<compile_context>
chip_gen: v7x
topology: tpu7x:2x2x1
jax: 0.10.0
libtpu: 0.0.40
codegen_flags: <defaults>
</compile_context>

<pallas_src>
import functools
import math

import jax
import jax.numpy as jnp
from jax import lax
from jax.experimental import pallas as pl
from jax.experimental.pallas import tpu as pltpu


_TCHUNK = 8  # time-chunk length streamed through the encoder


# ----------------------------- small helpers -------------------------------

@functools.lru_cache(maxsize=None)
def _vmem_limit_bytes():
    """Generation-aware scoped-VMEM limit (~2/3 of physical, capped)."""
    cap = 128 * 1024 * 1024
    try:
        info = pltpu.get_tpu_info()
        cap = int(getattr(info, "vmem_capacity_bytes", cap))
    except Exception:
        pass
    return min(int(cap * 2 // 3), 100 * 1024 * 1024)


def _mosaic_params(dimension_semantics):
    return pltpu.CompilerParams(dimension_semantics=dimension_semantics,
                                vmem_limit_bytes=_vmem_limit_bytes())


def _full_spec(a):
    """Grid-invariant full-array BlockSpec (block index always 0)."""
    return pl.BlockSpec(a.shape, lambda i, _nd=a.ndim: (0,) * _nd)


def _pick_batch_block(b, rows_per_item, target_rows=512):
    """Largest divisor of b whose block keeps <= target rows (fills the MXU)."""
    best = 1
    for cand in range(1, b + 1):
        if b % cand == 0 and cand * rows_per_item <= max(target_rows,
                                                         rows_per_item):
            best = cand
    return best


def _log_softmax(y):
    y = y - jnp.max(y, axis=-1, keepdims=True)
    return y - jnp.log(jnp.sum(jnp.exp(y), axis=-1, keepdims=True))


def _bdot(a, w_ref, b_ref):
    """bf16 MXU matmul (weights pre-stored in bf16), f32 accumulate + f32 bias."""
    return (jnp.dot(a.astype(jnp.bfloat16), w_ref[...],
                    preferred_element_type=jnp.float32) + b_ref[...])


def _res_mlp(x, w0, b0, wa1, ba1, wb1, bb1, wa2, ba2, wb2, bb2):
    """Sequential(Linear, ResLayer, ResLayer) on (rows, s+z) -> (rows, hid)."""
    h0 = _bdot(x, w0, b0)
    t = jnp.maximum(_bdot(h0, wa1, ba1), 0.0)
    t = jnp.maximum(_bdot(t, wb1, bb1), 0.0)
    h1 = t + h0
    t = jnp.maximum(_bdot(h1, wa2, ba2), 0.0)
    t = jnp.maximum(_bdot(t, wb2, bb2), 0.0)
    return t + h1


# ----------------------------- encoder kernel ------------------------------

def _bilstm_encoder_kernel(xf_ref, xb_ref, mf_ref, mb_ref,
                           wihf_ref, wihb_ref, bf_ref, bb_ref,
                           whhf_ref, whhb_ref, wout_ref, bout_ref,
                           out_ref,
                           hf_ref, cf_ref, hb_ref, cb_ref, pf_ref, pb_ref,
                           *, tchunk):
    c = pl.program_id(0)
    hdim = whhf_ref.shape[0]
    bsz = xf_ref.shape[1]

    @pl.when(c == 0)
    def _init():
        zeros = jnp.zeros((bsz, hdim), jnp.float32)
        neg = jnp.full((bsz, hdim), -1e30, jnp.float32)
        hf_ref[...] = zeros
        cf_ref[...] = zeros
        hb_ref[...] = zeros
        cb_ref[...] = zeros
        pf_ref[...] = neg
        pb_ref[...] = neg

    def gates_to_hc(gates, c_prev):
        # Gate slices are lane-aligned whenever h_dim % 128 == 0 (512 in the
        # reference config); small h_dim only costs tiny relayouts.
        i = jax.nn.sigmoid(gates[:, 0 * hdim:1 * hdim])
        f = jax.nn.sigmoid(gates[:, 1 * hdim:2 * hdim])
        g = jnp.tanh(gates[:, 2 * hdim:3 * hdim])
        o = jax.nn.sigmoid(gates[:, 3 * hdim:4 * hdim])
        c_new = f * c_prev + i * g
        return o * jnp.tanh(c_new), c_new

    def step(j, carry):
        h_f, c_f, h_b, c_b, p_f, p_b = carry
        jb = tchunk - 1 - j                      # backward walks chunk in reverse

        # forward direction (pad positions only appear after the valid ones,
        # so masking the pool is sufficient)
        g_f = (jnp.dot(xf_ref[j], wihf_ref[...],
                       preferred_element_type=jnp.float32)
               + bf_ref[...]
               + jnp.dot(h_f.astype(jnp.bfloat16), whhf_ref[...],
                         preferred_element_type=jnp.float32))
        h_f, c_f = gates_to_hc(g_f, c_f)
        m_f = mf_ref[j]                          # (B, 1)
        p_f = jnp.maximum(p_f, jnp.where(m_f > 0.0, h_f, -1e30))

        # backward direction: zeroing h/c across padding reproduces
        # pack_padded_sequence semantics exactly (backward chain starts fresh
        # at t = l-1), assuming every l >= 1.
        g_b = (jnp.dot(xb_ref[jb], wihb_ref[...],
                       preferred_element_type=jnp.float32)
               + bb_ref[...]
               + jnp.dot(h_b.astype(jnp.bfloat16), whhb_ref[...],
                         preferred_element_type=jnp.float32))
        h_bn, c_bn = gates_to_hc(g_b, c_b)
        m_b = mb_ref[jb]
        p_b = jnp.maximum(p_b, jnp.where(m_b > 0.0, h_bn, -1e30))
        h_b = jnp.where(m_b > 0.0, h_bn, 0.0)
        c_b = jnp.where(m_b > 0.0, c_bn, 0.0)
        return h_f, c_f, h_b, c_b, p_f, p_b

    carry = (hf_ref[...], cf_ref[...], hb_ref[...], cb_ref[...],
             pf_ref[...], pb_ref[...])
    # Full unroll: lets the scheduler interleave the independent fwd/bwd chains
    # and the x@W_ih projections across steps, hiding MXU/EUP FIFO latency.
    h_f, c_f, h_b, c_b, p_f, p_b = lax.fori_loop(0, tchunk, step, carry,
                                                 unroll=True)
    hf_ref[...] = h_f
    cf_ref[...] = c_f
    hb_ref[...] = h_b
    cb_ref[...] = c_b
    pf_ref[...] = p_f
    pb_ref[...] = p_b

    @pl.when(c == pl.num_programs(0) - 1)
    def _finalize():
        # enc_out on concat([p_f, p_b]) as split matmuls (avoids the concat).
        out_ref[...] = (
            jnp.dot(p_f, wout_ref[:hdim, :], preferred_element_type=jnp.float32)
            + jnp.dot(p_b, wout_ref[hdim:, :],
                      preferred_element_type=jnp.float32)
            + bout_ref[...])


def pallas_bilstm_encoder(emb, mask, w_ih_f, w_ih_b, b_f, b_b,
                          w_hh_f, w_hh_b, w_out, b_out):
    n_pad, b, w_dim = emb.shape
    h_dim = w_hh_f.shape[0]
    z2 = w_out.shape[1]
    nc = n_pad // _TCHUNK

    seq_f = pl.BlockSpec((_TCHUNK, b, w_dim), lambda c: (c, 0, 0))
    seq_b = pl.BlockSpec((_TCHUNK, b, w_dim),
                         lambda c, _nc=nc: (_nc - 1 - c, 0, 0))
    msk_f = pl.BlockSpec((_TCHUNK, b, 1), lambda c: (c, 0, 0))
    msk_b = pl.BlockSpec((_TCHUNK, b, 1),
                         lambda c, _nc=nc: (_nc - 1 - c, 0, 0))
    w_specs = [_full_spec(a) for a in
               (w_ih_f, w_ih_b, b_f, b_b, w_hh_f, w_hh_b, w_out, b_out)]

    # TODO(synk): on v7x (2 TensorCores) the fwd/bwd chains could be split over
    # an extra parallel "direction" grid axis for ~2x on the recurrence.
    return pl.pallas_call(
        functools.partial(_bilstm_encoder_kernel, tchunk=_TCHUNK),
        out_shape=jax.ShapeDtypeStruct((b, z2), jnp.float32),
        grid=(nc,),
        in_specs=[seq_f, seq_b, msk_f, msk_b] + w_specs,
        out_specs=pl.BlockSpec((b, z2), lambda c: (0, 0)),
        scratch_shapes=[pltpu.VMEM((b, h_dim), jnp.float32) for _ in range(6)],
        compiler_params=_mosaic_params(("arbitrary",)),
    )(emb, emb, mask, mask, w_ih_f, w_ih_b, b_f, b_b, w_hh_f, w_hh_b,
      w_out, b_out)


# ----------------------------- terms kernel --------------------------------

def _term_kernel(emb_ref, z_ref, x_ref, w0, b0, wa1, ba1, wb1, bb1,
                 wa2, ba2, wb2, bb2, wo, bo, o_ref):
    bb = z_ref.shape[0]
    t_dim, s_dim = emb_ref.shape
    z_dim = z_ref.shape[2]
    n = x_ref.shape[2]
    vdim = wo.shape[1]

    emb_rows = jnp.broadcast_to(emb_ref[...][None], (bb, t_dim, s_dim)
                                ).reshape(bb * t_dim, s_dim)
    z_blk = z_ref[...][:, 0, :]                               # (bb, Z)
    z_rows = jnp.broadcast_to(z_blk[:, None, :], (bb, t_dim, z_dim)
                              ).reshape(bb * t_dim, z_dim)
    x_in = jnp.concatenate([emb_rows, z_rows], axis=-1)       # (bb*T, s+z)

    h = _res_mlp(x_in, w0, b0, wa1, ba1, wb1, bb1, wa2, ba2, wb2, bb2)
    logits = _bdot(h, wo, bo)                                  # (bb*T, V) f32

    logits3 = logits.reshape(bb, t_dim, vdim)
    mx = jnp.max(logits3, axis=-1, keepdims=True)
    lse = mx + jnp.log(jnp.sum(jnp.exp(logits3 - mx), axis=-1, keepdims=True))
    logp3 = logits3 - lse                                      # exact f32 log-softmax

    # Vocabulary gather as a bf16 MXU matmul (one-hot rows sum to 1, so the
    # lse subtraction rides through exactly); only the final log-prob value is
    # bf16-rounded.  The (bb, T, V) tensor never leaves VMEM and the result is
    # emitted directly in (B, N, T) layout (no XLA transpose afterwards).
    ids = x_ref[...][:, 0, :]                                  # (bb, N) int32
    onehot = (lax.broadcasted_iota(jnp.int32, (bb, n, vdim), 2)
              == ids[:, :, None]).astype(jnp.bfloat16)         # (bb, N, V)
    o_ref[...] = jnp.einsum('bnv,btv->bnt', onehot,
                            logp3.astype(jnp.bfloat16),
                            preferred_element_type=jnp.float32)


def pallas_terms(term_emb, z, x_tokens, mlp_params):
    b, z_dim = z.shape
    t_dim, s_dim = term_emb.shape
    n = x_tokens.shape[1]
    bb = _pick_batch_block(b, t_dim)
    z3 = z.reshape(b, 1, z_dim)
    x3 = x_tokens.reshape(b, 1, n)
    w_specs = [_full_spec(p) for p in mlp_params]
    return pl.pallas_call(
        _term_kernel,
        out_shape=jax.ShapeDtypeStruct((b, n, t_dim), jnp.float32),
        grid=(b // bb,),
        in_specs=[_full_spec(term_emb),
                  pl.BlockSpec((bb, 1, z_dim), lambda i: (i, 0, 0)),
                  pl.BlockSpec((bb, 1, n), lambda i: (i, 0, 0))] + w_specs,
        out_specs=pl.BlockSpec((bb, n, t_dim), lambda i: (i, 0, 0)),
        compiler_params=_mosaic_params(("parallel",)),
    )(term_emb, z3, x3, *mlp_params)


# ----------------------------- rules + roots kernel ------------------------

def _rules_roots_kernel(ntemb_ref, remb_ref, z_ref, wr, br,
                        w0, b0, wa1, ba1, wb1, bb1, wa2, ba2, wb2, bb2, wo, bo,
                        rule_ref, root_ref):
    bb = z_ref.shape[0]
    nt, s_dim = ntemb_ref.shape
    z_dim = z_ref.shape[2]
    z_blk = z_ref[...][:, 0, :]                                # (bb, Z)

    # rules: Linear + log_softmax on (bb*NT) rows
    emb_rows = jnp.broadcast_to(ntemb_ref[...][None], (bb, nt, s_dim)
                                ).reshape(bb * nt, s_dim)
    z_rows = jnp.broadcast_to(z_blk[:, None, :], (bb, nt, z_dim)
                              ).reshape(bb * nt, z_dim)
    x_rule = jnp.concatenate([emb_rows, z_rows], axis=-1)      # (bb*NT, s+z)
    rule_lp = _log_softmax(_bdot(x_rule, wr, br))              # (bb*NT, NT_T^2)
    rule_ref[...] = rule_lp.reshape(bb, nt, rule_ref.shape[2])

    # roots: tiny MLP head folded into the same kernel (no extra launch)
    x_root = jnp.concatenate(
        [jnp.broadcast_to(remb_ref[...], (bb, s_dim)), z_blk], axis=-1)
    hr = _res_mlp(x_root, w0, b0, wa1, ba1, wb1, bb1, wa2, ba2, wb2, bb2)
    root_ref[...] = _log_softmax(_bdot(hr, wo, bo))[:, None, :]


def pallas_rules_roots(nonterm_emb, root_emb, z, rule_params, root_mlp_params):
    b, z_dim = z.shape
    nt, s_dim = nonterm_emb.shape
    w_r, b_r = rule_params
    out_rules = w_r.shape[1]
    n_root = root_mlp_params[-2].shape[1]
    bb = _pick_batch_block(b, nt)
    z3 = z.reshape(b, 1, z_dim)
    w_specs = ([_full_spec(w_r), _full_spec(b_r)]
               + [_full_spec(p) for p in root_mlp_params])
    return pl.pallas_call(
        _rules_roots_kernel,
        out_shape=(jax.ShapeDtypeStruct((b, nt, out_rules), jnp.float32),
                   jax.ShapeDtypeStruct((b, 1, n_root), jnp.float32)),
        grid=(b // bb,),
        in_specs=[_full_spec(nonterm_emb), _full_spec(root_emb),
                  pl.BlockSpec((bb, 1, z_dim), lambda i: (i, 0, 0))] + w_specs,
        out_specs=(pl.BlockSpec((bb, nt, out_rules), lambda i: (i, 0, 0)),
                   pl.BlockSpec((bb, 1, n_root), lambda i: (i, 0, 0))),
        compiler_params=_mosaic_params(("parallel",)),
    )(nonterm_emb, root_emb, z3, w_r, b_r, *root_mlp_params)


# ----------------------------- parameters ----------------------------------

def init_params(key, V, NT, T, h_dim, w_dim, z_dim, s_dim):
    keys = iter(jax.random.split(key, 64))

    def randn(shape):
        return jax.random.normal(next(keys), shape, dtype=jnp.float32)

    def linear(in_dim, out_dim, w_dtype=jnp.bfloat16):
        scale = 1.0 / math.sqrt(in_dim)
        w = (randn((in_dim, out_dim)) * scale).astype(w_dtype)
        b = randn((1, out_dim)) * scale
        return w, b

    def res_mlp(in_dim, hid, out_dim):
        return (linear(in_dim, hid) + linear(hid, hid) + linear(hid, hid)
                + linear(hid, hid) + linear(hid, hid) + linear(hid, out_dim))

    def flat(pairs):
        out = []
        for w, b in zip(pairs[0::2], pairs[1::2]):
            out.extend([w, b])
        return tuple(out)

    # NOTE: normal * 1/sqrt(fan_in) init, not PyTorch's uniform init (no
    # numerical parity with the reference at init; semantics are identical).
    # Big matmul weights stored once in bf16; biases / tiny heads in f32.
    p = {}
    p["root_emb"] = randn((1, s_dim))
    p["term_emb"] = randn((T, s_dim))
    p["nonterm_emb"] = randn((NT, s_dim))
    p["rule_mlp"] = linear(s_dim + z_dim, (NT + T) ** 2)
    p["root_mlp"] = flat(res_mlp(s_dim + z_dim, s_dim, NT))
    p["term_mlp"] = flat(res_mlp(s_dim + z_dim, s_dim, V))

    p["enc_emb"] = randn((V, w_dim)).astype(jnp.bfloat16)
    sc = 1.0 / math.sqrt(h_dim)
    # b_f / b_b hold (b_ih + b_hh) folded for each direction.
    p["w_ih_f"] = (randn((w_dim, 4 * h_dim)) * sc).astype(jnp.bfloat16)
    p["w_ih_b"] = (randn((w_dim, 4 * h_dim)) * sc).astype(jnp.bfloat16)
    p["b_f"] = randn((1, 4 * h_dim)) * sc
    p["b_b"] = randn((1, 4 * h_dim)) * sc
    p["w_hh_f"] = (randn((h_dim, 4 * h_dim)) * sc).astype(jnp.bfloat16)
    p["w_hh_b"] = (randn((h_dim, 4 * h_dim)) * sc).astype(jnp.bfloat16)
    p["enc_out"] = linear(2 * h_dim, 2 * z_dim, w_dtype=jnp.float32)
    return p


# ----------------------------- forward pass --------------------------------

def compound_cfg_forward(params, x, l, *, V, NT, T, h_dim, w_dim, z_dim, s_dim):
    b, n = x.shape
    NT_T = NT + T
    # TODO(synk): z_dim == 0 branch of the reference module is not implemented.

    # ---- encoder: embedding lookup (XLA) -> streamed BiLSTM/pool/enc_out ---
    n_pad = pl.cdiv(n, _TCHUNK) * _TCHUNK
    x_tm = x.T                                               # (N, B) time-major
    if n_pad > n:
        x_tm = jnp.concatenate(
            [x_tm, jnp.zeros((n_pad - n, b), x.dtype)], axis=0)
    emb = jnp.take(params["enc_emb"], x_tm, axis=0)          # (Np, B, W) bf16

    t_idx = jnp.arange(n_pad, dtype=jnp.int32)[:, None]
    mask = (t_idx < l[None, :]).astype(jnp.float32)[:, :, None]  # (Np, B, 1)

    w_out, b_out = params["enc_out"]
    mean_lvar = pallas_bilstm_encoder(
        emb, mask, params["w_ih_f"], params["w_ih_b"], params["b_f"],
        params["b_b"], params["w_hh_f"], params["w_hh_b"], w_out, b_out)
    mean = mean_lvar[:, :z_dim]
    lvar = mean_lvar[:, z_dim:]
    kl = jnp.sum(-0.5 * (lvar - mean * mean - jnp.exp(lvar) + 1.0), axis=-1)

    # eval-mode: z = mean.
    # TODO(synk): training-mode reparameterization (z = mean + exp(0.5*lvar)*eps)
    z = mean

    # ---- terms: (B, N, T) emitted lane-dense directly by the kernel --------
    terms_ll = pallas_terms(params["term_emb"], z, x, params["term_mlp"])

    # ---- rules (B, NT, NT_T, NT_T) + roots (B, NT) in one kernel -----------
    rules_flat, roots3 = pallas_rules_roots(
        params["nonterm_emb"], params["root_emb"], z,
        params["rule_mlp"], params["root_mlp"])
    rules_ll = rules_flat.reshape(b, NT, NT_T, NT_T)
    roots_ll = roots3.reshape(b, NT)

    return (terms_ll, rules_ll, roots_ll), kl


# ----------------------------- main -----------------------------------------

if __name__ == "__main__":
    V, NT, T = 32, 4, 8
    h_dim = w_dim = 32
    z_dim = 16
    s_dim = 32
    b, n = 2, 8

    key = jax.random.PRNGKey(0)
    kp, kx = jax.random.split(key)
    params = init_params(kp, V, NT, T, h_dim, w_dim, z_dim, s_dim)
    x = jax.random.randint(kx, (b, n), 0, V, dtype=jnp.int32)
    l = jnp.array([n, n - 3], dtype=jnp.int32)

    fwd = jax.jit(functools.partial(compound_cfg_forward, V=V, NT=NT, T=T,
                                    h_dim=h_dim, w_dim=w_dim, z_dim=z_dim,
                                    s_dim=s_dim))
    (terms_ll, rules_ll, roots_ll), kl = fwd(params, x, l)
    jax.block_until_ready((terms_ll, rules_ll, roots_ll, kl))

    assert terms_ll.shape == (b, n, T)
    assert rules_ll.shape == (b, NT, NT + T, NT + T)
    assert roots_ll.shape == (b, NT)
    assert kl.shape == (b,)
    assert bool(jnp.all(jnp.isfinite(terms_ll)))
    assert bool(jnp.all(jnp.isfinite(rules_ll)))
    assert bool(jnp.all(jnp.isfinite(roots_ll)))
    assert bool(jnp.all(jnp.isfinite(kl)))
    print("KERNEL_OK")
</pallas_src>

<mosaic_0001>
module attributes {stable_mosaic.version = 11 : i64} {
  func.func @_rules_roots_kernel(%arg0: i32, %arg1: memref<4x32xf32, #tpu.memory_space<vmem>>, %arg2: memref<1x32xf32, #tpu.memory_space<vmem>>, %arg3: memref<2x1x16xf32, #tpu.memory_space<vmem>>, %arg4: memref<48x144xbf16, #tpu.memory_space<vmem>>, %arg5: memref<1x144xf32, #tpu.memory_space<vmem>>, %arg6: memref<48x32xbf16, #tpu.memory_space<vmem>>, %arg7: memref<1x32xf32, #tpu.memory_space<vmem>>, %arg8: memref<32x32xbf16, #tpu.memory_space<vmem>>, %arg9: memref<1x32xf32, #tpu.memory_space<vmem>>, %arg10: memref<32x32xbf16, #tpu.memory_space<vmem>>, %arg11: memref<1x32xf32, #tpu.memory_space<vmem>>, %arg12: memref<32x32xbf16, #tpu.memory_space<vmem>>, %arg13: memref<1x32xf32, #tpu.memory_space<vmem>>, %arg14: memref<32x32xbf16, #tpu.memory_space<vmem>>, %arg15: memref<1x32xf32, #tpu.memory_space<vmem>>, %arg16: memref<32x4xbf16, #tpu.memory_space<vmem>>, %arg17: memref<1x4xf32, #tpu.memory_space<vmem>>, %arg18: memref<2x4x144xf32, #tpu.memory_space<vmem>>, %arg19: memref<2x1x4xf32, #tpu.memory_space<vmem>>) attributes {dimension_semantics = [#tpu.dimension_semantics<parallel>], iteration_bounds = array<i64: 1>, scalar_prefetch = 0 : i64, scratch_operands = 0 : i64, tpu.core_type = #tpu.core_type<tc>, window_params = [{pipeline_mode = #tpu.pipeline_mode<synchronous>, transform_indices = @transform_0, window_bounds = array<i64: 4, 32>}, {pipeline_mode = #tpu.pipeline_mode<synchronous>, transform_indices = @transform_1, window_bounds = array<i64: 1, 32>}, {transform_indices = @transform_2, window_bounds = array<i64: 2, 1, 16>}, {pipeline_mode = #tpu.pipeline_mode<synchronous>, transform_indices = @transform_3, window_bounds = array<i64: 48, 144>}, {pipeline_mode = #tpu.pipeline_mode<synchronous>, transform_indices = @transform_4, window_bounds = array<i64: 1, 144>}, {pipeline_mode = #tpu.pipeline_mode<synchronous>, transform_indices = @transform_5, window_bounds = array<i64: 48, 32>}, {pipeline_mode = #tpu.pipeline_mode<synchronous>, transform_indices = @transform_6, window_bounds = array<i64: 1, 32>}, {pipeline_mode = #tpu.pipeline_mode<synchronous>, transform_indices = @transform_7, window_bounds = array<i64: 32, 32>}, {pipeline_mode = #tpu.pipeline_mode<synchronous>, transform_indices = @transform_8, window_bounds = array<i64: 1, 32>}, {pipeline_mode = #tpu.pipeline_mode<synchronous>, transform_indices = @transform_9, window_bounds = array<i64: 32, 32>}, {pipeline_mode = #tpu.pipeline_mode<synchronous>, transform_indices = @transform_10, window_bounds = array<i64: 1, 32>}, {pipeline_mode = #tpu.pipeline_mode<synchronous>, transform_indices = @transform_11, window_bounds = array<i64: 32, 32>}, {pipeline_mode = #tpu.pipeline_mode<synchronous>, transform_indices = @transform_12, window_bounds = array<i64: 1, 32>}, {pipeline_mode = #tpu.pipeline_mode<synchronous>, transform_indices = @transform_13, window_bounds = array<i64: 32, 32>}, {pipeline_mode = #tpu.pipeline_mode<synchronous>, transform_indices = @transform_14, window_bounds = array<i64: 1, 32>}, {pipeline_mode = #tpu.pipeline_mode<synchronous>, transform_indices = @transform_15, window_bounds = array<i64: 32, 4>}, {pipeline_mode = #tpu.pipeline_mode<synchronous>, transform_indices = @transform_16, window_bounds = array<i64: 1, 4>}, {transform_indices = @transform_17, window_bounds = array<i64: 2, 4, 144>}, {transform_indices = @transform_18, window_bounds = array<i64: 2, 1, 4>}]} {
    %c0 = arith.constant 0 : index
    %c0_0 = arith.constant 0 : index
    %c0_1 = arith.constant 0 : index
    %0 = vector.load %arg3[%c0, %c0_0, %c0_1] : memref<2x1x16xf32, #tpu.memory_space<vmem>>, vector<2x1x16xf32>
    %1 = vector.shape_cast %0 : vector<2x1x16xf32> to vector<2x16xf32>
    %c0_2 = arith.constant 0 : index
    %c0_3 = arith.constant 0 : index
    %2 = vector.load %arg1[%c0_2, %c0_3] : memref<4x32xf32, #tpu.memory_space<vmem>>, vector<4x32xf32>
    %3 = vector.shape_cast %2 : vector<4x32xf32> to vector<1x4x32xf32>
    %4 = vector.shape_cast %3 : vector<1x4x32xf32> to vector<1x4x32xf32>
    %5 = vector.broadcast %4 : vector<1x4x32xf32> to vector<2x4x32xf32>
    %6 = vector.shape_cast %5 : vector<2x4x32xf32> to vector<8x32xf32>
    %7 = vector.shape_cast %1 : vector<2x16xf32> to vector<2x1x16xf32>
    %8 = vector.shape_cast %7 : vector<2x1x16xf32> to vector<2x1x16xf32>
    %9 = vector.broadcast %8 : vector<2x1x16xf32> to vector<2x4x16xf32>
    %10 = vector.shape_cast %9 : vector<2x4x16xf32> to vector<8x16xf32>
    %11 = tpu.concatenate %6, %10 in 1 : vector<8x32xf32>, vector<8x16xf32> -> vector<8x48xf32>
    %12 = arith.truncf %11 : vector<8x48xf32> to vector<8x48xbf16>
    %c0_4 = arith.constant 0 : index
    %c0_5 = arith.constant 0 : index
    %13 = vector.load %arg4[%c0_4, %c0_5] : memref<48x144xbf16, #tpu.memory_space<vmem>>, vector<48x144xbf16>
    %cst = arith.constant dense<0.000000e+00> : vector<8x144xf32>
    %14 = tpu.matmul %12, %13, %cst {dimension_numbers = #tpu.dot_dimension_numbers<[1], [0], [0], [1], [0, 0, 1, 1], [], []>} : vector<8x48xbf16>, vector<48x144xbf16>, vector<8x144xf32> -> vector<8x144xf32>
    %c0_6 = arith.constant 0 : index
    %c0_7 = arith.constant 0 : index
    %15 = vector.load %arg5[%c0_6, %c0_7] : memref<1x144xf32, #tpu.memory_space<vmem>>, vector<1x144xf32>
    %16 = vector.broadcast %15 : vector<1x144xf32> to vector<8x144xf32>
    %17 = arith.addf %14, %16 : vector<8x144xf32>
    %cst_8 = arith.constant dense<0xFF800000> : vector<8xf32>
    %18 = vector.multi_reduction <maximumf>, %17, %cst_8 [1] : vector<8x144xf32> to vector<8xf32>
    %19 = vector.shape_cast %18 : vector<8xf32> to vector<8x1xf32>
    %20 = vector.broadcast %19 : vector<8x1xf32> to vector<8x144xf32>
    %21 = arith.subf %17, %20 : vector<8x144xf32>
    %22 = math.exp %21 : vector<8x144xf32>
    %cst_9 = arith.constant dense<0.000000e+00> : vector<8xf32>
    %23 = vector.multi_reduction <add>, %22, %cst_9 [1] : vector<8x144xf32> to vector<8xf32>
    %24 = vector.shape_cast %23 : vector<8xf32> to vector<8x1xf32>
    %25 = math.log %24 : vector<8x1xf32>
    %26 = vector.broadcast %25 : vector<8x1xf32> to vector<8x144xf32>
    %27 = arith.subf %21, %26 : vector<8x144xf32>
    %28 = vector.shape_cast %27 : vector<8x144xf32> to vector<2x4x144xf32>
    %c0_10 = arith.constant 0 : index
    %c0_11 = arith.constant 0 : index
    %c0_12 = arith.constant 0 : index
    %29 = vector.load %arg18[%c0_10, %c0_11, %c0_12] : memref<2x4x144xf32, #tpu.memory_space<vmem>>, vector<2x4x144xf32>
    tpu.vector_store %arg18[%c0_10, %c0_11, %c0_12], %28 {strides = array<i32>} : memref<2x4x144xf32, #tpu.memory_space<vmem>>, vector<2x4x144xf32>,
    %c0_13 = arith.constant 0 : index
    %c0_14 = arith.constant 0 : index
    %30 = vector.load %arg2[%c0_13, %c0_14] : memref<1x32xf32, #tpu.memory_space<vmem>>, vector<1x32xf32>
    %31 = vector.shape_cast %30 : vector<1x32xf32> to vector<1x32xf32>
    %32 = vector.broadcast %31 : vector<1x32xf32> to vector<2x32xf32>
    %33 = tpu.concatenate %32, %1 in 1 : vector<2x32xf32>, vector<2x16xf32> -> vector<2x48xf32>
    %34 = arith.truncf %33 : vector<2x48xf32> to vector<2x48xbf16>
    %c0_15 = arith.constant 0 : index
    %c0_16 = arith.constant 0 : index
    %35 = vector.load %arg6[%c0_15, %c0_16] : memref<48x32xbf16, #tpu.memory_space<vmem>>, vector<48x32xbf16>
    %cst_17 = arith.constant dense<0.000000e+00> : vector<2x32xf32>
    %36 = tpu.matmul %34, %35, %cst_17 {dimension_numbers = #tpu.dot_dimension_numbers<[1], [0], [0], [1], [0, 0, 1, 1], [], []>} : vector<2x48xbf16>, vector<48x32xbf16>, vector<2x32xf32> -> vector<2x32xf32>
    %c0_18 = arith.constant 0 : index
    %c0_19 = arith.constant 0 : index
    %37 = vector.load %arg7[%c0_18, %c0_19] : memref<1x32xf32, #tpu.memory_space<vmem>>, vector<1x32xf32>
    %38 = vector.broadcast %37 : vector<1x32xf32> to vector<2x32xf32>
    %39 = arith.addf %36, %38 : vector<2x32xf32>
    %40 = arith.truncf %39 : vector<2x32xf32> to vector<2x32xbf16>
    %c0_20 = arith.constant 0 : index
    %c0_21 = arith.constant 0 : index
    %41 = vector.load %arg8[%c0_20, %c0_21] : memref<32x32xbf16, #tpu.memory_space<vmem>>, vector<32x32xbf16>
    %cst_22 = arith.constant dense<0.000000e+00> : vector<2x32xf32>
    %42 = tpu.matmul %40, %41, %cst_22 {dimension_numbers = #tpu.dot_dimension_numbers<[1], [0], [0], [1], [0, 0, 1, 1], [], []>} : vector<2x32xbf16>, vector<32x32xbf16>, vector<2x32xf32> -> vector<2x32xf32>
    %c0_23 = arith.constant 0 : index
    %c0_24 = arith.constant 0 : index
    %43 = vector.load %arg9[%c0_23, %c0_24] : memref<1x32xf32, #tpu.memory_space<vmem>>, vector<1x32xf32>
    %44 = vector.broadcast %43 : vector<1x32xf32> to vector<2x32xf32>
    %45 = arith.addf %42, %44 : vector<2x32xf32>
    %cst_25 = arith.constant 0.000000e+00 : f32
    %46 = vector.broadcast %cst_25 : f32 to vector<2x32xf32>
    %47 = arith.maximumf %45, %46 : vector<2x32xf32>
    %48 = arith.truncf %47 : vector<2x32xf32> to vector<2x32xbf16>
    %c0_26 = arith.constant 0 : index
    %c0_27 = arith.constant 0 : index
    %49 = vector.load %arg10[%c0_26, %c0_27] : memref<32x32xbf16, #tpu.memory_space<vmem>>, vector<32x32xbf16>
    %cst_28 = arith.constant dense<0.000000e+00> : vector<2x32xf32>
    %50 = tpu.matmul %48, %49, %cst_28 {dimension_numbers = #tpu.dot_dimension_numbers<[1], [0], [0], [1], [0, 0, 1, 1], [], []>} : vector<2x32xbf16>, vector<32x32xbf16>, vector<2x32xf32> -> vector<2x32xf32>
    %c0_29 = arith.constant 0 : index
    %c0_30 = arith.constant 0 : index
    %51 = vector.load %arg11[%c0_29, %c0_30] : memref<1x32xf32, #tpu.memory_space<vmem>>, vector<1x32xf32>
    %52 = vector.broadcast %51 : vector<1x32xf32> to vector<2x32xf32>
    %53 = arith.addf %50, %52 : vector<2x32xf32>
    %cst_31 = arith.constant 0.000000e+00 : f32
    %54 = vector.broadcast %cst_31 : f32 to vector<2x32xf32>
    %55 = arith.maximumf %53, %54 : vector<2x32xf32>
    %56 = arith.addf %55, %39 : vector<2x32xf32>
    %57 = arith.truncf %56 : vector<2x32xf32> to vector<2x32xbf16>
    %c0_32 = arith.constant 0 : index
    %c0_33 = arith.constant 0 : index
    %58 = vector.load %arg12[%c0_32, %c0_33] : memref<32x32xbf16, #tpu.memory_space<vmem>>, vector<32x32xbf16>
    %cst_34 = arith.constant dense<0.000000e+00> : vector<2x32xf32>
    %59 = tpu.matmul %57, %58, %cst_34 {dimension_numbers = #tpu.dot_dimension_numbers<[1], [0], [0], [1], [0, 0, 1, 1], [], []>} : vector<2x32xbf16>, vector<32x32xbf16>, vector<2x32xf32> -> vector<2x32xf32>
    %c0_35 = arith.constant 0 : index
    %c0_36 = arith.constant 0 : index
    %60 = vector.load %arg13[%c0_35, %c0_36] : memref<1x32xf32, #tpu.memory_space<vmem>>, vector<1x32xf32>
    %61 = vector.broadcast %60 : vector<1x32xf32> to vector<2x32xf32>
    %62 = arith.addf %59, %61 : vector<2x32xf32>
    %cst_37 = arith.constant 0.000000e+00 : f32
    %63 = vector.broadcast %cst_37 : f32 to vector<2x32xf32>
    %64 = arith.maximumf %62, %63 : vector<2x32xf32>
    %65 = arith.truncf %64 : vector<2x32xf32> to vector<2x32xbf16>
    %c0_38 = arith.constant 0 : index
    %c0_39 = arith.constant 0 : index
    %66 = vector.load %arg14[%c0_38, %c0_39] : memref<32x32xbf16, #tpu.memory_space<vmem>>, vector<32x32xbf16>
    %cst_40 = arith.constant dense<0.000000e+00> : vector<2x32xf32>
    %67 = tpu.matmul %65, %66, %cst_40 {dimension_numbers = #tpu.dot_dimension_numbers<[1], [0], [0], [1], [0, 0, 1, 1], [], []>} : vector<2x32xbf16>, vector<32x32xbf16>, vector<2x32xf32> -> vector<2x32xf32>
    %c0_41 = arith.constant 0 : index
    %c0_42 = arith.constant 0 : index
    %68 = vector.load %arg15[%c0_41, %c0_42] : memref<1x32xf32, #tpu.memory_space<vmem>>, vector<1x32xf32>
    %69 = vector.broadcast %68 : vector<1x32xf32> to vector<2x32xf32>
    %70 = arith.addf %67, %69 : vector<2x32xf32>
    %cst_43 = arith.constant 0.000000e+00 : f32
    %71 = vector.broadcast %cst_43 : f32 to vector<2x32xf32>
    %72 = arith.maximumf %70, %71 : vector<2x32xf32>
    %73 = arith.addf %72, %56 : vector<2x32xf32>
    %74 = arith.truncf %73 : vector<2x32xf32> to vector<2x32xbf16>
    %c0_44 = arith.constant 0 : index
    %c0_45 = arith.constant 0 : index
    %75 = vector.load %arg16[%c0_44, %c0_45] : memref<32x4xbf16, #tpu.memory_space<vmem>>, vector<32x4xbf16>
    %cst_46 = arith.constant dense<0.000000e+00> : vector<2x4xf32>
    %76 = tpu.matmul %74, %75, %cst_46 {dimension_numbers = #tpu.dot_dimension_numbers<[1], [0], [0], [1], [0, 0, 1, 1], [], []>} : vector<2x32xbf16>, vector<32x4xbf16>, vector<2x4xf32> -> vector<2x4xf32>
    %c0_47 = arith.constant 0 : index
    %c0_48 = arith.constant 0 : index
    %77 = vector.load %arg17[%c0_47, %c0_48] : memref<1x4xf32, #tpu.memory_space<vmem>>, vector<1x4xf32>
    %78 = vector.broadcast %77 : vector<1x4xf32> to vector<2x4xf32>
    %79 = arith.addf %76, %78 : vector<2x4xf32>
    %cst_49 = arith.constant dense<0xFF800000> : vector<2xf32>
    %80 = vector.multi_reduction <maximumf>, %79, %cst_49 [1] : vector<2x4xf32> to vector<2xf32>
    %81 = vector.shape_cast %80 : vector<2xf32> to vector<2x1xf32>
    %82 = vector.broadcast %81 : vector<2x1xf32> to vector<2x4xf32>
    %83 = arith.subf %79, %82 : vector<2x4xf32>
    %84 = math.exp %83 : vector<2x4xf32>
    %cst_50 = arith.constant dense<0.000000e+00> : vector<2xf32>
    %85 = vector.multi_reduction <add>, %84, %cst_50 [1] : vector<2x4xf32> to vector<2xf32>
    %86 = vector.shape_cast %85 : vector<2xf32> to vector<2x1xf32>
    %87 = math.log %86 : vector<2x1xf32>
    %88 = vector.broadcast %87 : vector<2x1xf32> to vector<2x4xf32>
    %89 = arith.subf %83, %88 : vector<2x4xf32>
    %90 = vector.shape_cast %89 : vector<2x4xf32> to vector<2x1x4xf32>
    %c0_51 = arith.constant 0 : index
    %c0_52 = arith.constant 0 : index
    %c0_53 = arith.constant 0 : index
    %91 = vector.load %arg19[%c0_51, %c0_52, %c0_53] : memref<2x1x4xf32, #tpu.memory_space<vmem>>, vector<2x1x4xf32>
    tpu.vector_store %arg19[%c0_51, %c0_52, %c0_53], %90 {strides = array<i32>} : memref<2x1x4xf32, #tpu.memory_space<vmem>>, vector<2x1x4xf32>,
    return
  }
  func.func @transform_0(%arg0: i32) -> (i32, i32) {
    %c0_i32 = arith.constant 0 : i32
    %c0_i32_0 = arith.constant 0 : i32
    %c0_i32_1 = arith.constant 0 : i32
    return %c0_i32, %c0_i32_0 : i32, i32
  }
  func.func @transform_1(%arg0: i32) -> (i32, i32) {
    %c0_i32 = arith.constant 0 : i32
    %c0_i32_0 = arith.constant 0 : i32
    %c0_i32_1 = arith.constant 0 : i32
    return %c0_i32, %c0_i32_0 : i32, i32
  }
  func.func @transform_2(%arg0: i32) -> (i32, i32, i32) {
    %c0_i32 = arith.constant 0 : i32
    %c0_i32_0 = arith.constant 0 : i32
    %c0_i32_1 = arith.constant 0 : i32
    return %arg0, %c0_i32, %c0_i32_0 : i32, i32, i32
  }
  func.func @transform_3(%arg0: i32) -> (i32, i32) {
    %c0_i32 = arith.constant 0 : i32
    %c0_i32_0 = arith.constant 0 : i32
    %c0_i32_1 = arith.constant 0 : i32
    return %c0_i32, %c0_i32_0 : i32, i32
  }
  func.func @transform_4(%arg0: i32) -> (i32, i32) {
    %c0_i32 = arith.constant 0 : i32
    %c0_i32_0 = arith.constant 0 : i32
    %c0_i32_1 = arith.constant 0 : i32
    return %c0_i32, %c0_i32_0 : i32, i32
  }
  func.func @transform_5(%arg0: i32) -> (i32, i32) {
    %c0_i32 = arith.constant 0 : i32
    %c0_i32_0 = arith.constant 0 : i32
    %c0_i32_1 = arith.constant 0 : i32
    return %c0_i32, %c0_i32_0 : i32, i32
  }
  func.func @transform_6(%arg0: i32) -> (i32, i32) {
    %c0_i32 = arith.constant 0 : i32
    %c0_i32_0 = arith.constant 0 : i32
    %c0_i32_1 = arith.constant 0 : i32
    return %c0_i32, %c0_i32_0 : i32, i32
  }
  func.func @transform_7(%arg0: i32) -> (i32, i32) {
    %c0_i32 = arith.constant 0 : i32
    %c0_i32_0 = arith.constant 0 : i32
    %c0_i32_1 = arith.constant 0 : i32
    return %c0_i32, %c0_i32_0 : i32, i32
  }
  func.func @transform_8(%arg0: i32) -> (i32, i32) {
    %c0_i32 = arith.constant 0 : i32
    %c0_i32_0 = arith.constant 0 : i32
    %c0_i32_1 = arith.constant 0 : i32
    return %c0_i32, %c0_i32_0 : i32, i32
  }
  func.func @transform_9(%arg0: i32) -> (i32, i32) {
    %c0_i32 = arith.constant 0 : i32
    %c0_i32_0 = arith.constant 0 : i32
    %c0_i32_1 = arith.constant 0 : i32
    return %c0_i32, %c0_i32_0 : i32, i32
  }
  func.func @transform_10(%arg0: i32) -> (i32, i32) {
    %c0_i32 = arith.constant 0 : i32
    %c0_i32_0 = arith.constant 0 : i32
    %c0_i32_1 = arith.constant 0 : i32
    return %c0_i32, %c0_i32_0 : i32, i32
  }
  func.func @transform_11(%arg0: i32) -> (i32, i32) {
    %c0_i32 = arith.constant 0 : i32
    %c0_i32_0 = arith.constant 0 : i32
    %c0_i32_1 = arith.constant 0 : i32
    return %c0_i32, %c0_i32_0 : i32, i32
  }
  func.func @transform_12(%arg0: i32) -> (i32, i32) {
    %c0_i32 = arith.constant 0 : i32
    %c0_i32_0 = arith.constant 0 : i32
    %c0_i32_1 = arith.constant 0 : i32
    return %c0_i32, %c0_i32_0 : i32, i32
  }
  func.func @transform_13(%arg0: i32) -> (i32, i32) {
    %c0_i32 = arith.constant 0 : i32
    %c0_i32_0 = arith.constant 0 : i32
    %c0_i32_1 = arith.constant 0 : i32
    return %c0_i32, %c0_i32_0 : i32, i32
  }
  func.func @transform_14(%arg0: i32) -> (i32, i32) {
    %c0_i32 = arith.constant 0 : i32
    %c0_i32_0 = arith.constant 0 : i32
    %c0_i32_1 = arith.constant 0 : i32
    return %c0_i32, %c0_i32_0 : i32, i32
  }
  func.func @transform_15(%arg0: i32) -> (i32, i32) {
    %c0_i32 = arith.constant 0 : i32
    %c0_i32_0 = arith.constant 0 : i32
    %c0_i32_1 = arith.constant 0 : i32
    return %c0_i32, %c0_i32_0 : i32, i32
  }
  func.func @transform_16(%arg0: i32) -> (i32, i32) {
    %c0_i32 = arith.constant 0 : i32
    %c0_i32_0 = arith.constant 0 : i32
    %c0_i32_1 = arith.constant 0 : i32
    return %c0_i32, %c0_i32_0 : i32, i32
  }
  func.func @transform_17(%arg0: i32) -> (i32, i32, i32) {
    %c0_i32 = arith.constant 0 : i32
    %c0_i32_0 = arith.constant 0 : i32
    %c0_i32_1 = arith.constant 0 : i32
    return %arg0, %c0_i32, %c0_i32_0 : i32, i32, i32
  }
  func.func @transform_18(%arg0: i32) -> (i32, i32, i32) {
    %c0_i32 = arith.constant 0 : i32
    %c0_i32_0 = arith.constant 0 : i32
    %c0_i32_1 = arith.constant 0 : i32
    return %arg0, %c0_i32, %c0_i32_0 : i32, i32, i32
  }
}

module attributes {stable_mosaic.version = 11 : i64} {
  func.func @_bilstm_encoder_kernel(%arg0: i32, %arg1: memref<8x2x32xbf16, #tpu.memory_space<vmem>>, %arg2: memref<8x2x32xbf16, #tpu.memory_space<vmem>>, %arg3: memref<8x2x1xf32, #tpu.memory_space<vmem>>, %arg4: memref<8x2x1xf32, #tpu.memory_space<vmem>>, %arg5: memref<32x128xbf16, #tpu.memory_space<vmem>>, %arg6: memref<32x128xbf16, #tpu.memory_space<vmem>>, %arg7: memref<1x128xf32, #tpu.memory_space<vmem>>, %arg8: memref<1x128xf32, #tpu.memory_space<vmem>>, %arg9: memref<32x128xbf16, #tpu.memory_space<vmem>>, %arg10: memref<32x128xbf16, #tpu.memory_space<vmem>>, %arg11: memref<64x32xf32, #tpu.memory_space<vmem>>, %arg12: memref<1x32xf32, #tpu.memory_space<vmem>>, %arg13: memref<2x32xf32, #tpu.memory_space<vmem>>, %arg14: memref<2x32xf32, #tpu.memory_space<vmem>>, %arg15: memref<2x32xf32, #tpu.memory_space<vmem>>, %arg16: memref<2x32xf32, #tpu.memory_space<vmem>>, %arg17: memref<2x32xf32, #tpu.memory_space<vmem>>, %arg18: memref<2x32xf32, #tpu.memory_space<vmem>>, %arg19: memref<2x32xf32, #tpu.memory_space<vmem>>) attributes {dimension_semantics = [#tpu.dimension_semantics<arbitrary>], iteration_bounds = array<i64: 1>, scalar_prefetch = 0 : i64, scratch_operands = 6 : i64, tpu.core_type = #tpu.core_type<tc>, window_params = [{transform_indices = @transform_0, window_bounds = array<i64: 8, 2, 32>}, {transform_indices = @transform_1, window_bounds = array<i64: 8, 2, 32>}, {transform_indices = @transform_2, window_bounds = array<i64: 8, 2, 1>}, {transform_indices = @transform_3, window_bounds = array<i64: 8, 2, 1>}, {pipeline_mode = #tpu.pipeline_mode<synchronous>, transform_indices = @transform_4, window_bounds = array<i64: 32, 128>}, {pipeline_mode = #tpu.pipeline_mode<synchronous>, transform_indices = @transform_5, window_bounds = array<i64: 32, 128>}, {pipeline_mode = #tpu.pipeline_mode<synchronous>, transform_indices = @transform_6, window_bounds = array<i64: 1, 128>}, {pipeline_mode = #tpu.pipeline_mode<synchronous>, transform_indices = @transform_7, window_bounds = array<i64: 1, 128>}, {pipeline_mode = #tpu.pipeline_mode<synchronous>, transform_indices = @transform_8, window_bounds = array<i64: 32, 128>}, {pipeline_mode = #tpu.pipeline_mode<synchronous>, transform_indices = @transform_9, window_bounds = array<i64: 32, 128>}, {pipeline_mode = #tpu.pipeline_mode<synchronous>, transform_indices = @transform_10, window_bounds = array<i64: 64, 32>}, {pipeline_mode = #tpu.pipeline_mode<synchronous>, transform_indices = @transform_11, window_bounds = array<i64: 1, 32>}, {pipeline_mode = #tpu.pipeline_mode<synchronous>, transform_indices = @transform_12, window_bounds = array<i64: 2, 32>}]} {
    %c0_i32 = arith.constant 0 : i32
    %0 = arith.cmpi eq, %arg0, %c0_i32 : i32
    %1 = arith.extui %0 : i1 to i32
    %c0_i32_0 = arith.constant 0 : i32
    %2 = arith.cmpi ne, %1, %c0_i32_0 : i32
    scf.if %2 {
      %cst_338 = arith.constant 0.000000e+00 : f32
      %874 = vector.broadcast %cst_338 : f32 to vector<2x32xf32>
      %cst_339 = arith.constant -1.000000e+30 : f32
      %875 = vector.broadcast %cst_339 : f32 to vector<2x32xf32>
      %c0_340 = arith.constant 0 : index
      %c0_341 = arith.constant 0 : index
      %876 = vector.load %arg14[%c0_340, %c0_341] : memref<2x32xf32, #tpu.memory_space<vmem>>, vector<2x32xf32>
      tpu.vector_store %arg14[%c0_340, %c0_341], %874 {strides = array<i32>} : memref<2x32xf32, #tpu.memory_space<vmem>>, vector<2x32xf32>,
      %c0_342 = arith.constant 0 : index
      %c0_343 = arith.constant 0 : index
      %877 = vector.load %arg15[%c0_342, %c0_343] : memref<2x32xf32, #tpu.memory_space<vmem>>, vector<2x32xf32>
      tpu.vector_store %arg15[%c0_342, %c0_343], %874 {strides = array<i32>} : memref<2x32xf32, #tpu.memory_space<vmem>>, vector<2x32xf32>,
      %c0_344 = arith.constant 0 : index
      %c0_345 = arith.constant 0 : index
      %878 = vector.load %arg16[%c0_344, %c0_345] : memref<2x32xf32, #tpu.memory_space<vmem>>, vector<2x32xf32>
      tpu.vector_store %arg16[%c0_344, %c0_345], %874 {strides = array<i32>} : memref<2x32xf32, #tpu.memory_space<vmem>>, vector<2x32xf32>,
      %c0_346 = arith.constant 0 : index
      %c0_347 = arith.constant 0 : index
      %879 = vector.load %arg17[%c0_346, %c0_347] : memref<2x32xf32, #tpu.memory_space<vmem>>, vector<2x32xf32>
      tpu.vector_store %arg17[%c0_346, %c0_347], %874 {strides = array<i32>} : memref<2x32xf32, #tpu.memory_space<vmem>>, vector<2x32xf32>,
      %c0_348 = arith.constant 0 : index
      %c0_349 = arith.constant 0 : index
      %880 = vector.load %arg18[%c0_348, %c0_349] : memref<2x32xf32, #tpu.memory_space<vmem>>, vector<2x32xf32>
      tpu.vector_store %arg18[%c0_348, %c0_349], %875 {strides = array<i32>} : memref<2x32xf32, #tpu.memory_space<vmem>>, vector<2x32xf32>,
      %c0_350 = arith.constant 0 : index
      %c0_351 = arith.constant 0 : index
      %881 = vector.load %arg19[%c0_350, %c0_351] : memref<2x32xf32, #tpu.memory_space<vmem>>, vector<2x32xf32>
      tpu.vector_store %arg19[%c0_350, %c0_351], %875 {strides = array<i32>} : memref<2x32xf32, #tpu.memory_space<vmem>>, vector<2x32xf32>,
    } else {
    }
    %c0 = arith.constant 0 : index
    %c0_1 = arith.constant 0 : index
    %3 = vector.load %arg14[%c0, %c0_1] : memref<2x32xf32, #tpu.memory_space<vmem>>, vector<2x32xf32>
    %c0_2 = arith.constant 0 : index
    %c0_3 = arith.constant 0 : index
    %4 = vector.load %arg15[%c0_2, %c0_3] : memref<2x32xf32, #tpu.memory_space<vmem>>, vector<2x32xf32>
    %c0_4 = arith.constant 0 : index
    %c0_5 = arith.constant 0 : index
    %5 = vector.load %arg16[%c0_4, %c0_5] : memref<2x32xf32, #tpu.memory_space<vmem>>, vector<2x32xf32>
    %c0_6 = arith.constant 0 : index
    %c0_7 = arith.constant 0 : index
    %6 = vector.load %arg17[%c0_6, %c0_7] : memref<2x32xf32, #tpu.memory_space<vmem>>, vector<2x32xf32>
    %c0_8 = arith.constant 0 : index
    %c0_9 = arith.constant 0 : index
    %7 = vector.load %arg18[%c0_8, %c0_9] : memref<2x32xf32, #tpu.memory_space<vmem>>, vector<2x32xf32>
    %c0_10 = arith.constant 0 : index
    %c0_11 = arith.constant 0 : index
    %8 = vector.load %arg19[%c0_10, %c0_11] : memref<2x32xf32, #tpu.memory_space<vmem>>, vector<2x32xf32>
    %c0_i32_12 = arith.constant 0 : i32
    %c7_i32 = arith.constant 7 : i32
    %9 = arith.subi %c7_i32, %c0_i32_12 : i32
    %10 = arith.index_cast %c0_i32_12 : i32 to index
    %c0_13 = arith.constant 0 : index
    %c0_14 = arith.constant 0 : index
    %11 = vector.load %arg1[%10, %c0_13, %c0_14] : memref<8x2x32xbf16, #tpu.memory_space<vmem>>, vector<1x2x32xbf16>
    %12 = vector.shape_cast %11 : vector<1x2x32xbf16> to vector<2x32xbf16>
    %c0_15 = arith.constant 0 : index
    %c0_16 = arith.constant 0 : index
    %13 = vector.load %arg5[%c0_15, %c0_16] : memref<32x128xbf16, #tpu.memory_space<vmem>>, vector<32x128xbf16>
    %cst = arith.constant dense<0.000000e+00> : vector<2x128xf32>
    %14 = tpu.matmul %12, %13, %cst {dimension_numbers = #tpu.dot_dimension_numbers<[1], [0], [0], [1], [0, 0, 1, 1], [], []>} : vector<2x32xbf16>, vector<32x128xbf16>, vector<2x128xf32> -> vector<2x128xf32>
    %c0_17 = arith.constant 0 : index
    %c0_18 = arith.constant 0 : index
    %15 = vector.load %arg7[%c0_17, %c0_18] : memref<1x128xf32, #tpu.memory_space<vmem>>, vector<1x128xf32>
    %16 = vector.broadcast %15 : vector<1x128xf32> to vector<2x128xf32>
    %17 = arith.addf %14, %16 : vector<2x128xf32>
    %18 = arith.truncf %3 : vector<2x32xf32> to vector<2x32xbf16>
    %c0_19 = arith.constant 0 : index
    %c0_20 = arith.constant 0 : index
    %19 = vector.load %arg9[%c0_19, %c0_20] : memref<32x128xbf16, #tpu.memory_space<vmem>>, vector<32x128xbf16>
    %cst_21 = arith.constant dense<0.000000e+00> : vector<2x128xf32>
    %20 = tpu.matmul %18, %19, %cst_21 {dimension_numbers = #tpu.dot_dimension_numbers<[1], [0], [0], [1], [0, 0, 1, 1], [], []>} : vector<2x32xbf16>, vector<32x128xbf16>, vector<2x128xf32> -> vector<2x128xf32>
    %21 = arith.addf %17, %20 : vector<2x128xf32>
    %22 = vector.extract_strided_slice %21 {offsets = [0, 0], sizes = [2, 32], strides = [1, 1]} : vector<2x128xf32> to vector<2x32xf32>
    %23 = arith.negf %22 : vector<2x32xf32>
    %24 = math.exp %23 : vector<2x32xf32>
    %cst_22 = arith.constant 1.000000e+00 : f32
    %25 = vector.broadcast %cst_22 : f32 to vector<2x32xf32>
    %26 = arith.addf %25, %24 : vector<2x32xf32>
    %27 = arith.divf %25, %26 : vector<2x32xf32>
    %28 = vector.extract_strided_slice %21 {offsets = [0, 32], sizes = [2, 32], strides = [1, 1]} : vector<2x128xf32> to vector<2x32xf32>
    %29 = arith.negf %28 : vector<2x32xf32>
    %30 = math.exp %29 : vector<2x32xf32>
    %cst_23 = arith.constant 1.000000e+00 : f32
    %31 = vector.broadcast %cst_23 : f32 to vector<2x32xf32>
    %32 = arith.addf %31, %30 : vector<2x32xf32>
    %33 = arith.divf %31, %32 : vector<2x32xf32>
    %34 = vector.extract_strided_slice %21 {offsets = [0, 64], sizes = [2, 32], strides = [1, 1]} : vector<2x128xf32> to vector<2x32xf32>
    %35 = math.tanh %34 : vector<2x32xf32>
    %36 = vector.extract_strided_slice %21 {offsets = [0, 96], sizes = [2, 32], strides = [1, 1]} : vector<2x128xf32> to vector<2x32xf32>
    %37 = arith.negf %36 : vector<2x32xf32>
    %38 = math.exp %37 : vector<2x32xf32>
    %cst_24 = arith.constant 1.000000e+00 : f32
    %39 = vector.broadcast %cst_24 : f32 to vector<2x32xf32>
    %40 = arith.addf %39, %38 : vector<2x32xf32>
    %41 = arith.divf %39, %40 : vector<2x32xf32>
    %42 = arith.mulf %33, %4 : vector<2x32xf32>
    %43 = arith.mulf %27, %35 : vector<2x32xf32>
    %44 = arith.addf %42, %43 : vector<2x32xf32>
    %45 = math.tanh %44 : vector<2x32xf32>
    %46 = arith.mulf %41, %45 : vector<2x32xf32>
    %47 = arith.index_cast %c0_i32_12 : i32 to index
    %c0_25 = arith.constant 0 : index
    %c0_26 = arith.constant 0 : index
    %48 = vector.load %arg3[%47, %c0_25, %c0_26] : memref<8x2x1xf32, #tpu.memory_space<vmem>>, vector<1x2x1xf32>
    %49 = vector.shape_cast %48 : vector<1x2x1xf32> to vector<2x1xf32>
    %cst_27 = arith.constant 0.000000e+00 : f32
    %50 = vector.broadcast %cst_27 : f32 to vector<2x1xf32>
    %51 = arith.cmpf ogt, %49, %50 : vector<2x1xf32>
    %cst_28 = arith.constant -1.000000e+30 : f32
    %52 = vector.shape_cast %51 : vector<2x1xi1> to vector<2x1xi1>
    %53 = vector.broadcast %52 : vector<2x1xi1> to vector<2x32xi1>
    %54 = vector.broadcast %cst_28 : f32 to vector<2x32xf32>
    %55 = arith.select %53, %46, %54 : vector<2x32xi1>, vector<2x32xf32>
    %56 = arith.maximumf %7, %55 : vector<2x32xf32>
    %57 = arith.index_cast %9 : i32 to index
    %c0_29 = arith.constant 0 : index
    %c0_30 = arith.constant 0 : index
    %58 = vector.load %arg2[%57, %c0_29, %c0_30] : memref<8x2x32xbf16, #tpu.memory_space<vmem>>, vector<1x2x32xbf16>
    %59 = vector.shape_cast %58 : vector<1x2x32xbf16> to vector<2x32xbf16>
    %c0_31 = arith.constant 0 : index
    %c0_32 = arith.constant 0 : index
    %60 = vector.load %arg6[%c0_31, %c0_32] : memref<32x128xbf16, #tpu.memory_space<vmem>>, vector<32x128xbf16>
    %cst_33 = arith.constant dense<0.000000e+00> : vector<2x128xf32>
    %61 = tpu.matmul %59, %60, %cst_33 {dimension_numbers = #tpu.dot_dimension_numbers<[1], [0], [0], [1], [0, 0, 1, 1], [], []>} : vector<2x32xbf16>, vector<32x128xbf16>, vector<2x128xf32> -> vector<2x128xf32>
    %c0_34 = arith.constant 0 : index
    %c0_35 = arith.constant 0 : index
    %62 = vector.load %arg8[%c0_34, %c0_35] : memref<1x128xf32, #tpu.memory_space<vmem>>, vector<1x128xf32>
    %63 = vector.broadcast %62 : vector<1x128xf32> to vector<2x128xf32>
    %64 = arith.addf %61, %63 : vector<2x128xf32>
    %65 = arith.truncf %5 : vector<2x32xf32> to vector<2x32xbf16>
    %c0_36 = arith.constant 0 : index
    %c0_37 = arith.constant 0 : index
    %66 = vector.load %arg10[%c0_36, %c0_37] : memref<32x128xbf16, #tpu.memory_space<vmem>>, vector<32x128xbf16>
    %cst_38 = arith.constant dense<0.000000e+00> : vector<2x128xf32>
    %67 = tpu.matmul %65, %66, %cst_38 {dimension_numbers = #tpu.dot_dimension_numbers<[1], [0], [0], [1], [0, 0, 1, 1], [], []>} : vector<2x32xbf16>, vector<32x128xbf16>, vector<2x128xf32> -> vector<2x128xf32>
    %68 = arith.addf %64, %67 : vector<2x128xf32>
    %69 = vector.extract_strided_slice %68 {offsets = [0, 0], sizes = [2, 32], strides = [1, 1]} : vector<2x128xf32> to vector<2x32xf32>
    %70 = arith.negf %69 : vector<2x32xf32>
    %71 = math.exp %70 : vector<2x32xf32>
    %cst_39 = arith.constant 1.000000e+00 : f32
    %72 = vector.broadcast %cst_39 : f32 to vector<2x32xf32>
    %73 = arith.addf %72, %71 : vector<2x32xf32>
    %74 = arith.divf %72, %73 : vector<2x32xf32>
    %75 = vector.extract_strided_slice %68 {offsets = [0, 32], sizes = [2, 32], strides = [1, 1]} : vector<2x128xf32> to vector<2x32xf32>
    %76 = arith.negf %75 : vector<2x32xf32>
    %77 = math.exp %76 : vector<2x32xf32>
    %cst_40 = arith.constant 1.000000e+00 : f32
    %78 = vector.broadcast %cst_40 : f32 to vector<2x32xf32>
    %79 = arith.addf %78, %77 : vector<2x32xf32>
    %80 = arith.divf %78, %79 : vector<2x32xf32>
    %81 = vector.extract_strided_slice %68 {offsets = [0, 64], sizes = [2, 32], strides = [1, 1]} : vector<2x128xf32> to vector<2x32xf32>
    %82 = math.tanh %81 : vector<2x32xf32>
    %83 = vector.extract_strided_slice %68 {offsets = [0, 96], sizes = [2, 32], strides = [1, 1]} : vector<2x128xf32> to vector<2x32xf32>
    %84 = arith.negf %83 : vector<2x32xf32>
    %85 = math.exp %84 : vector<2x32xf32>
    %cst_41 = arith.constant 1.000000e+00 : f32
    %86 = vector.broadcast %cst_41 : f32 to vector<2x32xf32>
    %87 = arith.addf %86, %85 : vector<2x32xf32>
    %88 = arith.divf %86, %87 : vector<2x32xf32>
    %89 = arith.mulf %80, %6 : vector<2x32xf32>
    %90 = arith.mulf %74, %82 : vector<2x32xf32>
    %91 = arith.addf %89, %90 : vector<2x32xf32>
    %92 = math.tanh %91 : vector<2x32xf32>
    %93 = arith.mulf %88, %92 : vector<2x32xf32>
    %94 = arith.index_cast %9 : i32 to index
    %c0_42 = arith.constant 0 : index
    %c0_43 = arith.constant 0 : index
    %95 = vector.load %arg4[%94, %c0_42, %c0_43] : memref<8x2x1xf32, #tpu.memory_space<vmem>>, vector<1x2x1xf32>
    %96 = vector.shape_cast %95 : vector<1x2x1xf32> to vector<2x1xf32>
    %cst_44 = arith.constant 0.000000e+00 : f32
    %97 = vector.broadcast %cst_44 : f32 to vector<2x1xf32>
    %98 = arith.cmpf ogt, %96, %97 : vector<2x1xf32>
    %cst_45 = arith.constant -1.000000e+30 : f32
    %99 = vector.shape_cast %98 : vector<2x1xi1> to vector<2x1xi1>
    %100 = vector.broadcast %99 : vector<2x1xi1> to vector<2x32xi1>
    %101 = vector.broadcast %cst_45 : f32 to vector<2x32xf32>
    %102 = arith.select %100, %93, %101 : vector<2x32xi1>, vector<2x32xf32>
    %103 = arith.maximumf %8, %102 : vector<2x32xf32>
    %cst_46 = arith.constant 0.000000e+00 : f32
    %104 = vector.broadcast %cst_46 : f32 to vector<2x1xf32>
    %105 = arith.cmpf ogt, %96, %104 : vector<2x1xf32>
    %cst_47 = arith.constant 0.000000e+00 : f32
    %106 = vector.shape_cast %105 : vector<2x1xi1> to vector<2x1xi1>
    %107 = vector.broadcast %106 : vector<2x1xi1> to vector<2x32xi1>
    %108 = vector.broadcast %cst_47 : f32 to vector<2x32xf32>
    %109 = arith.select %107, %93, %108 : vector<2x32xi1>, vector<2x32xf32>
    %cst_48 = arith.constant 0.000000e+00 : f32
    %110 = vector.broadcast %cst_48 : f32 to vector<2x1xf32>
    %111 = arith.cmpf ogt, %96, %110 : vector<2x1xf32>
    %cst_49 = arith.constant 0.000000e+00 : f32
    %112 = vector.shape_cast %111 : vector<2x1xi1> to vector<2x1xi1>
    %113 = vector.broadcast %112 : vector<2x1xi1> to vector<2x32xi1>
    %114 = vector.broadcast %cst_49 : f32 to vector<2x32xf32>
    %115 = arith.select %113, %91, %114 : vector<2x32xi1>, vector<2x32xf32>
    %c1_i32 = arith.constant 1 : i32
    %c7_i32_50 = arith.constant 7 : i32
    %116 = arith.subi %c7_i32_50, %c1_i32 : i32
    %117 = arith.index_cast %c1_i32 : i32 to index
    %c0_51 = arith.constant 0 : index
    %c0_52 = arith.constant 0 : index
    %118 = vector.load %arg1[%117, %c0_51, %c0_52] : memref<8x2x32xbf16, #tpu.memory_space<vmem>>, vector<1x2x32xbf16>
    %119 = vector.shape_cast %118 : vector<1x2x32xbf16> to vector<2x32xbf16>
    %c0_53 = arith.constant 0 : index
    %c0_54 = arith.constant 0 : index
    %120 = vector.load %arg5[%c0_53, %c0_54] : memref<32x128xbf16, #tpu.memory_space<vmem>>, vector<32x128xbf16>
    %cst_55 = arith.constant dense<0.000000e+00> : vector<2x128xf32>
    %121 = tpu.matmul %119, %120, %cst_55 {dimension_numbers = #tpu.dot_dimension_numbers<[1], [0], [0], [1], [0, 0, 1, 1], [], []>} : vector<2x32xbf16>, vector<32x128xbf16>, vector<2x128xf32> -> vector<2x128xf32>
    %c0_56 = arith.constant 0 : index
    %c0_57 = arith.constant 0 : index
    %122 = vector.load %arg7[%c0_56, %c0_57] : memref<1x128xf32, #tpu.memory_space<vmem>>, vector<1x128xf32>
    %123 = vector.broadcast %122 : vector<1x128xf32> to vector<2x128xf32>
    %124 = arith.addf %121, %123 : vector<2x128xf32>
    %125 = arith.truncf %46 : vector<2x32xf32> to vector<2x32xbf16>
    %c0_58 = arith.constant 0 : index
    %c0_59 = arith.constant 0 : index
    %126 = vector.load %arg9[%c0_58, %c0_59] : memref<32x128xbf16, #tpu.memory_space<vmem>>, vector<32x128xbf16>
    %cst_60 = arith.constant dense<0.000000e+00> : vector<2x128xf32>
    %127 = tpu.matmul %125, %126, %cst_60 {dimension_numbers = #tpu.dot_dimension_numbers<[1], [0], [0], [1], [0, 0, 1, 1], [], []>} : vector<2x32xbf16>, vector<32x128xbf16>, vector<2x128xf32> -> vector<2x128xf32>
    %128 = arith.addf %124, %127 : vector<2x128xf32>
    %129 = vector.extract_strided_slice %128 {offsets = [0, 0], sizes = [2, 32], strides = [1, 1]} : vector<2x128xf32> to vector<2x32xf32>
    %130 = arith.negf %129 : vector<2x32xf32>
    %131 = math.exp %130 : vector<2x32xf32>
    %cst_61 = arith.constant 1.000000e+00 : f32
    %132 = vector.broadcast %cst_61 : f32 to vector<2x32xf32>
    %133 = arith.addf %132, %131 : vector<2x32xf32>
    %134 = arith.divf %132, %133 : vector<2x32xf32>
    %135 = vector.extract_strided_slice %128 {offsets = [0, 32], sizes = [2, 32], strides = [1, 1]} : vector<2x128xf32> to vector<2x32xf32>
    %136 = arith.negf %135 : vector<2x32xf32>
    %137 = math.exp %136 : vector<2x32xf32>
    %cst_62 = arith.constant 1.000000e+00 : f32
    %138 = vector.broadcast %cst_62 : f32 to vector<2x32xf32>
    %139 = arith.addf %138, %137 : vector<2x32xf32>
    %140 = arith.divf %138, %139 : vector<2x32xf32>
    %141 = vector.extract_strided_slice %128 {offsets = [0, 64], sizes = [2, 32], strides = [1, 1]} : vector<2x128xf32> to vector<2x32xf32>
    %142 = math.tanh %141 : vector<2x32xf32>
    %143 = vector.extract_strided_slice %128 {offsets = [0, 96], sizes = [2, 32], strides = [1, 1]} : vector<2x128xf32> to vector<2x32xf32>
    %144 = arith.negf %143 : vector<2x32xf32>
    %145 = math.exp %144 : vector<2x32xf32>
    %cst_63 = arith.constant 1.000000e+00 : f32
    %146 = vector.broadcast %cst_63 : f32 to vector<2x32xf32>
    %147 = arith.addf %146, %145 : vector<2x32xf32>
    %148 = arith.divf %146, %147 : vector<2x32xf32>
    %149 = arith.mulf %140, %44 : vector<2x32xf32>
    %150 = arith.mulf %134, %142 : vector<2x32xf32>
    %151 = arith.addf %149, %150 : vector<2x32xf32>
    %152 = math.tanh %151 : vector<2x32xf32>
    %153 = arith.mulf %148, %152 : vector<2x32xf32>
    %154 = arith.index_cast %c1_i32 : i32 to index
    %c0_64 = arith.constant 0 : index
    %c0_65 = arith.constant 0 : index
    %155 = vector.load %arg3[%154, %c0_64, %c0_65] : memref<8x2x1xf32, #tpu.memory_space<vmem>>, vector<1x2x1xf32>
    %156 = vector.shape_cast %155 : vector<1x2x1xf32> to vector<2x1xf32>
    %cst_66 = arith.constant 0.000000e+00 : f32
    %157 = vector.broadcast %cst_66 : f32 to vector<2x1xf32>
    %158 = arith.cmpf ogt, %156, %157 : vector<2x1xf32>
    %cst_67 = arith.constant -1.000000e+30 : f32
    %159 = vector.shape_cast %158 : vector<2x1xi1> to vector<2x1xi1>
    %160 = vector.broadcast %159 : vector<2x1xi1> to vector<2x32xi1>
    %161 = vector.broadcast %cst_67 : f32 to vector<2x32xf32>
    %162 = arith.select %160, %153, %161 : vector<2x32xi1>, vector<2x32xf32>
    %163 = arith.maximumf %56, %162 : vector<2x32xf32>
    %164 = arith.index_cast %116 : i32 to index
    %c0_68 = arith.constant 0 : index
    %c0_69 = arith.constant 0 : index
    %165 = vector.load %arg2[%164, %c0_68, %c0_69] : memref<8x2x32xbf16, #tpu.memory_space<vmem>>, vector<1x2x32xbf16>
    %166 = vector.shape_cast %165 : vector<1x2x32xbf16> to vector<2x32xbf16>
    %c0_70 = arith.constant 0 : index
    %c0_71 = arith.constant 0 : index
    %167 = vector.load %arg6[%c0_70, %c0_71] : memref<32x128xbf16, #tpu.memory_space<vmem>>, vector<32x128xbf16>
    %cst_72 = arith.constant dense<0.000000e+00> : vector<2x128xf32>
    %168 = tpu.matmul %166, %167, %cst_72 {dimension_numbers = #tpu.dot_dimension_numbers<[1], [0], [0], [1], [0, 0, 1, 1], [], []>} : vector<2x32xbf16>, vector<32x128xbf16>, vector<2x128xf32> -> vector<2x128xf32>
    %c0_73 = arith.constant 0 : index
    %c0_74 = arith.constant 0 : index
    %169 = vector.load %arg8[%c0_73, %c0_74] : memref<1x128xf32, #tpu.memory_space<vmem>>, vector<1x128xf32>
    %170 = vector.broadcast %169 : vector<1x128xf32> to vector<2x128xf32>
    %171 = arith.addf %168, %170 : vector<2x128xf32>
    %172 = arith.truncf %109 : vector<2x32xf32> to vector<2x32xbf16>
    %c0_75 = arith.constant 0 : index
    %c0_76 = arith.constant 0 : index
    %173 = vector.load %arg10[%c0_75, %c0_76] : memref<32x128xbf16, #tpu.memory_space<vmem>>, vector<32x128xbf16>
    %cst_77 = arith.constant dense<0.000000e+00> : vector<2x128xf32>
    %174 = tpu.matmul %172, %173, %cst_77 {dimension_numbers = #tpu.dot_dimension_numbers<[1], [0], [0], [1], [0, 0, 1, 1], [], []>} : vector<2x32xbf16>, vector<32x128xbf16>, vector<2x128xf32> -> vector<2x128xf32>
    %175 = arith.addf %171, %174 : vector<2x128xf32>
    %176 = vector.extract_strided_slice %175 {offsets = [0, 0], sizes = [2, 32], strides = [1, 1]} : vector<2x128xf32> to vector<2x32xf32>
    %177 = arith.negf %176 : vector<2x32xf32>
    %178 = math.exp %177 : vector<2x32xf32>
    %cst_78 = arith.constant 1.000000e+00 : f32
    %179 = vector.broadcast %cst_78 : f32 to vector<2x32xf32>
    %180 = arith.addf %179, %178 : vector<2x32xf32>
    %181 = arith.divf %179, %180 : vector<2x32xf32>
    %182 = vector.extract_strided_slice %175 {offsets = [0, 32], sizes = [2, 32], strides = [1, 1]} : vector<2x128xf32> to vector<2x32xf32>
    %183 = arith.negf %182 : vector<2x32xf32>
    %184 = math.exp %183 : vector<2x32xf32>
    %cst_79 = arith.constant 1.000000e+00 : f32
    %185 = vector.broadcast %cst_79 : f32 to vector<2x32xf32>
    %186 = arith.addf %185, %184 : vector<2x32xf32>
    %187 = arith.divf %185, %186 : vector<2x32xf32>
    %188 = vector.extract_strided_slice %175 {offsets = [0, 64], sizes = [2, 32], strides = [1, 1]} : vector<2x128xf32> to vector<2x32xf32>
    %189 = math.tanh %188 : vector<2x32xf32>
    %190 = vector.extract_strided_slice %175 {offsets = [0, 96], sizes = [2, 32], strides = [1, 1]} : vector<2x128xf32> to vector<2x32xf32>
    %191 = arith.negf %190 : vector<2x32xf32>
    %192 = math.exp %191 : vector<2x32xf32>
    %cst_80 = arith.constant 1.000000e+00 : f32
    %193 = vector.broadcast %cst_80 : f32 to vector<2x32xf32>
    %194 = arith.addf %193, %192 : vector<2x32xf32>
    %195 = arith.divf %193, %194 : vector<2x32xf32>
    %196 = arith.mulf %187, %115 : vector<2x32xf32>
    %197 = arith.mulf %181, %189 : vector<2x32xf32>
    %198 = arith.addf %196, %197 : vector<2x32xf32>
    %199 = math.tanh %198 : vector<2x32xf32>
    %200 = arith.mulf %195, %199 : vector<2x32xf32>
    %201 = arith.index_cast %116 : i32 to index
    %c0_81 = arith.constant 0 : index
    %c0_82 = arith.constant 0 : index
    %202 = vector.load %arg4[%201, %c0_81, %c0_82] : memref<8x2x1xf32, #tpu.memory_space<vmem>>, vector<1x2x1xf32>
    %203 = vector.shape_cast %202 : vector<1x2x1xf32> to vector<2x1xf32>
    %cst_83 = arith.constant 0.000000e+00 : f32
    %204 = vector.broadcast %cst_83 : f32 to vector<2x1xf32>
    %205 = arith.cmpf ogt, %203, %204 : vector<2x1xf32>
    %cst_84 = arith.constant -1.000000e+30 : f32
    %206 = vector.shape_cast %205 : vector<2x1xi1> to vector<2x1xi1>
    %207 = vector.broadcast %206 : vector<2x1xi1> to vector<2x32xi1>
    %208 = vector.broadcast %cst_84 : f32 to vector<2x32xf32>
    %209 = arith.select %207, %200, %208 : vector<2x32xi1>, vector<2x32xf32>
    %210 = arith.maximumf %103, %209 : vector<2x32xf32>
    %cst_85 = arith.constant 0.000000e+00 : f32
    %211 = vector.broadcast %cst_85 : f32 to vector<2x1xf32>
    %212 = arith.cmpf ogt, %203, %211 : vector<2x1xf32>
    %cst_86 = arith.constant 0.000000e+00 : f32
    %213 = vector.shape_cast %212 : vector<2x1xi1> to vector<2x1xi1>
    %214 = vector.broadcast %213 : vector<2x1xi1> to vector<2x32xi1>
    %215 = vector.broadcast %cst_86 : f32 to vector<2x32xf32>
    %216 = arith.select %214, %200, %215 : vector<2x32xi1>, vector<2x32xf32>
    %cst_87 = arith.constant 0.000000e+00 : f32
    %217 = vector.broadcast %cst_87 : f32 to vector<2x1xf32>
    %218 = arith.cmpf ogt, %203, %217 : vector<2x1xf32>
    %cst_88 = arith.constant 0.000000e+00 : f32
    %219 = vector.shape_cast %218 : vector<2x1xi1> to vector<2x1xi1>
    %220 = vector.broadcast %219 : vector<2x1xi1> to vector<2x32xi1>
    %221 = vector.broadcast %cst_88 : f32 to vector<2x32xf32>
    %222 = arith.select %220, %198, %221 : vector<2x32xi1>, vector<2x32xf32>
    %c2_i32 = arith.constant 2 : i32
    %c7_i32_89 = arith.constant 7 : i32
    %223 = arith.subi %c7_i32_89, %c2_i32 : i32
    %224 = arith.index_cast %c2_i32 : i32 to index
    %c0_90 = arith.constant 0 : index
    %c0_91 = arith.constant 0 : index
    %225 = vector.load %arg1[%224, %c0_90, %c0_91] : memref<8x2x32xbf16, #tpu.memory_space<vmem>>, vector<1x2x32xbf16>
    %226 = vector.shape_cast %225 : vector<1x2x32xbf16> to vector<2x32xbf16>
    %c0_92 = arith.constant 0 : index
    %c0_93 = arith.constant 0 : index
    %227 = vector.load %arg5[%c0_92, %c0_93] : memref<32x128xbf16, #tpu.memory_space<vmem>>, vector<32x128xbf16>
    %cst_94 = arith.constant dense<0.000000e+00> : vector<2x128xf32>
    %228 = tpu.matmul %226, %227, %cst_94 {dimension_numbers = #tpu.dot_dimension_numbers<[1], [0], [0], [1], [0, 0, 1, 1], [], []>} : vector<2x32xbf16>, vector<32x128xbf16>, vector<2x128xf32> -> vector<2x128xf32>
    %c0_95 = arith.constant 0 : index
    %c0_96 = arith.constant 0 : index
    %229 = vector.load %arg7[%c0_95, %c0_96] : memref<1x128xf32, #tpu.memory_space<vmem>>, vector<1x128xf32>
    %230 = vector.broadcast %229 : vector<1x128xf32> to vector<2x128xf32>
    %231 = arith.addf %228, %230 : vector<2x128xf32>
    %232 = arith.truncf %153 : vector<2x32xf32> to vector<2x32xbf16>
    %c0_97 = arith.constant 0 : index
    %c0_98 = arith.constant 0 : index
    %233 = vector.load %arg9[%c0_97, %c0_98] : memref<32x128xbf16, #tpu.memory_space<vmem>>, vector<32x128xbf16>
    %cst_99 = arith.constant dense<0.000000e+00> : vector<2x128xf32>
    %234 = tpu.matmul %232, %233, %cst_99 {dimension_numbers = #tpu.dot_dimension_numbers<[1], [0], [0], [1], [0, 0, 1, 1], [], []>} : vector<2x32xbf16>, vector<32x128xbf16>, vector<2x128xf32> -> vector<2x128xf32>
    %235 = arith.addf %231, %234 : vector<2x128xf32>
    %236 = vector.extract_strided_slice %235 {offsets = [0, 0], sizes = [2, 32], strides = [1, 1]} : vector<2x128xf32> to vector<2x32xf32>
    %237 = arith.negf %236 : vector<2x32xf32>
    %238 = math.exp %237 : vector<2x32xf32>
    %cst_100 = arith.constant 1.000000e+00 : f32
    %239 = vector.broadcast %cst_100 : f32 to vector<2x32xf32>
    %240 = arith.addf %239, %238 : vector<2x32xf32>
    %241 = arith.divf %239, %240 : vector<2x32xf32>
    %242 = vector.extract_strided_slice %235 {offsets = [0, 32], sizes = [2, 32], strides = [1, 1]} : vector<2x128xf32> to vector<2x32xf32>
    %243 = arith.negf %242 : vector<2x32xf32>
    %244 = math.exp %243 : vector<2x32xf32>
    %cst_101 = arith.constant 1.000000e+00 : f32
    %245 = vector.broadcast %cst_101 : f32 to vector<2x32xf32>
    %246 = arith.addf %245, %244 : vector<2x32xf32>
    %247 = arith.divf %245, %246 : vector<2x32xf32>
    %248 = vector.extract_strided_slice %235 {offsets = [0, 64], sizes = [2, 32], strides = [1, 1]} : vector<2x128xf32> to vector<2x32xf32>
    %249 = math.tanh %248 : vector<2x32xf32>
    %250 = vector.extract_strided_slice %235 {offsets = [0, 96], sizes = [2, 32], strides = [1, 1]} : vector<2x128xf32> to vector<2x32xf32>
    %251 = arith.negf %250 : vector<2x32xf32>
    %252 = math.exp %251 : vector<2x32xf32>
    %cst_102 = arith.constant 1.000000e+00 : f32
    %253 = vector.broadcast %cst_102 : f32 to vector<2x32xf32>
    %254 = arith.addf %253, %252 : vector<2x32xf32>
    %255 = arith.divf %253, %254 : vector<2x32xf32>
    %256 = arith.mulf %247, %151 : vector<2x32xf32>
    %257 = arith.mulf %241, %249 : vector<2x32xf32>
    %258 = arith.addf %256, %257 : vector<2x32xf32>
    %259 = math.tanh %258 : vector<2x32xf32>
    %260 = arith.mulf %255, %259 : vector<2x32xf32>
    %261 = arith.index_cast %c2_i32 : i32 to index
    %c0_103 = arith.constant 0 : index
    %c0_104 = arith.constant 0 : index
    %262 = vector.load %arg3[%261, %c0_103, %c0_104] : memref<8x2x1xf32, #tpu.memory_space<vmem>>, vector<1x2x1xf32>
    %263 = vector.shape_cast %262 : vector<1x2x1xf32> to vector<2x1xf32>
    %cst_105 = arith.constant 0.000000e+00 : f32
    %264 = vector.broadcast %cst_105 : f32 to vector<2x1xf32>
    %265 = arith.cmpf ogt, %263, %264 : vector<2x1xf32>
    %cst_106 = arith.constant -1.000000e+30 : f32
    %266 = vector.shape_cast %265 : vector<2x1xi1> to vector<2x1xi1>
    %267 = vector.broadcast %266 : vector<2x1xi1> to vector<2x32xi1>
    %268 = vector.broadcast %cst_106 : f32 to vector<2x32xf32>
    %269 = arith.select %267, %260, %268 : vector<2x32xi1>, vector<2x32xf32>
    %270 = arith.maximumf %163, %269 : vector<2x32xf32>
    %271 = arith.index_cast %223 : i32 to index
    %c0_107 = arith.constant 0 : index
    %c0_108 = arith.constant 0 : index
    %272 = vector.load %arg2[%271, %c0_107, %c0_108] : memref<8x2x32xbf16, #tpu.memory_space<vmem>>, vector<1x2x32xbf16>
    %273 = vector.shape_cast %272 : vector<1x2x32xbf16> to vector<2x32xbf16>
    %c0_109 = arith.constant 0 : index
    %c0_110 = arith.constant 0 : index
    %274 = vector.load %arg6[%c0_109, %c0_110] : memref<32x128xbf16, #tpu.memory_space<vmem>>, vector<32x128xbf16>
    %cst_111 = arith.constant dense<0.000000e+00> : vector<2x128xf32>
    %275 = tpu.matmul %273, %274, %cst_111 {dimension_numbers = #tpu.dot_dimension_numbers<[1], [0], [0], [1], [0, 0, 1, 1], [], []>} : vector<2x32xbf16>, vector<32x128xbf16>, vector<2x128xf32> -> vector<2x128xf32>
    %c0_112 = arith.constant 0 : index
    %c0_113 = arith.constant 0 : index
    %276 = vector.load %arg8[%c0_112, %c0_113] : memref<1x128xf32, #tpu.memory_space<vmem>>, vector<1x128xf32>
    %277 = vector.broadcast %276 : vector<1x128xf32> to vector<2x128xf32>
    %278 = arith.addf %275, %277 : vector<2x128xf32>
    %279 = arith.truncf %216 : vector<2x32xf32> to vector<2x32xbf16>
    %c0_114 = arith.constant 0 : index
    %c0_115 = arith.constant 0 : index
    %280 = vector.load %arg10[%c0_114, %c0_115] : memref<32x128xbf16, #tpu.memory_space<vmem>>, vector<32x128xbf16>
    %cst_116 = arith.constant dense<0.000000e+00> : vector<2x128xf32>
    %281 = tpu.matmul %279, %280, %cst_116 {dimension_numbers = #tpu.dot_dimension_numbers<[1], [0], [0], [1], [0, 0, 1, 1], [], []>} : vector<2x32xbf16>, vector<32x128xbf16>, vector<2x128xf32> -> vector<2x128xf32>
    %282 = arith.addf %278, %281 : vector<2x128xf32>
    %283 = vector.extract_strided_slice %282 {offsets = [0, 0], sizes = [2, 32], strides = [1, 1]} : vector<2x128xf32> to vector<2x32xf32>
    %284 = arith.negf %283 : vector<2x32xf32>
    %285 = math.exp %284 : vector<2x32xf32>
    %cst_117 = arith.constant 1.000000e+00 : f32
    %286 = vector.broadcast %cst_117 : f32 to vector<2x32xf32>
    %287 = arith.addf %286, %285 : vector<2x32xf32>
    %288 = arith.divf %286, %287 : vector<2x32xf32>
    %289 = vector.extract_strided_slice %282 {offsets = [0, 32], sizes = [2, 32], strides = [1, 1]} : vector<2x128xf32> to vector<2x32xf32>
    %290 = arith.negf %289 : vector<2x32xf32>
    %291 = math.exp %290 : vector<2x32xf32>
    %cst_118 = arith.constant 1.000000e+00 : f32
    %292 = vector.broadcast %cst_118 : f32 to vector<2x32xf32>
    %293 = arith.addf %292, %291 : vector<2x32xf32>
    %294 = arith.divf %292, %293 : vector<2x32xf32>
    %295 = vector.extract_strided_slice %282 {offsets = [0, 64], sizes = [2, 32], strides = [1, 1]} : vector<2x128xf32> to vector<2x32xf32>
    %296 = math.tanh %295 : vector<2x32xf32>
    %297 = vector.extract_strided_slice %282 {offsets = [0, 96], sizes = [2, 32], strides = [1, 1]} : vector<2x128xf32> to vector<2x32xf32>
    %298 = arith.negf %297 : vector<2x32xf32>
    %299 = math.exp %298 : vector<2x32xf32>
    %cst_119 = arith.constant 1.000000e+00 : f32
    %300 = vector.broadcast %cst_119 : f32 to vector<2x32xf32>
    %301 = arith.addf %300, %299 : vector<2x32xf32>
    %302 = arith.divf %300, %301 : vector<2x32xf32>
    %303 = arith.mulf %294, %222 : vector<2x32xf32>
    %304 = arith.mulf %288, %296 : vector<2x32xf32>
    %305 = arith.addf %303, %304 : vector<2x32xf32>
    %306 = math.tanh %305 : vector<2x32xf32>
    %307 = arith.mulf %302, %306 : vector<2x32xf32>
    %308 = arith.index_cast %223 : i32 to index
    %c0_120 = arith.constant 0 : index
    %c0_121 = arith.constant 0 : index
    %309 = vector.load %arg4[%308, %c0_120, %c0_121] : memref<8x2x1xf32, #tpu.memory_space<vmem>>, vector<1x2x1xf32>
    %310 = vector.shape_cast %309 : vector<1x2x1xf32> to vector<2x1xf32>
    %cst_122 = arith.constant 0.000000e+00 : f32
    %311 = vector.broadcast %cst_122 : f32 to vector<2x1xf32>
    %312 = arith.cmpf ogt, %310, %311 : vector<2x1xf32>
    %cst_123 = arith.constant -1.000000e+30 : f32
    %313 = vector.shape_cast %312 : vector<2x1xi1> to vector<2x1xi1>
    %314 = vector.broadcast %313 : vector<2x1xi1> to vector<2x32xi1>
    %315 = vector.broadcast %cst_123 : f32 to vector<2x32xf32>
    %316 = arith.select %314, %307, %315 : vector<2x32xi1>, vector<2x32xf32>
    %317 = arith.maximumf %210, %316 : vector<2x32xf32>
    %cst_124 = arith.constant 0.000000e+00 : f32
    %318 = vector.broadcast %cst_124 : f32 to vector<2x1xf32>
    %319 = arith.cmpf ogt, %310, %318 : vector<2x1xf32>
    %cst_125 = arith.constant 0.000000e+00 : f32
    %320 = vector.shape_cast %319 : vector<2x1xi1> to vector<2x1xi1>
    %321 = vector.broadcast %320 : vector<2x1xi1> to vector<2x32xi1>
    %322 = vector.broadcast %cst_125 : f32 to vector<2x32xf32>
    %323 = arith.select %321, %307, %322 : vector<2x32xi1>, vector<2x32xf32>
    %cst_126 = arith.constant 0.000000e+00 : f32
    %324 = vector.broadcast %cst_126 : f32 to vector<2x1xf32>
    %325 = arith.cmpf ogt, %310, %324 : vector<2x1xf32>
    %cst_127 = arith.constant 0.000000e+00 : f32
    %326 = vector.shape_cast %325 : vector<2x1xi1> to vector<2x1xi1>
    %327 = vector.broadcast %326 : vector<2x1xi1> to vector<2x32xi1>
    %328 = vector.broadcast %cst_127 : f32 to vector<2x32xf32>
    %329 = arith.select %327, %305, %328 : vector<2x32xi1>, vector<2x32xf32>
    %c3_i32 = arith.constant 3 : i32
    %c7_i32_128 = arith.constant 7 : i32
    %330 = arith.subi %c7_i32_128, %c3_i32 : i32
    %331 = arith.index_cast %c3_i32 : i32 to index
    %c0_129 = arith.constant 0 : index
    %c0_130 = arith.constant 0 : index
    %332 = vector.load %arg1[%331, %c0_129, %c0_130] : memref<8x2x32xbf16, #tpu.memory_space<vmem>>, vector<1x2x32xbf16>
    %333 = vector.shape_cast %332 : vector<1x2x32xbf16> to vector<2x32xbf16>
    %c0_131 = arith.constant 0 : index
    %c0_132 = arith.constant 0 : index
    %334 = vector.load %arg5[%c0_131, %c0_132] : memref<32x128xbf16, #tpu.memory_space<vmem>>, vector<32x128xbf16>
    %cst_133 = arith.constant dense<0.000000e+00> : vector<2x128xf32>
    %335 = tpu.matmul %333, %334, %cst_133 {dimension_numbers = #tpu.dot_dimension_numbers<[1], [0], [0], [1], [0, 0, 1, 1], [], []>} : vector<2x32xbf16>, vector<32x128xbf16>, vector<2x128xf32> -> vector<2x128xf32>
    %c0_134 = arith.constant 0 : index
    %c0_135 = arith.constant 0 : index
    %336 = vector.load %arg7[%c0_134, %c0_135] : memref<1x128xf32, #tpu.memory_space<vmem>>, vector<1x128xf32>
    %337 = vector.broadcast %336 : vector<1x128xf32> to vector<2x128xf32>
    %338 = arith.addf %335, %337 : vector<2x128xf32>
    %339 = arith.truncf %260 : vector<2x32xf32> to vector<2x32xbf16>
    %c0_136 = arith.constant 0 : index
    %c0_137 = arith.constant 0 : index
    %340 = vector.load %arg9[%c0_136, %c0_137] : memref<32x128xbf16, #tpu.memory_space<vmem>>, vector<32x128xbf16>
    %cst_138 = arith.constant dense<0.000000e+00> : vector<2x128xf32>
    %341 = tpu.matmul %339, %340, %cst_138 {dimension_numbers = #tpu.dot_dimension_numbers<[1], [0], [0], [1], [0, 0, 1, 1], [], []>} : vector<2x32xbf16>, vector<32x128xbf16>, vector<2x128xf32> -> vector<2x128xf32>
    %342 = arith.addf %338, %341 : vector<2x128xf32>
    %343 = vector.extract_strided_slice %342 {offsets = [0, 0], sizes = [2, 32], strides = [1, 1]} : vector<2x128xf32> to vector<2x32xf32>
    %344 = arith.negf %343 : vector<2x32xf32>
    %345 = math.exp %344 : vector<2x32xf32>
    %cst_139 = arith.constant 1.000000e+00 : f32
    %346 = vector.broadcast %cst_139 : f32 to vector<2x32xf32>
    %347 = arith.addf %346, %345 : vector<2x32xf32>
    %348 = arith.divf %346, %347 : vector<2x32xf32>
    %349 = vector.extract_strided_slice %342 {offsets = [0, 32], sizes = [2, 32], strides = [1, 1]} : vector<2x128xf32> to vector<2x32xf32>
    %350 = arith.negf %349 : vector<2x32xf32>
    %351 = math.exp %350 : vector<2x32xf32>
    %cst_140 = arith.constant 1.000000e+00 : f32
    %352 = vector.broadcast %cst_140 : f32 to vector<2x32xf32>
    %353 = arith.addf %352, %351 : vector<2x32xf32>
    %354 = arith.divf %352, %353 : vector<2x32xf32>
    %355 = vector.extract_strided_slice %342 {offsets = [0, 64], sizes = [2, 32], strides = [1, 1]} : vector<2x128xf32> to vector<2x32xf32>
    %356 = math.tanh %355 : vector<2x32xf32>
    %357 = vector.extract_strided_slice %342 {offsets = [0, 96], sizes = [2, 32], strides = [1, 1]} : vector<2x128xf32> to vector<2x32xf32>
    %358 = arith.negf %357 : vector<2x32xf32>
    %359 = math.exp %358 : vector<2x32xf32>
    %cst_141 = arith.constant 1.000000e+00 : f32
    %360 = vector.broadcast %cst_141 : f32 to vector<2x32xf32>
    %361 = arith.addf %360, %359 : vector<2x32xf32>
    %362 = arith.divf %360, %361 : vector<2x32xf32>
    %363 = arith.mulf %354, %258 : vector<2x32xf32>
    %364 = arith.mulf %348, %356 : vector<2x32xf32>
    %365 = arith.addf %363, %364 : vector<2x32xf32>
    %366 = math.tanh %365 : vector<2x32xf32>
    %367 = arith.mulf %362, %366 : vector<2x32xf32>
    %368 = arith.index_cast %c3_i32 : i32 to index
    %c0_142 = arith.constant 0 : index
    %c0_143 = arith.constant 0 : index
    %369 = vector.load %arg3[%368, %c0_142, %c0_143] : memref<8x2x1xf32, #tpu.memory_space<vmem>>, vector<1x2x1xf32>
    %370 = vector.shape_cast %369 : vector<1x2x1xf32> to vector<2x1xf32>
    %cst_144 = arith.constant 0.000000e+00 : f32
    %371 = vector.broadcast %cst_144 : f32 to vector<2x1xf32>
    %372 = arith.cmpf ogt, %370, %371 : vector<2x1xf32>
    %cst_145 = arith.constant -1.000000e+30 : f32
    %373 = vector.shape_cast %372 : vector<2x1xi1> to vector<2x1xi1>
    %374 = vector.broadcast %373 : vector<2x1xi1> to vector<2x32xi1>
    %375 = vector.broadcast %cst_145 : f32 to vector<2x32xf32>
    %376 = arith.select %374, %367, %375 : vector<2x32xi1>, vector<2x32xf32>
    %377 = arith.maximumf %270, %376 : vector<2x32xf32>
    %378 = arith.index_cast %330 : i32 to index
    %c0_146 = arith.constant 0 : index
    %c0_147 = arith.constant 0 : index
    %379 = vector.load %arg2[%378, %c0_146, %c0_147] : memref<8x2x32xbf16, #tpu.memory_space<vmem>>, vector<1x2x32xbf16>
    %380 = vector.shape_cast %379 : vector<1x2x32xbf16> to vector<2x32xbf16>
    %c0_148 = arith.constant 0 : index
    %c0_149 = arith.constant 0 : index
    %381 = vector.load %arg6[%c0_148, %c0_149] : memref<32x128xbf16, #tpu.memory_space<vmem>>, vector<32x128xbf16>
    %cst_150 = arith.constant dense<0.000000e+00> : vector<2x128xf32>
    %382 = tpu.matmul %380, %381, %cst_150 {dimension_numbers = #tpu.dot_dimension_numbers<[1], [0], [0], [1], [0, 0, 1, 1], [], []>} : vector<2x32xbf16>, vector<32x128xbf16>, vector<2x128xf32> -> vector<2x128xf32>
    %c0_151 = arith.constant 0 : index
    %c0_152 = arith.constant 0 : index
    %383 = vector.load %arg8[%c0_151, %c0_152] : memref<1x128xf32, #tpu.memory_space<vmem>>, vector<1x128xf32>
    %384 = vector.broadcast %383 : vector<1x128xf32> to vector<2x128xf32>
    %385 = arith.addf %382, %384 : vector<2x128xf32>
    %386 = arith.truncf %323 : vector<2x32xf32> to vector<2x32xbf16>
    %c0_153 = arith.constant 0 : index
    %c0_154 = arith.constant 0 : index
    %387 = vector.load %arg10[%c0_153, %c0_154] : memref<32x128xbf16, #tpu.memory_space<vmem>>, vector<32x128xbf16>
    %cst_155 = arith.constant dense<0.000000e+00> : vector<2x128xf32>
    %388 = tpu.matmul %386, %387, %cst_155 {dimension_numbers = #tpu.dot_dimension_numbers<[1], [0], [0], [1], [0, 0, 1, 1], [], []>} : vector<2x32xbf16>, vector<32x128xbf16>, vector<2x128xf32> -> vector<2x128xf32>
    %389 = arith.addf %385, %388 : vector<2x128xf32>
    %390 = vector.extract_strided_slice %389 {offsets = [0, 0], sizes = [2, 32], strides = [1, 1]} : vector<2x128xf32> to vector<2x32xf32>
    %391 = arith.negf %390 : vector<2x32xf32>
    %392 = math.exp %391 : vector<2x32xf32>
    %cst_156 = arith.constant 1.000000e+00 : f32
    %393 = vector.broadcast %cst_156 : f32 to vector<2x32xf32>
    %394 = arith.addf %393, %392 : vector<2x32xf32>
    %395 = arith.divf %393, %394 : vector<2x32xf32>
    %396 = vector.extract_strided_slice %389 {offsets = [0, 32], sizes = [2, 32], strides = [1, 1]} : vector<2x128xf32> to vector<2x32xf32>
    %397 = arith.negf %396 : vector<2x32xf32>
    %398 = math.exp %397 : vector<2x32xf32>
    %cst_157 = arith.constant 1.000000e+00 : f32
    %399 = vector.broadcast %cst_157 : f32 to vector<2x32xf32>
    %400 = arith.addf %399, %398 : vector<2x32xf32>
    %401 = arith.divf %399, %400 : vector<2x32xf32>
    %402 = vector.extract_strided_slice %389 {offsets = [0, 64], sizes = [2, 32], strides = [1, 1]} : vector<2x128xf32> to vector<2x32xf32>
    %403 = math.tanh %402 : vector<2x32xf32>
    %404 = vector.extract_strided_slice %389 {offsets = [0, 96], sizes = [2, 32], strides = [1, 1]} : vector<2x128xf32> to vector<2x32xf32>
    %405 = arith.negf %404 : vector<2x32xf32>
    %406 = math.exp %405 : vector<2x32xf32>
    %cst_158 = arith.constant 1.000000e+00 : f32
    %407 = vector.broadcast %cst_158 : f32 to vector<2x32xf32>
    %408 = arith.addf %407, %406 : vector<2x32xf32>
    %409 = arith.divf %407, %408 : vector<2x32xf32>
    %410 = arith.mulf %401, %329 : vector<2x32xf32>
    %411 = arith.mulf %395, %403 : vector<2x32xf32>
    %412 = arith.addf %410, %411 : vector<2x32xf32>
    %413 = math.tanh %412 : vector<2x32xf32>
    %414 = arith.mulf %409, %413 : vector<2x32xf32>
    %415 = arith.index_cast %330 : i32 to index
    %c0_159 = arith.constant 0 : index
    %c0_160 = arith.constant 0 : index
    %416 = vector.load %arg4[%415, %c0_159, %c0_160] : memref<8x2x1xf32, #tpu.memory_space<vmem>>, vector<1x2x1xf32>
    %417 = vector.shape_cast %416 : vector<1x2x1xf32> to vector<2x1xf32>
    %cst_161 = arith.constant 0.000000e+00 : f32
    %418 = vector.broadcast %cst_161 : f32 to vector<2x1xf32>
    %419 = arith.cmpf ogt, %417, %418 : vector<2x1xf32>
    %cst_162 = arith.constant -1.000000e+30 : f32
    %420 = vector.shape_cast %419 : vector<2x1xi1> to vector<2x1xi1>
    %421 = vector.broadcast %420 : vector<2x1xi1> to vector<2x32xi1>
    %422 = vector.broadcast %cst_162 : f32 to vector<2x32xf32>
    %423 = arith.select %421, %414, %422 : vector<2x32xi1>, vector<2x32xf32>
    %424 = arith.maximumf %317, %423 : vector<2x32xf32>
    %cst_163 = arith.constant 0.000000e+00 : f32
    %425 = vector.broadcast %cst_163 : f32 to vector<2x1xf32>
    %426 = arith.cmpf ogt, %417, %425 : vector<2x1xf32>
    %cst_164 = arith.constant 0.000000e+00 : f32
    %427 = vector.shape_cast %426 : vector<2x1xi1> to vector<2x1xi1>
    %428 = vector.broadcast %427 : vector<2x1xi1> to vector<2x32xi1>
    %429 = vector.broadcast %cst_164 : f32 to vector<2x32xf32>
    %430 = arith.select %428, %414, %429 : vector<2x32xi1>, vector<2x32xf32>
    %cst_165 = arith.constant 0.000000e+00 : f32
    %431 = vector.broadcast %cst_165 : f32 to vector<2x1xf32>
    %432 = arith.cmpf ogt, %417, %431 : vector<2x1xf32>
    %cst_166 = arith.constant 0.000000e+00 : f32
    %433 = vector.shape_cast %432 : vector<2x1xi1> to vector<2x1xi1>
    %434 = vector.broadcast %433 : vector<2x1xi1> to vector<2x32xi1>
    %435 = vector.broadcast %cst_166 : f32 to vector<2x32xf32>
    %436 = arith.select %434, %412, %435 : vector<2x32xi1>, vector<2x32xf32>
    %c4_i32 = arith.constant 4 : i32
    %c7_i32_167 = arith.constant 7 : i32
    %437 = arith.subi %c7_i32_167, %c4_i32 : i32
    %438 = arith.index_cast %c4_i32 : i32 to index
    %c0_168 = arith.constant 0 : index
    %c0_169 = arith.constant 0 : index
    %439 = vector.load %arg1[%438, %c0_168, %c0_169] : memref<8x2x32xbf16, #tpu.memory_space<vmem>>, vector<1x2x32xbf16>
    %440 = vector.shape_cast %439 : vector<1x2x32xbf16> to vector<2x32xbf16>
    %c0_170 = arith.constant 0 : index
    %c0_171 = arith.constant 0 : index
    %441 = vector.load %arg5[%c0_170, %c0_171] : memref<32x128xbf16, #tpu.memory_space<vmem>>, vector<32x128xbf16>
    %cst_172 = arith.constant dense<0.000000e+00> : vector<2x128xf32>
    %442 = tpu.matmul %440, %441, %cst_172 {dimension_numbers = #tpu.dot_dimension_numbers<[1], [0], [0], [1], [0, 0, 1, 1], [], []>} : vector<2x32xbf16>, vector<32x128xbf16>, vector<2x128xf32> -> vector<2x128xf32>
    %c0_173 = arith.constant 0 : index
    %c0_174 = arith.constant 0 : index
    %443 = vector.load %arg7[%c0_173, %c0_174] : memref<1x128xf32, #tpu.memory_space<vmem>>, vector<1x128xf32>
    %444 = vector.broadcast %443 : vector<1x128xf32> to vector<2x128xf32>
    %445 = arith.addf %442, %444 : vector<2x128xf32>
    %446 = arith.truncf %367 : vector<2x32xf32> to vector<2x32xbf16>
    %c0_175 = arith.constant 0 : index
    %c0_176 = arith.constant 0 : index
    %447 = vector.load %arg9[%c0_175, %c0_176] : memref<32x128xbf16, #tpu.memory_space<vmem>>, vector<32x128xbf16>
    %cst_177 = arith.constant dense<0.000000e+00> : vector<2x128xf32>
    %448 = tpu.matmul %446, %447, %cst_177 {dimension_numbers = #tpu.dot_dimension_numbers<[1], [0], [0], [1], [0, 0, 1, 1], [], []>} : vector<2x32xbf16>, vector<32x128xbf16>, vector<2x128xf32> -> vector<2x128xf32>
    %449 = arith.addf %445, %448 : vector<2x128xf32>
    %450 = vector.extract_strided_slice %449 {offsets = [0, 0], sizes = [2, 32], strides = [1, 1]} : vector<2x128xf32> to vector<2x32xf32>
    %451 = arith.negf %450 : vector<2x32xf32>
    %452 = math.exp %451 : vector<2x32xf32>
    %cst_178 = arith.constant 1.000000e+00 : f32
    %453 = vector.broadcast %cst_178 : f32 to vector<2x32xf32>
    %454 = arith.addf %453, %452 : vector<2x32xf32>
    %455 = arith.divf %453, %454 : vector<2x32xf32>
    %456 = vector.extract_strided_slice %449 {offsets = [0, 32], sizes = [2, 32], strides = [1, 1]} : vector<2x128xf32> to vector<2x32xf32>
    %457 = arith.negf %456 : vector<2x32xf32>
    %458 = math.exp %457 : vector<2x32xf32>
    %cst_179 = arith.constant 1.000000e+00 : f32
    %459 = vector.broadcast %cst_179 : f32 to vector<2x32xf32>
    %460 = arith.addf %459, %458 : vector<2x32xf32>
    %461 = arith.divf %459, %460 : vector<2x32xf32>
    %462 = vector.extract_strided_slice %449 {offsets = [0, 64], sizes = [2, 32], strides = [1, 1]} : vector<2x128xf32> to vector<2x32xf32>
    %463 = math.tanh %462 : vector<2x32xf32>
    %464 = vector.extract_strided_slice %449 {offsets = [0, 96], sizes = [2, 32], strides = [1, 1]} : vector<2x128xf32> to vector<2x32xf32>
    %465 = arith.negf %464 : vector<2x32xf32>
    %466 = math.exp %465 : vector<2x32xf32>
    %cst_180 = arith.constant 1.000000e+00 : f32
    %467 = vector.broadcast %cst_180 : f32 to vector<2x32xf32>
    %468 = arith.addf %467, %466 : vector<2x32xf32>
    %469 = arith.divf %467, %468 : vector<2x32xf32>
    %470 = arith.mulf %461, %365 : vector<2x32xf32>
    %471 = arith.mulf %455, %463 : vector<2x32xf32>
    %472 = arith.addf %470, %471 : vector<2x32xf32>
    %473 = math.tanh %472 : vector<2x32xf32>
    %474 = arith.mulf %469, %473 : vector<2x32xf32>
    %475 = arith.index_cast %c4_i32 : i32 to index
    %c0_181 = arith.constant 0 : index
    %c0_182 = arith.constant 0 : index
    %476 = vector.load %arg3[%475, %c0_181, %c0_182] : memref<8x2x1xf32, #tpu.memory_space<vmem>>, vector<1x2x1xf32>
    %477 = vector.shape_cast %476 : vector<1x2x1xf32> to vector<2x1xf32>
    %cst_183 = arith.constant 0.000000e+00 : f32
    %478 = vector.broadcast %cst_183 : f32 to vector<2x1xf32>
    %479 = arith.cmpf ogt, %477, %478 : vector<2x1xf32>
    %cst_184 = arith.constant -1.000000e+30 : f32
    %480 = vector.shape_cast %479 : vector<2x1xi1> to vector<2x1xi1>
    %481 = vector.broadcast %480 : vector<2x1xi1> to vector<2x32xi1>
    %482 = vector.broadcast %cst_184 : f32 to vector<2x32xf32>
    %483 = arith.select %481, %474, %482 : vector<2x32xi1>, vector<2x32xf32>
    %484 = arith.maximumf %377, %483 : vector<2x32xf32>
    %485 = arith.index_cast %437 : i32 to index
    %c0_185 = arith.constant 0 : index
    %c0_186 = arith.constant 0 : index
    %486 = vector.load %arg2[%485, %c0_185, %c0_186] : memref<8x2x32xbf16, #tpu.memory_space<vmem>>, vector<1x2x32xbf16>
    %487 = vector.shape_cast %486 : vector<1x2x32xbf16> to vector<2x32xbf16>
    %c0_187 = arith.constant 0 : index
    %c0_188 = arith.constant 0 : index
    %488 = vector.load %arg6[%c0_187, %c0_188] : memref<32x128xbf16, #tpu.memory_space<vmem>>, vector<32x128xbf16>
    %cst_189 = arith.constant dense<0.000000e+00> : vector<2x128xf32>
    %489 = tpu.matmul %487, %488, %cst_189 {dimension_numbers = #tpu.dot_dimension_numbers<[1], [0], [0], [1], [0, 0, 1, 1], [], []>} : vector<2x32xbf16>, vector<32x128xbf16>, vector<2x128xf32> -> vector<2x128xf32>
    %c0_190 = arith.constant 0 : index
    %c0_191 = arith.constant 0 : index
    %490 = vector.load %arg8[%c0_190, %c0_191] : memref<1x128xf32, #tpu.memory_space<vmem>>, vector<1x128xf32>
    %491 = vector.broadcast %490 : vector<1x128xf32> to vector<2x128xf32>
    %492 = arith.addf %489, %491 : vector<2x128xf32>
    %493 = arith.truncf %430 : vector<2x32xf32> to vector<2x32xbf16>
    %c0_192 = arith.constant 0 : index
    %c0_193 = arith.constant 0 : index
    %494 = vector.load %arg10[%c0_192, %c0_193] : memref<32x128xbf16, #tpu.memory_space<vmem>>, vector<32x128xbf16>
    %cst_194 = arith.constant dense<0.000000e+00> : vector<2x128xf32>
    %495 = tpu.matmul %493, %494, %cst_194 {dimension_numbers = #tpu.dot_dimension_numbers<[1], [0], [0], [1], [0, 0, 1, 1], [], []>} : vector<2x32xbf16>, vector<32x128xbf16>, vector<2x128xf32> -> vector<2x128xf32>
    %496 = arith.addf %492, %495 : vector<2x128xf32>
    %497 = vector.extract_strided_slice %496 {offsets = [0, 0], sizes = [2, 32], strides = [1, 1]} : vector<2x128xf32> to vector<2x32xf32>
    %498 = arith.negf %497 : vector<2x32xf32>
    %499 = math.exp %498 : vector<2x32xf32>
    %cst_195 = arith.constant 1.000000e+00 : f32
    %500 = vector.broadcast %cst_195 : f32 to vector<2x32xf32>
    %501 = arith.addf %500, %499 : vector<2x32xf32>
    %502 = arith.divf %500, %501 : vector<2x32xf32>
    %503 = vector.extract_strided_slice %496 {offsets = [0, 32], sizes = [2, 32], strides = [1, 1]} : vector<2x128xf32> to vector<2x32xf32>
    %504 = arith.negf %503 : vector<2x32xf32>
    %505 = math.exp %504 : vector<2x32xf32>
    %cst_196 = arith.constant 1.000000e+00 : f32
    %506 = vector.broadcast %cst_196 : f32 to vector<2x32xf32>
    %507 = arith.addf %506, %505 : vector<2x32xf32>
    %508 = arith.divf %506, %507 : vector<2x32xf32>
    %509 = vector.extract_strided_slice %496 {offsets = [0, 64], sizes = [2, 32], strides = [1, 1]} : vector<2x128xf32> to vector<2x32xf32>
    %510 = math.tanh %509 : vector<2x32xf32>
    %511 = vector.extract_strided_slice %496 {offsets = [0, 96], sizes = [2, 32], strides = [1, 1]} : vector<2x128xf32> to vector<2x32xf32>
    %512 = arith.negf %511 : vector<2x32xf32>
    %513 = math.exp %512 : vector<2x32xf32>
    %cst_197 = arith.constant 1.000000e+00 : f32
    %514 = vector.broadcast %cst_197 : f32 to vector<2x32xf32>
    %515 = arith.addf %514, %513 : vector<2x32xf32>
    %516 = arith.divf %514, %515 : vector<2x32xf32>
    %517 = arith.mulf %508, %436 : vector<2x32xf32>
    %518 = arith.mulf %502, %510 : vector<2x32xf32>
    %519 = arith.addf %517, %518 : vector<2x32xf32>
    %520 = math.tanh %519 : vector<2x32xf32>
    %521 = arith.mulf %516, %520 : vector<2x32xf32>
    %522 = arith.index_cast %437 : i32 to index
    %c0_198 = arith.constant 0 : index
    %c0_199 = arith.constant 0 : index
    %523 = vector.load %arg4[%522, %c0_198, %c0_199] : memref<8x2x1xf32, #tpu.memory_space<vmem>>, vector<1x2x1xf32>
    %524 = vector.shape_cast %523 : vector<1x2x1xf32> to vector<2x1xf32>
    %cst_200 = arith.constant 0.000000e+00 : f32
    %525 = vector.broadcast %cst_200 : f32 to vector<2x1xf32>
    %526 = arith.cmpf ogt, %524, %525 : vector<2x1xf32>
    %cst_201 = arith.constant -1.000000e+30 : f32
    %527 = vector.shape_cast %526 : vector<2x1xi1> to vector<2x1xi1>
    %528 = vector.broadcast %527 : vector<2x1xi1> to vector<2x32xi1>
    %529 = vector.broadcast %cst_201 : f32 to vector<2x32xf32>
    %530 = arith.select %528, %521, %529 : vector<2x32xi1>, vector<2x32xf32>
    %531 = arith.maximumf %424, %530 : vector<2x32xf32>
    %cst_202 = arith.constant 0.000000e+00 : f32
    %532 = vector.broadcast %cst_202 : f32 to vector<2x1xf32>
    %533 = arith.cmpf ogt, %524, %532 : vector<2x1xf32>
    %cst_203 = arith.constant 0.000000e+00 : f32
    %534 = vector.shape_cast %533 : vector<2x1xi1> to vector<2x1xi1>
    %535 = vector.broadcast %534 : vector<2x1xi1> to vector<2x32xi1>
    %536 = vector.broadcast %cst_203 : f32 to vector<2x32xf32>
    %537 = arith.select %535, %521, %536 : vector<2x32xi1>, vector<2x32xf32>
    %cst_204 = arith.constant 0.000000e+00 : f32
    %538 = vector.broadcast %cst_204 : f32 to vector<2x1xf32>
    %539 = arith.cmpf ogt, %524, %538 : vector<2x1xf32>
    %cst_205 = arith.constant 0.000000e+00 : f32
    %540 = vector.shape_cast %539 : vector<2x1xi1> to vector<2x1xi1>
    %541 = vector.broadcast %540 : vector<2x1xi1> to vector<2x32xi1>
    %542 = vector.broadcast %cst_205 : f32 to vector<2x32xf32>
    %543 = arith.select %541, %519, %542 : vector<2x32xi1>, vector<2x32xf32>
    %c5_i32 = arith.constant 5 : i32
    %c7_i32_206 = arith.constant 7 : i32
    %544 = arith.subi %c7_i32_206, %c5_i32 : i32
    %545 = arith.index_cast %c5_i32 : i32 to index
    %c0_207 = arith.constant 0 : index
    %c0_208 = arith.constant 0 : index
    %546 = vector.load %arg1[%545, %c0_207, %c0_208] : memref<8x2x32xbf16, #tpu.memory_space<vmem>>, vector<1x2x32xbf16>
    %547 = vector.shape_cast %546 : vector<1x2x32xbf16> to vector<2x32xbf16>
    %c0_209 = arith.constant 0 : index
    %c0_210 = arith.constant 0 : index
    %548 = vector.load %arg5[%c0_209, %c0_210] : memref<32x128xbf16, #tpu.memory_space<vmem>>, vector<32x128xbf16>
    %cst_211 = arith.constant dense<0.000000e+00> : vector<2x128xf32>
    %549 = tpu.matmul %547, %548, %cst_211 {dimension_numbers = #tpu.dot_dimension_numbers<[1], [0], [0], [1], [0, 0, 1, 1], [], []>} : vector<2x32xbf16>, vector<32x128xbf16>, vector<2x128xf32> -> vector<2x128xf32>
    %c0_212 = arith.constant 0 : index
    %c0_213 = arith.constant 0 : index
    %550 = vector.load %arg7[%c0_212, %c0_213] : memref<1x128xf32, #tpu.memory_space<vmem>>, vector<1x128xf32>
    %551 = vector.broadcast %550 : vector<1x128xf32> to vector<2x128xf32>
    %552 = arith.addf %549, %551 : vector<2x128xf32>
    %553 = arith.truncf %474 : vector<2x32xf32> to vector<2x32xbf16>
    %c0_214 = arith.constant 0 : index
    %c0_215 = arith.constant 0 : index
    %554 = vector.load %arg9[%c0_214, %c0_215] : memref<32x128xbf16, #tpu.memory_space<vmem>>, vector<32x128xbf16>
    %cst_216 = arith.constant dense<0.000000e+00> : vector<2x128xf32>
    %555 = tpu.matmul %553, %554, %cst_216 {dimension_numbers = #tpu.dot_dimension_numbers<[1], [0], [0], [1], [0, 0, 1, 1], [], []>} : vector<2x32xbf16>, vector<32x128xbf16>, vector<2x128xf32> -> vector<2x128xf32>
    %556 = arith.addf %552, %555 : vector<2x128xf32>
    %557 = vector.extract_strided_slice %556 {offsets = [0, 0], sizes = [2, 32], strides = [1, 1]} : vector<2x128xf32> to vector<2x32xf32>
    %558 = arith.negf %557 : vector<2x32xf32>
    %559 = math.exp %558 : vector<2x32xf32>
    %cst_217 = arith.constant 1.000000e+00 : f32
    %560 = vector.broadcast %cst_217 : f32 to vector<2x32xf32>
    %561 = arith.addf %560, %559 : vector<2x32xf32>
    %562 = arith.divf %560, %561 : vector<2x32xf32>
    %563 = vector.extract_strided_slice %556 {offsets = [0, 32], sizes = [2, 32], strides = [1, 1]} : vector<2x128xf32> to vector<2x32xf32>
    %564 = arith.negf %563 : vector<2x32xf32>
    %565 = math.exp %564 : vector<2x32xf32>
    %cst_218 = arith.constant 1.000000e+00 : f32
    %566 = vector.broadcast %cst_218 : f32 to vector<2x32xf32>
    %567 = arith.addf %566, %565 : vector<2x32xf32>
    %568 = arith.divf %566, %567 : vector<2x32xf32>
    %569 = vector.extract_strided_slice %556 {offsets = [0, 64], sizes = [2, 32], strides = [1, 1]} : vector<2x128xf32> to vector<2x32xf32>
    %570 = math.tanh %569 : vector<2x32xf32>
    %571 = vector.extract_strided_slice %556 {offsets = [0, 96], sizes = [2, 32], strides = [1, 1]} : vector<2x128xf32> to vector<2x32xf32>
    %572 = arith.negf %571 : vector<2x32xf32>
    %573 = math.exp %572 : vector<2x32xf32>
    %cst_219 = arith.constant 1.000000e+00 : f32
    %574 = vector.broadcast %cst_219 : f32 to vector<2x32xf32>
    %575 = arith.addf %574, %573 : vector<2x32xf32>
    %576 = arith.divf %574, %575 : vector<2x32xf32>
    %577 = arith.mulf %568, %472 : vector<2x32xf32>
    %578 = arith.mulf %562, %570 : vector<2x32xf32>
    %579 = arith.addf %577, %578 : vector<2x32xf32>
    %580 = math.tanh %579 : vector<2x32xf32>
    %581 = arith.mulf %576, %580 : vector<2x32xf32>
    %582 = arith.index_cast %c5_i32 : i32 to index
    %c0_220 = arith.constant 0 : index
    %c0_221 = arith.constant 0 : index
    %583 = vector.load %arg3[%582, %c0_220, %c0_221] : memref<8x2x1xf32, #tpu.memory_space<vmem>>, vector<1x2x1xf32>
    %584 = vector.shape_cast %583 : vector<1x2x1xf32> to vector<2x1xf32>
    %cst_222 = arith.constant 0.000000e+00 : f32
    %585 = vector.broadcast %cst_222 : f32 to vector<2x1xf32>
    %586 = arith.cmpf ogt, %584, %585 : vector<2x1xf32>
    %cst_223 = arith.constant -1.000000e+30 : f32
    %587 = vector.shape_cast %586 : vector<2x1xi1> to vector<2x1xi1>
    %588 = vector.broadcast %587 : vector<2x1xi1> to vector<2x32xi1>
    %589 = vector.broadcast %cst_223 : f32 to vector<2x32xf32>
    %590 = arith.select %588, %581, %589 : vector<2x32xi1>, vector<2x32xf32>
    %591 = arith.maximumf %484, %590 : vector<2x32xf32>
    %592 = arith.index_cast %544 : i32 to index
    %c0_224 = arith.constant 0 : index
    %c0_225 = arith.constant 0 : index
    %593 = vector.load %arg2[%592, %c0_224, %c0_225] : memref<8x2x32xbf16, #tpu.memory_space<vmem>>, vector<1x2x32xbf16>
    %594 = vector.shape_cast %593 : vector<1x2x32xbf16> to vector<2x32xbf16>
    %c0_226 = arith.constant 0 : index
    %c0_227 = arith.constant 0 : index
    %595 = vector.load %arg6[%c0_226, %c0_227] : memref<32x128xbf16, #tpu.memory_space<vmem>>, vector<32x128xbf16>
    %cst_228 = arith.constant dense<0.000000e+00> : vector<2x128xf32>
    %596 = tpu.matmul %594, %595, %cst_228 {dimension_numbers = #tpu.dot_dimension_numbers<[1], [0], [0], [1], [0, 0, 1, 1], [], []>} : vector<2x32xbf16>, vector<32x128xbf16>, vector<2x128xf32> -> vector<2x128xf32>
    %c0_229 = arith.constant 0 : index
    %c0_230 = arith.constant 0 : index
    %597 = vector.load %arg8[%c0_229, %c0_230] : memref<1x128xf32, #tpu.memory_space<vmem>>, vector<1x128xf32>
    %598 = vector.broadcast %597 : vector<1x128xf32> to vector<2x128xf32>
    %599 = arith.addf %596, %598 : vector<2x128xf32>
    %600 = arith.truncf %537 : vector<2x32xf32> to vector<2x32xbf16>
    %c0_231 = arith.constant 0 : index
    %c0_232 = arith.constant 0 : index
    %601 = vector.load %arg10[%c0_231, %c0_232] : memref<32x128xbf16, #tpu.memory_space<vmem>>, vector<32x128xbf16>
    %cst_233 = arith.constant dense<0.000000e+00> : vector<2x128xf32>
    %602 = tpu.matmul %600, %601, %cst_233 {dimension_numbers = #tpu.dot_dimension_numbers<[1], [0], [0], [1], [0, 0, 1, 1], [], []>} : vector<2x32xbf16>, vector<32x128xbf16>, vector<2x128xf32> -> vector<2x128xf32>
    %603 = arith.addf %599, %602 : vector<2x128xf32>
    %604 = vector.extract_strided_slice %603 {offsets = [0, 0], sizes = [2, 32], strides = [1, 1]} : vector<2x128xf32> to vector<2x32xf32>
    %605 = arith.negf %604 : vector<2x32xf32>
    %606 = math.exp %605 : vector<2x32xf32>
    %cst_234 = arith.constant 1.000000e+00 : f32
    %607 = vector.broadcast %cst_234 : f32 to vector<2x32xf32>
    %608 = arith.addf %607, %606 : vector<2x32xf32>
    %609 = arith.divf %607, %608 : vector<2x32xf32>
    %610 = vector.extract_strided_slice %603 {offsets = [0, 32], sizes = [2, 32], strides = [1, 1]} : vector<2x128xf32> to vector<2x32xf32>
    %611 = arith.negf %610 : vector<2x32xf32>
    %612 = math.exp %611 : vector<2x32xf32>
    %cst_235 = arith.constant 1.000000e+00 : f32
    %613 = vector.broadcast %cst_235 : f32 to vector<2x32xf32>
    %614 = arith.addf %613, %612 : vector<2x32xf32>
    %615 = arith.divf %613, %614 : vector<2x32xf32>
    %616 = vector.extract_strided_slice %603 {offsets = [0, 64], sizes = [2, 32], strides = [1, 1]} : vector<2x128xf32> to vector<2x32xf32>
    %617 = math.tanh %616 : vector<2x32xf32>
    %618 = vector.extract_strided_slice %603 {offsets = [0, 96], sizes = [2, 32], strides = [1, 1]} : vector<2x128xf32> to vector<2x32xf32>
    %619 = arith.negf %618 : vector<2x32xf32>
    %620 = math.exp %619 : vector<2x32xf32>
    %cst_236 = arith.constant 1.000000e+00 : f32
    %621 = vector.broadcast %cst_236 : f32 to vector<2x32xf32>
    %622 = arith.addf %621, %620 : vector<2x32xf32>
    %623 = arith.divf %621, %622 : vector<2x32xf32>
    %624 = arith.mulf %615, %543 : vector<2x32xf32>
    %625 = arith.mulf %609, %617 : vector<2x32xf32>
    %626 = arith.addf %624, %625 : vector<2x32xf32>
    %627 = math.tanh %626 : vector<2x32xf32>
    %628 = arith.mulf %623, %627 : vector<2x32xf32>
    %629 = arith.index_cast %544 : i32 to index
    %c0_237 = arith.constant 0 : index
    %c0_238 = arith.constant 0 : index
    %630 = vector.load %arg4[%629, %c0_237, %c0_238] : memref<8x2x1xf32, #tpu.memory_space<vmem>>, vector<1x2x1xf32>
    %631 = vector.shape_cast %630 : vector<1x2x1xf32> to vector<2x1xf32>
    %cst_239 = arith.constant 0.000000e+00 : f32
    %632 = vector.broadcast %cst_239 : f32 to vector<2x1xf32>
    %633 = arith.cmpf ogt, %631, %632 : vector<2x1xf32>
    %cst_240 = arith.constant -1.000000e+30 : f32
    %634 = vector.shape_cast %633 : vector<2x1xi1> to vector<2x1xi1>
    %635 = vector.broadcast %634 : vector<2x1xi1> to vector<2x32xi1>
    %636 = vector.broadcast %cst_240 : f32 to vector<2x32xf32>
    %637 = arith.select %635, %628, %636 : vector<2x32xi1>, vector<2x32xf32>
    %638 = arith.maximumf %531, %637 : vector<2x32xf32>
    %cst_241 = arith.constant 0.000000e+00 : f32
    %639 = vector.broadcast %cst_241 : f32 to vector<2x1xf32>
    %640 = arith.cmpf ogt, %631, %639 : vector<2x1xf32>
    %cst_242 = arith.constant 0.000000e+00 : f32
    %641 = vector.shape_cast %640 : vector<2x1xi1> to vector<2x1xi1>
    %642 = vector.broadcast %641 : vector<2x1xi1> to vector<2x32xi1>
    %643 = vector.broadcast %cst_242 : f32 to vector<2x32xf32>
    %644 = arith.select %642, %628, %643 : vector<2x32xi1>, vector<2x32xf32>
    %cst_243 = arith.constant 0.000000e+00 : f32
    %645 = vector.broadcast %cst_243 : f32 to vector<2x1xf32>
    %646 = arith.cmpf ogt, %631, %645 : vector<2x1xf32>
    %cst_244 = arith.constant 0.000000e+00 : f32
    %647 = vector.shape_cast %646 : vector<2x1xi1> to vector<2x1xi1>
    %648 = vector.broadcast %647 : vector<2x1xi1> to vector<2x32xi1>
    %649 = vector.broadcast %cst_244 : f32 to vector<2x32xf32>
    %650 = arith.select %648, %626, %649 : vector<2x32xi1>, vector<2x32xf32>
    %c6_i32 = arith.constant 6 : i32
    %c7_i32_245 = arith.constant 7 : i32
    %651 = arith.subi %c7_i32_245, %c6_i32 : i32
    %652 = arith.index_cast %c6_i32 : i32 to index
    %c0_246 = arith.constant 0 : index
    %c0_247 = arith.constant 0 : index
    %653 = vector.load %arg1[%652, %c0_246, %c0_247] : memref<8x2x32xbf16, #tpu.memory_space<vmem>>, vector<1x2x32xbf16>
    %654 = vector.shape_cast %653 : vector<1x2x32xbf16> to vector<2x32xbf16>
    %c0_248 = arith.constant 0 : index
    %c0_249 = arith.constant 0 : index
    %655 = vector.load %arg5[%c0_248, %c0_249] : memref<32x128xbf16, #tpu.memory_space<vmem>>, vector<32x128xbf16>
    %cst_250 = arith.constant dense<0.000000e+00> : vector<2x128xf32>
    %656 = tpu.matmul %654, %655, %cst_250 {dimension_numbers = #tpu.dot_dimension_numbers<[1], [0], [0], [1], [0, 0, 1, 1], [], []>} : vector<2x32xbf16>, vector<32x128xbf16>, vector<2x128xf32> -> vector<2x128xf32>
    %c0_251 = arith.constant 0 : index
    %c0_252 = arith.constant 0 : index
    %657 = vector.load %arg7[%c0_251, %c0_252] : memref<1x128xf32, #tpu.memory_space<vmem>>, vector<1x128xf32>
    %658 = vector.broadcast %657 : vector<1x128xf32> to vector<2x128xf32>
    %659 = arith.addf %656, %658 : vector<2x128xf32>
    %660 = arith.truncf %581 : vector<2x32xf32> to vector<2x32xbf16>
    %c0_253 = arith.constant 0 : index
    %c0_254 = arith.constant 0 : index
    %661 = vector.load %arg9[%c0_253, %c0_254] : memref<32x128xbf16, #tpu.memory_space<vmem>>, vector<32x128xbf16>
    %cst_255 = arith.constant dense<0.000000e+00> : vector<2x128xf32>
    %662 = tpu.matmul %660, %661, %cst_255 {dimension_numbers = #tpu.dot_dimension_numbers<[1], [0], [0], [1], [0, 0, 1, 1], [], []>} : vector<2x32xbf16>, vector<32x128xbf16>, vector<2x128xf32> -> vector<2x128xf32>
    %663 = arith.addf %659, %662 : vector<2x128xf32>
    %664 = vector.extract_strided_slice %663 {offsets = [0, 0], sizes = [2, 32], strides = [1, 1]} : vector<2x128xf32> to vector<2x32xf32>
    %665 = arith.negf %664 : vector<2x32xf32>
    %666 = math.exp %665 : vector<2x32xf32>
    %cst_256 = arith.constant 1.000000e+00 : f32
    %667 = vector.broadcast %cst_256 : f32 to vector<2x32xf32>
    %668 = arith.addf %667, %666 : vector<2x32xf32>
    %669 = arith.divf %667, %668 : vector<2x32xf32>
    %670 = vector.extract_strided_slice %663 {offsets = [0, 32], sizes = [2, 32], strides = [1, 1]} : vector<2x128xf32> to vector<2x32xf32>
    %671 = arith.negf %670 : vector<2x32xf32>
    %672 = math.exp %671 : vector<2x32xf32>
    %cst_257 = arith.constant 1.000000e+00 : f32
    %673 = vector.broadcast %cst_257 : f32 to vector<2x32xf32>
    %674 = arith.addf %673, %672 : vector<2x32xf32>
    %675 = arith.divf %673, %674 : vector<2x32xf32>
    %676 = vector.extract_strided_slice %663 {offsets = [0, 64], sizes = [2, 32], strides = [1, 1]} : vector<2x128xf32> to vector<2x32xf32>
    %677 = math.tanh %676 : vector<2x32xf32>
    %678 = vector.extract_strided_slice %663 {offsets = [0, 96], sizes = [2, 32], strides = [1, 1]} : vector<2x128xf32> to vector<2x32xf32>
    %679 = arith.negf %678 : vector<2x32xf32>
    %680 = math.exp %679 : vector<2x32xf32>
    %cst_258 = arith.constant 1.000000e+00 : f32
    %681 = vector.broadcast %cst_258 : f32 to vector<2x32xf32>
    %682 = arith.addf %681, %680 : vector<2x32xf32>
    %683 = arith.divf %681, %682 : vector<2x32xf32>
    %684 = arith.mulf %675, %579 : vector<2x32xf32>
    %685 = arith.mulf %669, %677 : vector<2x32xf32>
    %686 = arith.addf %684, %685 : vector<2x32xf32>
    %687 = math.tanh %686 : vector<2x32xf32>
    %688 = arith.mulf %683, %687 : vector<2x32xf32>
    %689 = arith.index_cast %c6_i32 : i32 to index
    %c0_259 = arith.constant 0 : index
    %c0_260 = arith.constant 0 : index
    %690 = vector.load %arg3[%689, %c0_259, %c0_260] : memref<8x2x1xf32, #tpu.memory_space<vmem>>, vector<1x2x1xf32>
    %691 = vector.shape_cast %690 : vector<1x2x1xf32> to vector<2x1xf32>
    %cst_261 = arith.constant 0.000000e+00 : f32
    %692 = vector.broadcast %cst_261 : f32 to vector<2x1xf32>
    %693 = arith.cmpf ogt, %691, %692 : vector<2x1xf32>
    %cst_262 = arith.constant -1.000000e+30 : f32
    %694 = vector.shape_cast %693 : vector<2x1xi1> to vector<2x1xi1>
    %695 = vector.broadcast %694 : vector<2x1xi1> to vector<2x32xi1>
    %696 = vector.broadcast %cst_262 : f32 to vector<2x32xf32>
    %697 = arith.select %695, %688, %696 : vector<2x32xi1>, vector<2x32xf32>
    %698 = arith.maximumf %591, %697 : vector<2x32xf32>
    %699 = arith.index_cast %651 : i32 to index
    %c0_263 = arith.constant 0 : index
    %c0_264 = arith.constant 0 : index
    %700 = vector.load %arg2[%699, %c0_263, %c0_264] : memref<8x2x32xbf16, #tpu.memory_space<vmem>>, vector<1x2x32xbf16>
    %701 = vector.shape_cast %700 : vector<1x2x32xbf16> to vector<2x32xbf16>
    %c0_265 = arith.constant 0 : index
    %c0_266 = arith.constant 0 : index
    %702 = vector.load %arg6[%c0_265, %c0_266] : memref<32x128xbf16, #tpu.memory_space<vmem>>, vector<32x128xbf16>
    %cst_267 = arith.constant dense<0.000000e+00> : vector<2x128xf32>
    %703 = tpu.matmul %701, %702, %cst_267 {dimension_numbers = #tpu.dot_dimension_numbers<[1], [0], [0], [1], [0, 0, 1, 1], [], []>} : vector<2x32xbf16>, vector<32x128xbf16>, vector<2x128xf32> -> vector<2x128xf32>
    %c0_268 = arith.constant 0 : index
    %c0_269 = arith.constant 0 : index
    %704 = vector.load %arg8[%c0_268, %c0_269] : memref<1x128xf32, #tpu.memory_space<vmem>>, vector<1x128xf32>
    %705 = vector.broadcast %704 : vector<1x128xf32> to vector<2x128xf32>
    %706 = arith.addf %703, %705 : vector<2x128xf32>
    %707 = arith.truncf %644 : vector<2x32xf32> to vector<2x32xbf16>
    %c0_270 = arith.constant 0 : index
    %c0_271 = arith.constant 0 : index
    %708 = vector.load %arg10[%c0_270, %c0_271] : memref<32x128xbf16, #tpu.memory_space<vmem>>, vector<32x128xbf16>
    %cst_272 = arith.constant dense<0.000000e+00> : vector<2x128xf32>
    %709 = tpu.matmul %707, %708, %cst_272 {dimension_numbers = #tpu.dot_dimension_numbers<[1], [0], [0], [1], [0, 0, 1, 1], [], []>} : vector<2x32xbf16>, vector<32x128xbf16>, vector<2x128xf32> -> vector<2x128xf32>
    %710 = arith.addf %706, %709 : vector<2x128xf32>
    %711 = vector.extract_strided_slice %710 {offsets = [0, 0], sizes = [2, 32], strides = [1, 1]} : vector<2x128xf32> to vector<2x32xf32>
    %712 = arith.negf %711 : vector<2x32xf32>
    %713 = math.exp %712 : vector<2x32xf32>
    %cst_273 = arith.constant 1.000000e+00 : f32
    %714 = vector.broadcast %cst_273 : f32 to vector<2x32xf32>
    %715 = arith.addf %714, %713 : vector<2x32xf32>
    %716 = arith.divf %714, %715 : vector<2x32xf32>
    %717 = vector.extract_strided_slice %710 {offsets = [0, 32], sizes = [2, 32], strides = [1, 1]} : vector<2x128xf32> to vector<2x32xf32>
    %718 = arith.negf %717 : vector<2x32xf32>
    %719 = math.exp %718 : vector<2x32xf32>
    %cst_274 = arith.constant 1.000000e+00 : f32
    %720 = vector.broadcast %cst_274 : f32 to vector<2x32xf32>
    %721 = arith.addf %720, %719 : vector<2x32xf32>
    %722 = arith.divf %720, %721 : vector<2x32xf32>
    %723 = vector.extract_strided_slice %710 {offsets = [0, 64], sizes = [2, 32], strides = [1, 1]} : vector<2x128xf32> to vector<2x32xf32>
    %724 = math.tanh %723 : vector<2x32xf32>
    %725 = vector.extract_strided_slice %710 {offsets = [0, 96], sizes = [2, 32], strides = [1, 1]} : vector<2x128xf32> to vector<2x32xf32>
    %726 = arith.negf %725 : vector<2x32xf32>
    %727 = math.exp %726 : vector<2x32xf32>
    %cst_275 = arith.constant 1.000000e+00 : f32
    %728 = vector.broadcast %cst_275 : f32 to vector<2x32xf32>
    %729 = arith.addf %728, %727 : vector<2x32xf32>
    %730 = arith.divf %728, %729 : vector<2x32xf32>
    %731 = arith.mulf %722, %650 : vector<2x32xf32>
    %732 = arith.mulf %716, %724 : vector<2x32xf32>
    %733 = arith.addf %731, %732 : vector<2x32xf32>
    %734 = math.tanh %733 : vector<2x32xf32>
    %735 = arith.mulf %730, %734 : vector<2x32xf32>
    %736 = arith.index_cast %651 : i32 to index
    %c0_276 = arith.constant 0 : index
    %c0_277 = arith.constant 0 : index
    %737 = vector.load %arg4[%736, %c0_276, %c0_277] : memref<8x2x1xf32, #tpu.memory_space<vmem>>, vector<1x2x1xf32>
    %738 = vector.shape_cast %737 : vector<1x2x1xf32> to vector<2x1xf32>
    %cst_278 = arith.constant 0.000000e+00 : f32
    %739 = vector.broadcast %cst_278 : f32 to vector<2x1xf32>
    %740 = arith.cmpf ogt, %738, %739 : vector<2x1xf32>
    %cst_279 = arith.constant -1.000000e+30 : f32
    %741 = vector.shape_cast %740 : vector<2x1xi1> to vector<2x1xi1>
    %742 = vector.broadcast %741 : vector<2x1xi1> to vector<2x32xi1>
    %743 = vector.broadcast %cst_279 : f32 to vector<2x32xf32>
    %744 = arith.select %742, %735, %743 : vector<2x32xi1>, vector<2x32xf32>
    %745 = arith.maximumf %638, %744 : vector<2x32xf32>
    %cst_280 = arith.constant 0.000000e+00 : f32
    %746 = vector.broadcast %cst_280 : f32 to vector<2x1xf32>
    %747 = arith.cmpf ogt, %738, %746 : vector<2x1xf32>
    %cst_281 = arith.constant 0.000000e+00 : f32
    %748 = vector.shape_cast %747 : vector<2x1xi1> to vector<2x1xi1>
    %749 = vector.broadcast %748 : vector<2x1xi1> to vector<2x32xi1>
    %750 = vector.broadcast %cst_281 : f32 to vector<2x32xf32>
    %751 = arith.select %749, %735, %750 : vector<2x32xi1>, vector<2x32xf32>
    %cst_282 = arith.constant 0.000000e+00 : f32
    %752 = vector.broadcast %cst_282 : f32 to vector<2x1xf32>
    %753 = arith.cmpf ogt, %738, %752 : vector<2x1xf32>
    %cst_283 = arith.constant 0.000000e+00 : f32
    %754 = vector.shape_cast %753 : vector<2x1xi1> to vector<2x1xi1>
    %755 = vector.broadcast %754 : vector<2x1xi1> to vector<2x32xi1>
    %756 = vector.broadcast %cst_283 : f32 to vector<2x32xf32>
    %757 = arith.select %755, %733, %756 : vector<2x32xi1>, vector<2x32xf32>
    %c7_i32_284 = arith.constant 7 : i32
    %c7_i32_285 = arith.constant 7 : i32
    %758 = arith.subi %c7_i32_285, %c7_i32_284 : i32
    %759 = arith.index_cast %c7_i32_284 : i32 to index
    %c0_286 = arith.constant 0 : index
    %c0_287 = arith.constant 0 : index
    %760 = vector.load %arg1[%759, %c0_286, %c0_287] : memref<8x2x32xbf16, #tpu.memory_space<vmem>>, vector<1x2x32xbf16>
    %761 = vector.shape_cast %760 : vector<1x2x32xbf16> to vector<2x32xbf16>
    %c0_288 = arith.constant 0 : index
    %c0_289 = arith.constant 0 : index
    %762 = vector.load %arg5[%c0_288, %c0_289] : memref<32x128xbf16, #tpu.memory_space<vmem>>, vector<32x128xbf16>
    %cst_290 = arith.constant dense<0.000000e+00> : vector<2x128xf32>
    %763 = tpu.matmul %761, %762, %cst_290 {dimension_numbers = #tpu.dot_dimension_numbers<[1], [0], [0], [1], [0, 0, 1, 1], [], []>} : vector<2x32xbf16>, vector<32x128xbf16>, vector<2x128xf32> -> vector<2x128xf32>
    %c0_291 = arith.constant 0 : index
    %c0_292 = arith.constant 0 : index
    %764 = vector.load %arg7[%c0_291, %c0_292] : memref<1x128xf32, #tpu.memory_space<vmem>>, vector<1x128xf32>
    %765 = vector.broadcast %764 : vector<1x128xf32> to vector<2x128xf32>
    %766 = arith.addf %763, %765 : vector<2x128xf32>
    %767 = arith.truncf %688 : vector<2x32xf32> to vector<2x32xbf16>
    %c0_293 = arith.constant 0 : index
    %c0_294 = arith.constant 0 : index
    %768 = vector.load %arg9[%c0_293, %c0_294] : memref<32x128xbf16, #tpu.memory_space<vmem>>, vector<32x128xbf16>
    %cst_295 = arith.constant dense<0.000000e+00> : vector<2x128xf32>
    %769 = tpu.matmul %767, %768, %cst_295 {dimension_numbers = #tpu.dot_dimension_numbers<[1], [0], [0], [1], [0, 0, 1, 1], [], []>} : vector<2x32xbf16>, vector<32x128xbf16>, vector<2x128xf32> -> vector<2x128xf32>
    %770 = arith.addf %766, %769 : vector<2x128xf32>
    %771 = vector.extract_strided_slice %770 {offsets = [0, 0], sizes = [2, 32], strides = [1, 1]} : vector<2x128xf32> to vector<2x32xf32>
    %772 = arith.negf %771 : vector<2x32xf32>
    %773 = math.exp %772 : vector<2x32xf32>
    %cst_296 = arith.constant 1.000000e+00 : f32
    %774 = vector.broadcast %cst_296 : f32 to vector<2x32xf32>
    %775 = arith.addf %774, %773 : vector<2x32xf32>
    %776 = arith.divf %774, %775 : vector<2x32xf32>
    %777 = vector.extract_strided_slice %770 {offsets = [0, 32], sizes = [2, 32], strides = [1, 1]} : vector<2x128xf32> to vector<2x32xf32>
    %778 = arith.negf %777 : vector<2x32xf32>
    %779 = math.exp %778 : vector<2x32xf32>
    %cst_297 = arith.constant 1.000000e+00 : f32
    %780 = vector.broadcast %cst_297 : f32 to vector<2x32xf32>
    %781 = arith.addf %780, %779 : vector<2x32xf32>
    %782 = arith.divf %780, %781 : vector<2x32xf32>
    %783 = vector.extract_strided_slice %770 {offsets = [0, 64], sizes = [2, 32], strides = [1, 1]} : vector<2x128xf32> to vector<2x32xf32>
    %784 = math.tanh %783 : vector<2x32xf32>
    %785 = vector.extract_strided_slice %770 {offsets = [0, 96], sizes = [2, 32], strides = [1, 1]} : vector<2x128xf32> to vector<2x32xf32>
    %786 = arith.negf %785 : vector<2x32xf32>
    %787 = math.exp %786 : vector<2x32xf32>
    %cst_298 = arith.constant 1.000000e+00 : f32
    %788 = vector.broadcast %cst_298 : f32 to vector<2x32xf32>
    %789 = arith.addf %788, %787 : vector<2x32xf32>
    %790 = arith.divf %788, %789 : vector<2x32xf32>
    %791 = arith.mulf %782, %686 : vector<2x32xf32>
    %792 = arith.mulf %776, %784 : vector<2x32xf32>
    %793 = arith.addf %791, %792 : vector<2x32xf32>
    %794 = math.tanh %793 : vector<2x32xf32>
    %795 = arith.mulf %790, %794 : vector<2x32xf32>
    %796 = arith.index_cast %c7_i32_284 : i32 to index
    %c0_299 = arith.constant 0 : index
    %c0_300 = arith.constant 0 : index
    %797 = vector.load %arg3[%796, %c0_299, %c0_300] : memref<8x2x1xf32, #tpu.memory_space<vmem>>, vector<1x2x1xf32>
    %798 = vector.shape_cast %797 : vector<1x2x1xf32> to vector<2x1xf32>
    %cst_301 = arith.constant 0.000000e+00 : f32
    %799 = vector.broadcast %cst_301 : f32 to vector<2x1xf32>
    %800 = arith.cmpf ogt, %798, %799 : vector<2x1xf32>
    %cst_302 = arith.constant -1.000000e+30 : f32
    %801 = vector.shape_cast %800 : vector<2x1xi1> to vector<2x1xi1>
    %802 = vector.broadcast %801 : vector<2x1xi1> to vector<2x32xi1>
    %803 = vector.broadcast %cst_302 : f32 to vector<2x32xf32>
    %804 = arith.select %802, %795, %803 : vector<2x32xi1>, vector<2x32xf32>
    %805 = arith.maximumf %698, %804 : vector<2x32xf32>
    %806 = arith.index_cast %758 : i32 to index
    %c0_303 = arith.constant 0 : index
    %c0_304 = arith.constant 0 : index
    %807 = vector.load %arg2[%806, %c0_303, %c0_304] : memref<8x2x32xbf16, #tpu.memory_space<vmem>>, vector<1x2x32xbf16>
    %808 = vector.shape_cast %807 : vector<1x2x32xbf16> to vector<2x32xbf16>
    %c0_305 = arith.constant 0 : index
    %c0_306 = arith.constant 0 : index
    %809 = vector.load %arg6[%c0_305, %c0_306] : memref<32x128xbf16, #tpu.memory_space<vmem>>, vector<32x128xbf16>
    %cst_307 = arith.constant dense<0.000000e+00> : vector<2x128xf32>
    %810 = tpu.matmul %808, %809, %cst_307 {dimension_numbers = #tpu.dot_dimension_numbers<[1], [0], [0], [1], [0, 0, 1, 1], [], []>} : vector<2x32xbf16>, vector<32x128xbf16>, vector<2x128xf32> -> vector<2x128xf32>
    %c0_308 = arith.constant 0 : index
    %c0_309 = arith.constant 0 : index
    %811 = vector.load %arg8[%c0_308, %c0_309] : memref<1x128xf32, #tpu.memory_space<vmem>>, vector<1x128xf32>
    %812 = vector.broadcast %811 : vector<1x128xf32> to vector<2x128xf32>
    %813 = arith.addf %810, %812 : vector<2x128xf32>
    %814 = arith.truncf %751 : vector<2x32xf32> to vector<2x32xbf16>
    %c0_310 = arith.constant 0 : index
    %c0_311 = arith.constant 0 : index
    %815 = vector.load %arg10[%c0_310, %c0_311] : memref<32x128xbf16, #tpu.memory_space<vmem>>, vector<32x128xbf16>
    %cst_312 = arith.constant dense<0.000000e+00> : vector<2x128xf32>
    %816 = tpu.matmul %814, %815, %cst_312 {dimension_numbers = #tpu.dot_dimension_numbers<[1], [0], [0], [1], [0, 0, 1, 1], [], []>} : vector<2x32xbf16>, vector<32x128xbf16>, vector<2x128xf32> -> vector<2x128xf32>
    %817 = arith.addf %813, %816 : vector<2x128xf32>
    %818 = vector.extract_strided_slice %817 {offsets = [0, 0], sizes = [2, 32], strides = [1, 1]} : vector<2x128xf32> to vector<2x32xf32>
    %819 = arith.negf %818 : vector<2x32xf32>
    %820 = math.exp %819 : vector<2x32xf32>
    %cst_313 = arith.constant 1.000000e+00 : f32
    %821 = vector.broadcast %cst_313 : f32 to vector<2x32xf32>
    %822 = arith.addf %821, %820 : vector<2x32xf32>
    %823 = arith.divf %821, %822 : vector<2x32xf32>
    %824 = vector.extract_strided_slice %817 {offsets = [0, 32], sizes = [2, 32], strides = [1, 1]} : vector<2x128xf32> to vector<2x32xf32>
    %825 = arith.negf %824 : vector<2x32xf32>
    %826 = math.exp %825 : vector<2x32xf32>
    %cst_314 = arith.constant 1.000000e+00 : f32
    %827 = vector.broadcast %cst_314 : f32 to vector<2x32xf32>
    %828 = arith.addf %827, %826 : vector<2x32xf32>
    %829 = arith.divf %827, %828 : vector<2x32xf32>
    %830 = vector.extract_strided_slice %817 {offsets = [0, 64], sizes = [2, 32], strides = [1, 1]} : vector<2x128xf32> to vector<2x32xf32>
    %831 = math.tanh %830 : vector<2x32xf32>
    %832 = vector.extract_strided_slice %817 {offsets = [0, 96], sizes = [2, 32], strides = [1, 1]} : vector<2x128xf32> to vector<2x32xf32>
    %833 = arith.negf %832 : vector<2x32xf32>
    %834 = math.exp %833 : vector<2x32xf32>
    %cst_315 = arith.constant 1.000000e+00 : f32
    %835 = vector.broadcast %cst_315 : f32 to vector<2x32xf32>
    %836 = arith.addf %835, %834 : vector<2x32xf32>
    %837 = arith.divf %835, %836 : vector<2x32xf32>
    %838 = arith.mulf %829, %757 : vector<2x32xf32>
    %839 = arith.mulf %823, %831 : vector<2x32xf32>
    %840 = arith.addf %838, %839 : vector<2x32xf32>
    %841 = math.tanh %840 : vector<2x32xf32>
    %842 = arith.mulf %837, %841 : vector<2x32xf32>
    %843 = arith.index_cast %758 : i32 to index
    %c0_316 = arith.constant 0 : index
    %c0_317 = arith.constant 0 : index
    %844 = vector.load %arg4[%843, %c0_316, %c0_317] : memref<8x2x1xf32, #tpu.memory_space<vmem>>, vector<1x2x1xf32>
    %845 = vector.shape_cast %844 : vector<1x2x1xf32> to vector<2x1xf32>
    %cst_318 = arith.constant 0.000000e+00 : f32
    %846 = vector.broadcast %cst_318 : f32 to vector<2x1xf32>
    %847 = arith.cmpf ogt, %845, %846 : vector<2x1xf32>
    %cst_319 = arith.constant -1.000000e+30 : f32
    %848 = vector.shape_cast %847 : vector<2x1xi1> to vector<2x1xi1>
    %849 = vector.broadcast %848 : vector<2x1xi1> to vector<2x32xi1>
    %850 = vector.broadcast %cst_319 : f32 to vector<2x32xf32>
    %851 = arith.select %849, %842, %850 : vector<2x32xi1>, vector<2x32xf32>
    %852 = arith.maximumf %745, %851 : vector<2x32xf32>
    %cst_320 = arith.constant 0.000000e+00 : f32
    %853 = vector.broadcast %cst_320 : f32 to vector<2x1xf32>
    %854 = arith.cmpf ogt, %845, %853 : vector<2x1xf32>
    %cst_321 = arith.constant 0.000000e+00 : f32
    %855 = vector.shape_cast %854 : vector<2x1xi1> to vector<2x1xi1>
    %856 = vector.broadcast %855 : vector<2x1xi1> to vector<2x32xi1>
    %857 = vector.broadcast %cst_321 : f32 to vector<2x32xf32>
    %858 = arith.select %856, %842, %857 : vector<2x32xi1>, vector<2x32xf32>
    %cst_322 = arith.constant 0.000000e+00 : f32
    %859 = vector.broadcast %cst_322 : f32 to vector<2x1xf32>
    %860 = arith.cmpf ogt, %845, %859 : vector<2x1xf32>
    %cst_323 = arith.constant 0.000000e+00 : f32
    %861 = vector.shape_cast %860 : vector<2x1xi1> to vector<2x1xi1>
    %862 = vector.broadcast %861 : vector<2x1xi1> to vector<2x32xi1>
    %863 = vector.broadcast %cst_323 : f32 to vector<2x32xf32>
    %864 = arith.select %862, %840, %863 : vector<2x32xi1>, vector<2x32xf32>
    %c8_i32 = arith.constant 8 : i32
    %c0_324 = arith.constant 0 : index
    %c0_325 = arith.constant 0 : index
    %865 = vector.load %arg14[%c0_324, %c0_325] : memref<2x32xf32, #tpu.memory_space<vmem>>, vector<2x32xf32>
    tpu.vector_store %arg14[%c0_324, %c0_325], %795 {strides = array<i32>} : memref<2x32xf32, #tpu.memory_space<vmem>>, vector<2x32xf32>,
    %c0_326 = arith.constant 0 : index
    %c0_327 = arith.constant 0 : index
    %866 = vector.load %arg15[%c0_326, %c0_327] : memref<2x32xf32, #tpu.memory_space<vmem>>, vector<2x32xf32>
    tpu.vector_store %arg15[%c0_326, %c0_327], %793 {strides = array<i32>} : memref<2x32xf32, #tpu.memory_space<vmem>>, vector<2x32xf32>,
    %c0_328 = arith.constant 0 : index
    %c0_329 = arith.constant 0 : index
    %867 = vector.load %arg16[%c0_328, %c0_329] : memref<2x32xf32, #tpu.memory_space<vmem>>, vector<2x32xf32>
    tpu.vector_store %arg16[%c0_328, %c0_329], %858 {strides = array<i32>} : memref<2x32xf32, #tpu.memory_space<vmem>>, vector<2x32xf32>,
    %c0_330 = arith.constant 0 : index
    %c0_331 = arith.constant 0 : index
    %868 = vector.load %arg17[%c0_330, %c0_331] : memref<2x32xf32, #tpu.memory_space<vmem>>, vector<2x32xf32>
    tpu.vector_store %arg17[%c0_330, %c0_331], %864 {strides = array<i32>} : memref<2x32xf32, #tpu.memory_space<vmem>>, vector<2x32xf32>,
    %c0_332 = arith.constant 0 : index
    %c0_333 = arith.constant 0 : index
    %869 = vector.load %arg18[%c0_332, %c0_333] : memref<2x32xf32, #tpu.memory_space<vmem>>, vector<2x32xf32>
    tpu.vector_store %arg18[%c0_332, %c0_333], %805 {strides = array<i32>} : memref<2x32xf32, #tpu.memory_space<vmem>>, vector<2x32xf32>,
    %c0_334 = arith.constant 0 : index
    %c0_335 = arith.constant 0 : index
    %870 = vector.load %arg19[%c0_334, %c0_335] : memref<2x32xf32, #tpu.memory_space<vmem>>, vector<2x32xf32>
    tpu.vector_store %arg19[%c0_334, %c0_335], %852 {strides = array<i32>} : memref<2x32xf32, #tpu.memory_space<vmem>>, vector<2x32xf32>,
    %c0_i32_336 = arith.constant 0 : i32
    %871 = arith.cmpi eq, %arg0, %c0_i32_336 : i32
    %872 = arith.extui %871 : i1 to i32
    %c0_i32_337 = arith.constant 0 : i32
    %873 = arith.cmpi ne, %872, %c0_i32_337 : i32
    scf.if %873 {
      %c0_338 = arith.constant 0 : index
      %c0_339 = arith.constant 0 : index
      %874 = vector.load %arg11[%c0_338, %c0_339] : memref<64x32xf32, #tpu.memory_space<vmem>>, vector<32x32xf32>
      %cst_340 = arith.constant dense<0.000000e+00> : vector<2x32xf32>
      %875 = tpu.matmul %805, %874, %cst_340 {dimension_numbers = #tpu.dot_dimension_numbers<[1], [0], [0], [1], [0, 0, 1, 1], [], []>} : vector<2x32xf32>, vector<32x32xf32>, vector<2x32xf32> -> vector<2x32xf32>
      %c32 = arith.constant 32 : index
      %c0_341 = arith.constant 0 : index
      %876 = vector.load %arg11[%c32, %c0_341] : memref<64x32xf32, #tpu.memory_space<vmem>>, vector<32x32xf32>
      %cst_342 = arith.constant dense<0.000000e+00> : vector<2x32xf32>
      %877 = tpu.matmul %852, %876, %cst_342 {dimension_numbers = #tpu.dot_dimension_numbers<[1], [0], [0], [1], [0, 0, 1, 1], [], []>} : vector<2x32xf32>, vector<32x32xf32>, vector<2x32xf32> -> vector<2x32xf32>
      %878 = arith.addf %875, %877 : vector<2x32xf32>
      %c0_343 = arith.constant 0 : index
      %c0_344 = arith.constant 0 : index
      %879 = vector.load %arg12[%c0_343, %c0_344] : memref<1x32xf32, #tpu.memory_space<vmem>>, vector<1x32xf32>
      %880 = vector.broadcast %879 : vector<1x32xf32> to vector<2x32xf32>
      %881 = arith.addf %878, %880 : vector<2x32xf32>
      %c0_345 = arith.constant 0 : index
      %c0_346 = arith.constant 0 : index
      %882 = vector.load %arg13[%c0_345, %c0_346] : memref<2x32xf32, #tpu.memory_space<vmem>>, vector<2x32xf32>
      tpu.vector_store %arg13[%c0_345, %c0_346], %881 {strides = array<i32>} : memref<2x32xf32, #tpu.memory_space<vmem>>, vector<2x32xf32>,
    } else {
    }
    return
  }
  func.func @transform_0(%arg0: i32) -> (i32, i32, i32) {
    %c0_i32 = arith.constant 0 : i32
    %c0_i32_0 = arith.constant 0 : i32
    %c0_i32_1 = arith.constant 0 : i32
    return %arg0, %c0_i32, %c0_i32_0 : i32, i32, i32
  }
  func.func @transform_1(%arg0: i32) -> (i32, i32, i32) {
    %c0_i32 = arith.constant 0 : i32
    %0 = arith.subi %c0_i32, %arg0 : i32
    %c0_i32_0 = arith.constant 0 : i32
    %c0_i32_1 = arith.constant 0 : i32
    %c0_i32_2 = arith.constant 0 : i32
    return %0, %c0_i32_0, %c0_i32_1 : i32, i32, i32
  }
  func.func @transform_2(%arg0: i32) -> (i32, i32, i32) {
    %c0_i32 = arith.constant 0 : i32
    %c0_i32_0 = arith.constant 0 : i32
    %c0_i32_1 = arith.constant 0 : i32
    return %arg0, %c0_i32, %c0_i32_0 : i32, i32, i32
  }
  func.func @transform_3(%arg0: i32) -> (i32, i32, i32) {
    %c0_i32 = arith.constant 0 : i32
    %0 = arith.subi %c0_i32, %arg0 : i32
    %c0_i32_0 = arith.constant 0 : i32
    %c0_i32_1 = arith.constant 0 : i32
    %c0_i32_2 = arith.constant 0 : i32
    return %0, %c0_i32_0, %c0_i32_1 : i32, i32, i32
  }
  func.func @transform_4(%arg0: i32) -> (i32, i32) {
    %c0_i32 = arith.constant 0 : i32
    %c0_i32_0 = arith.constant 0 : i32
    %c0_i32_1 = arith.constant 0 : i32
    return %c0_i32, %c0_i32_0 : i32, i32
  }
  func.func @transform_5(%arg0: i32) -> (i32, i32) {
    %c0_i32 = arith.constant 0 : i32
    %c0_i32_0 = arith.constant 0 : i32
    %c0_i32_1 = arith.constant 0 : i32
    return %c0_i32, %c0_i32_0 : i32, i32
  }
  func.func @transform_6(%arg0: i32) -> (i32, i32) {
    %c0_i32 = arith.constant 0 : i32
    %c0_i32_0 = arith.constant 0 : i32
    %c0_i32_1 = arith.constant 0 : i32
    return %c0_i32, %c0_i32_0 : i32, i32
  }
  func.func @transform_7(%arg0: i32) -> (i32, i32) {
    %c0_i32 = arith.constant 0 : i32
    %c0_i32_0 = arith.constant 0 : i32
    %c0_i32_1 = arith.constant 0 : i32
    return %c0_i32, %c0_i32_0 : i32, i32
  }
  func.func @transform_8(%arg0: i32) -> (i32, i32) {
    %c0_i32 = arith.constant 0 : i32
    %c0_i32_0 = arith.constant 0 : i32
    %c0_i32_1 = arith.constant 0 : i32
    return %c0_i32, %c0_i32_0 : i32, i32
  }
  func.func @transform_9(%arg0: i32) -> (i32, i32) {
    %c0_i32 = arith.constant 0 : i32
    %c0_i32_0 = arith.constant 0 : i32
    %c0_i32_1 = arith.constant 0 : i32
    return %c0_i32, %c0_i32_0 : i32, i32
  }
  func.func @transform_10(%arg0: i32) -> (i32, i32) {
    %c0_i32 = arith.constant 0 : i32
    %c0_i32_0 = arith.constant 0 : i32
    %c0_i32_1 = arith.constant 0 : i32
    return %c0_i32, %c0_i32_0 : i32, i32
  }
  func.func @transform_11(%arg0: i32) -> (i32, i32) {
    %c0_i32 = arith.constant 0 : i32
    %c0_i32_0 = arith.constant 0 : i32
    %c0_i32_1 = arith.constant 0 : i32
    return %c0_i32, %c0_i32_0 : i32, i32
  }
  func.func @transform_12(%arg0: i32) -> (i32, i32) {
    %c0_i32 = arith.constant 0 : i32
    %c0_i32_0 = arith.constant 0 : i32
    %c0_i32_1 = arith.constant 0 : i32
    return %c0_i32, %c0_i32_0 : i32, i32
  }
}

module attributes {stable_mosaic.version = 11 : i64} {
  func.func @_term_kernel(%arg0: i32, %arg1: memref<8x32xf32, #tpu.memory_space<vmem>>, %arg2: memref<2x1x16xf32, #tpu.memory_space<vmem>>, %arg3: memref<2x1x8xi32, #tpu.memory_space<vmem>>, %arg4: memref<48x32xbf16, #tpu.memory_space<vmem>>, %arg5: memref<1x32xf32, #tpu.memory_space<vmem>>, %arg6: memref<32x32xbf16, #tpu.memory_space<vmem>>, %arg7: memref<1x32xf32, #tpu.memory_space<vmem>>, %arg8: memref<32x32xbf16, #tpu.memory_space<vmem>>, %arg9: memref<1x32xf32, #tpu.memory_space<vmem>>, %arg10: memref<32x32xbf16, #tpu.memory_space<vmem>>, %arg11: memref<1x32xf32, #tpu.memory_space<vmem>>, %arg12: memref<32x32xbf16, #tpu.memory_space<vmem>>, %arg13: memref<1x32xf32, #tpu.memory_space<vmem>>, %arg14: memref<32x32xbf16, #tpu.memory_space<vmem>>, %arg15: memref<1x32xf32, #tpu.memory_space<vmem>>, %arg16: memref<2x8x8xf32, #tpu.memory_space<vmem>>) attributes {dimension_semantics = [#tpu.dimension_semantics<parallel>], iteration_bounds = array<i64: 1>, scalar_prefetch = 0 : i64, scratch_operands = 0 : i64, tpu.core_type = #tpu.core_type<tc>, window_params = [{pipeline_mode = #tpu.pipeline_mode<synchronous>, transform_indices = @transform_0, window_bounds = array<i64: 8, 32>}, {transform_indices = @transform_1, window_bounds = array<i64: 2, 1, 16>}, {transform_indices = @transform_2, window_bounds = array<i64: 2, 1, 8>}, {pipeline_mode = #tpu.pipeline_mode<synchronous>, transform_indices = @transform_3, window_bounds = array<i64: 48, 32>}, {pipeline_mode = #tpu.pipeline_mode<synchronous>, transform_indices = @transform_4, window_bounds = array<i64: 1, 32>}, {pipeline_mode = #tpu.pipeline_mode<synchronous>, transform_indices = @transform_5, window_bounds = array<i64: 32, 32>}, {pipeline_mode = #tpu.pipeline_mode<synchronous>, transform_indices = @transform_6, window_bounds = array<i64: 1, 32>}, {pipeline_mode = #tpu.pipeline_mode<synchronous>, transform_indices = @transform_7, window_bounds = array<i64: 32, 32>}, {pipeline_mode = #tpu.pipeline_mode<synchronous>, transform_indices = @transform_8, window_bounds = array<i64: 1, 32>}, {pipeline_mode = #tpu.pipeline_mode<synchronous>, transform_indices = @transform_9, window_bounds = array<i64: 32, 32>}, {pipeline_mode = #tpu.pipeline_mode<synchronous>, transform_indices = @transform_10, window_bounds = array<i64: 1, 32>}, {pipeline_mode = #tpu.pipeline_mode<synchronous>, transform_indices = @transform_11, window_bounds = array<i64: 32, 32>}, {pipeline_mode = #tpu.pipeline_mode<synchronous>, transform_indices = @transform_12, window_bounds = array<i64: 1, 32>}, {pipeline_mode = #tpu.pipeline_mode<synchronous>, transform_indices = @transform_13, window_bounds = array<i64: 32, 32>}, {pipeline_mode = #tpu.pipeline_mode<synchronous>, transform_indices = @transform_14, window_bounds = array<i64: 1, 32>}, {transform_indices = @transform_15, window_bounds = array<i64: 2, 8, 8>}]} {
    %c0 = arith.constant 0 : index
    %c0_0 = arith.constant 0 : index
    %0 = vector.load %arg1[%c0, %c0_0] : memref<8x32xf32, #tpu.memory_space<vmem>>, vector<8x32xf32>
    %1 = vector.shape_cast %0 : vector<8x32xf32> to vector<1x8x32xf32>
    %2 = vector.shape_cast %1 : vector<1x8x32xf32> to vector<1x8x32xf32>
    %3 = vector.broadcast %2 : vector<1x8x32xf32> to vector<2x8x32xf32>
    %4 = vector.shape_cast %3 : vector<2x8x32xf32> to vector<16x32xf32>
    %c0_1 = arith.constant 0 : index
    %c0_2 = arith.constant 0 : index
    %c0_3 = arith.constant 0 : index
    %5 = vector.load %arg2[%c0_1, %c0_2, %c0_3] : memref<2x1x16xf32, #tpu.memory_space<vmem>>, vector<2x1x16xf32>
    %6 = vector.shape_cast %5 : vector<2x1x16xf32> to vector<2x16xf32>
    %7 = vector.shape_cast %6 : vector<2x16xf32> to vector<2x1x16xf32>
    %8 = vector.shape_cast %7 : vector<2x1x16xf32> to vector<2x1x16xf32>
    %9 = vector.broadcast %8 : vector<2x1x16xf32> to vector<2x8x16xf32>
    %10 = vector.shape_cast %9 : vector<2x8x16xf32> to vector<16x16xf32>
    %11 = tpu.concatenate %4, %10 in 1 : vector<16x32xf32>, vector<16x16xf32> -> vector<16x48xf32>
    %12 = arith.truncf %11 : vector<16x48xf32> to vector<16x48xbf16>
    %c0_4 = arith.constant 0 : index
    %c0_5 = arith.constant 0 : index
    %13 = vector.load %arg4[%c0_4, %c0_5] : memref<48x32xbf16, #tpu.memory_space<vmem>>, vector<48x32xbf16>
    %cst = arith.constant dense<0.000000e+00> : vector<16x32xf32>
    %14 = tpu.matmul %12, %13, %cst {dimension_numbers = #tpu.dot_dimension_numbers<[1], [0], [0], [1], [0, 0, 1, 1], [], []>} : vector<16x48xbf16>, vector<48x32xbf16>, vector<16x32xf32> -> vector<16x32xf32>
    %c0_6 = arith.constant 0 : index
    %c0_7 = arith.constant 0 : index
    %15 = vector.load %arg5[%c0_6, %c0_7] : memref<1x32xf32, #tpu.memory_space<vmem>>, vector<1x32xf32>
    %16 = vector.broadcast %15 : vector<1x32xf32> to vector<16x32xf32>
    %17 = arith.addf %14, %16 : vector<16x32xf32>
    %18 = arith.truncf %17 : vector<16x32xf32> to vector<16x32xbf16>
    %c0_8 = arith.constant 0 : index
    %c0_9 = arith.constant 0 : index
    %19 = vector.load %arg6[%c0_8, %c0_9] : memref<32x32xbf16, #tpu.memory_space<vmem>>, vector<32x32xbf16>
    %cst_10 = arith.constant dense<0.000000e+00> : vector<16x32xf32>
    %20 = tpu.matmul %18, %19, %cst_10 {dimension_numbers = #tpu.dot_dimension_numbers<[1], [0], [0], [1], [0, 0, 1, 1], [], []>} : vector<16x32xbf16>, vector<32x32xbf16>, vector<16x32xf32> -> vector<16x32xf32>
    %c0_11 = arith.constant 0 : index
    %c0_12 = arith.constant 0 : index
    %21 = vector.load %arg7[%c0_11, %c0_12] : memref<1x32xf32, #tpu.memory_space<vmem>>, vector<1x32xf32>
    %22 = vector.broadcast %21 : vector<1x32xf32> to vector<16x32xf32>
    %23 = arith.addf %20, %22 : vector<16x32xf32>
    %cst_13 = arith.constant 0.000000e+00 : f32
    %24 = vector.broadcast %cst_13 : f32 to vector<16x32xf32>
    %25 = arith.maximumf %23, %24 : vector<16x32xf32>
    %26 = arith.truncf %25 : vector<16x32xf32> to vector<16x32xbf16>
    %c0_14 = arith.constant 0 : index
    %c0_15 = arith.constant 0 : index
    %27 = vector.load %arg8[%c0_14, %c0_15] : memref<32x32xbf16, #tpu.memory_space<vmem>>, vector<32x32xbf16>
    %cst_16 = arith.constant dense<0.000000e+00> : vector<16x32xf32>
    %28 = tpu.matmul %26, %27, %cst_16 {dimension_numbers = #tpu.dot_dimension_numbers<[1], [0], [0], [1], [0, 0, 1, 1], [], []>} : vector<16x32xbf16>, vector<32x32xbf16>, vector<16x32xf32> -> vector<16x32xf32>
    %c0_17 = arith.constant 0 : index
    %c0_18 = arith.constant 0 : index
    %29 = vector.load %arg9[%c0_17, %c0_18] : memref<1x32xf32, #tpu.memory_space<vmem>>, vector<1x32xf32>
    %30 = vector.broadcast %29 : vector<1x32xf32> to vector<16x32xf32>
    %31 = arith.addf %28, %30 : vector<16x32xf32>
    %cst_19 = arith.constant 0.000000e+00 : f32
    %32 = vector.broadcast %cst_19 : f32 to vector<16x32xf32>
    %33 = arith.maximumf %31, %32 : vector<16x32xf32>
    %34 = arith.addf %33, %17 : vector<16x32xf32>
    %35 = arith.truncf %34 : vector<16x32xf32> to vector<16x32xbf16>
    %c0_20 = arith.constant 0 : index
    %c0_21 = arith.constant 0 : index
    %36 = vector.load %arg10[%c0_20, %c0_21] : memref<32x32xbf16, #tpu.memory_space<vmem>>, vector<32x32xbf16>
    %cst_22 = arith.constant dense<0.000000e+00> : vector<16x32xf32>
    %37 = tpu.matmul %35, %36, %cst_22 {dimension_numbers = #tpu.dot_dimension_numbers<[1], [0], [0], [1], [0, 0, 1, 1], [], []>} : vector<16x32xbf16>, vector<32x32xbf16>, vector<16x32xf32> -> vector<16x32xf32>
    %c0_23 = arith.constant 0 : index
    %c0_24 = arith.constant 0 : index
    %38 = vector.load %arg11[%c0_23, %c0_24] : memref<1x32xf32, #tpu.memory_space<vmem>>, vector<1x32xf32>
    %39 = vector.broadcast %38 : vector<1x32xf32> to vector<16x32xf32>
    %40 = arith.addf %37, %39 : vector<16x32xf32>
    %cst_25 = arith.constant 0.000000e+00 : f32
    %41 = vector.broadcast %cst_25 : f32 to vector<16x32xf32>
    %42 = arith.maximumf %40, %41 : vector<16x32xf32>
    %43 = arith.truncf %42 : vector<16x32xf32> to vector<16x32xbf16>
    %c0_26 = arith.constant 0 : index
    %c0_27 = arith.constant 0 : index
    %44 = vector.load %arg12[%c0_26, %c0_27] : memref<32x32xbf16, #tpu.memory_space<vmem>>, vector<32x32xbf16>
    %cst_28 = arith.constant dense<0.000000e+00> : vector<16x32xf32>
    %45 = tpu.matmul %43, %44, %cst_28 {dimension_numbers = #tpu.dot_dimension_numbers<[1], [0], [0], [1], [0, 0, 1, 1], [], []>} : vector<16x32xbf16>, vector<32x32xbf16>, vector<16x32xf32> -> vector<16x32xf32>
    %c0_29 = arith.constant 0 : index
    %c0_30 = arith.constant 0 : index
    %46 = vector.load %arg13[%c0_29, %c0_30] : memref<1x32xf32, #tpu.memory_space<vmem>>, vector<1x32xf32>
    %47 = vector.broadcast %46 : vector<1x32xf32> to vector<16x32xf32>
    %48 = arith.addf %45, %47 : vector<16x32xf32>
    %cst_31 = arith.constant 0.000000e+00 : f32
    %49 = vector.broadcast %cst_31 : f32 to vector<16x32xf32>
    %50 = arith.maximumf %48, %49 : vector<16x32xf32>
    %51 = arith.addf %50, %34 : vector<16x32xf32>
    %52 = arith.truncf %51 : vector<16x32xf32> to vector<16x32xbf16>
    %c0_32 = arith.constant 0 : index
    %c0_33 = arith.constant 0 : index
    %53 = vector.load %arg14[%c0_32, %c0_33] : memref<32x32xbf16, #tpu.memory_space<vmem>>, vector<32x32xbf16>
    %cst_34 = arith.constant dense<0.000000e+00> : vector<16x32xf32>
    %54 = tpu.matmul %52, %53, %cst_34 {dimension_numbers = #tpu.dot_dimension_numbers<[1], [0], [0], [1], [0, 0, 1, 1], [], []>} : vector<16x32xbf16>, vector<32x32xbf16>, vector<16x32xf32> -> vector<16x32xf32>
    %c0_35 = arith.constant 0 : index
    %c0_36 = arith.constant 0 : index
    %55 = vector.load %arg15[%c0_35, %c0_36] : memref<1x32xf32, #tpu.memory_space<vmem>>, vector<1x32xf32>
    %56 = vector.broadcast %55 : vector<1x32xf32> to vector<16x32xf32>
    %57 = arith.addf %54, %56 : vector<16x32xf32>
    %58 = vector.shape_cast %57 : vector<16x32xf32> to vector<2x8x32xf32>
    %cst_37 = arith.constant dense<0xFF800000> : vector<2x8xf32>
    %59 = vector.multi_reduction <maximumf>, %58, %cst_37 [2] : vector<2x8x32xf32> to vector<2x8xf32>
    %60 = vector.shape_cast %59 : vector<2x8xf32> to vector<2x8x1xf32>
    %61 = vector.broadcast %60 : vector<2x8x1xf32> to vector<2x8x32xf32>
    %62 = arith.subf %58, %61 : vector<2x8x32xf32>
    %63 = math.exp %62 : vector<2x8x32xf32>
    %cst_38 = arith.constant dense<0.000000e+00> : vector<2x8xf32>
    %64 = vector.multi_reduction <add>, %63, %cst_38 [2] : vector<2x8x32xf32> to vector<2x8xf32>
    %65 = vector.shape_cast %64 : vector<2x8xf32> to vector<2x8x1xf32>
    %66 = math.log %65 : vector<2x8x1xf32>
    %67 = arith.addf %60, %66 : vector<2x8x1xf32>
    %68 = vector.broadcast %67 : vector<2x8x1xf32> to vector<2x8x32xf32>
    %69 = arith.subf %58, %68 : vector<2x8x32xf32>
    %c0_39 = arith.constant 0 : index
    %c0_40 = arith.constant 0 : index
    %c0_41 = arith.constant 0 : index
    %70 = vector.load %arg3[%c0_39, %c0_40, %c0_41] : memref<2x1x8xi32, #tpu.memory_space<vmem>>, vector<2x1x8xi32>
    %71 = vector.shape_cast %70 : vector<2x1x8xi32> to vector<2x8xi32>
    %72 = tpu.iota {dimensions = array<i32: 2>} : vector<2x8x32xi32>
    %73 = vector.shape_cast %71 : vector<2x8xi32> to vector<2x8x1xi32>
    %74 = vector.broadcast %73 : vector<2x8x1xi32> to vector<2x8x32xi32>
    %75 = arith.cmpi eq, %72, %74 : vector<2x8x32xi32>
    %76 = arith.extui %75 : vector<2x8x32xi1> to vector<2x8x32xi32>
    %77 = arith.sitofp %76 : vector<2x8x32xi32> to vector<2x8x32xf32>
    %78 = arith.truncf %77 : vector<2x8x32xf32> to vector<2x8x32xbf16>
    %79 = arith.truncf %69 : vector<2x8x32xf32> to vector<2x8x32xbf16>
    "tpu.trace_start"() <{level = 10 : i32, message = "bnv,btv->bnt"}> : () -> ()
    %cst_42 = arith.constant dense<0.000000e+00> : vector<2x8x8xf32>
    %80 = tpu.matmul %78, %79, %cst_42 {dimension_numbers = #tpu.dot_dimension_numbers<[2], [2], [1], [1], [0, 0, 0, 1, 1, 1], [0], [0]>} : vector<2x8x32xbf16>, vector<2x8x32xbf16>, vector<2x8x8xf32> -> vector<2x8x8xf32>
    "tpu.trace_stop"() : () -> ()
    %c0_43 = arith.constant 0 : index
    %c0_44 = arith.constant 0 : index
    %c0_45 = arith.constant 0 : index
    %81 = vector.load %arg16[%c0_43, %c0_44, %c0_45] : memref<2x8x8xf32, #tpu.memory_space<vmem>>, vector<2x8x8xf32>
    tpu.vector_store %arg16[%c0_43, %c0_44, %c0_45], %80 {strides = array<i32>} : memref<2x8x8xf32, #tpu.memory_space<vmem>>, vector<2x8x8xf32>,
    return
  }
  func.func @transform_0(%arg0: i32) -> (i32, i32) {
    %c0_i32 = arith.constant 0 : i32
    %c0_i32_0 = arith.constant 0 : i32
    %c0_i32_1 = arith.constant 0 : i32
    return %c0_i32, %c0_i32_0 : i32, i32
  }
  func.func @transform_1(%arg0: i32) -> (i32, i32, i32) {
    %c0_i32 = arith.constant 0 : i32
    %c0_i32_0 = arith.constant 0 : i32
    %c0_i32_1 = arith.constant 0 : i32
    return %arg0, %c0_i32, %c0_i32_0 : i32, i32, i32
  }
  func.func @transform_2(%arg0: i32) -> (i32, i32, i32) {
    %c0_i32 = arith.constant 0 : i32
    %c0_i32_0 = arith.constant 0 : i32
    %c0_i32_1 = arith.constant 0 : i32
    return %arg0, %c0_i32, %c0_i32_0 : i32, i32, i32
  }
  func.func @transform_3(%arg0: i32) -> (i32, i32) {
    %c0_i32 = arith.constant 0 : i32
    %c0_i32_0 = arith.constant 0 : i32
    %c0_i32_1 = arith.constant 0 : i32
    return %c0_i32, %c0_i32_0 : i32, i32
  }
  func.func @transform_4(%arg0: i32) -> (i32, i32) {
    %c0_i32 = arith.constant 0 : i32
    %c0_i32_0 = arith.constant 0 : i32
    %c0_i32_1 = arith.constant 0 : i32
    return %c0_i32, %c0_i32_0 : i32, i32
  }
  func.func @transform_5(%arg0: i32) -> (i32, i32) {
    %c0_i32 = arith.constant 0 : i32
    %c0_i32_0 = arith.constant 0 : i32
    %c0_i32_1 = arith.constant 0 : i32
    return %c0_i32, %c0_i32_0 : i32, i32
  }
  func.func @transform_6(%arg0: i32) -> (i32, i32) {
    %c0_i32 = arith.constant 0 : i32
    %c0_i32_0 = arith.constant 0 : i32
    %c0_i32_1 = arith.constant 0 : i32
    return %c0_i32, %c0_i32_0 : i32, i32
  }
  func.func @transform_7(%arg0: i32) -> (i32, i32) {
    %c0_i32 = arith.constant 0 : i32
    %c0_i32_0 = arith.constant 0 : i32
    %c0_i32_1 = arith.constant 0 : i32
    return %c0_i32, %c0_i32_0 : i32, i32
  }
  func.func @transform_8(%arg0: i32) -> (i32, i32) {
    %c0_i32 = arith.constant 0 : i32
    %c0_i32_0 = arith.constant 0 : i32
    %c0_i32_1 = arith.constant 0 : i32
    return %c0_i32, %c0_i32_0 : i32, i32
  }
  func.func @transform_9(%arg0: i32) -> (i32, i32) {
    %c0_i32 = arith.constant 0 : i32
    %c0_i32_0 = arith.constant 0 : i32
    %c0_i32_1 = arith.constant 0 : i32
    return %c0_i32, %c0_i32_0 : i32, i32
  }
  func.func @transform_10(%arg0: i32) -> (i32, i32) {
    %c0_i32 = arith.constant 0 : i32
    %c0_i32_0 = arith.constant 0 : i32
    %c0_i32_1 = arith.constant 0 : i32
    return %c0_i32, %c0_i32_0 : i32, i32
  }
  func.func @transform_11(%arg0: i32) -> (i32, i32) {
    %c0_i32 = arith.constant 0 : i32
    %c0_i32_0 = arith.constant 0 : i32
    %c0_i32_1 = arith.constant 0 : i32
    return %c0_i32, %c0_i32_0 : i32, i32
  }
  func.func @transform_12(%arg0: i32) -> (i32, i32) {
    %c0_i32 = arith.constant 0 : i32
    %c0_i32_0 = arith.constant 0 : i32
    %c0_i32_1 = arith.constant 0 : i32
    return %c0_i32, %c0_i32_0 : i32, i32
  }
  func.func @transform_13(%arg0: i32) -> (i32, i32) {
    %c0_i32 = arith.constant 0 : i32
    %c0_i32_0 = arith.constant 0 : i32
    %c0_i32_1 = arith.constant 0 : i32
    return %c0_i32, %c0_i32_0 : i32, i32
  }
  func.func @transform_14(%arg0: i32) -> (i32, i32) {
    %c0_i32 = arith.constant 0 : i32
    %c0_i32_0 = arith.constant 0 : i32
    %c0_i32_1 = arith.constant 0 : i32
    return %c0_i32, %c0_i32_0 : i32, i32
  }
  func.func @transform_15(%arg0: i32) -> (i32, i32, i32) {
    %c0_i32 = arith.constant 0 : i32
    %c0_i32_0 = arith.constant 0 : i32
    %c0_i32_1 = arith.constant 0 : i32
    return %arg0, %c0_i32, %c0_i32_0 : i32, i32, i32
  }
}

</mosaic_0001>

<bundles_post_ra>
// kernel: compound_cfg_forward.4
= control target key start
LH: loop header
LB: loop body
LE: loop exit
PB: predicated region body
PF: predicated region fallthrough
CT: control target
= control target key end

     0   :  { %20 = vsyncpa [#allocation3], 0  ;;  %s1787_s0 = inlined_call_operand.hbm [shape: f32[8,32], index: 0, kind: input, shape index: {}]   ;;  %s1788_s1 = inlined_call_operand.hbm [shape: f32[2,1,16], index: 1, kind: input, shape index: {}]   ;;  %s1789_s2 = inlined_call_operand.hbm [shape: s32[2,1,8], index: 2, kind: input, shape index: {}]   ;;  %s1790_s3 = inlined_call_operand.hbm [shape: bf16[48,32], index: 3, kind: input, shape index: {}]   ;;  %s1791_s4 = inlined_call_operand.hbm [shape: f32[1,32], index: 4, kind: input, shape index: {}]   ;;  %s1792_s5 = inlined_call_operand.hbm [shape: bf16[32,32], index: 5, kind: input, shape index: {}]   ;;  %s1793_s6 = inlined_call_operand.hbm [shape: f32[1,32], index: 6, kind: input, shape index: {}]   ;;  %s1794_s7 = inlined_call_operand.hbm [shape: bf16[32,32], index: 7, kind: input, shape index: {}]   ;;  %s1795_s8 = inlined_call_operand.hbm [shape: f32[1,32], index: 8, kind: input, shape index: {}]   ;;  %s1796_s9 = inlined_call_operand.hbm [shape: bf16[32,32], index: 9, kind: input, shape index: {}]   ;;  %s1797_s10 = inlined_call_operand.hbm [shape: f32[1,32], index: 10, kind: input, shape index: {}]   ;;  %s1798_s11 = inlined_call_operand.hbm [shape: bf16[32,32], index: 11, kind: input, shape index: {}]   ;;  %s1799_s12 = inlined_call_operand.hbm [shape: f32[1,32], index: 12, kind: input, shape index: {}]   ;;  %s1800_s13 = inlined_call_operand.hbm [shape: bf16[32,32], index: 13, kind: input, shape index: {}]   ;;  %s1801_s14 = inlined_call_operand.hbm [shape: f32[1,32], index: 14, kind: input, shape index: {}]   ;;  %s1802_s15 = inlined_call_operand.hbm [shape: f32[2,8,8], index: 15, kind: output, shape index: {}]  }
   0x1   :  { %21 = vsyncpa [#allocation6], 0 }
   0x2   :  { %22 = vsyncpa [#allocation9], 0 }
   0x3   :  { %23 = vsyncpa [#allocation12], 0 }
   0x4   :  { %24 = vsyncpa [#allocation15], 0 }
   0x5   :  { %25 = vsyncpa [#allocation18], 0 }
   0x6   :  { %26 = vsyncpa [#allocation21], 0 }
   0x7   :  { %27 = vsyncpa [#allocation24], 0 }
   0x8   :  { %28 = vsyncpa [#allocation4], 0  ;;  %s1404_s18 = smov [#allocation5]   ;;  %s1034_s22 = scalar_lea.hbm %s1788_s1, 32 }
   0x9   :  { %s44_s19 = sshll.u32 %s1404_s18, 4  ;;  %p1035_p0 = scmp.ne.s32.totalorder %s1788_s1, %s1034_s22  ;;  %s45_s19 = int_to_ptr.vmem [resolvable:$true] %s44_s19 }
   0xa   :  { %p1038_p1 = scmp.lt.u32.totalorder %s1034_s22, %s1788_s1 }
   0xc   :  { %p1040_p2 = pnand %p1038_p1, %p1035_p0 }
   0xe   :  { %1043 = shalt.err (!%p1040_p2)
}
   0xf   :  { %s1044_s27 = scalar_lea.vmem %s45_s19, 32  ;;  %p1049_p4 = scmp.lt.s32.totalorder %s45_s19, %s45_s19 }
  0x10   :  { %p1045_p3 = scmp.ne.s32.totalorder %s45_s19, %s1044_s27  ;;  %p1050_p5 = scmp.lt.s32.totalorder %s1044_s27, %s1044_s27 }
  0x12   :  { %p1051_p6 = por %p1050_p5, %p1049_p4 }
  0x14   :  { %p1052_p7 = pnand %p1051_p6, %p1045_p3 }
  0x16   :  { %1055 = shalt.err (!%p1052_p7)
}
  0x17   :  { %s1803_s28 = smov 16   ;;  %s1804_s29 = smov 1  }
  0x18   :  { %50 = dma.hbm_to_vmem [thread:$0]  %s1788_s1, 32, %s45_s19, [#allocation6], %s1803_s28, %s1803_s28, %s1804_s29  }
  0x19   :  { %s1407_s17 = smov [#allocation8]   ;;  %s1056_s22 = scalar_lea.hbm %s1790_s3, 384 }
  0x1a   :  { %s68_s18 = sshll.u32 %s1407_s17, 4  ;;  %p1057_p8 = scmp.ne.s32.totalorder %s1790_s3, %s1056_s22  ;;  %s69_s18 = int_to_ptr.vmem [resolvable:$true] %s68_s18 }
  0x1b   :  { %p1060_p9 = scmp.lt.u32.totalorder %s1056_s22, %s1790_s3 }
  0x1d   :  { %p1062_p10 = pnand %p1060_p9, %p1057_p8 }
  0x1f   :  { %1065 = shalt.err (!%p1062_p10)
}
  0x20   :  { %s1066_s27 = scalar_lea.vmem %s69_s18, 384  ;;  %p1071_p12 = scmp.lt.s32.totalorder %s69_s18, %s69_s18 }
  0x21   :  { %p1067_p11 = scmp.ne.s32.totalorder %s69_s18, %s1066_s27  ;;  %p1072_p13 = scmp.lt.s32.totalorder %s1066_s27, %s1066_s27 }
  0x23   :  { %p1073_p0 = por %p1072_p13, %p1071_p12 }
  0x25   :  { %p1074_p1 = pnand %p1073_p0, %p1067_p11 }
  0x27   :  { %1077 = shalt.err (!%p1074_p1)
}
  0x28   :  { %s1408_s1 = smov 64   ;;  %s1409_s19 = smov 4  }
  0x29   :  { %74 = dma.hbm_to_vmem [thread:$0]  %s1790_s3, 384, %s69_s18, [#allocation9], %s1408_s1, %s1408_s1, %s1409_s19  }
  0x2a   :  { %s1410_s17 = smov [#allocation11]   ;;  %s1411_s21 = smov [#allocation14]  }
  0x2b   :  { %s90_s20 = sshll.u32 %s1410_s17, 4  ;;  %s112_s22 = sshll.u32 %s1411_s21, 4  ;;  %s91_s20 = int_to_ptr.vmem [resolvable:$true] %s90_s20  ;;  %s1539_s22 = int_to_ptr.vmem [resolvable:$true] %s112_s22 }
  0x2c   :  { %s1078_s25 = scalar_lea.hbm %s1792_s5, 256 }
  0x2d   :  { %p1079_p2 = scmp.ne.s32.totalorder %s1792_s5, %s1078_s25  ;;  %p1082_p3 = scmp.lt.u32.totalorder %s1078_s25, %s1792_s5 }
  0x2f   :  { %p1084_p4 = pnand %p1082_p3, %p1079_p2 }
  0x31   :  { %1087 = shalt.err (!%p1084_p4)
}
  0x32   :  { %s1088_s3 = scalar_lea.vmem %s91_s20, 256  ;;  %p1093_p6 = scmp.lt.s32.totalorder %s91_s20, %s91_s20 }
  0x33   :  { %p1089_p5 = scmp.ne.s32.totalorder %s91_s20, %s1088_s3  ;;  %p1094_p7 = scmp.lt.s32.totalorder %s1088_s3, %s1088_s3 }
  0x35   :  { %p1095_p8 = por %p1094_p7, %p1093_p6 }
  0x37   :  { %p1096_p9 = pnand %p1095_p8, %p1089_p5 }
  0x39   :  { %1099 = shalt.err (!%p1096_p9)
}
  0x3a   :  { %96 = dma.hbm_to_vmem [thread:$0]  %s1792_s5, 256, %s91_s20, [#allocation12], %s1408_s1, %s1408_s1, %s1409_s19  }
  0x3b   :  { %s1100_s28 = scalar_lea.hbm %s1794_s7, 256 }
  0x3c   :  { %p1101_p10 = scmp.ne.s32.totalorder %s1794_s7, %s1100_s28  ;;  %p1104_p11 = scmp.lt.u32.totalorder %s1100_s28, %s1794_s7 }
  0x3e   :  { %p1106_p12 = pnand %p1104_p11, %p1101_p10 }
  0x40   :  { %1109 = shalt.err (!%p1106_p12)
}
  0x41   :  { %s1110_s25 = scalar_lea.vmem %s1539_s22, 256  ;;  %p1115_p0 = scmp.lt.s32.totalorder %s1539_s22, %s1539_s22 }
  0x42   :  { %p1111_p13 = scmp.ne.s32.totalorder %s1539_s22, %s1110_s25  ;;  %p1116_p1 = scmp.lt.s32.totalorder %s1110_s25, %s1110_s25 }
  0x44   :  { %p1117_p2 = por %p1116_p1, %p1115_p0 }
  0x46   :  { %p1118_p3 = pnand %p1117_p2, %p1111_p13 }
  0x48   :  { %1121 = shalt.err (!%p1118_p3)
}
  0x49   :  { %118 = dma.hbm_to_vmem [thread:$0]  %s1794_s7, 256, %s1539_s22, [#allocation15], %s1408_s1, %s1408_s1, %s1409_s19  }
  0x4a   :  { %s1412_s26 = smov [#allocation17]   ;;  %s1413_s3 = smov [#allocation20]  }
  0x4b   :  { %s134_s27 = sshll.u32 %s1412_s26, 4  ;;  %s156_s18 = sshll.u32 %s1413_s3, 4  ;;  %s135_s27 = int_to_ptr.vmem [resolvable:$true] %s134_s27  ;;  %s1576_s18 = int_to_ptr.vmem [resolvable:$true] %s156_s18 }
  0x4c   :  { %s1122_s17 = scalar_lea.hbm %s1796_s9, 256 }
  0x4d   :  { %p1123_p4 = scmp.ne.s32.totalorder %s1796_s9, %s1122_s17  ;;  %p1126_p5 = scmp.lt.u32.totalorder %s1122_s17, %s1796_s9 }
  0x4f   :  { %p1128_p6 = pnand %p1126_p5, %p1123_p4 }
  0x51   :  { %1131 = shalt.err (!%p1128_p6)
}
  0x52   :  { %s1132_s7 = scalar_lea.vmem %s135_s27, 256  ;;  %p1137_p8 = scmp.lt.s32.totalorder %s135_s27, %s135_s27 }
  0x53   :  { %p1133_p7 = scmp.ne.s32.totalorder %s135_s27, %s1132_s7  ;;  %p1138_p9 = scmp.lt.s32.totalorder %s1132_s7, %s1132_s7 }
  0x55   :  { %p1139_p10 = por %p1138_p9, %p1137_p8 }
  0x57   :  { %p1140_p11 = pnand %p1139_p10, %p1133_p7 }
  0x59   :  { %1143 = shalt.err (!%p1140_p11)
}
  0x5a   :  { %140 = dma.hbm_to_vmem [thread:$0]  %s1796_s9, 256, %s135_s27, [#allocation18], %s1408_s1, %s1408_s1, %s1409_s19  }
  0x5b   :  { %s1144_s20 = scalar_lea.hbm %s1798_s11, 256 }
  0x5c   :  { %p1145_p12 = scmp.ne.s32.totalorder %s1798_s11, %s1144_s20  ;;  %p1148_p13 = scmp.lt.u32.totalorder %s1144_s20, %s1798_s11 }
  0x5e   :  { %p1150_p0 = pnand %p1148_p13, %p1145_p12 }
  0x60   :  { %1153 = shalt.err (!%p1150_p0)
}
  0x61   :  { %s1154_s17 = scalar_lea.vmem %s1576_s18, 256  ;;  %p1159_p2 = scmp.lt.s32.totalorder %s1576_s18, %s1576_s18 }
  0x62   :  { %p1155_p1 = scmp.ne.s32.totalorder %s1576_s18, %s1154_s17  ;;  %p1160_p3 = scmp.lt.s32.totalorder %s1154_s17, %s1154_s17 }
  0x64   :  { %p1161_p4 = por %p1160_p3, %p1159_p2 }
  0x66   :  { %p1162_p5 = pnand %p1161_p4, %p1155_p1 }
  0x68   :  { %1165 = shalt.err (!%p1162_p5)
}
  0x69   :  { %162 = dma.hbm_to_vmem [thread:$0]  %s1798_s11, 256, %s1576_s18, [#allocation21], %s1408_s1, %s1408_s1, %s1409_s19  }
  0x6a   :  { %s1414_s28 = smov [#allocation23]   ;;  %s1415_s21 = smov [#allocation2]  }
  0x6b   :  { %s178_s29 = sshll.u32 %s1414_s28, 4  ;;  %s35_s23 = sshll.u32 %s1415_s21, 4  ;;  %s179_s29 = int_to_ptr.vmem [resolvable:$true] %s178_s29  ;;  %s36_s23 = int_to_ptr.vmem [resolvable:$true] %s35_s23 }
  0x6c   :  { %s1166_s24 = scalar_lea.hbm %s1800_s13, 256 }
  0x6d   :  { %p1167_p6 = scmp.ne.s32.totalorder %s1800_s13, %s1166_s24  ;;  %p1170_p7 = scmp.lt.u32.totalorder %s1166_s24, %s1800_s13 }
  0x6f   :  { %p1172_p8 = pnand %p1170_p7, %p1167_p6 }
  0x71   :  { %1175 = shalt.err (!%p1172_p8)
}
  0x72   :  { %s1176_s11 = scalar_lea.vmem %s179_s29, 256  ;;  %p1181_p10 = scmp.lt.s32.totalorder %s179_s29, %s179_s29 }
  0x73   :  { %p1177_p9 = scmp.ne.s32.totalorder %s179_s29, %s1176_s11  ;;  %p1182_p11 = scmp.lt.s32.totalorder %s1176_s11, %s1176_s11 }
  0x75   :  { %p1183_p12 = por %p1182_p11, %p1181_p10 }
  0x77   :  { %p1184_p13 = pnand %p1183_p12, %p1177_p9 }
  0x79   :  { %1187 = shalt.err (!%p1184_p13)
}
  0x7a   :  { %184 = dma.hbm_to_vmem [thread:$0]  %s1800_s13, 256, %s179_s29, [#allocation24], %s1408_s1, %s1408_s1, %s1409_s19  }
  0x7b   :  { %s1188_s17 = scalar_lea.hbm %s1787_s0, 128 }
  0x7c   :  { %p1189_p0 = scmp.ne.s32.totalorder %s1787_s0, %s1188_s17  ;;  %p1192_p1 = scmp.lt.u32.totalorder %s1188_s17, %s1787_s0 }
  0x7e   :  { %p1194_p2 = pnand %p1192_p1, %p1189_p0 }
  0x80   :  { %1197 = shalt.err (!%p1194_p2)
}
  0x81   :  { %s1198_s7 = scalar_lea.vmem %s36_s23, 128  ;;  %p1203_p4 = scmp.lt.s32.totalorder %s36_s23, %s36_s23 }
  0x82   :  { %p1199_p3 = scmp.ne.s32.totalorder %s36_s23, %s1198_s7  ;;  %p1204_p5 = scmp.lt.s32.totalorder %s1198_s7, %s1198_s7 }
  0x84   :  { %p1205_p6 = por %p1204_p5, %p1203_p4 }
  0x86   :  { %p1206_p7 = pnand %p1205_p6, %p1199_p3 }
  0x88   :  { %1209 = shalt.err (!%p1206_p7)
}
  0x89   :  { %38 = dma.hbm_to_vmem [thread:$0]  %s1787_s0, 128, %s36_s23, [#allocation3]  }
  0x8a   :  { %s1416_s19 = smov [#allocation7]   ;;  %s1417_s22 = smov [#allocation10]  }
  0x8b   :  { %s56_s29 = sshll.u32 %s1416_s19, 4  ;;  %s81_s24 = sshll.u32 %s1417_s22, 4  ;;  %s57_s29 = int_to_ptr.vmem [resolvable:$true] %s56_s29  ;;  %s82_s24 = int_to_ptr.vmem [resolvable:$true] %s81_s24 }
  0x8c   :  { %s1210_s20 = scalar_lea.hbm %s1789_s2, 32 }
  0x8d   :  { %p1211_p8 = scmp.ne.s32.totalorder %s1789_s2, %s1210_s20  ;;  %p1214_p9 = scmp.lt.u32.totalorder %s1210_s20, %s1789_s2 }
  0x8f   :  { %p1216_p10 = pnand %p1214_p9, %p1211_p8 }
  0x91   :  { %1219 = shalt.err (!%p1216_p10)
}
  0x92   :  { %s1220_s0 = scalar_lea.vmem %s57_s29, 32  ;;  %p1225_p12 = scmp.lt.s32.totalorder %s57_s29, %s57_s29 }
  0x93   :  { %p1221_p11 = scmp.ne.s32.totalorder %s57_s29, %s1220_s0  ;;  %p1226_p13 = scmp.lt.s32.totalorder %s1220_s0, %s1220_s0 }
  0x95   :  { %p1227_p0 = por %p1226_p13, %p1225_p12 }
  0x97   :  { %p1228_p1 = pnand %p1227_p0, %p1221_p11 }
  0x99   :  { %1231 = shalt.err (!%p1228_p1)
}
  0x9a   :  { %s1805_s23 = smov 1   ;;  %s1806_s30 = smov 16  }
  0x9b   :  { %62 = dma.hbm_to_vmem [thread:$0]  %s1789_s2, 32, %s57_s29, [#allocation6], %s1806_s30, %s1806_s30, %s1805_s23  }
  0x9c   :  { %s1232_s28 = scalar_lea.hbm %s1791_s4, 16 }
  0x9d   :  { %p1233_p2 = scmp.ne.s32.totalorder %s1791_s4, %s1232_s28  ;;  %p1236_p3 = scmp.lt.u32.totalorder %s1232_s28, %s1791_s4 }
  0x9f   :  { %p1238_p4 = pnand %p1236_p3, %p1233_p2 }
  0xa1   :  { %1241 = shalt.err (!%p1238_p4)
}
  0xa2   :  { %s1242_s19 = scalar_lea.vmem %s82_s24, 16  ;;  %s1246_s22 = scalar_lea.vmem %s82_s24, 32 }
  0xa3   :  { %p1243_p5 = scmp.ne.s32.totalorder %s82_s24, %s1242_s19  ;;  %p1247_p6 = scmp.lt.s32.totalorder %s82_s24, %s82_s24 }
  0xa4   :  { %p1248_p7 = scmp.lt.s32.totalorder %s1246_s22, %s1242_s19 }
  0xa6   :  { %p1249_p8 = por %p1248_p7, %p1247_p6 }
  0xa8   :  { %p1250_p9 = pnand %p1249_p8, %p1243_p5 }
  0xaa   :  { %1253 = shalt.err (!%p1250_p9)
}
  0xab   :  { %84 = dma.hbm_to_vmem [thread:$0]  %s1791_s4, 16, %s82_s24, [#allocation9]  }
  0xac   :  { %s1418_s25 = smov [#allocation13]   ;;  %s1419_s20 = smov [#allocation16]  }
  0xad   :  { %s103_s5 = sshll.u32 %s1418_s25, 4  ;;  %s125_s26 = sshll.u32 %s1419_s20, 4  ;;  %s104_s5 = int_to_ptr.vmem [resolvable:$true] %s103_s5  ;;  %s126_s26 = int_to_ptr.vmem [resolvable:$true] %s125_s26 }
  0xae   :  { %s1254_s3 = scalar_lea.hbm %s1793_s6, 16 }
  0xaf   :  { %p1255_p10 = scmp.ne.s32.totalorder %s1793_s6, %s1254_s3  ;;  %p1258_p11 = scmp.lt.u32.totalorder %s1254_s3, %s1793_s6 }
  0xb1   :  { %p1260_p12 = pnand %p1258_p11, %p1255_p10 }
  0xb3   :  { %1263 = shalt.err (!%p1260_p12)
}
  0xb4   :  { %s1264_s4 = scalar_lea.vmem %s104_s5, 16  ;;  %s1268_s24 = scalar_lea.vmem %s104_s5, 32 }
  0xb5   :  { %p1265_p13 = scmp.ne.s32.totalorder %s104_s5, %s1264_s4  ;;  %p1269_p0 = scmp.lt.s32.totalorder %s104_s5, %s104_s5 }
  0xb6   :  { %p1270_p1 = scmp.lt.s32.totalorder %s1268_s24, %s1264_s4 }
  0xb8   :  { %p1271_p2 = por %p1270_p1, %p1269_p0 }
  0xba   :  { %p1272_p3 = pnand %p1271_p2, %p1265_p13 }
  0xbc   :  { %1275 = shalt.err (!%p1272_p3)
}
  0xbd   :  { %106 = dma.hbm_to_vmem [thread:$0]  %s1793_s6, 16, %s104_s5, [#allocation12]  }
  0xbe   :  { %s1276_s21 = scalar_lea.hbm %s1795_s8, 16 }
  0xbf   :  { %p1277_p4 = scmp.ne.s32.totalorder %s1795_s8, %s1276_s21  ;;  %p1280_p5 = scmp.lt.u32.totalorder %s1276_s21, %s1795_s8 }
  0xc1   :  { %p1282_p6 = pnand %p1280_p5, %p1277_p4 }
  0xc3   :  { %1285 = shalt.err (!%p1282_p6)
}
  0xc4   :  { %s1286_s22 = scalar_lea.vmem %s126_s26, 16  ;;  %s1290_s2 = scalar_lea.vmem %s126_s26, 32 }
  0xc5   :  { %p1287_p7 = scmp.ne.s32.totalorder %s126_s26, %s1286_s22  ;;  %p1291_p8 = scmp.lt.s32.totalorder %s126_s26, %s126_s26 }
  0xc6   :  { %p1292_p9 = scmp.lt.s32.totalorder %s1290_s2, %s1286_s22 }
  0xc8   :  { %p1293_p10 = por %p1292_p9, %p1291_p8 }
  0xca   :  { %p1294_p11 = pnand %p1293_p10, %p1287_p7 }
  0xcc   :  { %1297 = shalt.err (!%p1294_p11)
}
  0xcd   :  { %128 = dma.hbm_to_vmem [thread:$0]  %s1795_s8, 16, %s126_s26, [#allocation15]  }
  0xce   :  { %s1420_s25 = smov [#allocation19]   ;;  %s1421_s20 = smov [#allocation22]  }
  0xcf   :  { %s147_s5 = sshll.u32 %s1420_s25, 4  ;;  %s169_s11 = sshll.u32 %s1421_s20, 4  ;;  %s148_s5 = int_to_ptr.vmem [resolvable:$true] %s147_s5  ;;  %s170_s11 = int_to_ptr.vmem [resolvable:$true] %s169_s11 }
  0xd0   :  { %s1298_s0 = scalar_lea.hbm %s1797_s10, 16 }
  0xd1   :  { %p1299_p12 = scmp.ne.s32.totalorder %s1797_s10, %s1298_s0  ;;  %p1302_p13 = scmp.lt.u32.totalorder %s1298_s0, %s1797_s10 }
  0xd3   :  { %p1304_p0 = pnand %p1302_p13, %p1299_p12 }
  0xd5   :  { %1307 = shalt.err (!%p1304_p0)
}
  0xd6   :  { %s1308_s8 = scalar_lea.vmem %s148_s5, 16  ;;  %s1312_s26 = scalar_lea.vmem %s148_s5, 32 }
  0xd7   :  { %p1309_p1 = scmp.ne.s32.totalorder %s148_s5, %s1308_s8  ;;  %p1313_p2 = scmp.lt.s32.totalorder %s148_s5, %s148_s5 }
  0xd8   :  { %p1314_p3 = scmp.lt.s32.totalorder %s1312_s26, %s1308_s8 }
  0xda   :  { %p1315_p4 = por %p1314_p3, %p1313_p2 }
  0xdc   :  { %p1316_p5 = pnand %p1315_p4, %p1309_p1 }
  0xde   :  { %1319 = shalt.err (!%p1316_p5)
}
  0xdf   :  { %150 = dma.hbm_to_vmem [thread:$0]  %s1797_s10, 16, %s148_s5, [#allocation18]  }
  0xe0   :  { %s1320_s28 = scalar_lea.hbm %s1799_s12, 16 }
  0xe1   :  { %p1321_p6 = scmp.ne.s32.totalorder %s1799_s12, %s1320_s28  ;;  %p1324_p7 = scmp.lt.u32.totalorder %s1320_s28, %s1799_s12 }
  0xe3   :  { %p1326_p8 = pnand %p1324_p7, %p1321_p6 }
  0xe5   :  { %1329 = shalt.err (!%p1326_p8)
}
  0xe6   :  { %s1330_s19 = scalar_lea.vmem %s170_s11, 16  ;;  %s1334_s22 = scalar_lea.vmem %s170_s11, 32 }
  0xe7   :  { %p1331_p9 = scmp.ne.s32.totalorder %s170_s11, %s1330_s19  ;;  %p1335_p10 = scmp.lt.s32.totalorder %s170_s11, %s170_s11 }
  0xe8   :  { %p1336_p11 = scmp.lt.s32.totalorder %s1334_s22, %s1330_s19 }
  0xea   :  { %p1337_p12 = por %p1336_p11, %p1335_p10 }
  0xec   :  { %p1338_p13 = pnand %p1337_p12, %p1331_p9 }
  0xee   :  { %1341 = shalt.err (!%p1338_p13)
}
  0xef   :  { %172 = dma.hbm_to_vmem [thread:$0]  %s1799_s12, 16, %s170_s11, [#allocation21]  }
  0xf0   :  { %s1422_s6 = smov [#allocation25]   ;;  %s1342_s20 = scalar_lea.hbm %s1801_s14, 16 }
  0xf1   :  { %s191_s29 = sshll.u32 %s1422_s6, 4  ;;  %p1343_p0 = scmp.ne.s32.totalorder %s1801_s14, %s1342_s20  ;;  %s192_s29 = int_to_ptr.vmem [resolvable:$true] %s191_s29 }
  0xf2   :  { %p1346_p1 = scmp.lt.u32.totalorder %s1342_s20, %s1801_s14 }
  0xf4   :  { %p1348_p2 = pnand %p1346_p1, %p1343_p0 }
  0xf6   :  { %1351 = shalt.err (!%p1348_p2)
}
  0xf7   :  { %s1352_s30 = scalar_lea.vmem %s192_s29, 16  ;;  %s1356_s12 = scalar_lea.vmem %s192_s29, 32 }
  0xf8   :  { %p1353_p3 = scmp.ne.s32.totalorder %s192_s29, %s1352_s30  ;;  %p1357_p4 = scmp.lt.s32.totalorder %s192_s29, %s192_s29 }
  0xf9   :  { %p1358_p5 = scmp.lt.s32.totalorder %s1356_s12, %s1352_s30 }
  0xfb   :  { %p1359_p6 = por %p1358_p5, %p1357_p4 }
  0xfd   :  { %p1360_p7 = pnand %p1359_p6, %p1353_p3 }
  0xff   :  { %1363 = shalt.err (!%p1360_p7)
}
 0x100   :  { %194 = dma.hbm_to_vmem [thread:$0]  %s1801_s14, 16, %s192_s29, [#allocation24]  }
 0x101   :  { %1386 = dma.done.wait [#allocation3], 128  }
 0x102   :  { %1387 = vsyncadd [#allocation3], 4294967168 }
 0x103   :  { %1388 = dma.done.wait [#allocation6], 64  }
 0x104   :  { %1389 = vsyncadd [#allocation6], 4294967232 }
 0x105   :  { %1390 = dma.done.wait [#allocation9], 400  }
 0x106   :  { %1391 = vsyncadd [#allocation9], 4294966896 }
 0x107   :  { %1392 = dma.done.wait [#allocation12], 272  }
 0x108   :  { %1393 = vsyncadd [#allocation12], 4294967024 }
 0x109   :  { %1394 = dma.done.wait [#allocation15], 272  }
 0x10a   :  { %1395 = vsyncadd [#allocation15], 4294967024 }
 0x10b   :  { %1396 = dma.done.wait [#allocation18], 272  }
 0x10c   :  { %1397 = vsyncadd [#allocation18], 4294967024 }
 0x10d   :  { %1398 = dma.done.wait [#allocation21], 272  }
 0x10e   :  { %1399 = vsyncadd [#allocation21], 4294967024 }
 0x10f   :  { %1400 = dma.done.wait [#allocation24], 272  }
 0x110   :  { %1401 = vsyncadd [#allocation24], 4294967024  ;;  %v1423_v0 = vmov 0.0   ;;  %vm1424_vm0 = vmmov 0   ;;  %v865_v1 = vld [vmem:[#allocation5] ss:$0 sm:$0xff] }
 0x111   :  { %921 = vmatprep.subr.bf16.mxu0 %v1423_v0  ;;  %927 = vmatprep.mubr.msk.bf16.mxu0 %vm1424_vm0, %v1423_v0  ;;  %v866_v2 = vld [vmem:[#allocation5 + $0x1] ss:$0 sm:$0xff]  ;;  %v1013_v4 = vld [vmem:[#allocation8] sm:$0xff]   ;;  %s1425_s14 = smov 32   ;;  %v1014_v5 = vld [vmem:[#allocation8 + $0x8] sm:$0xff]   ;;  %vm260_vm1 = vcmask 261120  }
 0x112   :  { %931 = vmatprep.subr.bf16.mxu1 %v1423_v0  ;;  %935 = vmatprep.mubr.msk.bf16.mxu1 %vm1424_vm0, %v1423_v0  ;;  %v1008_v3 = vpack.i.bf16 %v866_v2, %v865_v1  ;;  %v1015_v6 = vld [vmem:[#allocation8 + $0x10] sm:$0xff]   ;;  %vm295_vm2 = vcmask 392192   ;;  %v1016_v14 = vld [vmem:[#allocation11] sm:$0xff]   ;;  %v1017_v15 = vld [vmem:[#allocation11 + $0x8] sm:$0xff]   ;;  %vm838_vm5 = vcmask 64512   ;;  %s1426_s4 = smov [#allocation26]  }
 0x113   :  { %922 = vmatpush3.bf16.msra.mxu0 %v1013_v4  ;;  %v241_v8 = vld [vmem:[#allocation2] sm:$0xff]  ;;  %932 = vmatpush3.bf16.msra.mxu1 %v1016_v14  ;;  %v1018_v24 = vld [vmem:[#allocation14] sm:$0xff]   ;;  %v872_v26 = vld [vmem:[#allocation13] ss:$0 sm:$0xff]  ;;  %s846_s8 = sshll.u32 %s1426_s4, 4  ;;  %s847_s8 = int_to_ptr.vmem [resolvable:$true] %s846_s8 }
 0x114   :  { %1009 = vrot.lane.b32.xlu0 %v1008_v3, %s1425_s14  ;;  %923 = vmatprep.subr.bf16.mxu0 %v1423_v0  ;;  %v867_v16 = vld [vmem:[#allocation10] ss:$0 sm:$0xff]  ;;  %v1020_v36 = vld [vmem:[#allocation17] sm:$0xff]   ;;  %v1021_v37 = vld [vmem:[#allocation17 + $0x8] sm:$0xff]   ;;  %s1364_s26 = scalar_lea.vmem %s847_s8, 256  ;;  %p1369_p9 = scmp.lt.s32.totalorder %s847_s8, %s847_s8 }
 0x115   :  { %933 = vmatprep.subr.bf16.mxu1 %v1423_v0  ;;  %v1019_v25 = vld [vmem:[#allocation14 + $0x8] sm:$0xff]   ;;  %v876_v38 = vld [vmem:[#allocation16] ss:$0 sm:$0xff]  ;;  %v880_v52 = vld [vmem:[#allocation19] ss:$0 sm:$0xff]  ;;  %p1365_p8 = scmp.ne.s32.totalorder %s847_s8, %s1364_s26  ;;  %p1370_p10 = scmp.lt.s32.totalorder %s1364_s26, %s1364_s26 }
 0x116   :  { %v1022_v50 = vld [vmem:[#allocation20] sm:$0xff]   ;;  %v1023_v51 = vld [vmem:[#allocation20 + $0x8] sm:$0xff]   ;;  %v1024_v62 = vld [vmem:[#allocation23] sm:$0xff]  }
 0x117   :  { %924 = vmatpush3.bf16.msra.mxu0 %v1014_v5  ;;  %934 = vmatpush3.bf16.msra.mxu1 %v1017_v15  ;;  %v1025_v63 = vld [vmem:[#allocation23 + $0x8] sm:$0xff]   ;;  %v884_v1 = vld [vmem:[#allocation22] ss:$0 sm:$0xff]  ;;  %p1371_p11 = por %p1370_p10, %p1369_p9 }
 0x118   :  { %925 = vmatprep.subr.bf16.mxu0 %v1423_v0  ;;  %939 = vmatprep.subr.bf16.mxu1 %v1423_v0 }
 0x119   :  { %p1372_p12 = pnand %p1371_p11, %p1365_p8 }
 0x11b   :  { %926 = vmatpush3.bf16.msra.mxu0 %v1015_v6 }
 0x11c   :  { %947 = vmatprep.subr.bf16.mxu0 %v1423_v0 }
 0x186   :  { %v1010_v7 = vpop.permute.xlu0 %1009 }
 0x187   :  { %v1012_v9 = vunpack.i.h.bf16 %v1010_v7  ;;  %v1011_v10 = vunpack.i.l.bf16 %v1010_v7 }
 0x189   :  { %v261_v11 = vsel %vm260_vm1, %v241_v8, %v1011_v10  ;;  %v262_v12 = vsel %vm260_vm1, %v241_v8, %v1012_v9 }
 0x18a   :  { %v263_v13 = vpack.c.bf16 %v262_v12, %v261_v11 }
 0x18c   :  { %928 = vmatmul.mubr.msk.bf16.vlgmr.msra.gmra.mrb[0].mxu0 %vm295_vm2, %v263_v13  ;;  %v888_v13 = vld [vmem:[#allocation25] ss:$0 sm:$0xff] }
 0x18d   :  { %951 = vmatprep.mubr.msk.bf16.mxu0 %vm1424_vm0, %v1423_v0  ;;  %948 = vmatpush3.bf16.msra.mxu0 %v1020_v36  ;;  %v720_v36 = vlaneseq }
 0x18e   :  { %949 = vmatprep.subr.bf16.mxu0 %v1423_v0 }
 0x191   :  { %950 = vmatpush3.bf16.msra.mxu0 %v1021_v37 }
 0x192   :  { %963 = vmatprep.subr.bf16.mxu0 %v1423_v0 }
 0x25f   :  { %v333_v17 = vpop.f32.mrb[0].mxu0 }
 0x260   :  { %v929_v18 = vpop.f32.mrb[1].mxu0  ;;  %v334_v20 = vadd.f32 %v867_v16, %v333_v17 }
 0x261   :  { %v336_v19 = vpop.f32.mrb[2].mxu0 }
 0x262   :  { %v337_v21 = vadd.f32 %v867_v16, %v336_v19  ;;  %v930_v22 = vpop.f32.mrb[3].mxu0 }
 0x264   :  { %v340_v23 = vpack.c.bf16 %v337_v21, %v334_v20 }
 0x266   :  { %936 = vmatmul.mubr.msk.bf16.vlgmr.msra.gmra.mrb[0].mxu1 %vm260_vm1, %v340_v23 }
 0x267   :  { %943 = vmatprep.mubr.msk.bf16.mxu1 %vm1424_vm0, %v1423_v0  ;;  %940 = vmatpush3.bf16.msra.mxu1 %v1018_v24 }
 0x268   :  { %941 = vmatprep.subr.bf16.mxu1 %v1423_v0 }
 0x26b   :  { %942 = vmatpush3.bf16.msra.mxu1 %v1019_v25 }
 0x26c   :  { %955 = vmatprep.subr.bf16.mxu1 %v1423_v0 }
 0x339   :  { %v401_v27 = vpop.f32.mrb[0].mxu1 }
 0x33a   :  { %v402_v28 = vadd.f32 %v872_v26, %v401_v27  ;;  %v937_v29 = vpop.f32.mrb[1].mxu1 }
 0x33b   :  { %v404_v30 = vpop.f32.mrb[2].mxu1 }
 0x33c   :  { %v405_v31 = vadd.f32 %v872_v26, %v404_v30  ;;  %v938_v32 = vpop.f32.mrb[3].mxu1  ;;  %v408_v33 = vmax.f32 %v402_v28, 0.0 }
 0x33d   :  { %v892_v32 = vld [vmem:[#allocation7] ss:$0 sm:$0xff] }
 0x33e   :  { %v409_v34 = vmax.f32 %v405_v31, 0.0 }
 0x340   :  { %v410_v35 = vpack.c.bf16 %v409_v34, %v408_v33  ;;  %v893_v33 = vld [vmem:[#allocation7 + $0x1] ss:$0 sm:$0xff] }
 0x342   :  { %944 = vmatmul.mubr.msk.bf16.vlgmr.msra.gmra.mrb[4].mxu1 %vm260_vm1, %v410_v35 }
 0x343   :  { %959 = vmatprep.mubr.msk.bf16.mxu1 %vm1424_vm0, %v1423_v0  ;;  %956 = vmatpush3.bf16.msra.mxu1 %v1022_v50 }
 0x344   :  { %957 = vmatprep.subr.bf16.mxu1 %v1423_v0 }
 0x347   :  { %958 = vmatpush3.bf16.msra.mxu1 %v1023_v51 }
 0x348   :  { %971 = vmatprep.subr.bf16.mxu1 %v1423_v0 }
 0x415   :  { %v471_v39 = vpop.f32.mrb[4].mxu1 }
 0x416   :  { %v472_v40 = vadd.f32 %v876_v38, %v471_v39  ;;  %v945_v41 = vpop.f32.mrb[5].mxu1 }
 0x417   :  { %v474_v42 = vpop.f32.mrb[6].mxu1  ;;  %v721_v41 = vand.u32 127, %v720_v36 }
 0x418   :  { %v478_v43 = vmax.f32 %v472_v40, 0.0  ;;  %v475_v44 = vadd.f32 %v876_v38, %v474_v42  ;;  %v946_v45 = vpop.f32.mrb[7].mxu1 }
 0x41a   :  { %v479_v46 = vmax.f32 %v475_v44, 0.0  ;;  %v480_v47 = vadd.f32 %v478_v43, %v334_v20 }
 0x41c   :  { %v481_v48 = vadd.f32 %v479_v46, %v337_v21 }
 0x41e   :  { %v482_v49 = vpack.c.bf16 %v481_v48, %v480_v47 }
 0x420   :  { %952 = vmatmul.mubr.msk.bf16.vlgmr.msra.gmra.mrb[4].mxu0 %vm260_vm1, %v482_v49 }
 0x421   :  { %967 = vmatprep.mubr.msk.bf16.mxu0 %vm1424_vm0, %v1423_v0  ;;  %964 = vmatpush3.bf16.msra.mxu0 %v1024_v62 }
 0x422   :  { %965 = vmatprep.subr.bf16.mxu0 %v1423_v0 }
 0x425   :  { %966 = vmatpush3.bf16.msra.mxu0 %v1025_v63 }
 0x426   :  { %977 = vmatprep.subr.bf16.mxu0 %v1423_v0 }
 0x4f3   :  { %v543_v53 = vpop.f32.mrb[4].mxu0 }
 0x4f4   :  { %v544_v54 = vadd.f32 %v880_v52, %v543_v53  ;;  %v953_v55 = vpop.f32.mrb[5].mxu0 }
 0x4f5   :  { %v546_v56 = vpop.f32.mrb[6].mxu0 }
 0x4f6   :  { %v547_v57 = vadd.f32 %v880_v52, %v546_v56  ;;  %v954_v58 = vpop.f32.mrb[7].mxu0  ;;  %v550_v59 = vmax.f32 %v544_v54, 0.0 }
 0x4f8   :  { %v551_v60 = vmax.f32 %v547_v57, 0.0 }
 0x4fa   :  { %v552_v61 = vpack.c.bf16 %v551_v60, %v550_v59 }
 0x4fc   :  { %960 = vmatmul.mubr.msk.bf16.vlgmr.msra.gmra.mrb[8].mxu1 %vm260_vm1, %v552_v61 }
 0x4fd   :  { %973 = vmatprep.mubr.msk.bf16.mxu1 %vm1424_vm0, %v1423_v0 }
 0x5cf   :  { %v613_v2 = vpop.f32.mrb[8].mxu1 }
 0x5d0   :  { %v614_v3 = vadd.f32 %v884_v1, %v613_v2  ;;  %v961_v4 = vpop.f32.mrb[9].mxu1 }
 0x5d1   :  { %v616_v5 = vpop.f32.mrb[10].mxu1 }
 0x5d2   :  { %v620_v6 = vmax.f32 %v614_v3, 0.0  ;;  %v617_v7 = vadd.f32 %v884_v1, %v616_v5  ;;  %v962_v8 = vpop.f32.mrb[11].mxu1 }
 0x5d4   :  { %v621_v9 = vmax.f32 %v617_v7, 0.0  ;;  %v622_v10 = vadd.f32 %v620_v6, %v480_v47 }
 0x5d6   :  { %v623_v11 = vadd.f32 %v621_v9, %v481_v48 }
 0x5d8   :  { %v624_v12 = vpack.c.bf16 %v623_v11, %v622_v10 }
 0x5da   :  { %968 = vmatmul.mubr.msk.bf16.vlgmr.msra.gmra.mrb[8].mxu0 %vm260_vm1, %v624_v12 }
 0x5db   :  { %979 = vmatprep.mubr.msk.bf16.mxu0 %vm1424_vm0, %v1423_v0 }
 0x6ad   :  { %v685_v14 = vpop.f32.mrb[8].mxu0 }
 0x6ae   :  { %v686_v15 = vadd.f32 %v888_v13, %v685_v14  ;;  %v969_v16 = vpop.f32.mrb[9].mxu0 }
 0x6af   :  { %v688_v17 = vpop.f32.mrb[10].mxu0 }
 0x6b0   :  { %v689_v18 = vadd.f32 %v888_v13, %v688_v17  ;;  %v970_v19 = vpop.f32.mrb[11].mxu0  ;;  %v692_v20 = vsel %vm260_vm1, %v686_v15, -inf }
 0x6b1   :  { %693 = vmax.xlane.f32.xlu0 %v692_v20 }
 0x6b2   :  { %v695_v21 = vsel %vm260_vm1, %v689_v18, -inf }
 0x6b3   :  { %696 = vmax.xlane.f32.xlu1 %v695_v21 }
 0x73e   :  { %v694_v22 = vpop.xlane.xlu0 %693 }
 0x73f   :  { %v698_v23 = vsub.f32 %v686_v15, %v694_v22 }
 0x740   :  { %v697_v24 = vpop.xlane.xlu1 %696 }
 0x741   :  { %v700_v25 = vmul.f32 1.442695, %v698_v23  ;;  %v699_v26 = vsub.f32 %v689_v18, %v697_v24 }
 0x743   :  { %1026 = vpow2.f32 %v700_v25  ;;  %v702_v27 = vmul.f32 1.442695, %v699_v26 }
 0x745   :  { %1028 = vpow2.f32 %v702_v27 }
 0x74d   :  { %v1027_v28 = vpop.eup %1026 }
 0x74e   :  { %v704_v29 = vsel %vm260_vm1, %v1027_v28, 0.0 }
 0x74f   :  { %v1029_v30 = vpop.eup %1028  ;;  %705 = vadd.xlane.f32.xlu1 %v704_v29 }
 0x750   :  { %v707_v31 = vsel %vm260_vm1, %v1029_v30, 0.0 }
 0x753   :  { %708 = vadd.xlane.f32.xlu1 %v707_v31 }
 0x764   :  { %727 = vbcast.lane.b32.xlu1 %v892_v32, 256 }
 0x768   :  { %734 = vbcast.lane.b32.xlu1 %v893_v33, 256 }
 0x7dc   :  { %v706_v34 = vpop.xlane.xlu1 %705 }
 0x7dd   :  { %1030 = vlog2.f32 %v706_v34 }
 0x7e0   :  { %v709_v35 = vpop.xlane.xlu1 %708 }
 0x7e1   :  { %1032 = vlog2.f32 %v709_v35 }
 0x7e4   :  { %v728_v39 = vpop.permute.xlu1 %727 }
 0x7e5   :  { %vm736_vm3 = vcmp.eq.s32.totalorder %v721_v41, %v728_v39 }
 0x7e6   :  { %v894_v50 = vsel %vm736_vm3, 1.0, %v1423_v0 }
 0x7e7   :  { %v1031_v37 = vpop.eup %1030  ;;  %v742_v52 = vpack.c.bf16 %v894_v50, %v894_v50 }
 0x7e8   :  { %v711_v38 = vmul.f32 0.6931472, %v1031_v37  ;;  %v735_v47 = vpop.permute.xlu1 %734 }
 0x7e9   :  { %vm737_vm4 = vcmp.eq.s32.totalorder %v721_v41, %v735_v47 }
 0x7ea   :  { %v714_v40 = vadd.f32 %v711_v38, %v694_v22  ;;  %v895_v54 = vsel %vm737_vm4, 1.0, %v1423_v0 }
 0x7eb   :  { %v1033_v42 = vpop.eup %1032  ;;  %v743_v55 = vpack.c.bf16 %v895_v54, %v895_v54 }
 0x7ec   :  { %v713_v43 = vmul.f32 0.6931472, %v1033_v42  ;;  %v716_v44 = vsub.f32 %v686_v15, %v714_v40 }
 0x7ee   :  { %v715_v45 = vadd.f32 %v713_v43, %v697_v24  ;;  %v744_v46 = vpack.c.bf16 %v716_v44, %v716_v44 }
 0x7f0   :  { %v750_v48 = vsel %vm260_vm1, %v744_v46, 0  ;;  %v717_v49 = vsub.f32 %v689_v18, %v715_v45 }
 0x7f1   :  { %972 = vmatpush3.bf16.xpose.msra.mxu1 %v750_v48 }
 0x7f2   :  { %v745_v51 = vpack.c.bf16 %v717_v49, %v717_v49 }
 0x7f4   :  { %v796_v53 = vsel %vm260_vm1, %v745_v51, 0 }
 0x7f5   :  { %978 = vmatpush3.bf16.xpose.msra.mxu0 %v796_v53 }
 0x7f8   :  { %974 = vmatmul.mubr.msk.bf16.vlgmr.msra.gmra.mrb[12].mxu1 %vm260_vm1, %v742_v52 }
 0x7fc   :  { %980 = vmatmul.mubr.msk.bf16.vlgmr.msra.gmra.mrb[12].mxu0 %vm260_vm1, %v743_v55 }
 0x8cb   :  { %v786_v56 = vpop.f32.mrb[12].mxu1 }
 0x8cc   :  { %839 = vst.msk [vmem:[#allocation26] sm:$0xff] %vm838_vm5, %v786_v56  ;;  %v975_v57 = vpop.f32.mrb[13].mxu1 }
 0x8cd   :  { %v789_v58 = vpop.f32.mrb[14].mxu1 }
 0x8ce   :  { %v976_v59 = vpop.f32.mrb[15].mxu1 }
 0x8cf   :  { %v832_v60 = vpop.f32.mrb[12].mxu0 }
 0x8d0   :  { %840 = vst.msk [vmem:[#allocation26 + $0x8] sm:$0xff] %vm838_vm5, %v832_v60  ;;  %v981_v61 = vpop.f32.mrb[13].mxu0 }
 0x8d1   :  { %v835_v62 = vpop.f32.mrb[14].mxu0 }
 0x8d2   :  { %1375 = shalt.err (!%p1372_p12)
}
 0x8d3   :  { %s1376_s9 = scalar_lea.hbm %s1802_s15, 256 }
 0x8d4   :  { %p1377_p13 = scmp.ne.s32.totalorder %s1802_s15, %s1376_s9  ;;  %p1380_p0 = scmp.lt.u32.totalorder %s1376_s9, %s1802_s15 }
 0x8d6   :  { %p1382_p1 = pnand %p1380_p0, %p1377_p13 }
 0x8d8   :  { %1385 = shalt.err (!%p1382_p1)
}
 0x8d9   :  { %s1427_s13 = smov 128   ;;  %s1428_s1 = smov 8   ;;  %v982_v0 = vpop.f32.mrb[15].mxu0 }
 0x8da   :  { %852 = dma.vmem_to_hbm [thread:$0]  %s847_s8, 256, %s1802_s15, [#allocation4], %s1427_s13, %s1427_s13, %s1428_s1  }
 0x8db   :  { %1402 = dma.done.wait [#allocation4], 256  }
 0x8dc   :  { %1403 = vsyncadd [#allocation4], 4294967040 }
 0x8dd   :  { %856 = vsyncpa [#allocation3], 1 }
 0x8de   :  { %857 = vsyncpa [#allocation6], 1 }
 0x8df   :  { %858 = vsyncpa [#allocation9], 1 }
 0x8e0   :  { %859 = vsyncpa [#allocation12], 1 }
 0x8e1   :  { %860 = vsyncpa [#allocation15], 1 }
 0x8e2   :  { %861 = vsyncpa [#allocation18], 1 }
 0x8e3   :  { %862 = vsyncpa [#allocation21], 1 }
 0x8e4   :  { %863 = vsyncpa [#allocation24], 1 }
 0x8e5   :  { %864 = vsyncpa [#allocation4], 1 }

// kernel: compound_cfg_forward.5
= control target key start
LH: loop header
LB: loop body
LE: loop exit
PB: predicated region body
PF: predicated region fallthrough
CT: control target
= control target key end

     0   :  { %s2014_s0 = inlined_call_operand.hbm [shape: f32[4,32], index: 0, kind: input, shape index: {}]   ;;  %s2015_s1 = inlined_call_operand.hbm [shape: f32[1,32], index: 1, kind: input, shape index: {}]   ;;  %s2016_s2 = inlined_call_operand.hbm [shape: f32[2,1,16], index: 2, kind: input, shape index: {}]   ;;  %s2017_s3 = inlined_call_operand.hbm [shape: bf16[48,144], index: 3, kind: input, shape index: {}]   ;;  %s2018_s4 = inlined_call_operand.hbm [shape: f32[1,144], index: 4, kind: input, shape index: {}]   ;;  %s2019_s5 = inlined_call_operand.hbm [shape: bf16[48,32], index: 5, kind: input, shape index: {}]   ;;  %s2020_s6 = inlined_call_operand.hbm [shape: f32[1,32], index: 6, kind: input, shape index: {}]   ;;  %s2021_s7 = inlined_call_operand.hbm [shape: bf16[32,32], index: 7, kind: input, shape index: {}]   ;;  %s2022_s8 = inlined_call_operand.hbm [shape: f32[1,32], index: 8, kind: input, shape index: {}]   ;;  %s2023_s9 = inlined_call_operand.hbm [shape: bf16[32,32], index: 9, kind: input, shape index: {}]   ;;  %s2024_s10 = inlined_call_operand.hbm [shape: f32[1,32], index: 10, kind: input, shape index: {}]   ;;  %s2025_s11 = inlined_call_operand.hbm [shape: bf16[32,32], index: 11, kind: input, shape index: {}]   ;;  %s2026_s12 = inlined_call_operand.hbm [shape: f32[1,32], index: 12, kind: input, shape index: {}]   ;;  %s2027_s13 = inlined_call_operand.hbm [shape: bf16[32,32], index: 13, kind: input, shape index: {}]   ;;  %s2028_s14 = inlined_call_operand.hbm [shape: f32[1,32], index: 14, kind: input, shape index: {}]   ;;  %s2029_s15 = inlined_call_operand.hbm [shape: bf16[32,4], index: 15, kind: input, shape index: {}]   ;;  %s2030_s16 = inlined_call_operand.hbm [shape: f32[1,4], index: 16, kind: input, shape index: {}]   ;;  %s2031_s17 = inlined_call_operand.hbm [shape: f32[2,4,144], index: 17, kind: output, shape index: {0}]   ;;  %s2032_s18 = inlined_call_operand.hbm [shape: f32[2,1,4], index: 18, kind: output, shape index: {1}]  }
   0x1   :  { %2038 = sst [smem:[#allocation43_spill]] %s2014_s0 }
   0x2   :  { %2039 = sst [smem:[#allocation44_spill]] %s2015_s1 }
   0x3   :  { %2040 = sst [smem:[#allocation45_spill]] %s2016_s2 }
   0x4   :  { %24 = vsyncpa [#allocation3], 0 }
   0x5   :  { %25 = vsyncpa [#allocation6], 0 }
   0x6   :  { %26 = vsyncpa [#allocation9], 0 }
   0x7   :  { %27 = vsyncpa [#allocation12], 0 }
   0x8   :  { %28 = vsyncpa [#allocation15], 0 }
   0x9   :  { %29 = vsyncpa [#allocation18], 0 }
   0xa   :  { %30 = vsyncpa [#allocation21], 0 }
   0xb   :  { %31 = vsyncpa [#allocation24], 0 }
   0xc   :  { %32 = vsyncpa [#allocation27], 0 }
   0xd   :  { %33 = vsyncpa [#allocation4], 0 }
   0xe   :  { %34 = vsyncpa [#allocation31], 0  ;;  %s1548_s27 = smov [#allocation5]   ;;  %s1549_s29 = smov [#allocation8]  }
   0xf   :  { %s51_s28 = sshll.u32 %s1548_s27, 4  ;;  %s72_s30 = sshll.u32 %s1549_s29, 4  ;;  %s52_s28 = int_to_ptr.vmem [resolvable:$true] %s51_s28  ;;  %s1673_s30 = int_to_ptr.vmem [resolvable:$true] %s72_s30 }
  0x10   :  { %s2041_s1 = sld [smem:[#allocation44_spill]] }
  0x16   :  { %s1108_s20 = scalar_lea.hbm %s2041_s1, 16 }
  0x17   :  { %p1109_p0 = scmp.ne.s32.totalorder %s2041_s1, %s1108_s20  ;;  %p1112_p1 = scmp.lt.u32.totalorder %s1108_s20, %s2041_s1 }
  0x19   :  { %p1114_p2 = pnand %p1112_p1, %p1109_p0 }
  0x1b   :  { %1117 = shalt.err (!%p1114_p2)
}
  0x1c   :  { %s1118_s24 = scalar_lea.vmem %s52_s28, 16  ;;  %s1122_s25 = scalar_lea.vmem %s52_s28, 32 }
  0x1d   :  { %p1119_p3 = scmp.ne.s32.totalorder %s52_s28, %s1118_s24  ;;  %p1123_p4 = scmp.lt.s32.totalorder %s52_s28, %s52_s28 }
  0x1e   :  { %p1124_p5 = scmp.lt.s32.totalorder %s1122_s25, %s1118_s24 }
  0x20   :  { %p1125_p6 = por %p1124_p5, %p1123_p4 }
  0x22   :  { %p1126_p7 = pnand %p1125_p6, %p1119_p3 }
  0x24   :  { %1129 = shalt.err (!%p1126_p7)
}
  0x25   :  { %54 = dma.hbm_to_vmem [thread:$0]  %s2041_s1, 16, %s52_s28, [#allocation6]  }
  0x26   :  { %s1130_s19 = scalar_lea.hbm %s2017_s3, 768 }
  0x27   :  { %p1131_p8 = scmp.ne.s32.totalorder %s2017_s3, %s1130_s19  ;;  %p1134_p9 = scmp.lt.u32.totalorder %s1130_s19, %s2017_s3 }
  0x29   :  { %p1136_p10 = pnand %p1134_p9, %p1131_p8 }
  0x2b   :  { %1139 = shalt.err (!%p1136_p10)
}
  0x2c   :  { %s1140_s23 = scalar_lea.vmem %s1673_s30, 768  ;;  %p1145_p12 = scmp.lt.s32.totalorder %s1673_s30, %s1673_s30 }
  0x2d   :  { %p1141_p11 = scmp.ne.s32.totalorder %s1673_s30, %s1140_s23  ;;  %p1146_p13 = scmp.lt.s32.totalorder %s1140_s23, %s1140_s23 }
  0x2f   :  { %p1147_p0 = por %p1146_p13, %p1145_p12 }
  0x31   :  { %p1148_p1 = pnand %p1147_p0, %p1141_p11 }
  0x33   :  { %1151 = shalt.err (!%p1148_p1)
}
  0x34   :  { %s2036_s28 = smov 128   ;;  %s2037_s1 = smov 8  }
  0x35   :  { %78 = dma.hbm_to_vmem [thread:$0]  %s2017_s3, 768, %s1673_s30, [#allocation9], %s2036_s28, %s2036_s28, %s2037_s1  }
  0x36   :  { %s1552_s26 = smov [#allocation11]   ;;  %s1152_s19 = scalar_lea.hbm %s2019_s5, 384 }
  0x37   :  { %s94_s27 = sshll.u32 %s1552_s26, 4  ;;  %p1153_p2 = scmp.ne.s32.totalorder %s2019_s5, %s1152_s19  ;;  %s95_s27 = int_to_ptr.vmem [resolvable:$true] %s94_s27 }
  0x38   :  { %p1156_p3 = scmp.lt.u32.totalorder %s1152_s19, %s2019_s5 }
  0x3a   :  { %p1158_p4 = pnand %p1156_p3, %p1153_p2 }
  0x3c   :  { %1161 = shalt.err (!%p1158_p4)
}
  0x3d   :  { %s1162_s23 = scalar_lea.vmem %s95_s27, 384  ;;  %p1167_p6 = scmp.lt.s32.totalorder %s95_s27, %s95_s27 }
  0x3e   :  { %p1163_p5 = scmp.ne.s32.totalorder %s95_s27, %s1162_s23  ;;  %p1168_p7 = scmp.lt.s32.totalorder %s1162_s23, %s1162_s23 }
  0x40   :  { %p1169_p8 = por %p1168_p7, %p1167_p6 }
  0x42   :  { %p1170_p9 = pnand %p1169_p8, %p1163_p5 }
  0x44   :  { %1173 = shalt.err (!%p1170_p9)
}
  0x45   :  { %s1553_s3 = smov 64   ;;  %s1554_s30 = smov 4  }
  0x46   :  { %100 = dma.hbm_to_vmem [thread:$0]  %s2019_s5, 384, %s95_s27, [#allocation12], %s1553_s3, %s1553_s3, %s1554_s30  }
  0x47   :  { %s1555_s26 = smov [#allocation14]   ;;  %s1556_s0 = smov [#allocation17]  }
  0x48   :  { %s116_s29 = sshll.u32 %s1555_s26, 4  ;;  %s138_s19 = sshll.u32 %s1556_s0, 4  ;;  %s117_s29 = int_to_ptr.vmem [resolvable:$true] %s116_s29  ;;  %s139_s19 = int_to_ptr.vmem [resolvable:$true] %s138_s19 }
  0x49   :  { %s1174_s22 = scalar_lea.hbm %s2021_s7, 256 }
  0x4a   :  { %p1175_p10 = scmp.ne.s32.totalorder %s2021_s7, %s1174_s22  ;;  %p1178_p11 = scmp.lt.u32.totalorder %s1174_s22, %s2021_s7 }
  0x4c   :  { %p1180_p12 = pnand %p1178_p11, %p1175_p10 }
  0x4e   :  { %1183 = shalt.err (!%p1180_p12)
}
  0x4f   :  { %s1184_s5 = scalar_lea.vmem %s117_s29, 256  ;;  %p1189_p0 = scmp.lt.s32.totalorder %s117_s29, %s117_s29 }
  0x50   :  { %p1185_p13 = scmp.ne.s32.totalorder %s117_s29, %s1184_s5  ;;  %p1190_p1 = scmp.lt.s32.totalorder %s1184_s5, %s1184_s5 }
  0x52   :  { %p1191_p2 = por %p1190_p1, %p1189_p0 }
  0x54   :  { %p1192_p3 = pnand %p1191_p2, %p1185_p13 }
  0x56   :  { %1195 = shalt.err (!%p1192_p3)
}
  0x57   :  { %122 = dma.hbm_to_vmem [thread:$0]  %s2021_s7, 256, %s117_s29, [#allocation15], %s1553_s3, %s1553_s3, %s1554_s30  }
  0x58   :  { %s1196_s1 = scalar_lea.hbm %s2023_s9, 256 }
  0x59   :  { %p1197_p4 = scmp.ne.s32.totalorder %s2023_s9, %s1196_s1  ;;  %p1200_p5 = scmp.lt.u32.totalorder %s1196_s1, %s2023_s9 }
  0x5b   :  { %p1202_p6 = pnand %p1200_p5, %p1197_p4 }
  0x5d   :  { %1205 = shalt.err (!%p1202_p6)
}
  0x5e   :  { %s1206_s22 = scalar_lea.vmem %s139_s19, 256  ;;  %p1211_p8 = scmp.lt.s32.totalorder %s139_s19, %s139_s19 }
  0x5f   :  { %p1207_p7 = scmp.ne.s32.totalorder %s139_s19, %s1206_s22  ;;  %p1212_p9 = scmp.lt.s32.totalorder %s1206_s22, %s1206_s22 }
  0x61   :  { %p1213_p10 = por %p1212_p9, %p1211_p8 }
  0x63   :  { %p1214_p11 = pnand %p1213_p10, %p1207_p7 }
  0x65   :  { %1217 = shalt.err (!%p1214_p11)
}
  0x66   :  { %144 = dma.hbm_to_vmem [thread:$0]  %s2023_s9, 256, %s139_s19, [#allocation18], %s1553_s3, %s1553_s3, %s1554_s30  }
  0x67   :  { %s1557_s2 = smov [#allocation20]   ;;  %s1558_s5 = smov [#allocation23]  }
  0x68   :  { %s160_s23 = sshll.u32 %s1557_s2, 4  ;;  %s182_s27 = sshll.u32 %s1558_s5, 4  ;;  %s161_s23 = int_to_ptr.vmem [resolvable:$true] %s160_s23  ;;  %s183_s27 = int_to_ptr.vmem [resolvable:$true] %s182_s27 }
  0x69   :  { %s1218_s28 = scalar_lea.hbm %s2025_s11, 256 }
  0x6a   :  { %p1219_p12 = scmp.ne.s32.totalorder %s2025_s11, %s1218_s28  ;;  %p1222_p13 = scmp.lt.u32.totalorder %s1218_s28, %s2025_s11 }
  0x6c   :  { %p1224_p0 = pnand %p1222_p13, %p1219_p12 }
  0x6e   :  { %1227 = shalt.err (!%p1224_p0)
}
  0x6f   :  { %s1228_s9 = scalar_lea.vmem %s161_s23, 256  ;;  %p1233_p2 = scmp.lt.s32.totalorder %s161_s23, %s161_s23 }
  0x70   :  { %p1229_p1 = scmp.ne.s32.totalorder %s161_s23, %s1228_s9  ;;  %p1234_p3 = scmp.lt.s32.totalorder %s1228_s9, %s1228_s9 }
  0x72   :  { %p1235_p4 = por %p1234_p3, %p1233_p2 }
  0x74   :  { %p1236_p5 = pnand %p1235_p4, %p1229_p1 }
  0x76   :  { %1239 = shalt.err (!%p1236_p5)
}
  0x77   :  { %166 = dma.hbm_to_vmem [thread:$0]  %s2025_s11, 256, %s161_s23, [#allocation21], %s1553_s3, %s1553_s3, %s1554_s30  }
  0x78   :  { %s1240_s29 = scalar_lea.hbm %s2027_s13, 256 }
  0x79   :  { %p1241_p6 = scmp.ne.s32.totalorder %s2027_s13, %s1240_s29  ;;  %p1244_p7 = scmp.lt.u32.totalorder %s1240_s29, %s2027_s13 }
  0x7b   :  { %p1246_p8 = pnand %p1244_p7, %p1241_p6 }
  0x7d   :  { %1249 = shalt.err (!%p1246_p8)
}
  0x7e   :  { %s1250_s28 = scalar_lea.vmem %s183_s27, 256  ;;  %p1255_p10 = scmp.lt.s32.totalorder %s183_s27, %s183_s27 }
  0x7f   :  { %p1251_p9 = scmp.ne.s32.totalorder %s183_s27, %s1250_s28  ;;  %p1256_p11 = scmp.lt.s32.totalorder %s1250_s28, %s1250_s28 }
  0x81   :  { %p1257_p12 = por %p1256_p11, %p1255_p10 }
  0x83   :  { %p1258_p13 = pnand %p1257_p12, %p1251_p9 }
  0x85   :  { %1261 = shalt.err (!%p1258_p13)
}
  0x86   :  { %188 = dma.hbm_to_vmem [thread:$0]  %s2027_s13, 256, %s183_s27, [#allocation24], %s1553_s3, %s1553_s3, %s1554_s30  }
  0x87   :  { %s1559_s1 = smov [#allocation26]   ;;  %s1560_s0 = smov [#allocation2]  }
  0x88   :  { %s204_s26 = sshll.u32 %s1559_s1, 4  ;;  %s41_s21 = sshll.u32 %s1560_s0, 4  ;;  %s205_s26 = int_to_ptr.vmem [resolvable:$true] %s204_s26  ;;  %s42_s21 = int_to_ptr.vmem [resolvable:$true] %s41_s21 }
  0x89   :  { %s1262_s20 = scalar_lea.hbm %s2029_s15, 256 }
  0x8a   :  { %p1263_p0 = scmp.ne.s32.totalorder %s2029_s15, %s1262_s20  ;;  %p1266_p1 = scmp.lt.u32.totalorder %s1262_s20, %s2029_s15 }
  0x8c   :  { %p1268_p2 = pnand %p1266_p1, %p1263_p0 }
  0x8e   :  { %1271 = shalt.err (!%p1268_p2)
}
  0x8f   :  { %s1272_s13 = scalar_lea.vmem %s205_s26, 256  ;;  %p1277_p4 = scmp.lt.s32.totalorder %s205_s26, %s205_s26 }
  0x90   :  { %p1273_p3 = scmp.ne.s32.totalorder %s205_s26, %s1272_s13  ;;  %p1278_p5 = scmp.lt.s32.totalorder %s1272_s13, %s1272_s13 }
  0x92   :  { %p1279_p6 = por %p1278_p5, %p1277_p4 }
  0x94   :  { %p1280_p7 = pnand %p1279_p6, %p1273_p3 }
  0x96   :  { %1283 = shalt.err (!%p1280_p7)
}
  0x97   :  { %210 = dma.hbm_to_vmem [thread:$0]  %s2029_s15, 256, %s205_s26, [#allocation27], %s1553_s3, %s1553_s3, %s1554_s30  }
  0x98   :  { %s2042_s28 = sld [smem:[#allocation43_spill]] }
  0x9e   :  { %s1284_s11 = scalar_lea.hbm %s2042_s28, 64 }
  0x9f   :  { %p1285_p8 = scmp.ne.s32.totalorder %s2042_s28, %s1284_s11  ;;  %p1288_p9 = scmp.lt.u32.totalorder %s1284_s11, %s2042_s28 }
  0xa1   :  { %p1290_p10 = pnand %p1288_p9, %p1285_p8 }
  0xa3   :  { %1293 = shalt.err (!%p1290_p10)
}
  0xa4   :  { %s1294_s19 = scalar_lea.vmem %s42_s21, 64  ;;  %p1299_p12 = scmp.lt.s32.totalorder %s42_s21, %s42_s21 }
  0xa5   :  { %p1295_p11 = scmp.ne.s32.totalorder %s42_s21, %s1294_s19  ;;  %p1300_p13 = scmp.lt.s32.totalorder %s1294_s19, %s1294_s19 }
  0xa7   :  { %p1301_p0 = por %p1300_p13, %p1299_p12 }
  0xa9   :  { %p1302_p1 = pnand %p1301_p0, %p1295_p11 }
  0xab   :  { %1305 = shalt.err (!%p1302_p1)
}
  0xac   :  { %44 = dma.hbm_to_vmem [thread:$0]  %s2042_s28, 64, %s42_s21, [#allocation3]  }
  0xad   :  { %s1561_s30 = smov [#allocation7]   ;;  %s2043_s7 = sld [smem:[#allocation45_spill]] }
  0xae   :  { %s60_s26 = sshll.u32 %s1561_s30, 4  ;;  %s61_s26 = int_to_ptr.vmem [resolvable:$true] %s60_s26 }
  0xb3   :  { %s1306_s29 = scalar_lea.hbm %s2043_s7, 32 }
  0xb4   :  { %p1307_p2 = scmp.ne.s32.totalorder %s2043_s7, %s1306_s29  ;;  %p1310_p3 = scmp.lt.u32.totalorder %s1306_s29, %s2043_s7 }
  0xb6   :  { %p1312_p4 = pnand %p1310_p3, %p1307_p2 }
  0xb8   :  { %1315 = shalt.err (!%p1312_p4)
}
  0xb9   :  { %s1316_s24 = scalar_lea.vmem %s61_s26, 32  ;;  %p1321_p6 = scmp.lt.s32.totalorder %s61_s26, %s61_s26 }
  0xba   :  { %p1317_p5 = scmp.ne.s32.totalorder %s61_s26, %s1316_s24  ;;  %p1322_p7 = scmp.lt.s32.totalorder %s1316_s24, %s1316_s24 }
  0xbc   :  { %p1323_p8 = por %p1322_p7, %p1321_p6 }
  0xbe   :  { %p1324_p9 = pnand %p1323_p8, %p1317_p5 }
  0xc0   :  { %1327 = shalt.err (!%p1324_p9)
}
  0xc1   :  { %s1562_s21 = smov 16   ;;  %s1563_s25 = smov 1  }
  0xc2   :  { %66 = dma.hbm_to_vmem [thread:$0]  %s2043_s7, 32, %s61_s26, [#allocation6], %s1562_s21, %s1562_s21, %s1563_s25  }
  0xc3   :  { %s1564_s23 = smov [#allocation10]   ;;  %s1565_s0 = smov [#allocation13]  }
  0xc4   :  { %s85_s1 = sshll.u32 %s1564_s23, 4  ;;  %s107_s9 = sshll.u32 %s1565_s0, 4  ;;  %s86_s1 = int_to_ptr.vmem [resolvable:$true] %s85_s1  ;;  %s108_s9 = int_to_ptr.vmem [resolvable:$true] %s107_s9 }
  0xc5   :  { %s1328_s3 = scalar_lea.hbm %s2018_s4, 32 }
  0xc6   :  { %p1329_p10 = scmp.ne.s32.totalorder %s2018_s4, %s1328_s3  ;;  %p1332_p11 = scmp.lt.u32.totalorder %s1328_s3, %s2018_s4 }
  0xc8   :  { %p1334_p12 = pnand %p1332_p11, %p1329_p10 }
  0xca   :  { %1337 = shalt.err (!%p1334_p12)
}
  0xcb   :  { %s1338_s26 = scalar_lea.vmem %s86_s1, 32  ;;  %p1343_p0 = scmp.lt.s32.totalorder %s86_s1, %s86_s1 }
  0xcc   :  { %p1339_p13 = scmp.ne.s32.totalorder %s86_s1, %s1338_s26  ;;  %p1344_p1 = scmp.lt.s32.totalorder %s1338_s26, %s1338_s26 }
  0xce   :  { %p1345_p2 = por %p1344_p1, %p1343_p0 }
  0xd0   :  { %p1346_p3 = pnand %p1345_p2, %p1339_p13 }
  0xd2   :  { %1349 = shalt.err (!%p1346_p3)
}
  0xd3   :  { %88 = dma.hbm_to_vmem [thread:$0]  %s2018_s4, 32, %s86_s1, [#allocation9]  }
  0xd4   :  { %s1350_s5 = scalar_lea.hbm %s2020_s6, 16 }
  0xd5   :  { %p1351_p4 = scmp.ne.s32.totalorder %s2020_s6, %s1350_s5  ;;  %p1354_p5 = scmp.lt.u32.totalorder %s1350_s5, %s2020_s6 }
  0xd7   :  { %p1356_p6 = pnand %p1354_p5, %p1351_p4 }
  0xd9   :  { %1359 = shalt.err (!%p1356_p6)
}
  0xda   :  { %s1360_s0 = scalar_lea.vmem %s108_s9, 16  ;;  %s1364_s19 = scalar_lea.vmem %s108_s9, 32 }
  0xdb   :  { %p1361_p7 = scmp.ne.s32.totalorder %s108_s9, %s1360_s0  ;;  %p1365_p8 = scmp.lt.s32.totalorder %s108_s9, %s108_s9 }
  0xdc   :  { %p1366_p9 = scmp.lt.s32.totalorder %s1364_s19, %s1360_s0 }
  0xde   :  { %p1367_p10 = por %p1366_p9, %p1365_p8 }
  0xe0   :  { %p1368_p11 = pnand %p1367_p10, %p1361_p7 }
  0xe2   :  { %1371 = shalt.err (!%p1368_p11)
}
  0xe3   :  { %110 = dma.hbm_to_vmem [thread:$0]  %s2020_s6, 16, %s108_s9, [#allocation12]  }
  0xe4   :  { %s1566_s15 = smov [#allocation16]   ;;  %s1567_s30 = smov [#allocation19]  }
  0xe5   :  { %s129_s3 = sshll.u32 %s1566_s15, 4  ;;  %s151_s20 = sshll.u32 %s1567_s30, 4  ;;  %s130_s3 = int_to_ptr.vmem [resolvable:$true] %s129_s3  ;;  %s152_s20 = int_to_ptr.vmem [resolvable:$true] %s151_s20 }
  0xe6   :  { %s1372_s26 = scalar_lea.hbm %s2022_s8, 16 }
  0xe7   :  { %p1373_p12 = scmp.ne.s32.totalorder %s2022_s8, %s1372_s26  ;;  %p1376_p13 = scmp.lt.u32.totalorder %s1372_s26, %s2022_s8 }
  0xe9   :  { %p1378_p0 = pnand %p1376_p13, %p1373_p12 }
  0xeb   :  { %1381 = shalt.err (!%p1378_p0)
}
  0xec   :  { %s1382_s6 = scalar_lea.vmem %s130_s3, 16  ;;  %s1386_s9 = scalar_lea.vmem %s130_s3, 32 }
  0xed   :  { %p1383_p1 = scmp.ne.s32.totalorder %s130_s3, %s1382_s6  ;;  %p1387_p2 = scmp.lt.s32.totalorder %s130_s3, %s130_s3 }
  0xee   :  { %p1388_p3 = scmp.lt.s32.totalorder %s1386_s9, %s1382_s6 }
  0xf0   :  { %p1389_p4 = por %p1388_p3, %p1387_p2 }
  0xf2   :  { %p1390_p5 = pnand %p1389_p4, %p1383_p1 }
  0xf4   :  { %1393 = shalt.err (!%p1390_p5)
}
  0xf5   :  { %132 = dma.hbm_to_vmem [thread:$0]  %s2022_s8, 16, %s130_s3, [#allocation15]  }
  0xf6   :  { %s1394_s23 = scalar_lea.hbm %s2024_s10, 16 }
  0xf7   :  { %p1395_p6 = scmp.ne.s32.totalorder %s2024_s10, %s1394_s23  ;;  %p1398_p7 = scmp.lt.u32.totalorder %s1394_s23, %s2024_s10 }
  0xf9   :  { %p1400_p8 = pnand %p1398_p7, %p1395_p6 }
  0xfb   :  { %1403 = shalt.err (!%p1400_p8)
}
  0xfc   :  { %s1404_s15 = scalar_lea.vmem %s152_s20, 16  ;;  %s1408_s30 = scalar_lea.vmem %s152_s20, 32 }
  0xfd   :  { %p1405_p9 = scmp.ne.s32.totalorder %s152_s20, %s1404_s15  ;;  %p1409_p10 = scmp.lt.s32.totalorder %s152_s20, %s152_s20 }
  0xfe   :  { %p1410_p11 = scmp.lt.s32.totalorder %s1408_s30, %s1404_s15 }
 0x100   :  { %p1411_p12 = por %p1410_p11, %p1409_p10 }
 0x102   :  { %p1412_p13 = pnand %p1411_p12, %p1405_p9 }
 0x104   :  { %1415 = shalt.err (!%p1412_p13)
}
 0x105   :  { %154 = dma.hbm_to_vmem [thread:$0]  %s2024_s10, 16, %s152_s20, [#allocation18]  }
 0x106   :  { %s1568_s22 = smov [#allocation22]   ;;  %s1569_s26 = smov [#allocation25]  }
 0x107   :  { %s173_s29 = sshll.u32 %s1568_s22, 4  ;;  %s195_s7 = sshll.u32 %s1569_s26, 4  ;;  %s174_s29 = int_to_ptr.vmem [resolvable:$true] %s173_s29  ;;  %s196_s7 = int_to_ptr.vmem [resolvable:$true] %s195_s7 }
 0x108   :  { %s1416_s27 = scalar_lea.hbm %s2026_s12, 16 }
 0x109   :  { %p1417_p0 = scmp.ne.s32.totalorder %s2026_s12, %s1416_s27  ;;  %p1420_p1 = scmp.lt.u32.totalorder %s1416_s27, %s2026_s12 }
 0x10b   :  { %p1422_p2 = pnand %p1420_p1, %p1417_p0 }
 0x10d   :  { %1425 = shalt.err (!%p1422_p2)
}
 0x10e   :  { %s1426_s10 = scalar_lea.vmem %s174_s29, 16  ;;  %s1430_s20 = scalar_lea.vmem %s174_s29, 32 }
 0x10f   :  { %p1427_p3 = scmp.ne.s32.totalorder %s174_s29, %s1426_s10  ;;  %p1431_p4 = scmp.lt.s32.totalorder %s174_s29, %s174_s29 }
 0x110   :  { %p1432_p5 = scmp.lt.s32.totalorder %s1430_s20, %s1426_s10 }
 0x112   :  { %p1433_p6 = por %p1432_p5, %p1431_p4 }
 0x114   :  { %p1434_p7 = pnand %p1433_p6, %p1427_p3 }
 0x116   :  { %1437 = shalt.err (!%p1434_p7)
}
 0x117   :  { %176 = dma.hbm_to_vmem [thread:$0]  %s2026_s12, 16, %s174_s29, [#allocation21]  }
 0x118   :  { %s1438_s19 = scalar_lea.hbm %s2028_s14, 16 }
 0x119   :  { %p1439_p8 = scmp.ne.s32.totalorder %s2028_s14, %s1438_s19  ;;  %p1442_p9 = scmp.lt.u32.totalorder %s1438_s19, %s2028_s14 }
 0x11b   :  { %p1444_p10 = pnand %p1442_p9, %p1439_p8 }
 0x11d   :  { %1447 = shalt.err (!%p1444_p10)
}
 0x11e   :  { %s1448_s8 = scalar_lea.vmem %s196_s7, 16  ;;  %s1452_s3 = scalar_lea.vmem %s196_s7, 32 }
 0x11f   :  { %p1449_p11 = scmp.ne.s32.totalorder %s196_s7, %s1448_s8  ;;  %p1453_p12 = scmp.lt.s32.totalorder %s196_s7, %s196_s7 }
 0x120   :  { %p1454_p13 = scmp.lt.s32.totalorder %s1452_s3, %s1448_s8 }
 0x122   :  { %p1455_p0 = por %p1454_p13, %p1453_p12 }
 0x124   :  { %p1456_p1 = pnand %p1455_p0, %p1449_p11 }
 0x126   :  { %1459 = shalt.err (!%p1456_p1)
}
 0x127   :  { %198 = dma.hbm_to_vmem [thread:$0]  %s2028_s14, 16, %s196_s7, [#allocation24]  }
 0x128   :  { %s1570_s29 = smov [#allocation28]   ;;  %s1460_s27 = scalar_lea.hbm %s2030_s16, 16 }
 0x129   :  { %s217_s26 = sshll.u32 %s1570_s29, 4  ;;  %p1461_p2 = scmp.ne.s32.totalorder %s2030_s16, %s1460_s27  ;;  %s218_s26 = int_to_ptr.vmem [resolvable:$true] %s217_s26 }
 0x12a   :  { %p1464_p3 = scmp.lt.u32.totalorder %s1460_s27, %s2030_s16 }
 0x12c   :  { %p1466_p4 = pnand %p1464_p3, %p1461_p2 }
 0x12e   :  { %1469 = shalt.err (!%p1466_p4)
}
 0x12f   :  { %s1470_s10 = scalar_lea.vmem %s218_s26, 16  ;;  %s1474_s14 = scalar_lea.vmem %s218_s26, 32 }
 0x130   :  { %p1471_p5 = scmp.ne.s32.totalorder %s218_s26, %s1470_s10  ;;  %p1475_p6 = scmp.lt.s32.totalorder %s218_s26, %s218_s26 }
 0x131   :  { %p1476_p7 = scmp.lt.s32.totalorder %s1474_s14, %s1470_s10 }
 0x133   :  { %p1477_p8 = por %p1476_p7, %p1475_p6 }
 0x135   :  { %p1478_p9 = pnand %p1477_p8, %p1471_p5 }
 0x137   :  { %1481 = shalt.err (!%p1478_p9)
}
 0x138   :  { %220 = dma.hbm_to_vmem [thread:$0]  %s2030_s16, 16, %s218_s26, [#allocation27]  }
 0x139   :  { %1526 = dma.done.wait [#allocation3], 64  }
 0x13a   :  { %1527 = vsyncadd [#allocation3], 4294967232 }
 0x13b   :  { %1528 = dma.done.wait [#allocation6], 48  }
 0x13c   :  { %1529 = vsyncadd [#allocation6], 4294967248 }
 0x13d   :  { %1530 = dma.done.wait [#allocation9], 800  }
 0x13e   :  { %1531 = vsyncadd [#allocation9], 4294966496 }
 0x13f   :  { %1532 = dma.done.wait [#allocation12], 400  }
 0x140   :  { %1533 = vsyncadd [#allocation12], 4294966896 }
 0x141   :  { %1534 = dma.done.wait [#allocation15], 272  }
 0x142   :  { %1535 = vsyncadd [#allocation15], 4294967024 }
 0x143   :  { %1536 = dma.done.wait [#allocation18], 272  }
 0x144   :  { %1537 = vsyncadd [#allocation18], 4294967024 }
 0x145   :  { %1538 = dma.done.wait [#allocation21], 272  }
 0x146   :  { %1539 = vsyncadd [#allocation21], 4294967024 }
 0x147   :  { %1540 = dma.done.wait [#allocation24], 272  }
 0x148   :  { %1541 = vsyncadd [#allocation24], 4294967024 }
 0x149   :  { %1542 = dma.done.wait [#allocation27], 272  }
 0x14a   :  { %1543 = vsyncadd [#allocation27], 4294967024  ;;  %v278_v0 = vlaneseq  ;;  %v1571_v1 = vmov 1966171168   ;;  %v1572_v3 = vmov 0.0   ;;  %vm1573_vm0 = vmmov 0  }
 0x14b   :  { %v428_v2 = vunpack.c.l.s4 %v1571_v1  ;;  %995 = vmatprep.subr.bf16.mxu1 %v1572_v3  ;;  %1001 = vmatprep.mubr.msk.bf16.mxu1 %vm1573_vm0, %v1572_v3  ;;  %v273_v8 = vld [vmem:[#allocation7] sm:$0x1]  ;;  %v274_v9 = vld [vmem:[#allocation7 + $0x1] sm:$0x1]  ;;  %v1574_v10 = vmov 0   ;;  %v1075_v12 = vld [vmem:[#allocation11] sm:$0xff]  }
 0x14c   :  { %v1909_v4 = vshrl.u32 %v278_v0, 7  ;;  %380 = vmatprep.mubr.bf16.mxu0 %v1574_v10  ;;  %v426_v11 = vcombine.low %v273_v8, %v274_v9  ;;  %996 = vmatpush3.bf16.msra.mxu1 %v1075_v12  ;;  %v1076_v14 = vld [vmem:[#allocation11 + $0x8] sm:$0xff]   ;;  %v1078_v17 = vld [vmem:[#allocation8 + $0x4] ss:$8 sps:$4 sm:$0xff]   ;;  %s1575_s16 = smov 32   ;;  %vm293_vm1 = vcmask 261120  }
 0x14d   :  { %v429_v5 = vunpack.c.0.s8 %v428_v2  ;;  %997 = vmatprep.subr.bf16.mxu1 %v1572_v3  ;;  %v1080_v19 = vld [vmem:[#allocation8] ss:$8 sps:$4 sm:$0xff]   ;;  %348 = vmatprep.subr.bf16.mxu0 %v1078_v17  ;;  %v1081_v20 = vld [vmem:[#allocation8 + $0x14] ss:$8 sps:$4 sm:$0xff]   ;;  %v1083_v23 = vld [vmem:[#allocation8 + $0x10] ss:$8 sps:$4 sm:$0xff]  }
 0x14e   :  { %v1917_v7 = vsub.s32 0, %v1909_v4  ;;  %v1077_v21 = vld [vmem:[#allocation11 + $0x10] sm:$0xff]   ;;  %349 = vmatpush1.bf16.msra.mxu0 %v1080_v19  ;;  %v950_v26 = vld [vmem:[#allocation5] ss:$0 sm:$0xff]  ;;  %vm344_vm2 = vcmask 392192   ;;  %v1088_v33 = vld [vmem:[#allocation14] sm:$0xff]  }
 0x14f   :  { %v1914_v6 = vsub.s32 %v429_v5, %v1909_v4  ;;  %350 = vmatprep.subr.bf16.mxu0 %v1081_v20  ;;  %v1084_v24 = vld [vmem:[#allocation8 + $0x24] ss:$8 sps:$4 sm:$0xff]   ;;  %v1087_v25 = vld [vmem:[#allocation8 + $0x20] ss:$8 sps:$4 sm:$0xff]   ;;  %v1086_v29 = vld [vmem:[#allocation2] ss:$0 sps:$4 sm:$0xff]  }
 0x150   :  { %v281_v15 = vrot.slane %v273_v8, %v1917_v7  ;;  %v285_v16 = vrot.slane %v274_v9, %v1917_v7  ;;  %998 = vmatpush3.bf16.msra.mxu1 %v1076_v14  ;;  %v1089_v35 = vld [vmem:[#allocation14 + $0x8] sm:$0xff]   ;;  %v1090_v36 = vld [vmem:[#allocation17] sm:$0xff]   ;;  %v951_v37 = vld [vmem:[#allocation13] ss:$0 sm:$0xff]  ;;  %vm861_vm3 = vcmask 25600   ;;  %vm389_vm4 = vcmask 130048  }
 0x151   :  { %v433_v13 = vrot.slane %v426_v11, %v1914_v6  ;;  %999 = vmatprep.subr.bf16.mxu1 %v1572_v3  ;;  %v1091_v48 = vld [vmem:[#allocation17 + $0x8] sm:$0xff]   ;;  %v956_v49 = vld [vmem:[#allocation16] ss:$0 sm:$0xff]  ;;  %v1092_v57 = vld [vmem:[#allocation20] sm:$0xff]   ;;  %vm899_vm5 = vcmask 24576   ;;  %s1576_s28 = smov [#allocation30]  }
 0x152   :  { %v289_v22 = vcombine.low %v281_v15, %v285_v16  ;;  %351 = vmatpush1.bf16.msra.mxu0 %v1083_v23  ;;  %v1093_v58 = vld [vmem:[#allocation20 + $0x8] sm:$0xff]   ;;  %v1094_v59 = vld [vmem:[#allocation23] sm:$0xff]   ;;  %v960_v60 = vld [vmem:[#allocation19] ss:$0 sm:$0xff]  ;;  %s919_s11 = sshll.u32 %s1576_s28, 4  ;;  %vm414_vm6 = vcmask 1043456   ;;  %s920_s11 = int_to_ptr.vmem [resolvable:$true] %s919_s11 }
 0x153   :  { %v440_v18 = vrot.slane %v433_v13, %v1914_v6  ;;  %352 = vmatprep.subr.bf16.mxu0 %v1084_v24  ;;  %v1095_v9 = vld [vmem:[#allocation23 + $0x8] sm:$0xff]   ;;  %v964_v10 = vld [vmem:[#allocation22] ss:$0 sm:$0xff]  ;;  %v968_v20 = vld [vmem:[#allocation25] ss:$0 sm:$0xff]  ;;  %vm415_vm7 = vcmask 130052   ;;  %p1487_p11 = scmp.lt.s32.totalorder %s920_s11, %s920_s11 }
 0x154   :  { %1000 = vmatpush3.bf16.msra.mxu1 %v1077_v21  ;;  %v1097_v19 = vld [vmem:[#allocation26 + $0x8] sm:$0xff]   ;;  %s1577_s23 = smov [#allocation29]   ;;  %vm1968_vm8 = vmor %vm415_vm7, %vm414_vm6  ;;  %s1482_s19 = scalar_lea.vmem %s920_s11, 32 }
 0x155   :  { %441 = vrot.lane.b32.xlu0 %v440_v18, %s1575_s16  ;;  %1013 = vmatprep.subr.bf16.mxu1 %v1572_v3  ;;  %v1096_v18 = vld [vmem:[#allocation26] sm:$0xff]   ;;  %s907_s0 = sshll.u32 %s1577_s23, 4  ;;  %p1483_p10 = scmp.ne.s32.totalorder %s920_s11, %s1482_s19  ;;  %s1972_s0 = int_to_ptr.vmem [resolvable:$true] %s907_s0 }
 0x156   :  { %353 = vmatpush1.bf16.msra.mxu0 %v1087_v25  ;;  %p1488_p12 = scmp.lt.s32.totalorder %s1482_s19, %s1482_s19 }
 0x157   :  { %1005 = vmatprep.subr.bf16.mxu0 %v1572_v3 }
 0x158   :  { %p1489_p13 = por %p1488_p12, %p1487_p11 }
 0x159   :  { %290 = vrot.lane.b32.xlu0 %v289_v22, %s1575_s16 }
 0x15a   :  { %p1490_p0 = pnand %p1489_p13, %p1483_p10 }
 0x1c7   :  { %v442_v27 = vpop.permute.xlu0 %441 }
 0x1c8   :  { %v444_v28 = vsel %vm293_vm1, %v950_v26, %v442_v27 }
 0x1c9   :  { %v445_v30 = vpack.c.bf16 %v444_v28, %v444_v28 }
 0x1cb   :  { %1002 = vmatmul.mubr.msk.bf16.vlgmr.msra.gmra.mrb[0].mxu1 %vm344_vm2, %v445_v30  ;;  %v291_v31 = vpop.permute.xlu0 %290  ;;  %v302_v30 = vld [vmem:[#allocation10] sm:$0x3] }
 0x1cc   :  { %v294_v32 = vsel %vm293_vm1, %v1086_v29, %v291_v31  ;;  %1017 = vmatprep.mubr.msk.bf16.mxu1 %vm1573_vm0, %v1572_v3  ;;  %1014 = vmatpush3.bf16.msra.mxu1 %v1090_v36  ;;  %v310_v29 = vsub.s32 1, %v1909_v4 }
 0x1cd   :  { %v295_v34 = vpack.c.bf16 %v294_v32, %v294_v32  ;;  %1015 = vmatprep.subr.bf16.mxu1 %v1572_v3  ;;  %v307_v32 = vrot.slane %v302_v30, %v1917_v7 }
 0x1ce   :  { %v311_v31 = vrot.slane %v302_v30, %v310_v29 }
 0x1cf   :  { %949 = vmatmul.mubr.msk.bf16.vlgmr.msra.gmra.mrb[0].mxu0 %vm344_vm2, %v295_v34 }
 0x1d0   :  { %1006 = vmatpush3.bf16.msra.mxu0 %v1088_v33  ;;  %1009 = vmatprep.mubr.msk.bf16.mxu0 %vm1573_vm0, %v1572_v3 }
 0x1d1   :  { %1007 = vmatprep.subr.bf16.mxu0 %v1572_v3  ;;  %1016 = vmatpush3.bf16.msra.mxu1 %v1091_v48 }
 0x1d2   :  { %1029 = vmatprep.subr.bf16.mxu1 %v1572_v3 }
 0x1d4   :  { %1008 = vmatpush3.bf16.msra.mxu0 %v1089_v35 }
 0x1d5   :  { %1021 = vmatprep.subr.bf16.mxu0 %v1572_v3 }
 0x29e   :  { %v514_v38 = vpop.f32.mrb[0].mxu1 }
 0x29f   :  { %v515_v39 = vadd.f32 %v951_v37, %v514_v38  ;;  %v1003_v40 = vpop.f32.mrb[1].mxu1 }
 0x2a0   :  { %v517_v41 = vpop.f32.mrb[2].mxu1 }
 0x2a1   :  { %v520_v42 = vpack.c.bf16 %v515_v39, %v515_v39  ;;  %v1004_v43 = vpop.f32.mrb[3].mxu1 }
 0x2a2   :  { %v1936_v44 = vpop.f32.mrb[0].mxu0 }
 0x2a3   :  { %1010 = vmatmul.mubr.msk.bf16.vlgmr.msra.gmra.mrb[4].mxu0 %vm293_vm1, %v520_v42  ;;  %v1939_v45 = vpop.f32.mrb[1].mxu0  ;;  %v383_v37 = vadd.f32 %v1936_v44, %v307_v32 }
 0x2a4   :  { %v386_v46 = vpop.f32.mrb[2].mxu0  ;;  %1025 = vmatprep.mubr.msk.bf16.mxu0 %vm1573_vm0, %v1572_v3  ;;  %1022 = vmatpush3.bf16.msra.mxu0 %v1092_v57  ;;  %v385_v33 = vadd.f32 %v1939_v45, %v311_v31 }
 0x2a5   :  { %v387_v47 = vpop.f32.mrb[3].mxu0  ;;  %1023 = vmatprep.subr.bf16.mxu0 %v1572_v3 }
 0x2a6   :  { %v390_v4 = vsel %vm389_vm4, %v385_v33, -inf }
 0x2a7   :  { %v391_v41 = vmax.f32 %v383_v37, %v390_v4 }
 0x2a8   :  { %1024 = vmatpush3.bf16.msra.mxu0 %v1093_v58 }
 0x2a9   :  { %1037 = vmatprep.subr.bf16.mxu0 %v1572_v3 }
 0x376   :  { %v581_v50 = vpop.f32.mrb[4].mxu0 }
 0x377   :  { %v582_v51 = vadd.f32 %v956_v49, %v581_v50  ;;  %v1011_v52 = vpop.f32.mrb[5].mxu0 }
 0x378   :  { %v584_v53 = vpop.f32.mrb[6].mxu0 }
 0x379   :  { %v587_v54 = vmax.f32 %v582_v51, 0.0  ;;  %v1012_v55 = vpop.f32.mrb[7].mxu0 }
 0x37b   :  { %v588_v56 = vpack.c.bf16 %v587_v54, %v587_v54 }
 0x37d   :  { %1018 = vmatmul.mubr.msk.bf16.vlgmr.msra.gmra.mrb[4].mxu1 %vm293_vm1, %v588_v56 }
 0x37e   :  { %1033 = vmatprep.mubr.msk.bf16.mxu1 %vm1573_vm0, %v1572_v3  ;;  %1030 = vmatpush3.bf16.msra.mxu1 %v1094_v59 }
 0x37f   :  { %1031 = vmatprep.subr.bf16.mxu1 %v1572_v3 }
 0x382   :  { %1032 = vmatpush3.bf16.msra.mxu1 %v1095_v9 }
 0x450   :  { %v649_v61 = vpop.f32.mrb[4].mxu1 }
 0x451   :  { %v650_v62 = vadd.f32 %v960_v60, %v649_v61  ;;  %v1019_v63 = vpop.f32.mrb[5].mxu1 }
 0x452   :  { %v652_v0 = vpop.f32.mrb[6].mxu1 }
 0x453   :  { %v655_v1 = vmax.f32 %v650_v62, 0.0  ;;  %v1020_v2 = vpop.f32.mrb[7].mxu1 }
 0x455   :  { %v656_v5 = vadd.f32 %v655_v1, %v515_v39 }
 0x457   :  { %v657_v8 = vpack.c.bf16 %v656_v5, %v656_v5 }
 0x459   :  { %1026 = vmatmul.mubr.msk.bf16.vlgmr.msra.gmra.mrb[8].mxu0 %vm293_vm1, %v657_v8 }
 0x45a   :  { %1041 = vmatprep.mubr.msk.bf16.mxu0 %vm1573_vm0, %v1572_v3  ;;  %1038 = vmatpush3.bf16.msra.mxu0 %v1096_v18 }
 0x45b   :  { %1039 = vmatprep.subr.bf16.mxu0 %v1572_v3  ;;  %v972_v3 = vld [vmem:[#allocation28] ss:$0 sm:$0xff] }
 0x45e   :  { %1040 = vmatpush3.bf16.msra.mxu0 %v1097_v19 }
 0x52c   :  { %v718_v11 = vpop.f32.mrb[8].mxu0 }
 0x52d   :  { %v719_v12 = vadd.f32 %v964_v10, %v718_v11  ;;  %v1027_v13 = vpop.f32.mrb[9].mxu0 }
 0x52e   :  { %v721_v14 = vpop.f32.mrb[10].mxu0 }
 0x52f   :  { %v724_v15 = vmax.f32 %v719_v12, 0.0  ;;  %v1028_v16 = vpop.f32.mrb[11].mxu0 }
 0x531   :  { %v725_v17 = vpack.c.bf16 %v724_v15, %v724_v15 }
 0x533   :  { %1034 = vmatmul.mubr.msk.bf16.vlgmr.msra.gmra.mrb[8].mxu1 %vm293_vm1, %v725_v17 }
 0x606   :  { %v786_v21 = vpop.f32.mrb[8].mxu1 }
 0x607   :  { %v787_v22 = vadd.f32 %v968_v20, %v786_v21  ;;  %v1035_v23 = vpop.f32.mrb[9].mxu1 }
 0x608   :  { %v789_v24 = vpop.f32.mrb[10].mxu1 }
 0x609   :  { %v792_v25 = vmax.f32 %v787_v22, 0.0  ;;  %v1036_v26 = vpop.f32.mrb[11].mxu1 }
 0x60b   :  { %v793_v27 = vadd.f32 %v792_v25, %v656_v5 }
 0x60d   :  { %v794_v28 = vpack.c.bf16 %v793_v27, %v793_v27 }
 0x60f   :  { %1042 = vmatmul.mubr.msk.bf16.vlgmr.msra.gmra.mrb[12].mxu0 %vm293_vm1, %v794_v28 }
 0x6e2   :  { %v855_v34 = vpop.f32.mrb[12].mxu0 }
 0x6e3   :  { %v856_v35 = vadd.f32 %v972_v3, %v855_v34  ;;  %v1043_v36 = vpop.f32.mrb[13].mxu0 }
 0x6e4   :  { %v858_v38 = vpop.f32.mrb[14].mxu0 }
 0x6e5   :  { %v1044_v39 = vpop.f32.mrb[15].mxu0  ;;  %v862_v40 = vsel %vm861_vm3, %v856_v35, -inf }
 0x6e6   :  { %863 = vmax.xlane.f32.xlu1 %v862_v40 }
 0x6ea   :  { %392 = vmax.xlane.f32.xlu1 %v391_v41 }
 0x773   :  { %v864_v7 = vpop.xlane.xlu1 %863 }
 0x774   :  { %v865_v42 = vsub.f32 %v856_v35, %v864_v7 }
 0x776   :  { %v866_v43 = vmul.f32 1.442695, %v865_v42 }
 0x777   :  { %v393_v45 = vpop.xlane.xlu1 %392 }
 0x778   :  { %1098 = vpow2.f32 %v866_v43  ;;  %v394_v46 = vsub.f32 %v383_v37, %v393_v45  ;;  %v395_v47 = vsub.f32 %v385_v33, %v393_v45 }
 0x77a   :  { %v396_v48 = vmul.f32 1.442695, %v394_v46  ;;  %v398_v49 = vmul.f32 1.442695, %v395_v47 }
 0x77c   :  { %1100 = vpow2.f32 %v396_v48 }
 0x77d   :  { %1102 = vpow2.f32 %v398_v49 }
 0x782   :  { %v1099_v44 = vpop.eup %1098 }
 0x783   :  { %v868_v50 = vsel %vm861_vm3, %v1099_v44, 0.0 }
 0x784   :  { %869 = vadd.xlane.f32.xlu0 %v868_v50 }
 0x786   :  { %v1101_v51 = vpop.eup %1100 }
 0x787   :  { %v1103_v52 = vpop.eup %1102 }
 0x788   :  { %v400_v53 = vsel %vm389_vm4, %v1103_v52, 0.0 }
 0x789   :  { %v401_v54 = vadd.f32 %v1101_v51, %v400_v53 }
 0x78b   :  { %402 = vadd.xlane.f32.xlu1 %v401_v54 }
 0x811   :  { %v870_v55 = vpop.xlane.xlu0 %869 }
 0x812   :  { %1104 = vlog2.f32 %v870_v55 }
 0x818   :  { %v403_v56 = vpop.xlane.xlu1 %402 }
 0x819   :  { %1106 = vlog2.f32 %v403_v56 }
 0x81c   :  { %v1105_v57 = vpop.eup %1104 }
 0x81d   :  { %v872_v58 = vmul.f32 0.6931472, %v1105_v57 }
 0x81f   :  { %v873_v59 = vsub.f32 %v865_v42, %v872_v58 }
 0x821   :  { %v881_v60 = vrot.slane %v873_v59, %v1914_v6 }
 0x823   :  { %v1107_v61 = vpop.eup %1106  ;;  %v882_v62 = vcombine.high %v881_v60, %v881_v60  ;;  %v889_v63 = vrot.slane %v881_v60, %v1914_v6 }
 0x824   :  { %v405_v0 = vmul.f32 0.6931472, %v1107_v61 }
 0x825   :  { %v896_v1 = vrot.slane %v882_v62, %v1914_v6  ;;  %900 = vst.msk [vmem:[#allocation30] sm:$0x1] %vm899_vm5, %v889_v63 }
 0x826   :  { %v406_v2 = vsub.f32 %v394_v46, %v405_v0  ;;  %v407_v5 = vsub.f32 %v395_v47, %v405_v0 }
 0x827   :  { %901 = vst.msk [vmem:[#allocation30 + $0x1] sm:$0x1] %vm899_vm5, %v896_v1 }
 0x828   :  { %v410_v9 = vcombine.low %v406_v2, %v407_v5  ;;  %v411_v10 = vcombine.high %v406_v2, %v407_v5 }
 0x829   :  { %1493 = shalt.err (!%p1490_p0)
}
 0x82a   :  { %s1494_s15 = scalar_lea.hbm %s2032_s18, 32 }
 0x82b   :  { %p1495_p1 = scmp.ne.s32.totalorder %s2032_s18, %s1494_s15  ;;  %p1498_p2 = scmp.lt.u32.totalorder %s1494_s15, %s2032_s18 }
 0x82d   :  { %p1500_p3 = pnand %p1498_p2, %p1495_p1 }
 0x82f   :  { %1503 = shalt.err (!%p1500_p3)
}
 0x830   :  { %925 = dma.vmem_to_hbm [thread:$0]  %s920_s11, 32, %s2032_s18, [#allocation31], %s1562_s21, %s1562_s21, %s1563_s25   ;;  %417 = vst.msk [vmem:[#allocation29] sm:$0xff] %vm1968_vm8, %v410_v9  ;;  %418 = vst.msk [vmem:[#allocation29 + $0x8] sm:$0xff] %vm1968_vm8, %v411_v10 }
 0x831   :  { %s1504_s26 = scalar_lea.vmem %s1972_s0, 256  ;;  %p1509_p5 = scmp.lt.s32.totalorder %s1972_s0, %s1972_s0 }
 0x832   :  { %p1505_p4 = scmp.ne.s32.totalorder %s1972_s0, %s1504_s26  ;;  %p1510_p6 = scmp.lt.s32.totalorder %s1504_s26, %s1504_s26 }
 0x834   :  { %p1511_p7 = por %p1510_p6, %p1509_p5 }
 0x836   :  { %p1512_p8 = pnand %p1511_p7, %p1505_p4 }
 0x838   :  { %1515 = shalt.err (!%p1512_p8)
}
 0x839   :  { %s1516_s27 = scalar_lea.hbm %s2031_s17, 256 }
 0x83a   :  { %p1517_p9 = scmp.ne.s32.totalorder %s2031_s17, %s1516_s27  ;;  %p1520_p10 = scmp.lt.u32.totalorder %s1516_s27, %s2031_s17 }
 0x83c   :  { %p1522_p11 = pnand %p1520_p10, %p1517_p9 }
 0x83e   :  { %1525 = shalt.err (!%p1522_p11)
}
 0x83f   :  { %s2046_s9 = smov 8   ;;  %s2047_s5 = smov 128  }
 0x840   :  { %913 = dma.vmem_to_hbm [thread:$0]  %s1972_s0, 256, %s2031_s17, [#allocation4], %s2047_s5, %s2047_s5, %s2046_s9  }
 0x841   :  { %1544 = dma.done.wait [#allocation4], 256  }
 0x842   :  { %1545 = vsyncadd [#allocation4], 4294967040 }
 0x843   :  { %1546 = dma.done.wait [#allocation31], 32  }
 0x844   :  { %1547 = vsyncadd [#allocation31], 4294967264 }
 0x845   :  { %932 = vsyncpa [#allocation3], 1 }
 0x846   :  { %933 = vsyncpa [#allocation6], 1 }
 0x847   :  { %934 = vsyncpa [#allocation9], 1 }
 0x848   :  { %935 = vsyncpa [#allocation12], 1 }
 0x849   :  { %936 = vsyncpa [#allocation15], 1 }
 0x84a   :  { %937 = vsyncpa [#allocation18], 1 }
 0x84b   :  { %938 = vsyncpa [#allocation21], 1 }
 0x84c   :  { %939 = vsyncpa [#allocation24], 1 }
 0x84d   :  { %940 = vsyncpa [#allocation27], 1 }
 0x84e   :  { %941 = vsyncpa [#allocation4], 1 }
 0x84f   :  { %942 = vsyncpa [#allocation31], 1 }

// kernel: compound_cfg_forward.3
= control target key start
LH: loop header
LB: loop body
LE: loop exit
PB: predicated region body
PF: predicated region fallthrough
CT: control target
= control target key end

     0   :  { %17 = vsyncpa [#allocation9], 0  ;;  %s4541_s0 = inlined_call_operand.hbm [shape: bf16[8,2,32], index: 0, kind: input, shape index: {}, may-alias: {0,1}]   ;;  %s4542_s1 = inlined_call_operand.hbm [shape: bf16[8,2,32], index: 1, kind: input, shape index: {}, may-alias: {0,1}]   ;;  %s4543_s2 = inlined_call_operand.hbm [shape: f32[8,2,1], index: 2, kind: input, shape index: {}, may-alias: {2,3}]   ;;  %s4544_s3 = inlined_call_operand.hbm [shape: f32[8,2,1], index: 3, kind: input, shape index: {}, may-alias: {2,3}]   ;;  %s4545_s4 = inlined_call_operand.hbm [shape: bf16[32,128], index: 4, kind: input, shape index: {}]   ;;  %s4546_s5 = inlined_call_operand.hbm [shape: bf16[32,128], index: 5, kind: input, shape index: {}]   ;;  %s4547_s6 = inlined_call_operand.hbm [shape: f32[1,128], index: 6, kind: input, shape index: {}]   ;;  %s4548_s7 = inlined_call_operand.hbm [shape: f32[1,128], index: 7, kind: input, shape index: {}]   ;;  %s4549_s8 = inlined_call_operand.hbm [shape: bf16[32,128], index: 8, kind: input, shape index: {}]   ;;  %s4550_s9 = inlined_call_operand.hbm [shape: bf16[32,128], index: 9, kind: input, shape index: {}]   ;;  %s4551_s10 = inlined_call_operand.hbm [shape: f32[64,32], index: 10, kind: input, shape index: {}]   ;;  %s4552_s11 = inlined_call_operand.hbm [shape: f32[1,32], index: 11, kind: input, shape index: {}]   ;;  %s4553_s12 = inlined_call_operand.hbm [shape: f32[2,32], index: 12, kind: output, shape index: {}]  }
   0x1   :  { %18 = vsyncpa [#allocation12], 0 }
   0x2   :  { %19 = vsyncpa [#allocation15], 0 }
   0x3   :  { %20 = vsyncpa [#allocation18], 0 }
   0x4   :  { %21 = vsyncpa [#allocation21], 0 }
   0x5   :  { %22 = vsyncpa [#allocation24], 0 }
   0x6   :  { %23 = vsyncpa [#allocation27], 0 }
   0x7   :  { %24 = vsyncpa [#allocation10], 0  ;;  %s3646_s21 = smov [#allocation11]   ;;  %s3344_s25 = scalar_lea.hbm %s4542_s1, 128 }
   0x8   :  { %s46_s22 = sshll.u32 %s3646_s21, 4  ;;  %p3345_p0 = scmp.ne.s32.totalorder %s4542_s1, %s3344_s25  ;;  %s47_s22 = int_to_ptr.vmem [resolvable:$true] %s46_s22 }
   0x9   :  { %p3348_p1 = scmp.lt.u32.totalorder %s3344_s25, %s4542_s1 }
   0xb   :  { %p3350_p2 = pnand %p3348_p1, %p3345_p0 }
   0xd   :  { %3353 = shalt.err (!%p3350_p2)
}
   0xe   :  { %s3354_s30 = scalar_lea.vmem %s47_s22, 128  ;;  %p3359_p4 = scmp.lt.s32.totalorder %s47_s22, %s47_s22 }
   0xf   :  { %p3355_p3 = scmp.ne.s32.totalorder %s47_s22, %s3354_s30  ;;  %p3360_p5 = scmp.lt.s32.totalorder %s3354_s30, %s3354_s30 }
  0x11   :  { %p3361_p6 = por %p3360_p5, %p3359_p4 }
  0x13   :  { %p3362_p7 = pnand %p3361_p6, %p3355_p3 }
  0x15   :  { %3365 = shalt.err (!%p3362_p7)
}
  0x16   :  { %s3647_s13 = smov 16   ;;  %s3648_s14 = smov 1  }
  0x17   :  { %52 = dma.hbm_to_vmem [thread:$0]  %s4542_s1, 128, %s47_s22, [#allocation12], %s3647_s13, %s3647_s13, %s3648_s14  }
  0x18   :  { %s3649_s17 = smov [#allocation14]   ;;  %s3366_s21 = scalar_lea.hbm %s4544_s3, 256 }
  0x19   :  { %s74_s18 = sshll.u32 %s3649_s17, 4  ;;  %p3367_p8 = scmp.ne.s32.totalorder %s4544_s3, %s3366_s21  ;;  %s75_s18 = int_to_ptr.vmem [resolvable:$true] %s74_s18 }
  0x1a   :  { %p3370_p9 = scmp.lt.u32.totalorder %s3366_s21, %s4544_s3 }
  0x1c   :  { %p3372_p10 = pnand %p3370_p9, %p3367_p8 }
  0x1e   :  { %3375 = shalt.err (!%p3372_p10)
}
  0x1f   :  { %s3376_s27 = scalar_lea.vmem %s75_s18, 256  ;;  %p3381_p12 = scmp.lt.s32.totalorder %s75_s18, %s75_s18 }
  0x20   :  { %p3377_p11 = scmp.ne.s32.totalorder %s75_s18, %s3376_s27  ;;  %p3382_p13 = scmp.lt.s32.totalorder %s3376_s27, %s3376_s27 }
  0x22   :  { %p3383_p0 = por %p3382_p13, %p3381_p12 }
  0x24   :  { %p3384_p1 = pnand %p3383_p0, %p3377_p11 }
  0x26   :  { %3387 = shalt.err (!%p3384_p1)
}
  0x27   :  { %s3650_s1 = smov 32   ;;  %s3651_s22 = smov 2  }
  0x28   :  { %80 = dma.hbm_to_vmem [thread:$0]  %s4544_s3, 256, %s75_s18, [#allocation15], %s3650_s1, %s3650_s1, %s3651_s22  }
  0x29   :  { %s3652_s30 = smov [#allocation17]   ;;  %s3653_s16 = smov [#allocation20]  }
  0x2a   :  { %s98_s15 = sshll.u32 %s3652_s30, 4  ;;  %s121_s17 = sshll.u32 %s3653_s16, 4  ;;  %s99_s15 = int_to_ptr.vmem [resolvable:$true] %s98_s15  ;;  %s3768_s17 = int_to_ptr.vmem [resolvable:$true] %s121_s17 }
  0x2b   :  { %s3388_s21 = scalar_lea.hbm %s4546_s5, 256 }
  0x2c   :  { %p3389_p2 = scmp.ne.s32.totalorder %s4546_s5, %s3388_s21  ;;  %p3392_p3 = scmp.lt.u32.totalorder %s3388_s21, %s4546_s5 }
  0x2e   :  { %p3394_p4 = pnand %p3392_p3, %p3389_p2 }
  0x30   :  { %3397 = shalt.err (!%p3394_p4)
}
  0x31   :  { %s3398_s3 = scalar_lea.vmem %s99_s15, 256  ;;  %p3403_p6 = scmp.lt.s32.totalorder %s99_s15, %s99_s15 }
  0x32   :  { %p3399_p5 = scmp.ne.s32.totalorder %s99_s15, %s3398_s3  ;;  %p3404_p7 = scmp.lt.s32.totalorder %s3398_s3, %s3398_s3 }
  0x34   :  { %p3405_p8 = por %p3404_p7, %p3403_p6 }
  0x36   :  { %p3406_p9 = pnand %p3405_p8, %p3399_p5 }
  0x38   :  { %3409 = shalt.err (!%p3406_p9)
}
  0x39   :  { %s3654_s18 = smov 64   ;;  %s3655_s27 = smov 4  }
  0x3a   :  { %104 = dma.hbm_to_vmem [thread:$0]  %s4546_s5, 256, %s99_s15, [#allocation18], %s3654_s18, %s3654_s18, %s3655_s27  }
  0x3b   :  { %s3410_s19 = scalar_lea.hbm %s4548_s7, 16 }
  0x3c   :  { %p3411_p10 = scmp.ne.s32.totalorder %s4548_s7, %s3410_s19  ;;  %p3414_p11 = scmp.lt.u32.totalorder %s3410_s19, %s4548_s7 }
  0x3e   :  { %p3416_p12 = pnand %p3414_p11, %p3411_p10 }
  0x40   :  { %3419 = shalt.err (!%p3416_p12)
}
  0x41   :  { %s3420_s25 = scalar_lea.vmem %s3768_s17, 16  ;;  %s3424_s5 = scalar_lea.vmem %s3768_s17, 32 }
  0x42   :  { %p3421_p13 = scmp.ne.s32.totalorder %s3768_s17, %s3420_s25  ;;  %p3425_p0 = scmp.lt.s32.totalorder %s3768_s17, %s3768_s17 }
  0x43   :  { %p3426_p1 = scmp.lt.s32.totalorder %s3424_s5, %s3420_s25 }
  0x45   :  { %p3427_p2 = por %p3426_p1, %p3425_p0 }
  0x47   :  { %p3428_p3 = pnand %p3427_p2, %p3421_p13 }
  0x49   :  { %3431 = shalt.err (!%p3428_p3)
}
  0x4a   :  { %124 = dma.hbm_to_vmem [thread:$0]  %s4548_s7, 16, %s3768_s17, [#allocation21]  }
  0x4b   :  { %s3656_s3 = smov [#allocation23]   ;;  %s3657_s29 = smov [#allocation8]  }
  0x4c   :  { %s142_s28 = sshll.u32 %s3656_s3, 4  ;;  %s30_s30 = sshll.u32 %s3657_s29, 4  ;;  %s143_s28 = int_to_ptr.vmem [resolvable:$true] %s142_s28  ;;  %s3803_s30 = int_to_ptr.vmem [resolvable:$true] %s30_s30 }
  0x4d   :  { %s3432_s20 = scalar_lea.hbm %s4550_s9, 256 }
  0x4e   :  { %p3433_p4 = scmp.ne.s32.totalorder %s4550_s9, %s3432_s20  ;;  %p3436_p5 = scmp.lt.u32.totalorder %s3432_s20, %s4550_s9 }
  0x50   :  { %p3438_p6 = pnand %p3436_p5, %p3433_p4 }
  0x52   :  { %3441 = shalt.err (!%p3438_p6)
}
  0x53   :  { %s3442_s7 = scalar_lea.vmem %s143_s28, 256  ;;  %p3447_p8 = scmp.lt.s32.totalorder %s143_s28, %s143_s28 }
  0x54   :  { %p3443_p7 = scmp.ne.s32.totalorder %s143_s28, %s3442_s7  ;;  %p3448_p9 = scmp.lt.s32.totalorder %s3442_s7, %s3442_s7 }
  0x56   :  { %p3449_p10 = por %p3448_p9, %p3447_p8 }
  0x58   :  { %p3450_p11 = pnand %p3449_p10, %p3443_p7 }
  0x5a   :  { %3453 = shalt.err (!%p3450_p11)
}
  0x5b   :  { %148 = dma.hbm_to_vmem [thread:$0]  %s4550_s9, 256, %s143_s28, [#allocation24], %s3654_s18, %s3654_s18, %s3655_s27  }
  0x5c   :  { %s3454_s3 = scalar_lea.hbm %s4541_s0, 128 }
  0x5d   :  { %p3455_p12 = scmp.ne.s32.totalorder %s4541_s0, %s3454_s3  ;;  %p3458_p13 = scmp.lt.u32.totalorder %s3454_s3, %s4541_s0 }
  0x5f   :  { %p3460_p0 = pnand %p3458_p13, %p3455_p12 }
  0x61   :  { %3463 = shalt.err (!%p3460_p0)
}
  0x62   :  { %s3464_s21 = scalar_lea.vmem %s3803_s30, 128  ;;  %p3469_p2 = scmp.lt.s32.totalorder %s3803_s30, %s3803_s30 }
  0x63   :  { %p3465_p1 = scmp.ne.s32.totalorder %s3803_s30, %s3464_s21  ;;  %p3470_p3 = scmp.lt.s32.totalorder %s3464_s21, %s3464_s21 }
  0x65   :  { %p3471_p4 = por %p3470_p3, %p3469_p2 }
  0x67   :  { %p3472_p5 = pnand %p3471_p4, %p3465_p1 }
  0x69   :  { %3475 = shalt.err (!%p3472_p5)
}
  0x6a   :  { %36 = dma.hbm_to_vmem [thread:$0]  %s4541_s0, 128, %s3803_s30, [#allocation9], %s3647_s13, %s3647_s13, %s3648_s14  }
  0x6b   :  { %s3658_s23 = smov [#allocation13]   ;;  %s3659_s25 = smov [#allocation16]  }
  0x6c   :  { %s58_s24 = sshll.u32 %s3658_s23, 4  ;;  %s86_s7 = sshll.u32 %s3659_s25, 4  ;;  %s59_s24 = int_to_ptr.vmem [resolvable:$true] %s58_s24  ;;  %s3840_s7 = int_to_ptr.vmem [resolvable:$true] %s86_s7 }
  0x6d   :  { %s3476_s15 = scalar_lea.hbm %s4543_s2, 256 }
  0x6e   :  { %p3477_p6 = scmp.ne.s32.totalorder %s4543_s2, %s3476_s15  ;;  %p3480_p7 = scmp.lt.u32.totalorder %s3476_s15, %s4543_s2 }
  0x70   :  { %p3482_p8 = pnand %p3480_p7, %p3477_p6 }
  0x72   :  { %3485 = shalt.err (!%p3482_p8)
}
  0x73   :  { %s3486_s0 = scalar_lea.vmem %s59_s24, 256  ;;  %p3491_p10 = scmp.lt.s32.totalorder %s59_s24, %s59_s24 }
  0x74   :  { %p3487_p9 = scmp.ne.s32.totalorder %s59_s24, %s3486_s0  ;;  %p3492_p11 = scmp.lt.s32.totalorder %s3486_s0, %s3486_s0 }
  0x76   :  { %p3493_p12 = por %p3492_p11, %p3491_p10 }
  0x78   :  { %p3494_p13 = pnand %p3493_p12, %p3487_p9 }
  0x7a   :  { %3497 = shalt.err (!%p3494_p13)
}
  0x7b   :  { %64 = dma.hbm_to_vmem [thread:$0]  %s4543_s2, 256, %s59_s24, [#allocation12], %s3650_s1, %s3650_s1, %s3651_s22  }
  0x7c   :  { %s3498_s20 = scalar_lea.hbm %s4545_s4, 256 }
  0x7d   :  { %p3499_p0 = scmp.ne.s32.totalorder %s4545_s4, %s3498_s20  ;;  %p3502_p1 = scmp.lt.u32.totalorder %s3498_s20, %s4545_s4 }
  0x7f   :  { %p3504_p2 = pnand %p3502_p1, %p3499_p0 }
  0x81   :  { %3507 = shalt.err (!%p3504_p2)
}
  0x82   :  { %s3508_s25 = scalar_lea.vmem %s3840_s7, 256  ;;  %p3513_p4 = scmp.lt.s32.totalorder %s3840_s7, %s3840_s7 }
  0x83   :  { %p3509_p3 = scmp.ne.s32.totalorder %s3840_s7, %s3508_s25  ;;  %p3514_p5 = scmp.lt.s32.totalorder %s3508_s25, %s3508_s25 }
  0x85   :  { %p3515_p6 = por %p3514_p5, %p3513_p4 }
  0x87   :  { %p3516_p7 = pnand %p3515_p6, %p3509_p3 }
  0x89   :  { %3519 = shalt.err (!%p3516_p7)
}
  0x8a   :  { %92 = dma.hbm_to_vmem [thread:$0]  %s4545_s4, 256, %s3840_s7, [#allocation15], %s3654_s18, %s3654_s18, %s3655_s27  }
  0x8b   :  { %s3660_s24 = smov [#allocation19]   ;;  %s3661_s5 = smov [#allocation22]  }
  0x8c   :  { %s111_s17 = sshll.u32 %s3660_s24, 4  ;;  %s130_s15 = sshll.u32 %s3661_s5, 4  ;;  %s112_s17 = int_to_ptr.vmem [resolvable:$true] %s111_s17  ;;  %s3877_s15 = int_to_ptr.vmem [resolvable:$true] %s130_s15 }
  0x8d   :  { %s3520_s29 = scalar_lea.hbm %s4547_s6, 16 }
  0x8e   :  { %p3521_p8 = scmp.ne.s32.totalorder %s4547_s6, %s3520_s29  ;;  %p3524_p9 = scmp.lt.u32.totalorder %s3520_s29, %s4547_s6 }
  0x90   :  { %p3526_p10 = pnand %p3524_p9, %p3521_p8 }
  0x92   :  { %3529 = shalt.err (!%p3526_p10)
}
  0x93   :  { %s3530_s4 = scalar_lea.vmem %s112_s17, 16  ;;  %s3534_s7 = scalar_lea.vmem %s112_s17, 32 }
  0x94   :  { %p3531_p11 = scmp.ne.s32.totalorder %s112_s17, %s3530_s4  ;;  %p3535_p12 = scmp.lt.s32.totalorder %s112_s17, %s112_s17 }
  0x95   :  { %p3536_p13 = scmp.lt.s32.totalorder %s3534_s7, %s3530_s4 }
  0x97   :  { %p3537_p0 = por %p3536_p13, %p3535_p12 }
  0x99   :  { %p3538_p1 = pnand %p3537_p0, %p3531_p11 }
  0x9b   :  { %3541 = shalt.err (!%p3538_p1)
}
  0x9c   :  { %114 = dma.hbm_to_vmem [thread:$0]  %s4547_s6, 16, %s112_s17, [#allocation18]  }
  0x9d   :  { %s3542_s9 = scalar_lea.hbm %s4549_s8, 256 }
  0x9e   :  { %p3543_p2 = scmp.ne.s32.totalorder %s4549_s8, %s3542_s9  ;;  %p3546_p3 = scmp.lt.u32.totalorder %s3542_s9, %s4549_s8 }
  0xa0   :  { %p3548_p4 = pnand %p3546_p3, %p3543_p2 }
  0xa2   :  { %3551 = shalt.err (!%p3548_p4)
}
  0xa3   :  { %s3552_s22 = scalar_lea.vmem %s3877_s15, 256  ;;  %p3557_p6 = scmp.lt.s32.totalorder %s3877_s15, %s3877_s15 }
  0xa4   :  { %p3553_p5 = scmp.ne.s32.totalorder %s3877_s15, %s3552_s22  ;;  %p3558_p7 = scmp.lt.s32.totalorder %s3552_s22, %s3552_s22 }
  0xa6   :  { %p3559_p8 = por %p3558_p7, %p3557_p6 }
  0xa8   :  { %p3560_p9 = pnand %p3559_p8, %p3553_p5 }
  0xaa   :  { %3563 = shalt.err (!%p3560_p9)
}
  0xab   :  { %136 = dma.hbm_to_vmem [thread:$0]  %s4549_s8, 256, %s3877_s15, [#allocation21], %s3654_s18, %s3654_s18, %s3655_s27  }
  0xac   :  { %s3662_s17 = smov [#allocation25]   ;;  %s3564_s29 = scalar_lea.hbm %s4551_s10, 1024 }
  0xad   :  { %s154_s5 = sshll.u32 %s3662_s17, 4  ;;  %p3565_p10 = scmp.ne.s32.totalorder %s4551_s10, %s3564_s29  ;;  %s155_s5 = int_to_ptr.vmem [resolvable:$true] %s154_s5 }
  0xae   :  { %p3568_p11 = scmp.lt.u32.totalorder %s3564_s29, %s4551_s10 }
  0xb0   :  { %p3570_p12 = pnand %p3568_p11, %p3565_p10 }
  0xb2   :  { %3573 = shalt.err (!%p3570_p12)
}
  0xb3   :  { %s3574_s4 = scalar_lea.vmem %s155_s5, 1024  ;;  %p3579_p0 = scmp.lt.s32.totalorder %s155_s5, %s155_s5 }
  0xb4   :  { %p3575_p13 = scmp.ne.s32.totalorder %s155_s5, %s3574_s4  ;;  %p3580_p1 = scmp.lt.s32.totalorder %s3574_s4, %s3574_s4 }
  0xb6   :  { %p3581_p2 = por %p3580_p1, %p3579_p0 }
  0xb8   :  { %p3582_p3 = pnand %p3581_p2, %p3575_p13 }
  0xba   :  { %3585 = shalt.err (!%p3582_p3)
}
  0xbb   :  { %s3663_s8 = smov 128   ;;  %s3664_s27 = smov 8  }
  0xbc   :  { %160 = dma.hbm_to_vmem [thread:$0]  %s4551_s10, 1024, %s155_s5, [#allocation24], %s3663_s8, %s3663_s8, %s3664_s27  }
  0xbd   :  { %s3665_s30 = smov [#allocation26]   ;;  %s3586_s9 = scalar_lea.hbm %s4552_s11, 16 }
  0xbe   :  { %s167_s19 = sshll.u32 %s3665_s30, 4  ;;  %p3587_p4 = scmp.ne.s32.totalorder %s4552_s11, %s3586_s9  ;;  %s168_s19 = int_to_ptr.vmem [resolvable:$true] %s167_s19 }
  0xbf   :  { %p3590_p5 = scmp.lt.u32.totalorder %s3586_s9, %s4552_s11 }
  0xc1   :  { %p3592_p6 = pnand %p3590_p5, %p3587_p4 }
  0xc3   :  { %3595 = shalt.err (!%p3592_p6)
}
  0xc4   :  { %s3596_s22 = scalar_lea.vmem %s168_s19, 16  ;;  %s3600_s10 = scalar_lea.vmem %s168_s19, 32 }
  0xc5   :  { %p3597_p7 = scmp.ne.s32.totalorder %s168_s19, %s3596_s22  ;;  %p3601_p8 = scmp.lt.s32.totalorder %s168_s19, %s168_s19 }
  0xc6   :  { %p3602_p9 = scmp.lt.s32.totalorder %s3600_s10, %s3596_s22 }
  0xc8   :  { %p3603_p10 = por %p3602_p9, %p3601_p8 }
  0xca   :  { %p3604_p11 = pnand %p3603_p10, %p3597_p7 }
  0xcc   :  { %3607 = shalt.err (!%p3604_p11)
}
  0xcd   :  { %170 = dma.hbm_to_vmem [thread:$0]  %s4552_s11, 16, %s168_s19, [#allocation27]  }
  0xce   :  { %3630 = dma.done.wait [#allocation9], 128  }
  0xcf   :  { %3631 = vsyncadd [#allocation9], 4294967168 }
  0xd0   :  { %3632 = dma.done.wait [#allocation12], 384  }
  0xd1   :  { %3633 = vsyncadd [#allocation12], 4294966912 }
  0xd2   :  { %3634 = dma.done.wait [#allocation15], 512  }
  0xd3   :  { %3635 = vsyncadd [#allocation15], 4294966784 }
  0xd4   :  { %3636 = dma.done.wait [#allocation18], 272  }
  0xd5   :  { %3637 = vsyncadd [#allocation18], 4294967024 }
  0xd6   :  { %3638 = dma.done.wait [#allocation21], 272  }
  0xd7   :  { %3639 = vsyncadd [#allocation21], 4294967024 }
  0xd8   :  { %3640 = dma.done.wait [#allocation24], 1280  }
  0xd9   :  { %3641 = vsyncadd [#allocation24], 4294966016 }
  0xda   :  { %3642 = dma.done.wait [#allocation27], 16  }
  0xdb   :  { %3643 = vsyncadd [#allocation27], 4294967280  ;;  %vm216_vm0 = vcmask 254976   ;;  %v3666_v0 = vmov 0.0   ;;  %vm3667_vm1 = vmmov 0   ;;  %v3949_v1 = vld [vmem:[#allocation16] sm:$0xff]  }
  0xdc   :  { %2799 = vmatprep.subr.bf16.mxu0 %v3666_v0  ;;  %2815 = vmatprep.subr.bf16.mxu1 %v3666_v0  ;;  %217 = vst.msk [vmem:[#allocation2] sm:$0x3] %vm216_vm0, %v3666_v0  ;;  %218 = vst.msk [vmem:[#allocation3] sm:$0x3] %vm216_vm0, %v3666_v0  ;;  %v3951_v2 = vld [vmem:[#allocation17] sm:$0xff]   ;;  %v3954_v3 = vld [vmem:[#allocation16 + $0x8] sm:$0xff]  }
  0xdd   :  { %219 = vst.msk [vmem:[#allocation4] sm:$0x3] %vm216_vm0, %v3666_v0  ;;  %220 = vst.msk [vmem:[#allocation5] sm:$0x3] %vm216_vm0, %v3666_v0  ;;  %2803 = vmatprep.mubr.msk.bf16.mxu0 %vm3667_vm1, %v3666_v0  ;;  %2819 = vmatprep.mubr.msk.bf16.mxu1 %vm3667_vm1, %v3666_v0  ;;  %v3958_v4 = vld [vmem:[#allocation17 + $0x8] sm:$0xff]   ;;  %vm253_vm2 = vcmask 261120  }
  0xde   :  { %2800 = vmatpush3.bf16.msra.mxu0 %v3949_v1  ;;  %2816 = vmatpush3.bf16.msra.mxu1 %v3951_v2  ;;  %v229_v5 = vld [vmem:[#allocation8] sm:$0x1]  ;;  %v400_v6 = vld [vmem:[#allocation11 + $0x7] sm:$0x1]  ;;  %v3962_v7 = vld [vmem:[#allocation22] sm:$0xff]   ;;  %v3668_v16 = vmov 0  }
  0xdf   :  { %2801 = vmatprep.subr.bf16.mxu0 %v3666_v0  ;;  %2817 = vmatprep.subr.bf16.mxu1 %v3666_v0  ;;  %v3965_v8 = vld [vmem:[#allocation23] sm:$0xff]   ;;  %v3972_v9 = vld [vmem:[#allocation22 + $0x8] sm:$0xff]   ;;  %v3975_v11 = vld [vmem:[#allocation23 + $0x8] sm:$0xff]   ;;  %s3671_s11 = smov 96  }
  0xe0   :  { %3196 = vset.pattern.permute.xlu0 %v3668_v16  ;;  %3197 = vset.pattern.permute.xlu1 %v3668_v16  ;;  %v4004_v17 = vld [vmem:[#allocation20] ss:$0 sm:$0xff]  ;;  %v4006_v19 = vld [vmem:[#allocation19] ss:$0 sm:$0xff]  ;;  %v557_v31 = vld [vmem:[#allocation14 + $0xe] sm:$0x3] }
  0xe1   :  { %vm558_vm3 = vcmp.gt.f32.partialorder %v557_v31, 0.0  ;;  %v704_v54 = vld [vmem:[#allocation11 + $0x6] sm:$0x1]  ;;  %v573_v55 = vld [vmem:[#allocation8 + $0x1] sm:$0x1] }
  0xe2   :  { %2802 = vmatpush3.bf16.msra.mxu0 %v3954_v3  ;;  %2818 = vmatpush3.bf16.msra.mxu1 %v3958_v4  ;;  %v559_v33 = vsel %vm558_vm3, 1, %v3668_v16 }
  0xe3   :  { %2807 = vmatprep.subr.bf16.mxu0 %v3666_v0  ;;  %2823 = vmatprep.subr.bf16.mxu1 %v3666_v0  ;;  %v223_v12 = vld [vmem:[#allocation2] sm:$0x3]  ;;  %v224_v32 = vld [vmem:[#allocation3] sm:$0x3] }
  0xe4   :  { %v226_v10 = vld [vmem:[#allocation5] sm:$0x3]  ;;  %v225_v13 = vld [vmem:[#allocation4] sm:$0x3]  ;;  %v297_v14 = vpack.c.bf16 %v223_v12, %v223_v12 }
  0xe5   :  { %2804 = vmatmul.mubr.msk.bf16.vlgmr.msra.gmra.mrb[0].mxu0 %vm253_vm2, %v229_v5  ;;  %2820 = vmatmul.mubr.msk.bf16.vlgmr.msra.gmra.mrb[0].mxu1 %vm253_vm2, %v400_v6  ;;  %v467_v15 = vpack.c.bf16 %v225_v13, %v225_v13 }
  0xe6   :  { %2808 = vmatpush3.bf16.msra.mxu0 %v3962_v7  ;;  %2824 = vmatpush3.bf16.msra.mxu1 %v3965_v8 }
  0xe7   :  { %2809 = vmatprep.subr.bf16.mxu0 %v3666_v0  ;;  %2825 = vmatprep.subr.bf16.mxu1 %v3666_v0 }
  0xe8   :  { %2811 = vmatprep.mubr.msk.bf16.mxu0 %vm3667_vm1, %v3666_v0  ;;  %2827 = vmatprep.mubr.msk.bf16.mxu1 %vm3667_vm1, %v3666_v0 }
  0xe9   :  { %536 = vrot.lane.b32.xlu1 %v226_v10, %s3650_s1 }
  0xea   :  { %2810 = vmatpush3.bf16.msra.mxu0 %v3972_v9  ;;  %2826 = vmatpush3.bf16.msra.mxu1 %v3975_v11 }
  0xeb   :  { %2831 = vmatprep.subr.bf16.mxu0 %v3666_v0  ;;  %2847 = vmatprep.subr.bf16.mxu1 %v3666_v0 }
  0xf1   :  { %2812 = vmatmul.mubr.msk.bf16.vlgmr.msra.gmra.mrb[0].mxu0 %vm253_vm2, %v297_v14  ;;  %2828 = vmatmul.mubr.msk.bf16.vlgmr.msra.gmra.mrb[0].mxu1 %vm253_vm2, %v467_v15 }
  0xf2   :  { %2832 = vmatpush3.bf16.msra.mxu0 %v3949_v1  ;;  %2848 = vmatpush3.bf16.msra.mxu1 %v3951_v2 }
  0xf3   :  { %2833 = vmatprep.subr.bf16.mxu0 %v3666_v0  ;;  %2849 = vmatprep.subr.bf16.mxu1 %v3666_v0 }
  0xf4   :  { %2851 = vmatprep.mubr.msk.bf16.mxu1 %vm3667_vm1, %v3666_v0  ;;  %2835 = vmatprep.mubr.msk.bf16.mxu0 %vm3667_vm1, %v3666_v0 }
  0xf6   :  { %2834 = vmatpush3.bf16.msra.mxu0 %v3954_v3  ;;  %2850 = vmatpush3.bf16.msra.mxu1 %v3958_v4 }
  0xf7   :  { %2839 = vmatprep.subr.bf16.mxu0 %v3666_v0  ;;  %2855 = vmatprep.subr.bf16.mxu1 %v3666_v0 }
  0xf9   :  { %2852 = vmatmul.mubr.msk.bf16.vlgmr.msra.gmra.mrb[4].mxu1 %vm253_vm2, %v704_v54  ;;  %2836 = vmatmul.mubr.msk.bf16.vlgmr.msra.gmra.mrb[4].mxu0 %vm253_vm2, %v573_v55 }
  0xfa   :  { %2856 = vmatpush3.bf16.msra.mxu1 %v3965_v8  ;;  %2840 = vmatpush3.bf16.msra.mxu0 %v3962_v7 }
  0xfb   :  { %2857 = vmatprep.subr.bf16.mxu1 %v3666_v0  ;;  %2841 = vmatprep.subr.bf16.mxu0 %v3666_v0 }
  0xfc   :  { %2859 = vmatprep.mubr.msk.bf16.mxu1 %vm3667_vm1, %v3666_v0  ;;  %2843 = vmatprep.mubr.msk.bf16.mxu0 %vm3667_vm1, %v3666_v0 }
  0xfe   :  { %2858 = vmatpush3.bf16.msra.mxu1 %v3975_v11  ;;  %2842 = vmatpush3.bf16.msra.mxu0 %v3972_v9 }
  0xff   :  { %2879 = vmatprep.subr.bf16.mxu1 %v3666_v0  ;;  %2863 = vmatprep.subr.bf16.mxu0 %v3666_v0 }
 0x15b   :  { %v537_v46 = vpop.permute.xlu1 %536 }
 0x1c4   :  { %v351_v18 = vpop.f32.mrb[0].mxu0  ;;  %v521_v20 = vpop.f32.mrb[0].mxu1 }
 0x1c5   :  { %v2813_v21 = vpop.f32.mrb[1].mxu0  ;;  %v3090_v22 = vadd.f32 %v4004_v17, %v521_v20  ;;  %v2829_v23 = vpop.f32.mrb[1].mxu1  ;;  %v3089_v27 = vadd.f32 %v4006_v19, %v351_v18 }
 0x1c6   :  { %v354_v24 = vpop.f32.mrb[2].mxu0  ;;  %v524_v25 = vpop.f32.mrb[2].mxu1 }
 0x1c7   :  { %v2814_v26 = vpop.f32.mrb[3].mxu0  ;;  %v2830_v28 = vpop.f32.mrb[3].mxu1  ;;  %3206 = vtanh.f32 %v3090_v22  ;;  %v2647_v34 = vmul.f32 -1.442695, %v3090_v22  ;;  %v2639_v35 = vmul.f32 -1.442695, %v3089_v27 }
 0x1c8   :  { %3208 = vtanh.f32 %v3089_v27 }
 0x1c9   :  { %3210 = vpow2.f32 %v2647_v34  ;;  %v821_v34 = vld [vmem:[#allocation14 + $0xc] sm:$0x3] }
 0x1ca   :  { %3212 = vpow2.f32 %v2639_v35  ;;  %vm822_vm5 = vcmp.gt.f32.partialorder %v821_v34, 0.0 }
 0x1d1   :  { %v3207_v29 = vpop.eup %3206 }
 0x1d2   :  { %541 = vrot.lane.b32.xlu0 %v3207_v29, %s3654_s18  ;;  %v3209_v30 = vpop.eup %3208 }
 0x1d3   :  { %v3211_v36 = vpop.eup %3210 }
 0x1d4   :  { %v531_v37 = vadd.f32 1.0, %v3211_v36  ;;  %v3213_v38 = vpop.eup %3212 }
 0x1d5   :  { %v361_v39 = vadd.f32 1.0, %v3213_v38 }
 0x1d6   :  { %371 = vrot.lane.b32.xlu0 %v3209_v30, %s3654_s18  ;;  %3214 = vrcp.f32 %v531_v37 }
 0x1d7   :  { %3216 = vrcp.f32 %v361_v39 }
 0x1da   :  { %366 = vrot.lane.b32.xlu0 %v224_v32, %s3650_s1 }
 0x1de   :  { %561 = vperm.xlu0 %3196, %v559_v33  }
 0x1e0   :  { %v3215_v40 = vpop.eup %3214 }
 0x1e1   :  { %v3217_v43 = vpop.eup %3216  ;;  %v539_v47 = vmul.f32 %v3215_v40, %v537_v46 }
 0x244   :  { %v542_v41 = vpop.permute.xlu0 %541 }
 0x245   :  { %v544_v42 = vmul.f32 %v3215_v40, %v542_v41  ;;  %v823_v41 = vsel %vm822_vm5, 1, %v3668_v16 }
 0x247   :  { %546 = vrot.lane.b32.xlu1 %v544_v42, %s3650_s1 }
 0x248   :  { %v372_v44 = vpop.permute.xlu0 %371 }
 0x249   :  { %v374_v45 = vmul.f32 %v3217_v43, %v372_v44 }
 0x24b   :  { %376 = vrot.lane.b32.xlu1 %v374_v45, %s3650_s1 }
 0x24c   :  { %v367_v48 = vpop.permute.xlu0 %366 }
 0x24d   :  { %v369_v51 = vmul.f32 %v3217_v43, %v367_v48 }
 0x25d   :  { %v4038_v58 = vpop.permute.xlu0 %561 }
 0x25e   :  { %vm563_vm4 = vcmp.eq.s32.totalorder %v4038_v58, 1 }
 0x2b9   :  { %v547_v49 = vpop.permute.xlu1 %546 }
 0x2ba   :  { %v4016_v50 = vadd.f32 %v547_v49, %v539_v47  ;;  %v968_v49 = vld [vmem:[#allocation11 + $0x5] sm:$0x1] }
 0x2bc   :  { %3218 = vtanh.f32 %v4016_v50  ;;  %v571_v42 = vsel %vm563_vm4, %v4016_v50, 0.0 }
 0x2bd   :  { %v377_v52 = vpop.permute.xlu1 %376 }
 0x2be   :  { %v4019_v53 = vadd.f32 %v377_v52, %v369_v51  ;;  %v837_v51 = vld [vmem:[#allocation8 + $0x2] sm:$0x1] }
 0x2c0   :  { %3220 = vtanh.f32 %v4019_v53 }
 0x2c6   :  { %v3219_v56 = vpop.eup %3218 }
 0x2c7   :  { %552 = vrot.lane.b32.xlu1 %v3219_v56, %s3654_s18 }
 0x2ca   :  { %v3221_v57 = vpop.eup %3220 }
 0x2cb   :  { %382 = vrot.lane.b32.xlu1 %v3221_v57, %s3654_s18 }
 0x339   :  { %v553_v59 = vpop.permute.xlu1 %552 }
 0x33a   :  { %v4040_v60 = vmul.f32 %v3215_v40, %v553_v59 }
 0x33c   :  { %v570_v61 = vsel %vm563_vm4, %v4040_v60, 0.0 }
 0x33d   :  { %v383_v62 = vpop.permute.xlu1 %382  ;;  %v748_v63 = vpack.c.bf16 %v570_v61, %v570_v61 }
 0x33e   :  { %v4046_v5 = vmul.f32 %v3217_v43, %v383_v62 }
 0x33f   :  { %750 = vrot.lane.b32.xlu0 %v748_v63, %s3650_s1 }
 0x340   :  { %v617_v6 = vpack.c.bf16 %v4046_v5, %v4046_v5 }
 0x342   :  { %619 = vrot.lane.b32.xlu1 %v617_v6, %s3650_s1 }
 0x3b1   :  { %v751_v10 = vpop.permute.xlu0 %750 }
 0x3b2   :  { %2860 = vmatmul.mubr.msk.bf16.vlgmr.msra.gmra.mrb[4].mxu1 %vm253_vm2, %v751_v10 }
 0x3b3   :  { %2880 = vmatpush3.bf16.msra.mxu1 %v3951_v2  ;;  %2883 = vmatprep.mubr.msk.bf16.mxu1 %vm3667_vm1, %v3666_v0 }
 0x3b4   :  { %v620_v12 = vpop.permute.xlu1 %619  ;;  %2881 = vmatprep.subr.bf16.mxu1 %v3666_v0 }
 0x3b5   :  { %2844 = vmatmul.mubr.msk.bf16.vlgmr.msra.gmra.mrb[4].mxu0 %vm253_vm2, %v620_v12 }
 0x3b6   :  { %2864 = vmatpush3.bf16.msra.mxu0 %v3949_v1  ;;  %2867 = vmatprep.mubr.msk.bf16.mxu0 %vm3667_vm1, %v3666_v0 }
 0x3b7   :  { %2882 = vmatpush3.bf16.msra.mxu1 %v3958_v4  ;;  %2865 = vmatprep.subr.bf16.mxu0 %v3666_v0 }
 0x3b8   :  { %2887 = vmatprep.subr.bf16.mxu1 %v3666_v0 }
 0x3ba   :  { %2866 = vmatpush3.bf16.msra.mxu0 %v3954_v3  ;;  %2884 = vmatmul.mubr.msk.bf16.vlgmr.msra.gmra.mrb[8].mxu1 %vm253_vm2, %v968_v49  ;;  %v1232_v49 = vld [vmem:[#allocation11 + $0x4] sm:$0x1] }
 0x3bb   :  { %2871 = vmatprep.subr.bf16.mxu0 %v3666_v0  ;;  %2888 = vmatpush3.bf16.msra.mxu1 %v3965_v8 }
 0x3bc   :  { %2889 = vmatprep.subr.bf16.mxu1 %v3666_v0  ;;  %2891 = vmatprep.mubr.msk.bf16.mxu1 %vm3667_vm1, %v3666_v0 }
 0x3bd   :  { %2868 = vmatmul.mubr.msk.bf16.vlgmr.msra.gmra.mrb[8].mxu0 %vm253_vm2, %v837_v51  ;;  %v1101_v51 = vld [vmem:[#allocation8 + $0x3] sm:$0x1] }
 0x3be   :  { %2872 = vmatpush3.bf16.msra.mxu0 %v3962_v7  ;;  %2875 = vmatprep.mubr.msk.bf16.mxu0 %vm3667_vm1, %v3666_v0 }
 0x3bf   :  { %2873 = vmatprep.subr.bf16.mxu0 %v3666_v0  ;;  %2890 = vmatpush3.bf16.msra.mxu1 %v3975_v11 }
 0x3c0   :  { %2911 = vmatprep.subr.bf16.mxu1 %v3666_v0 }
 0x3c2   :  { %2874 = vmatpush3.bf16.msra.mxu0 %v3972_v9 }
 0x3c3   :  { %2895 = vmatprep.subr.bf16.mxu0 %v3666_v0 }
 0x485   :  { %v789_v13 = vpop.f32.mrb[4].mxu1 }
 0x486   :  { %v3092_v14 = vadd.f32 %v4004_v17, %v789_v13  ;;  %v2861_v15 = vpop.f32.mrb[5].mxu1 }
 0x487   :  { %v792_v18 = vpop.f32.mrb[6].mxu1 }
 0x488   :  { %3222 = vtanh.f32 %v3092_v14  ;;  %v658_v20 = vpop.f32.mrb[4].mxu0  ;;  %v2862_v21 = vpop.f32.mrb[7].mxu1  ;;  %v2653_v28 = vmul.f32 -1.442695, %v3092_v14 }
 0x489   :  { %v3091_v22 = vadd.f32 %v4006_v19, %v658_v20  ;;  %v2845_v23 = vpop.f32.mrb[5].mxu0 }
 0x48a   :  { %v661_v24 = vpop.f32.mrb[6].mxu0 }
 0x48b   :  { %3224 = vtanh.f32 %v3091_v22  ;;  %v2846_v25 = vpop.f32.mrb[7].mxu0  ;;  %v2650_v29 = vmul.f32 -1.442695, %v3091_v22 }
 0x48c   :  { %3226 = vpow2.f32 %v2653_v28 }
 0x48d   :  { %3228 = vpow2.f32 %v2650_v29 }
 0x492   :  { %v3223_v26 = vpop.eup %3222 }
 0x493   :  { %805 = vrot.lane.b32.xlu0 %v3223_v26, %s3654_s18 }
 0x495   :  { %v3225_v27 = vpop.eup %3224 }
 0x496   :  { %674 = vrot.lane.b32.xlu1 %v3225_v27, %s3654_s18  ;;  %v3227_v30 = vpop.eup %3226 }
 0x497   :  { %v3229_v31 = vpop.eup %3228  ;;  %v799_v32 = vadd.f32 1.0, %v3227_v30 }
 0x498   :  { %v668_v33 = vadd.f32 1.0, %v3229_v31 }
 0x499   :  { %3230 = vrcp.f32 %v799_v32  ;;  %v1085_v32 = vld [vmem:[#allocation14 + $0xa] sm:$0x3] }
 0x49a   :  { %3232 = vrcp.f32 %v668_v33  ;;  %vm1086_vm7 = vcmp.gt.f32.partialorder %v1085_v32, 0.0 }
 0x4a3   :  { %v3231_v35 = vpop.eup %3230 }
 0x4a4   :  { %v3233_v38 = vpop.eup %3232  ;;  %v803_v43 = vmul.f32 %v3231_v35, %v571_v42 }
 0x4a5   :  { %v672_v46 = vmul.f32 %v3233_v38, %v4019_v53 }
 0x505   :  { %v806_v36 = vpop.permute.xlu0 %805 }
 0x506   :  { %v808_v37 = vmul.f32 %v3231_v35, %v806_v36 }
 0x508   :  { %810 = vrot.lane.b32.xlu0 %v808_v37, %s3650_s1  ;;  %v675_v39 = vpop.permute.xlu1 %674 }
 0x509   :  { %v677_v40 = vmul.f32 %v3233_v38, %v675_v39  ;;  %v1087_v39 = vsel %vm1086_vm7, 1, %v3668_v16 }
 0x50b   :  { %679 = vrot.lane.b32.xlu1 %v677_v40, %s3650_s1 }
 0x50c   :  { %825 = vperm.xlu0 %3196, %v823_v41  }
 0x57a   :  { %v811_v44 = vpop.permute.xlu0 %810 }
 0x57b   :  { %v4076_v45 = vadd.f32 %v811_v44, %v803_v43 }
 0x57d   :  { %3234 = vtanh.f32 %v4076_v45  ;;  %v680_v47 = vpop.permute.xlu1 %679 }
 0x57e   :  { %v4080_v48 = vadd.f32 %v680_v47, %v672_v46 }
 0x580   :  { %3236 = vtanh.f32 %v4080_v48 }
 0x587   :  { %v3235_v50 = vpop.eup %3234 }
 0x588   :  { %816 = vrot.lane.b32.xlu1 %v3235_v50, %s3654_s18 }
 0x58a   :  { %v3237_v52 = vpop.eup %3236 }
 0x58b   :  { %685 = vrot.lane.b32.xlu0 %v3237_v52, %s3654_s18  ;;  %v4099_v53 = vpop.permute.xlu0 %825 }
 0x58c   :  { %vm827_vm6 = vcmp.eq.s32.totalorder %v4099_v53, 1 }
 0x58d   :  { %v835_v40 = vsel %vm827_vm6, %v4076_v45, 0.0 }
 0x5fa   :  { %v817_v54 = vpop.permute.xlu1 %816 }
 0x5fb   :  { %v4101_v55 = vmul.f32 %v3231_v35, %v817_v54 }
 0x5fd   :  { %v686_v56 = vpop.permute.xlu0 %685  ;;  %v834_v57 = vsel %vm827_vm6, %v4101_v55, 0.0 }
 0x5fe   :  { %v4107_v59 = vmul.f32 %v3233_v38, %v686_v56  ;;  %v1012_v61 = vpack.c.bf16 %v834_v57, %v834_v57 }
 0x600   :  { %1014 = vrot.lane.b32.xlu1 %v1012_v61, %s3650_s1  ;;  %v881_v62 = vpack.c.bf16 %v4107_v59, %v4107_v59 }
 0x602   :  { %883 = vrot.lane.b32.xlu0 %v881_v62, %s3650_s1 }
 0x672   :  { %v1015_v63 = vpop.permute.xlu1 %1014 }
 0x673   :  { %2892 = vmatmul.mubr.msk.bf16.vlgmr.msra.gmra.mrb[8].mxu1 %vm253_vm2, %v1015_v63 }
 0x674   :  { %v884_v6 = vpop.permute.xlu0 %883  ;;  %2912 = vmatpush3.bf16.msra.mxu1 %v3951_v2  ;;  %2915 = vmatprep.mubr.msk.bf16.mxu1 %vm3667_vm1, %v3666_v0 }
 0x675   :  { %2876 = vmatmul.mubr.msk.bf16.vlgmr.msra.gmra.mrb[8].mxu0 %vm253_vm2, %v884_v6  ;;  %2913 = vmatprep.subr.bf16.mxu1 %v3666_v0 }
 0x676   :  { %2896 = vmatpush3.bf16.msra.mxu0 %v3949_v1  ;;  %2899 = vmatprep.mubr.msk.bf16.mxu0 %vm3667_vm1, %v3666_v0 }
 0x677   :  { %2897 = vmatprep.subr.bf16.mxu0 %v3666_v0 }
 0x678   :  { %2914 = vmatpush3.bf16.msra.mxu1 %v3958_v4 }
 0x679   :  { %2919 = vmatprep.subr.bf16.mxu1 %v3666_v0 }
 0x67a   :  { %2898 = vmatpush3.bf16.msra.mxu0 %v3954_v3 }
 0x67b   :  { %2903 = vmatprep.subr.bf16.mxu0 %v3666_v0  ;;  %2916 = vmatmul.mubr.msk.bf16.vlgmr.msra.gmra.mrb[12].mxu1 %vm253_vm2, %v1232_v49 }
 0x67c   :  { %2920 = vmatpush3.bf16.msra.mxu1 %v3965_v8  ;;  %2923 = vmatprep.mubr.msk.bf16.mxu1 %vm3667_vm1, %v3666_v0 }
 0x67d   :  { %2900 = vmatmul.mubr.msk.bf16.vlgmr.msra.gmra.mrb[12].mxu0 %vm253_vm2, %v1101_v51  ;;  %2921 = vmatprep.subr.bf16.mxu1 %v3666_v0 }
 0x67e   :  { %2904 = vmatpush3.bf16.msra.mxu0 %v3962_v7  ;;  %2907 = vmatprep.mubr.msk.bf16.mxu0 %vm3667_vm1, %v3666_v0 }
 0x67f   :  { %2905 = vmatprep.subr.bf16.mxu0 %v3666_v0 }
 0x680   :  { %2922 = vmatpush3.bf16.msra.mxu1 %v3975_v11 }
 0x681   :  { %2943 = vmatprep.subr.bf16.mxu1 %v3666_v0 }
 0x682   :  { %2906 = vmatpush3.bf16.msra.mxu0 %v3972_v9 }
 0x683   :  { %2927 = vmatprep.subr.bf16.mxu0 %v3666_v0 }
 0x746   :  { %v1053_v10 = vpop.f32.mrb[8].mxu1 }
 0x747   :  { %v3094_v12 = vadd.f32 %v4004_v17, %v1053_v10  ;;  %v2893_v13 = vpop.f32.mrb[9].mxu1 }
 0x748   :  { %v922_v14 = vpop.f32.mrb[8].mxu0  ;;  %v1056_v15 = vpop.f32.mrb[10].mxu1 }
 0x749   :  { %3238 = vtanh.f32 %v3094_v12  ;;  %v3093_v18 = vadd.f32 %v4006_v19, %v922_v14  ;;  %v2877_v20 = vpop.f32.mrb[9].mxu0  ;;  %v2894_v21 = vpop.f32.mrb[11].mxu1  ;;  %v2659_v26 = vmul.f32 -1.442695, %v3094_v12 }
 0x74a   :  { %v925_v22 = vpop.f32.mrb[10].mxu0 }
 0x74b   :  { %v2878_v23 = vpop.f32.mrb[11].mxu0  ;;  %3240 = vtanh.f32 %v3093_v18  ;;  %v2656_v27 = vmul.f32 -1.442695, %v3093_v18 }
 0x74c   :  { %3242 = vpow2.f32 %v2659_v26 }
 0x74d   :  { %3244 = vpow2.f32 %v2656_v27 }
 0x753   :  { %v3239_v24 = vpop.eup %3238 }
 0x754   :  { %1069 = vrot.lane.b32.xlu1 %v3239_v24, %s3654_s18 }
 0x755   :  { %v3241_v25 = vpop.eup %3240 }
 0x756   :  { %938 = vrot.lane.b32.xlu0 %v3241_v25, %s3654_s18  ;;  %v3243_v28 = vpop.eup %3242 }
 0x757   :  { %v3245_v29 = vpop.eup %3244  ;;  %v1063_v30 = vadd.f32 1.0, %v3243_v28 }
 0x758   :  { %v932_v31 = vadd.f32 1.0, %v3245_v29 }
 0x759   :  { %3246 = vrcp.f32 %v1063_v30 }
 0x75a   :  { %3248 = vrcp.f32 %v932_v31 }
 0x763   :  { %v3247_v33 = vpop.eup %3246 }
 0x764   :  { %v3249_v36 = vpop.eup %3248  ;;  %v1067_v41 = vmul.f32 %v3247_v33, %v835_v40 }
 0x765   :  { %v936_v44 = vmul.f32 %v3249_v36, %v4080_v48 }
 0x7c6   :  { %v1070_v34 = vpop.permute.xlu1 %1069 }
 0x7c7   :  { %v1072_v35 = vmul.f32 %v3247_v33, %v1070_v34 }
 0x7c8   :  { %v939_v37 = vpop.permute.xlu0 %938 }
 0x7c9   :  { %1074 = vrot.lane.b32.xlu1 %v1072_v35, %s3650_s1  ;;  %v941_v38 = vmul.f32 %v3249_v36, %v939_v37 }
 0x7cb   :  { %943 = vrot.lane.b32.xlu0 %v941_v38, %s3650_s1 }
 0x7cd   :  { %1089 = vperm.xlu1 %3197, %v1087_v39  }
 0x83b   :  { %v1075_v42 = vpop.permute.xlu1 %1074 }
 0x83c   :  { %v4137_v43 = vadd.f32 %v1075_v42, %v1067_v41 }
 0x83d   :  { %v944_v46 = vpop.permute.xlu0 %943 }
 0x83e   :  { %3250 = vtanh.f32 %v4137_v43  ;;  %v4141_v47 = vadd.f32 %v944_v46, %v936_v44 }
 0x840   :  { %3252 = vtanh.f32 %v4141_v47 }
 0x848   :  { %v3251_v45 = vpop.eup %3250 }
 0x849   :  { %1080 = vrot.lane.b32.xlu0 %v3251_v45, %s3654_s18 }
 0x84a   :  { %v3253_v48 = vpop.eup %3252 }
 0x84b   :  { %949 = vrot.lane.b32.xlu1 %v3253_v48, %s3654_s18  ;;  %v1365_v48 = vld [vmem:[#allocation8 + $0x4] sm:$0x1] }
 0x84c   :  { %v4160_v50 = vpop.permute.xlu1 %1089 }
 0x84d   :  { %vm1091_vm8 = vcmp.eq.s32.totalorder %v4160_v50, 1  ;;  %v3670_v50 = vmov 0.0|0.0  }
 0x84e   :  { %v1099_v41 = vsel %vm1091_vm8, %v4137_v43, 0.0 }
 0x8bb   :  { %v1081_v52 = vpop.permute.xlu0 %1080 }
 0x8bc   :  { %v4162_v54 = vmul.f32 %v3247_v33, %v1081_v52  ;;  %v1349_v33 = vld [vmem:[#allocation14 + $0x8] sm:$0x3]  ;;  %v1496_v52 = vld [vmem:[#allocation11 + $0x3] sm:$0x1] }
 0x8bd   :  { %v950_v56 = vpop.permute.xlu1 %949  ;;  %vm1350_vm9 = vcmp.gt.f32.partialorder %v1349_v33, 0.0 }
 0x8be   :  { %v1098_v57 = vsel %vm1091_vm8, %v4162_v54, 0.0  ;;  %v4168_v61 = vmul.f32 %v3249_v36, %v950_v56  ;;  %v1351_v40 = vsel %vm1350_vm9, 1, %v3668_v16  ;;  %v1092_v58 = vsel %vm1091_vm8, %v4162_v54, -1e+30 }
 0x8bf   :  { %v1276_v62 = vpack.c.bf16 %v1098_v57, %v1098_v57 }
 0x8c0   :  { %v1145_v63 = vpack.c.bf16 %v4168_v61, %v4168_v61 }
 0x8c1   :  { %1278 = vrot.lane.b32.xlu0 %v1276_v62, %s3650_s1 }
 0x8c2   :  { %1147 = vrot.lane.b32.xlu1 %v1145_v63, %s3650_s1 }
 0x933   :  { %v1279_v6 = vpop.permute.xlu0 %1278 }
 0x934   :  { %2924 = vmatmul.mubr.msk.bf16.vlgmr.msra.gmra.mrb[12].mxu1 %vm253_vm2, %v1279_v6  ;;  %v1148_v10 = vpop.permute.xlu1 %1147 }
 0x935   :  { %2944 = vmatpush3.bf16.msra.mxu1 %v3951_v2  ;;  %2947 = vmatprep.mubr.msk.bf16.mxu1 %vm3667_vm1, %v3666_v0 }
 0x936   :  { %2908 = vmatmul.mubr.msk.bf16.vlgmr.msra.gmra.mrb[12].mxu0 %vm253_vm2, %v1148_v10  ;;  %2945 = vmatprep.subr.bf16.mxu1 %v3666_v0 }
 0x937   :  { %2928 = vmatpush3.bf16.msra.mxu0 %v3949_v1  ;;  %2931 = vmatprep.mubr.msk.bf16.mxu0 %vm3667_vm1, %v3666_v0 }
 0x938   :  { %2929 = vmatprep.subr.bf16.mxu0 %v3666_v0 }
 0x939   :  { %2946 = vmatpush3.bf16.msra.mxu1 %v3958_v4 }
 0x93a   :  { %2951 = vmatprep.subr.bf16.mxu1 %v3666_v0 }
 0x93b   :  { %2930 = vmatpush3.bf16.msra.mxu0 %v3954_v3 }
 0x93c   :  { %2935 = vmatprep.subr.bf16.mxu0 %v3666_v0  ;;  %2948 = vmatmul.mubr.msk.bf16.vlgmr.msra.gmra.mrb[16].mxu1 %vm253_vm2, %v1496_v52 }
 0x93d   :  { %2952 = vmatpush3.bf16.msra.mxu1 %v3965_v8  ;;  %2955 = vmatprep.mubr.msk.bf16.mxu1 %vm3667_vm1, %v3666_v0 }
 0x93e   :  { %2932 = vmatmul.mubr.msk.bf16.vlgmr.msra.gmra.mrb[16].mxu0 %vm253_vm2, %v1365_v48  ;;  %2953 = vmatprep.subr.bf16.mxu1 %v3666_v0 }
 0x93f   :  { %2936 = vmatpush3.bf16.msra.mxu0 %v3962_v7  ;;  %2939 = vmatprep.mubr.msk.bf16.mxu0 %vm3667_vm1, %v3666_v0 }
 0x940   :  { %2937 = vmatprep.subr.bf16.mxu0 %v3666_v0 }
 0x941   :  { %2954 = vmatpush3.bf16.msra.mxu1 %v3975_v11 }
 0x942   :  { %2975 = vmatprep.subr.bf16.mxu1 %v3666_v0 }
 0x943   :  { %2938 = vmatpush3.bf16.msra.mxu0 %v3972_v9 }
 0x944   :  { %2959 = vmatprep.subr.bf16.mxu0 %v3666_v0 }
 0xa07   :  { %v1317_v12 = vpop.f32.mrb[12].mxu1 }
 0xa08   :  { %v3096_v13 = vadd.f32 %v4004_v17, %v1317_v12  ;;  %v2925_v14 = vpop.f32.mrb[13].mxu1 }
 0xa09   :  { %v1186_v15 = vpop.f32.mrb[12].mxu0  ;;  %v1320_v18 = vpop.f32.mrb[14].mxu1 }
 0xa0a   :  { %3254 = vtanh.f32 %v3096_v13  ;;  %v3095_v20 = vadd.f32 %v4006_v19, %v1186_v15  ;;  %v2909_v21 = vpop.f32.mrb[13].mxu0  ;;  %v2926_v22 = vpop.f32.mrb[15].mxu1  ;;  %v2665_v27 = vmul.f32 -1.442695, %v3096_v13 }
 0xa0b   :  { %v1189_v23 = vpop.f32.mrb[14].mxu0 }
 0xa0c   :  { %v2910_v24 = vpop.f32.mrb[15].mxu0  ;;  %3256 = vtanh.f32 %v3095_v20  ;;  %v2662_v28 = vmul.f32 -1.442695, %v3095_v20 }
 0xa0d   :  { %3258 = vpow2.f32 %v2665_v27 }
 0xa0e   :  { %3260 = vpow2.f32 %v2662_v28 }
 0xa14   :  { %v3255_v25 = vpop.eup %3254 }
 0xa15   :  { %1333 = vrot.lane.b32.xlu0 %v3255_v25, %s3654_s18 }
 0xa16   :  { %v3257_v26 = vpop.eup %3256 }
 0xa17   :  { %1202 = vrot.lane.b32.xlu1 %v3257_v26, %s3654_s18  ;;  %v3259_v29 = vpop.eup %3258 }
 0xa18   :  { %v3261_v30 = vpop.eup %3260  ;;  %v1327_v31 = vadd.f32 1.0, %v3259_v29 }
 0xa19   :  { %v1196_v32 = vadd.f32 1.0, %v3261_v30 }
 0xa1a   :  { %3262 = vrcp.f32 %v1327_v31 }
 0xa1b   :  { %3264 = vrcp.f32 %v1196_v32 }
 0xa24   :  { %v3263_v34 = vpop.eup %3262 }
 0xa25   :  { %v3265_v37 = vpop.eup %3264  ;;  %v1331_v42 = vmul.f32 %v3263_v34, %v1099_v41 }
 0xa26   :  { %v1200_v49 = vmul.f32 %v3265_v37, %v4141_v47 }
 0xa87   :  { %v1334_v35 = vpop.permute.xlu0 %1333 }
 0xa88   :  { %v1336_v36 = vmul.f32 %v3263_v34, %v1334_v35 }
 0xa89   :  { %v1203_v38 = vpop.permute.xlu1 %1202 }
 0xa8a   :  { %1338 = vrot.lane.b32.xlu0 %v1336_v36, %s3650_s1  ;;  %v1205_v39 = vmul.f32 %v3265_v37, %v1203_v38  ;;  %v1613_v36 = vld [vmem:[#allocation14 + $0x6] sm:$0x3] }
 0xa8b   :  { %vm1614_vm11 = vcmp.gt.f32.partialorder %v1613_v36, 0.0 }
 0xa8c   :  { %1207 = vrot.lane.b32.xlu1 %v1205_v39, %s3650_s1 }
 0xa8e   :  { %1353 = vperm.xlu0 %3196, %v1351_v40  }
 0xafc   :  { %v1339_v44 = vpop.permute.xlu0 %1338 }
 0xafd   :  { %v4198_v46 = vadd.f32 %v1339_v44, %v1331_v42  ;;  %v1615_v44 = vsel %vm1614_vm11, 1, %v3668_v16 }
 0xafe   :  { %v1208_v51 = vpop.permute.xlu1 %1207 }
 0xaff   :  { %3266 = vtanh.f32 %v4198_v46  ;;  %v4202_v45 = vadd.f32 %v1208_v51, %v1200_v49 }
 0xb01   :  { %3268 = vtanh.f32 %v4202_v45 }
 0xb09   :  { %v3267_v43 = vpop.eup %3266 }
 0xb0a   :  { %1344 = vrot.lane.b32.xlu1 %v3267_v43, %s3654_s18 }
 0xb0b   :  { %v3269_v47 = vpop.eup %3268 }
 0xb0c   :  { %1213 = vrot.lane.b32.xlu0 %v3269_v47, %s3654_s18 }
 0xb0d   :  { %v4221_v56 = vpop.permute.xlu0 %1353 }
 0xb0e   :  { %vm1355_vm10 = vcmp.eq.s32.totalorder %v4221_v56, 1 }
 0xb0f   :  { %v1363_v49 = vsel %vm1355_vm10, %v4198_v46, 0.0 }
 0xb7c   :  { %v1345_v57 = vpop.permute.xlu1 %1344 }
 0xb7d   :  { %v4223_v62 = vmul.f32 %v3263_v34, %v1345_v57 }
 0xb7e   :  { %v1214_v63 = vpop.permute.xlu0 %1213 }
 0xb7f   :  { %v1362_v6 = vsel %vm1355_vm10, %v4223_v62, 0.0  ;;  %v4229_v10 = vmul.f32 %v3265_v37, %v1214_v63  ;;  %v1629_v63 = vld [vmem:[#allocation8 + $0x5] sm:$0x1]  ;;  %v1356_v53 = vsel %vm1355_vm10, %v4223_v62, -1e+30 }
 0xb80   :  { %v1540_v12 = vpack.c.bf16 %v1362_v6, %v1362_v6  ;;  %v1760_v6 = vld [vmem:[#allocation11 + $0x2] sm:$0x1] }
 0xb81   :  { %v1409_v13 = vpack.c.bf16 %v4229_v10, %v4229_v10 }
 0xb82   :  { %1542 = vrot.lane.b32.xlu1 %v1540_v12, %s3650_s1 }
 0xb83   :  { %1411 = vrot.lane.b32.xlu0 %v1409_v13, %s3650_s1 }
 0xbf4   :  { %v1543_v14 = vpop.permute.xlu1 %1542 }
 0xbf5   :  { %2956 = vmatmul.mubr.msk.bf16.vlgmr.msra.gmra.mrb[16].mxu1 %vm253_vm2, %v1543_v14  ;;  %v1412_v15 = vpop.permute.xlu0 %1411 }
 0xbf6   :  { %2976 = vmatpush3.bf16.msra.mxu1 %v3951_v2  ;;  %2979 = vmatprep.mubr.msk.bf16.mxu1 %vm3667_vm1, %v3666_v0 }
 0xbf7   :  { %2940 = vmatmul.mubr.msk.bf16.vlgmr.msra.gmra.mrb[16].mxu0 %vm253_vm2, %v1412_v15  ;;  %2977 = vmatprep.subr.bf16.mxu1 %v3666_v0 }
 0xbf8   :  { %2960 = vmatpush3.bf16.msra.mxu0 %v3949_v1  ;;  %2963 = vmatprep.mubr.msk.bf16.mxu0 %vm3667_vm1, %v3666_v0 }
 0xbf9   :  { %2961 = vmatprep.subr.bf16.mxu0 %v3666_v0 }
 0xbfa   :  { %2978 = vmatpush3.bf16.msra.mxu1 %v3958_v4 }
 0xbfb   :  { %2983 = vmatprep.subr.bf16.mxu1 %v3666_v0 }
 0xbfc   :  { %2962 = vmatpush3.bf16.msra.mxu0 %v3954_v3 }
 0xbfd   :  { %2967 = vmatprep.subr.bf16.mxu0 %v3666_v0  ;;  %2980 = vmatmul.mubr.msk.bf16.vlgmr.msra.gmra.mrb[20].mxu1 %vm253_vm2, %v1760_v6  ;;  %v2024_v6 = vld [vmem:[#allocation11 + $0x1] sm:$0x1] }
 0xbfe   :  { %2984 = vmatpush3.bf16.msra.mxu1 %v3965_v8  ;;  %2987 = vmatprep.mubr.msk.bf16.mxu1 %vm3667_vm1, %v3666_v0 }
 0xbff   :  { %2964 = vmatmul.mubr.msk.bf16.vlgmr.msra.gmra.mrb[20].mxu0 %vm253_vm2, %v1629_v63  ;;  %2985 = vmatprep.subr.bf16.mxu1 %v3666_v0  ;;  %v1893_v63 = vld [vmem:[#allocation8 + $0x6] sm:$0x1] }
 0xc00   :  { %2968 = vmatpush3.bf16.msra.mxu0 %v3962_v7  ;;  %2971 = vmatprep.mubr.msk.bf16.mxu0 %vm3667_vm1, %v3666_v0 }
 0xc01   :  { %2969 = vmatprep.subr.bf16.mxu0 %v3666_v0 }
 0xc02   :  { %2986 = vmatpush3.bf16.msra.mxu1 %v3975_v11 }
 0xc03   :  { %3007 = vmatprep.subr.bf16.mxu1 %v3666_v0 }
 0xc04   :  { %2970 = vmatpush3.bf16.msra.mxu0 %v3972_v9 }
 0xc05   :  { %2991 = vmatprep.subr.bf16.mxu0 %v3666_v0 }
 0xcc8   :  { %v1581_v18 = vpop.f32.mrb[16].mxu1 }
 0xcc9   :  { %v3098_v20 = vadd.f32 %v4004_v17, %v1581_v18  ;;  %v2957_v21 = vpop.f32.mrb[17].mxu1 }
 0xcca   :  { %v1450_v22 = vpop.f32.mrb[16].mxu0  ;;  %v1584_v23 = vpop.f32.mrb[18].mxu1  ;;  %v4299_v21 = vld [vmem:[#allocation16] sm:$0xff]  }
 0xccb   :  { %v3097_v1 = vadd.f32 %v4006_v19, %v1450_v22  ;;  %3270 = vtanh.f32 %v3098_v20  ;;  %v2941_v24 = vpop.f32.mrb[17].mxu0  ;;  %v2958_v25 = vpop.f32.mrb[19].mxu1  ;;  %v2671_v30 = vmul.f32 -1.442695, %v3098_v20 }
 0xccc   :  { %v1453_v26 = vpop.f32.mrb[18].mxu0 }
 0xccd   :  { %3272 = vtanh.f32 %v3097_v1  ;;  %v2942_v27 = vpop.f32.mrb[19].mxu0  ;;  %v2668_v31 = vmul.f32 -1.442695, %v3097_v1 }
 0xcce   :  { %3274 = vpow2.f32 %v2671_v30 }
 0xccf   :  { %3276 = vpow2.f32 %v2668_v31 }
 0xcd5   :  { %v3271_v28 = vpop.eup %3270 }
 0xcd6   :  { %1597 = vrot.lane.b32.xlu1 %v3271_v28, %s3654_s18 }
 0xcd7   :  { %v3273_v29 = vpop.eup %3272 }
 0xcd8   :  { %1466 = vrot.lane.b32.xlu0 %v3273_v29, %s3654_s18  ;;  %v3275_v32 = vpop.eup %3274 }
 0xcd9   :  { %v3277_v33 = vpop.eup %3276  ;;  %v1591_v34 = vadd.f32 1.0, %v3275_v32 }
 0xcda   :  { %v1460_v35 = vadd.f32 1.0, %v3277_v33 }
 0xcdb   :  { %3278 = vrcp.f32 %v1591_v34  ;;  %v1877_v34 = vld [vmem:[#allocation14 + $0x4] sm:$0x3] }
 0xcdc   :  { %3280 = vrcp.f32 %v1460_v35  ;;  %vm1878_vm13 = vcmp.gt.f32.partialorder %v1877_v34, 0.0 }
 0xce5   :  { %v3279_v37 = vpop.eup %3278 }
 0xce6   :  { %v3281_v40 = vpop.eup %3280  ;;  %v1595_v51 = vmul.f32 %v3279_v37, %v1363_v49 }
 0xce7   :  { %v1464_v43 = vmul.f32 %v3281_v40, %v4202_v45 }
 0xd48   :  { %v1598_v38 = vpop.permute.xlu1 %1597 }
 0xd49   :  { %v1600_v39 = vmul.f32 %v3279_v37, %v1598_v38 }
 0xd4a   :  { %v1467_v41 = vpop.permute.xlu0 %1466 }
 0xd4b   :  { %v1469_v42 = vmul.f32 %v3281_v40, %v1467_v41  ;;  %1602 = vrot.lane.b32.xlu1 %v1600_v39, %s3650_s1  ;;  %v1879_v41 = vsel %vm1878_vm13, 1, %v3668_v16 }
 0xd4d   :  { %1471 = vrot.lane.b32.xlu0 %v1469_v42, %s3650_s1 }
 0xd4f   :  { %1617 = vperm.xlu1 %3197, %v1615_v44  }
 0xdbd   :  { %v1603_v48 = vpop.permute.xlu1 %1602 }
 0xdbe   :  { %v4259_v52 = vadd.f32 %v1603_v48, %v1595_v51 }
 0xdbf   :  { %v1472_v47 = vpop.permute.xlu0 %1471 }
 0xdc0   :  { %3282 = vtanh.f32 %v4259_v52  ;;  %v4263_v57 = vadd.f32 %v1472_v47, %v1464_v43 }
 0xdc2   :  { %3284 = vtanh.f32 %v4263_v57 }
 0xdca   :  { %v3283_v46 = vpop.eup %3282 }
 0xdcb   :  { %1608 = vrot.lane.b32.xlu0 %v3283_v46, %s3654_s18  ;;  %v4343_v46 = vld [vmem:[#allocation22 + $0x8] sm:$0xff]  }
 0xdcc   :  { %v3285_v7 = vpop.eup %3284 }
 0xdcd   :  { %1477 = vrot.lane.b32.xlu1 %v3285_v7, %s3654_s18  ;;  %v4346_v7 = vld [vmem:[#allocation23 + $0x8] sm:$0xff]  }
 0xdce   :  { %v4282_v8 = vpop.permute.xlu1 %1617 }
 0xdcf   :  { %vm1619_vm12 = vcmp.eq.s32.totalorder %v4282_v8, 1 }
 0xdd0   :  { %v1627_v42 = vsel %vm1619_vm12, %v4259_v52, 0.0  ;;  %v4331_v52 = vld [vmem:[#allocation23] sm:$0xff]  }
 0xe3d   :  { %v1609_v45 = vpop.permute.xlu0 %1608 }
 0xe3e   :  { %v4284_v12 = vmul.f32 %v3279_v37, %v1609_v45 }
 0xe3f   :  { %v1478_v13 = vpop.permute.xlu1 %1477 }
 0xe40   :  { %v4287_v11 = vmul.f32 %v3281_v40, %v1478_v13  ;;  %v1626_v9 = vsel %vm1619_vm12, %v4284_v12, 0.0 }
 0xe41   :  { %v1804_v14 = vpack.c.bf16 %v1626_v9, %v1626_v9 }
 0xe42   :  { %v1673_v15 = vpack.c.bf16 %v4287_v11, %v4287_v11 }
 0xe43   :  { %1806 = vrot.lane.b32.xlu0 %v1804_v14, %s3650_s1 }
 0xe44   :  { %1675 = vrot.lane.b32.xlu1 %v1673_v15, %s3650_s1 }
 0xeb5   :  { %v1807_v18 = vpop.permute.xlu0 %1806 }
 0xeb6   :  { %v1676_v20 = vpop.permute.xlu1 %1675  ;;  %2988 = vmatmul.mubr.msk.bf16.vlgmr.msra.gmra.mrb[20].mxu1 %vm253_vm2, %v1807_v18 }
 0xeb7   :  { %2972 = vmatmul.mubr.msk.bf16.vlgmr.msra.gmra.mrb[20].mxu0 %vm253_vm2, %v1676_v20  ;;  %3008 = vmatpush3.bf16.msra.mxu1 %v3951_v2 }
 0xeb8   :  { %2992 = vmatpush3.bf16.msra.mxu0 %v4299_v21  ;;  %3009 = vmatprep.subr.bf16.mxu1 %v3666_v0 }
 0xeb9   :  { %2993 = vmatprep.subr.bf16.mxu0 %v3666_v0  ;;  %2995 = vmatprep.mubr.msk.bf16.mxu0 %vm3667_vm1, %v3666_v0 }
 0xeba   :  { %3011 = vmatprep.mubr.msk.bf16.mxu1 %vm3667_vm1, %v3666_v0 }
 0xebb   :  { %3010 = vmatpush3.bf16.msra.mxu1 %v3958_v4 }
 0xebc   :  { %2994 = vmatpush3.bf16.msra.mxu0 %v3954_v3  ;;  %3015 = vmatprep.subr.bf16.mxu1 %v3666_v0 }
 0xebd   :  { %2999 = vmatprep.subr.bf16.mxu0 %v3666_v0 }
 0xebe   :  { %3012 = vmatmul.mubr.msk.bf16.vlgmr.msra.gmra.mrb[24].mxu1 %vm253_vm2, %v2024_v6 }
 0xebf   :  { %2996 = vmatmul.mubr.msk.bf16.vlgmr.msra.gmra.mrb[24].mxu0 %vm253_vm2, %v1893_v63  ;;  %3016 = vmatpush3.bf16.msra.mxu1 %v4331_v52 }
 0xec0   :  { %3017 = vmatprep.subr.bf16.mxu1 %v3666_v0  ;;  %3003 = vmatprep.mubr.msk.bf16.mxu0 %vm3667_vm1, %v3666_v0 }
 0xec1   :  { %3019 = vmatprep.mubr.msk.bf16.mxu1 %vm3667_vm1, %v3666_v0 }
 0xec3   :  { %3018 = vmatpush3.bf16.msra.mxu1 %v4346_v7 }
 0xec4   :  { %3039 = vmatprep.subr.bf16.mxu1 %v3666_v0 }
 0xf89   :  { %v1845_v2 = vpop.f32.mrb[20].mxu1 }
 0xf8a   :  { %v1714_v22 = vpop.f32.mrb[20].mxu0  ;;  %v3100_v23 = vadd.f32 %v4004_v17, %v1845_v2  ;;  %v2989_v1 = vpop.f32.mrb[21].mxu1 }
 0xf8b   :  { %v3099_v24 = vadd.f32 %v4006_v19, %v1714_v22  ;;  %v2973_v25 = vpop.f32.mrb[21].mxu0  ;;  %v1848_v26 = vpop.f32.mrb[22].mxu1 }
 0xf8c   :  { %3286 = vtanh.f32 %v3100_v23  ;;  %v1717_v27 = vpop.f32.mrb[22].mxu0  ;;  %v2990_v28 = vpop.f32.mrb[23].mxu1  ;;  %v2677_v30 = vmul.f32 -1.442695, %v3100_v23  ;;  %v3339_v25 = vld [vmem:[#allocation17] sm:$0xff]   ;;  %v3340_v26 = vld [vmem:[#allocation16 + $0x8] sm:$0xff]  }
 0xf8d   :  { %3288 = vtanh.f32 %v3099_v24  ;;  %v2974_v4 = vpop.f32.mrb[23].mxu0  ;;  %v2674_v31 = vmul.f32 -1.442695, %v3099_v24  ;;  %v3341_v27 = vld [vmem:[#allocation17 + $0x8] sm:$0xff]  }
 0xf8e   :  { %3290 = vpow2.f32 %v2677_v30  ;;  %v4378_v4 = vld [vmem:[#allocation19] ss:$0 sm:$0xff]  ;;  %v4381_v30 = vld [vmem:[#allocation20] ss:$0 sm:$0xff] }
 0xf8f   :  { %3292 = vpow2.f32 %v2674_v31 }
 0xf96   :  { %v3287_v29 = vpop.eup %3286 }
 0xf97   :  { %v3289_v3 = vpop.eup %3288  ;;  %1861 = vrot.lane.b32.xlu0 %v3287_v29, %s3654_s18 }
 0xf98   :  { %1730 = vrot.lane.b32.xlu1 %v3289_v3, %s3654_s18  ;;  %v3291_v17 = vpop.eup %3290 }
 0xf99   :  { %v3293_v32 = vpop.eup %3292  ;;  %v1855_v19 = vadd.f32 1.0, %v3291_v17 }
 0xf9a   :  { %v1724_v33 = vadd.f32 1.0, %v3293_v32 }
 0xf9b   :  { %3294 = vrcp.f32 %v1855_v19 }
 0xf9c   :  { %3296 = vrcp.f32 %v1724_v33 }
 0xfa5   :  { %v3295_v35 = vpop.eup %3294 }
 0xfa6   :  { %v3297_v37 = vpop.eup %3296  ;;  %v1859_v44 = vmul.f32 %v3295_v35, %v1627_v42 }
 0xfa7   :  { %v1728_v49 = vmul.f32 %v3297_v37, %v4263_v57  ;;  %v4334_v57 = vld [vmem:[#allocation22] sm:$0xff]  }
 0xfa8   :  { %3000 = vmatpush3.bf16.msra.mxu0 %v4334_v57 }
 0xfa9   :  { %3001 = vmatprep.subr.bf16.mxu0 %v3666_v0 }
 0xfac   :  { %3002 = vmatpush3.bf16.msra.mxu0 %v4343_v46 }
 0xfad   :  { %3023 = vmatprep.subr.bf16.mxu0 %v3666_v0 }
0x1009   :  { %v1862_v36 = vpop.permute.xlu0 %1861 }
0x100a   :  { %v1731_v38 = vpop.permute.xlu1 %1730  ;;  %v1864_v39 = vmul.f32 %v3295_v35, %v1862_v36 }
0x100b   :  { %v1733_v40 = vmul.f32 %v3297_v37, %v1731_v38 }
0x100c   :  { %1866 = vrot.lane.b32.xlu0 %v1864_v39, %s3650_s1 }
0x100d   :  { %1735 = vrot.lane.b32.xlu1 %v1733_v40, %s3650_s1 }
0x1010   :  { %1881 = vperm.xlu0 %3196, %v1879_v41  }
0x107e   :  { %v1867_v51 = vpop.permute.xlu0 %1866 }
0x107f   :  { %v1736_v48 = vpop.permute.xlu1 %1735  ;;  %v4323_v43 = vadd.f32 %v1867_v51, %v1859_v44  ;;  %v2141_v44 = vld [vmem:[#allocation14 + $0x2] sm:$0x3] }
0x1080   :  { %v4325_v47 = vadd.f32 %v1736_v48, %v1728_v49  ;;  %vm2142_vm15 = vcmp.gt.f32.partialorder %v2141_v44, 0.0 }
0x1081   :  { %3298 = vtanh.f32 %v4323_v43 }
0x1082   :  { %3300 = vtanh.f32 %v4325_v47 }
0x108b   :  { %v3299_v45 = vpop.eup %3298 }
0x108c   :  { %v3301_v13 = vpop.eup %3300  ;;  %1872 = vrot.lane.b32.xlu1 %v3299_v45, %s3654_s18 }
0x108d   :  { %1741 = vrot.lane.b32.xlu0 %v3301_v13, %s3654_s18  ;;  %v2143_v13 = vsel %vm2142_vm15, 1, %v3668_v16 }
0x108f   :  { %v4353_v9 = vpop.permute.xlu0 %1881 }
0x1090   :  { %vm1883_vm14 = vcmp.eq.s32.totalorder %v4353_v9, 1 }
0x10fe   :  { %v1873_v14 = vpop.permute.xlu1 %1872 }
0x10ff   :  { %v1742_v15 = vpop.permute.xlu0 %1741  ;;  %v4355_v18 = vmul.f32 %v3295_v35, %v1873_v14  ;;  %v1891_v14 = vsel %vm1883_vm14, %v4323_v43, 0.0 }
0x1100   :  { %v4358_v20 = vmul.f32 %v3297_v37, %v1742_v15 }
0x1101   :  { %v1890_v2 = vsel %vm1883_vm14, %v4355_v18, 0.0 }
0x1102   :  { %v1937_v22 = vpack.c.bf16 %v4358_v20, %v4358_v20  ;;  %v2068_v23 = vpack.c.bf16 %v1890_v2, %v1890_v2 }
0x1104   :  { %1939 = vrot.lane.b32.xlu0 %v1937_v22, %s3650_s1  ;;  %2070 = vrot.lane.b32.xlu1 %v2068_v23, %s3650_s1 }
0x1176   :  { %v1940_v1 = vpop.permute.xlu0 %1939  ;;  %v2071_v24 = vpop.permute.xlu1 %2070 }
0x1177   :  { %3004 = vmatmul.mubr.msk.bf16.vlgmr.msra.gmra.mrb[24].mxu0 %vm253_vm2, %v1940_v1  ;;  %3020 = vmatmul.mubr.msk.bf16.vlgmr.msra.gmra.mrb[24].mxu1 %vm253_vm2, %v2071_v24 }
0x1178   :  { %3024 = vmatpush3.bf16.msra.mxu0 %v4299_v21  ;;  %3040 = vmatpush3.bf16.msra.mxu1 %v3339_v25  ;;  %v2157_v25 = vld [vmem:[#allocation8 + $0x7] sm:$0x1] }
0x1179   :  { %3025 = vmatprep.subr.bf16.mxu0 %v3666_v0  ;;  %3027 = vmatprep.mubr.msk.bf16.mxu0 %vm3667_vm1, %v3666_v0 }
0x117a   :  { %3041 = vmatprep.subr.bf16.mxu1 %v3666_v0  ;;  %3043 = vmatprep.mubr.msk.bf16.mxu1 %vm3667_vm1, %v3666_v0 }
0x117c   :  { %3026 = vmatpush3.bf16.msra.mxu0 %v3340_v26  ;;  %3042 = vmatpush3.bf16.msra.mxu1 %v3341_v27  ;;  %v2287_v26 = vld [vmem:[#allocation11] sm:$0x1] }
0x117d   :  { %3031 = vmatprep.subr.bf16.mxu0 %v3666_v0  ;;  %3047 = vmatprep.subr.bf16.mxu1 %v3666_v0 }
0x117f   :  { %3028 = vmatmul.mubr.msk.bf16.vlgmr.msra.gmra.mrb[28].mxu0 %vm253_vm2, %v2157_v25  ;;  %3044 = vmatmul.mubr.msk.bf16.vlgmr.msra.gmra.mrb[28].mxu1 %vm253_vm2, %v2287_v26  ;;  %v1482_v25 = vld [vmem:[#allocation13 + $0x8] sm:$0x3] }
0x1180   :  { %3032 = vmatpush3.bf16.msra.mxu0 %v4334_v57  ;;  %3048 = vmatpush3.bf16.msra.mxu1 %v4331_v52  ;;  %vm1483_vm11 = vcmp.gt.f32.partialorder %v1482_v25, 0.0 }
0x1181   :  { %3033 = vmatprep.subr.bf16.mxu0 %v3666_v0  ;;  %3049 = vmatprep.subr.bf16.mxu1 %v3666_v0 }
0x1182   :  { %3035 = vmatprep.mubr.msk.bf16.mxu0 %vm3667_vm1, %v3666_v0  ;;  %3051 = vmatprep.mubr.msk.bf16.mxu1 %vm3667_vm1, %v3666_v0 }
0x1184   :  { %3034 = vmatpush3.bf16.msra.mxu0 %v4343_v46  ;;  %3050 = vmatpush3.bf16.msra.mxu1 %v4346_v7 }
0x1185   :  { %3083 = vmatprep.subr.bf16.mxu1 %v3670_v50  ;;  %3077 = vmatprep.subr.bf16.mxu0 %v3670_v50 }
0x124a   :  { %v1978_v21 = vpop.f32.mrb[24].mxu0  ;;  %v2109_v28 = vpop.f32.mrb[24].mxu1 }
0x124b   :  { %v3101_v29 = vadd.f32 %v4378_v4, %v1978_v21  ;;  %v3005_v3 = vpop.f32.mrb[25].mxu0  ;;  %v3102_v31 = vadd.f32 %v4381_v30, %v2109_v28  ;;  %v3021_v17 = vpop.f32.mrb[25].mxu1 }
0x124c   :  { %v1981_v32 = vpop.f32.mrb[26].mxu0  ;;  %v2112_v19 = vpop.f32.mrb[26].mxu1 }
0x124d   :  { %3302 = vtanh.f32 %v3101_v29  ;;  %v3006_v33 = vpop.f32.mrb[27].mxu0  ;;  %v3022_v34 = vpop.f32.mrb[27].mxu1  ;;  %v2680_v37 = vmul.f32 -1.442695, %v3101_v29  ;;  %v2683_v38 = vmul.f32 -1.442695, %v3102_v31 }
0x124e   :  { %3304 = vtanh.f32 %v3102_v31 }
0x124f   :  { %3306 = vpow2.f32 %v2680_v37 }
0x1250   :  { %3308 = vpow2.f32 %v2683_v38 }
0x1257   :  { %v3303_v35 = vpop.eup %3302 }
0x1258   :  { %v3305_v36 = vpop.eup %3304  ;;  %1994 = vrot.lane.b32.xlu0 %v3303_v35, %s3654_s18 }
0x1259   :  { %2125 = vrot.lane.b32.xlu1 %v3305_v36, %s3654_s18  ;;  %v3307_v39 = vpop.eup %3306 }
0x125a   :  { %v3309_v40 = vpop.eup %3308  ;;  %v1988_v41 = vadd.f32 1.0, %v3307_v39 }
0x125b   :  { %v2119_v42 = vadd.f32 1.0, %v3309_v40 }
0x125c   :  { %3310 = vrcp.f32 %v1988_v41 }
0x125d   :  { %3312 = vrcp.f32 %v2119_v42 }
0x1266   :  { %v3311_v49 = vpop.eup %3310 }
0x1267   :  { %v3313_v48 = vpop.eup %3312  ;;  %v1992_v15 = vmul.f32 %v3311_v49, %v4325_v47 }
0x1268   :  { %v2123_v22 = vmul.f32 %v3313_v48, %v1891_v14 }
0x12ca   :  { %v1995_v51 = vpop.permute.xlu0 %1994 }
0x12cb   :  { %v1997_v63 = vmul.f32 %v3311_v49, %v1995_v51  ;;  %v2126_v6 = vpop.permute.xlu1 %2125 }
0x12cc   :  { %v2128_v45 = vmul.f32 %v3313_v48, %v2126_v6 }
0x12cd   :  { %1999 = vrot.lane.b32.xlu0 %v1997_v63, %s3650_s1 }
0x12ce   :  { %2130 = vrot.lane.b32.xlu1 %v2128_v45, %s3650_s1  ;;  %v690_v45 = vld [vmem:[#allocation13 + $0x2] sm:$0x3] }
0x12cf   :  { %vm691_vm5 = vcmp.gt.f32.partialorder %v690_v45, 0.0  ;;  %v2447_v45 = vld [vmem:[#allocation25 + $0x18] sm:$0xff] }
0x12d0   :  { %v692_v26 = vsel %vm691_vm5, 1, %v3668_v16 }
0x12d2   :  { %2145 = vperm.xlu1 %3197, %v2143_v13   ;;  %v954_v13 = vld [vmem:[#allocation13 + $0x4] sm:$0x3] }
0x12d3   :  { %vm955_vm7 = vcmp.gt.f32.partialorder %v954_v13, 0.0  ;;  %v1620_v13 = vsel %vm1619_vm12, %v4284_v12, -1e+30 }
0x133f   :  { %v2000_v2 = vpop.permute.xlu0 %1999 }
0x1340   :  { %v4393_v23 = vadd.f32 %v2000_v2, %v1992_v15  ;;  %v2131_v1 = vpop.permute.xlu1 %2130 }
0x1341   :  { %v4395_v24 = vadd.f32 %v2131_v1, %v2123_v22  ;;  %v1218_v1 = vld [vmem:[#allocation13 + $0x6] sm:$0x3] }
0x1342   :  { %3314 = vtanh.f32 %v4393_v23  ;;  %vm1219_vm9 = vcmp.gt.f32.partialorder %v1218_v1, 0.0 }
0x1343   :  { %3316 = vtanh.f32 %v4395_v24 }
0x134c   :  { %v3315_v43 = vpop.eup %3314 }
0x134d   :  { %v3317_v47 = vpop.eup %3316  ;;  %2005 = vrot.lane.b32.xlu1 %v3315_v43, %s3654_s18  ;;  %v956_v43 = vsel %vm955_vm7, 1, %v3668_v16 }
0x134e   :  { %2136 = vrot.lane.b32.xlu0 %v3317_v47, %s3654_s18  ;;  %v1746_v47 = vld [vmem:[#allocation13 + $0xa] sm:$0x3] }
0x134f   :  { %vm1747_vm13 = vcmp.gt.f32.partialorder %v1746_v47, 0.0 }
0x1351   :  { %v4413_v52 = vpop.permute.xlu1 %2145 }
0x1352   :  { %vm2147_vm3 = vcmp.eq.s32.totalorder %v4413_v52, 1 }
0x13bf   :  { %v2006_v57 = vpop.permute.xlu1 %2005 }
0x13c0   :  { %v4415_v27 = vmul.f32 %v3311_v49, %v2006_v57  ;;  %v2137_v21 = vpop.permute.xlu0 %2136  ;;  %v2010_v57 = vld [vmem:[#allocation13 + $0xc] sm:$0x3] }
0x13c1   :  { %v4417_v28 = vmul.f32 %v3313_v48, %v2137_v21  ;;  %v1220_v21 = vsel %vm1219_vm9, 1, %v3668_v16  ;;  %vm2011_vm15 = vcmp.gt.f32.partialorder %v2010_v57, 0.0 }
0x13c2   :  { %v2201_v46 = vpack.c.bf16 %v4415_v27, %v4415_v27 }
0x13c3   :  { %v2154_v7 = vsel %vm2147_vm3, %v4417_v28, 0.0  ;;  %v2148_v12 = vsel %vm2147_vm3, %v4417_v28, -1e+30 }
0x13c4   :  { %2203 = vrot.lane.b32.xlu0 %v2201_v46, %s3650_s1  ;;  %v2331_v29 = vpack.c.bf16 %v2154_v7, %v2154_v7  ;;  %v1484_v46 = vsel %vm1483_vm11, 1, %v3668_v16  ;;  %v2274_v7 = vld [vmem:[#allocation13 + $0xe] sm:$0x3] }
0x13c6   :  { %2333 = vrot.lane.b32.xlu1 %v2331_v29, %s3650_s1  ;;  %v2403_v29 = vld [vmem:[#allocation14] sm:$0x3] }
0x13c7   :  { %vm2404_vm5 = vcmp.gt.f32.partialorder %v2403_v29, 0.0 }
0x1436   :  { %v2204_v3 = vpop.permute.xlu0 %2203 }
0x1437   :  { %3036 = vmatmul.mubr.msk.bf16.vlgmr.msra.gmra.mrb[28].mxu0 %vm253_vm2, %v2204_v3  ;;  %v1748_v3 = vsel %vm1747_vm13, 1, %v3668_v16 }
0x1438   :  { %v2334_v31 = vpop.permute.xlu1 %2333  ;;  %3063 = vmatprep.mubr.msk.f32.mxu0 %vm3667_vm1, %v3666_v0 }
0x1439   :  { %3052 = vmatmul.mubr.msk.bf16.vlgmr.msra.gmra.mrb[28].mxu1 %vm253_vm2, %v2334_v31  ;;  %v2012_v31 = vsel %vm2011_vm15, 1, %v3668_v16 }
0x143a   :  { %3074 = vmatprep.mubr.msk.f32.mxu1 %vm3667_vm1, %v3666_v0 }
0x150a   :  { %v2242_v17 = vpop.f32.mrb[28].mxu0 }
0x150b   :  { %v3103_v32 = vadd.f32 %v4378_v4, %v2242_v17  ;;  %v3037_v19 = vpop.f32.mrb[29].mxu0 }
0x150c   :  { %v2245_v33 = vpop.f32.mrb[30].mxu0  ;;  %v2372_v34 = vpop.f32.mrb[28].mxu1 }
0x150d   :  { %3318 = vtanh.f32 %v3103_v32  ;;  %v3038_v35 = vpop.f32.mrb[31].mxu0  ;;  %v3104_v36 = vadd.f32 %v4381_v30, %v2372_v34  ;;  %v3053_v37 = vpop.f32.mrb[29].mxu1  ;;  %v2686_v0 = vmul.f32 -1.442695, %v3103_v32  ;;  %v386_v30 = vld [vmem:[#allocation13] sm:$0x3] }
0x150e   :  { %v2375_v38 = vpop.f32.mrb[30].mxu1  ;;  %vm387_vm1 = vcmp.gt.f32.partialorder %v386_v30, 0.0  ;;  %v2405_v32 = vsel %vm2404_vm5, 1, %v3668_v16  ;;  %v3669_v33 = vmov -1e+30   ;;  %v2155_v35 = vsel %vm2147_vm3, %v4395_v24, 0.0 }
0x150f   :  { %v3054_v39 = vpop.f32.mrb[31].mxu1  ;;  %3320 = vtanh.f32 %v3104_v36  ;;  %v2689_v42 = vmul.f32 -1.442695, %v3104_v36  ;;  %v388_v22 = vsel %vm387_vm1, 1, %v3668_v16  ;;  %vm2275_vm1 = vcmp.gt.f32.partialorder %v2274_v7, 0.0 }
0x1510   :  { %3322 = vpow2.f32 %v2686_v0  ;;  %v2276_v17 = vsel %vm2275_vm1, 1, %v3668_v16  ;;  %221 = vst.msk [vmem:[#allocation6] sm:$0x3] %vm216_vm0, %v3669_v33  ;;  %222 = vst.msk [vmem:[#allocation7] sm:$0x3] %vm216_vm0, %v3669_v33 }
0x1511   :  { %3324 = vpow2.f32 %v2689_v42  ;;  %v564_v0 = vsel %vm563_vm4, %v4040_v60, -1e+30 }
0x1517   :  { %v3319_v40 = vpop.eup %3318  ;;  %v228_v33 = vld [vmem:[#allocation7] sm:$0x3] }
0x1518   :  { %2258 = vrot.lane.b32.xlu0 %v3319_v40, %s3654_s18 }
0x1519   :  { %v3321_v41 = vpop.eup %3320 }
0x151a   :  { %2388 = vrot.lane.b32.xlu1 %v3321_v41, %s3654_s18  ;;  %v3323_v4 = vpop.eup %3322 }
0x151b   :  { %v3325_v44 = vpop.eup %3324  ;;  %v2252_v49 = vadd.f32 1.0, %v3323_v4 }
0x151c   :  { %v2382_v51 = vadd.f32 1.0, %v3325_v44 }
0x151d   :  { %3326 = vrcp.f32 %v2252_v49 }
0x151e   :  { %3328 = vrcp.f32 %v2382_v51  ;;  %v2448_v51 = vld [vmem:[#allocation25 + $0x20] sm:$0xff] }
0x1527   :  { %v4437_v48 = vpop.eup %3326 }
0x1528   :  { %v4440_v14 = vpop.eup %3328  ;;  %v2256_v19 = vmul.f32 %v4437_v48, %v4393_v23 }
0x1529   :  { %v2386_v37 = vmul.f32 %v4440_v14, %v2155_v35 }
0x158a   :  { %v2259_v63 = vpop.permute.xlu0 %2258 }
0x158b   :  { %v2261_v6 = vmul.f32 %v4437_v48, %v2259_v63  ;;  %v2449_v63 = vld [vmem:[#allocation25 + $0x28] sm:$0xff] }
0x158c   :  { %v2389_v15 = vpop.permute.xlu1 %2388 }
0x158d   :  { %2263 = vrot.lane.b32.xlu0 %v2261_v6, %s3650_s1  ;;  %v2391_v2 = vmul.f32 %v4440_v14, %v2389_v15  ;;  %v2446_v6 = vld [vmem:[#allocation25 + $0x10] sm:$0xff] }
0x158e   :  { %v3087_v62 = vpack.c.bf16 %v2447_v45, %v2446_v6  ;;  %v2692_v45 = vld [vmem:[#allocation26] ss:$0 sm:$0xff] }
0x158f   :  { %2393 = vrot.lane.b32.xlu1 %v2391_v2, %s3650_s1 }
0x1591   :  { %390 = vperm.xlu0 %3196, %v388_v22   ;;  %v2451_v22 = vld [vmem:[#allocation25 + $0x38] sm:$0xff] }
0x1593   :  { %694 = vperm.xlu1 %3197, %v692_v26  }
0x1595   :  { %958 = vperm.xlu0 %3196, %v956_v43  }
0x1597   :  { %1222 = vperm.xlu1 %3197, %v1220_v21  }
0x1599   :  { %1486 = vperm.xlu0 %3196, %v1484_v46  }
0x159b   :  { %1750 = vperm.xlu1 %3197, %v1748_v3  }
0x159d   :  { %2014 = vperm.xlu0 %3196, %v2012_v31  }
0x159f   :  { %2278 = vperm.xlu1 %3197, %v2276_v17   ;;  %v227_v17 = vld [vmem:[#allocation6] sm:$0x3] }
0x15a1   :  { %2407 = vperm.xlu0 %3196, %v2405_v32  }
0x15ff   :  { %v2264_v34 = vpop.permute.xlu0 %2263 }
0x1600   :  { %v4461_v36 = vadd.f32 %v2264_v34, %v2256_v19 }
0x1601   :  { %v2394_v16 = vpop.permute.xlu1 %2393 }
0x1602   :  { %3330 = vtanh.f32 %v4461_v36  ;;  %v4465_v38 = vadd.f32 %v2394_v16, %v2386_v37 }
0x1604   :  { %3332 = vtanh.f32 %v4465_v38 }
0x160c   :  { %v3331_v23 = vpop.eup %3330 }
0x160d   :  { %2269 = vrot.lane.b32.xlu1 %v3331_v23, %s3654_s18 }
0x160e   :  { %v3333_v39 = vpop.eup %3332 }
0x160f   :  { %2399 = vrot.lane.b32.xlu0 %v3333_v39, %s3654_s18 }
0x1610   :  { %v391_v40 = vpop.permute.xlu0 %390 }
0x1611   :  { %vm392_vm7 = vcmp.eq.s32.totalorder %v391_v40, 1 }
0x1612   :  { %v393_v24 = vsel %vm392_vm7, %v4046_v5, -1e+30  ;;  %v695_v41 = vpop.permute.xlu1 %694  ;;  %v828_v5 = vsel %vm827_vm6, %v4101_v55, -1e+30  ;;  %v2444_v55 = vld [vmem:[#allocation25] sm:$0xff] }
0x1613   :  { %395 = vrot.lane.b32.xlu1 %v393_v24, %s3650_s1  ;;  %vm696_vm9 = vcmp.eq.s32.totalorder %v695_v41, 1  ;;  %566 = vrot.lane.b32.xlu0 %v564_v0, %s3650_s1 }
0x1614   :  { %v959_v42 = vpop.permute.xlu0 %958  ;;  %v697_v4 = vsel %vm696_vm9, %v4107_v59, -1e+30 }
0x1615   :  { %vm960_vm11 = vcmp.eq.s32.totalorder %v959_v42, 1 }
0x1616   :  { %v1223_v44 = vpop.permute.xlu1 %1222  ;;  %v961_v49 = vsel %vm960_vm11, %v4168_v61, -1e+30  ;;  %v2445_v61 = vld [vmem:[#allocation25 + $0x8] sm:$0xff] }
0x1617   :  { %699 = vrot.lane.b32.xlu1 %v697_v4, %s3650_s1  ;;  %830 = vrot.lane.b32.xlu0 %v828_v5, %s3650_s1  ;;  %vm1224_vm13 = vcmp.eq.s32.totalorder %v1223_v44, 1  ;;  %v3084_v54 = vpack.c.bf16 %v2445_v61, %v2444_v55 }
0x1618   :  { %v1487_v60 = vpop.permute.xlu0 %1486  ;;  %v1225_v59 = vsel %vm1224_vm13, %v4229_v10, -1e+30  ;;  %v3078_v10 = vpack.c.bf16 %v2449_v63, %v2448_v51 }
0x1619   :  { %vm1488_vm4 = vcmp.eq.s32.totalorder %v1487_v60, 1  ;;  %3085 = vmatpush3.bf16.msra.mxu1 %v3084_v54 }
0x161a   :  { %v1751_v30 = vpop.permute.xlu1 %1750  ;;  %v1489_v56 = vsel %vm1488_vm4, %v4287_v11, -1e+30  ;;  %3079 = vmatpush3.bf16.msra.mxu0 %v3078_v10  ;;  %3086 = vmatprep.subr.bf16.mxu1 %v3670_v50  ;;  %v1884_v11 = vsel %vm1883_vm14, %v4355_v18, -1e+30 }
0x161b   :  { %963 = vrot.lane.b32.xlu1 %v961_v49, %s3650_s1  ;;  %1094 = vrot.lane.b32.xlu0 %v1092_v58, %s3650_s1  ;;  %vm1752_vm6 = vcmp.eq.s32.totalorder %v1751_v30, 1 }
0x161c   :  { %v2015_v15 = vpop.permute.xlu0 %2014  ;;  %3080 = vmatprep.subr.bf16.mxu0 %v3670_v50  ;;  %v1753_v2 = vsel %vm1752_vm6, %v4358_v20, -1e+30  ;;  %v2450_v20 = vld [vmem:[#allocation25 + $0x30] sm:$0xff] }
0x161d   :  { %3088 = vmatpush3.bf16.msra.mxu1 %v3087_v62  ;;  %vm2016_vm8 = vcmp.eq.s32.totalorder %v2015_v15, 1  ;;  %v3081_v1 = vpack.c.bf16 %v2451_v22, %v2450_v20 }
0x161e   :  { %v2017_v8 = vsel %vm2016_vm8, %v4415_v27, -1e+30  ;;  %v2279_v25 = vpop.permute.xlu1 %2278 }
0x161f   :  { %1227 = vrot.lane.b32.xlu1 %v1225_v59, %s3650_s1  ;;  %1358 = vrot.lane.b32.xlu0 %v1356_v53, %s3650_s1  ;;  %vm2280_vm10 = vcmp.eq.s32.totalorder %v2279_v25, 1 }
0x1620   :  { %3082 = vmatpush3.bf16.msra.mxu0 %v3081_v1  ;;  %v2408_v26 = vpop.permute.xlu0 %2407 }
0x1621   :  { %vm2409_vm12 = vcmp.eq.s32.totalorder %v2408_v26, 1 }
0x1623   :  { %1491 = vrot.lane.b32.xlu1 %v1489_v56, %s3650_s1  ;;  %1622 = vrot.lane.b32.xlu0 %v1620_v13, %s3650_s1 }
0x1627   :  { %1755 = vrot.lane.b32.xlu1 %v1753_v2, %s3650_s1  ;;  %1886 = vrot.lane.b32.xlu0 %v1884_v11, %s3650_s1 }
0x162b   :  { %2019 = vrot.lane.b32.xlu1 %v2017_v8, %s3650_s1  ;;  %2150 = vrot.lane.b32.xlu0 %v2148_v12, %s3650_s1 }
0x167f   :  { %v2270_v9 = vpop.permute.xlu1 %2269 }
0x1680   :  { %v2272_v18 = vmul.f32 %v4437_v48, %v2270_v9  ;;  %v2417_v48 = vsel %vm2409_vm12, %v4465_v38, 0.0 }
0x1681   :  { %v2400_v43 = vpop.permute.xlu0 %2399 }
0x1682   :  { %v2281_v27 = vsel %vm2280_vm10, %v2272_v18, -1e+30  ;;  %v2402_v47 = vmul.f32 %v4440_v14, %v2400_v43 }
0x1683   :  { %2283 = vrot.lane.b32.xlu1 %v2281_v27, %s3650_s1 }
0x1684   :  { %v2410_v52 = vsel %vm2409_vm12, %v2402_v47, -1e+30  ;;  %v2416_v28 = vsel %vm2409_vm12, %v2402_v47, 0.0 }
0x1685   :  { %2412 = vrot.lane.b32.xlu0 %v2410_v52, %s3650_s1  ;;  %v396_v57 = vpop.permute.xlu1 %395  ;;  %v567_v21 = vpop.permute.xlu0 %566 }
0x1686   :  { %v398_v19 = vmax.f32 %v227_v17, %v396_v57 }
0x1687   :  { %2419 = vrot.lane.b32.xlu1 %v2272_v18, %s3650_s1 }
0x1689   :  { %2425 = vrot.lane.b32.xlu0 %v4461_v36, %s3671_s11  ;;  %v700_v14 = vpop.permute.xlu1 %699  ;;  %v831_v46 = vpop.permute.xlu0 %830  ;;  %v569_v36 = vmax.f32 %v228_v33, %v567_v21 }
0x168a   :  { %v702_v35 = vmax.f32 %v398_v19, %v700_v14 }
0x168b   :  { %2430 = vrot.lane.b32.xlu1 %v2416_v28, %s3650_s1  ;;  %v833_v23 = vmax.f32 %v569_v36, %v831_v46  ;;  %s3672_s1 = smov [#allocation28]  }
0x168c   :  { %s2613_s18 = sshll.u32 %s3672_s1, 4  ;;  %s2614_s18 = int_to_ptr.vmem [resolvable:$true] %s2613_s18 }
0x168d   :  { %2435 = vrot.lane.b32.xlu0 %v2417_v48, %s3671_s11  ;;  %v964_v7 = vpop.permute.xlu1 %963  ;;  %v1095_v29 = vpop.permute.xlu0 %1094  ;;  %s3608_s17 = scalar_lea.vmem %s2614_s18, 32  ;;  %p3613_p13 = scmp.lt.s32.totalorder %s2614_s18, %s2614_s18 }
0x168e   :  { %v966_v16 = vmax.f32 %v702_v35, %v964_v7  ;;  %v1097_v40 = vmax.f32 %v833_v23, %v1095_v29  ;;  %p3609_p12 = scmp.ne.s32.totalorder %s2614_s18, %s3608_s17  ;;  %p3614_p0 = scmp.lt.s32.totalorder %s3608_s17, %s3608_s17 }
0x1690   :  { %p3615_p1 = por %p3614_p0, %p3613_p13 }
0x1691   :  { %v1228_v3 = vpop.permute.xlu1 %1227  ;;  %v1359_v31 = vpop.permute.xlu0 %1358 }
0x1692   :  { %v1230_v38 = vmax.f32 %v966_v16, %v1228_v3  ;;  %v1361_v41 = vmax.f32 %v1097_v40, %v1359_v31  ;;  %p3616_p2 = pnand %p3615_p1, %p3609_p12 }
0x1695   :  { %v1492_v32 = vpop.permute.xlu1 %1491  ;;  %v1623_v34 = vpop.permute.xlu0 %1622 }
0x1696   :  { %v1494_v24 = vmax.f32 %v1230_v38, %v1492_v32  ;;  %v1625_v4 = vmax.f32 %v1361_v41, %v1623_v34 }
0x1699   :  { %v1756_v37 = vpop.permute.xlu1 %1755  ;;  %v1887_v39 = vpop.permute.xlu0 %1886 }
0x169a   :  { %v1758_v42 = vmax.f32 %v1494_v24, %v1756_v37  ;;  %v1889_v49 = vmax.f32 %v1625_v4, %v1887_v39 }
0x169d   :  { %v2020_v0 = vpop.permute.xlu1 %2019  ;;  %v2151_v44 = vpop.permute.xlu0 %2150 }
0x169e   :  { %v2022_v5 = vmax.f32 %v1758_v42, %v2020_v0  ;;  %v2153_v59 = vmax.f32 %v1889_v49, %v2151_v44 }
0x16f5   :  { %v2284_v58 = vpop.permute.xlu1 %2283 }
0x16f6   :  { %v2286_v60 = vmax.f32 %v2022_v5, %v2284_v58 }
0x16f7   :  { %v2413_v53 = vpop.permute.xlu0 %2412 }
0x16f8   :  { %2439 = vst.msk [vmem:[#allocation6] sm:$0x3] %vm216_vm0, %v2286_v60  ;;  %3075 = vmatmul.mubr.msk.f32.vlgmr.msra.gmra.mrb[32].mxu1 %vm253_vm2, %v2286_v60  ;;  %v2415_v55 = vmax.f32 %v2153_v59, %v2413_v53 }
0x16f9   :  { %v2420_v61 = vpop.permute.xlu1 %2419 }
0x16fa   :  { %2423 = vst.msk [vmem:[#allocation2] sm:$0x3] %vm216_vm0, %v2420_v61  ;;  %2440 = vst.msk [vmem:[#allocation7] sm:$0x3] %vm216_vm0, %v2415_v55  ;;  %3064 = vmatmul.mubr.msk.f32.vlgmr.msra.gmra.mrb[32].mxu0 %vm253_vm2, %v2415_v55 }
0x16fb   :  { %v2426_v51 = vpop.permute.xlu0 %2425 }
0x16fc   :  { %2428 = vst.msk [vmem:[#allocation3] sm:$0x3] %vm216_vm0, %v2426_v51 }
0x16fd   :  { %v2431_v30 = vpop.permute.xlu1 %2430 }
0x16fe   :  { %2433 = vst.msk [vmem:[#allocation4] sm:$0x3] %vm216_vm0, %v2431_v30 }
0x16ff   :  { %v2436_v50 = vpop.permute.xlu0 %2435 }
0x1700   :  { %2438 = vst.msk [vmem:[#allocation5] sm:$0x3] %vm216_vm0, %v2436_v50 }
0x17cb   :  { %v2594_v54 = vpop.f32.mrb[32].mxu1 }
0x17cc   :  { %v3076_v63 = vpop.f32.mrb[33].mxu1 }
0x17cd   :  { %v2521_v6 = vpop.f32.mrb[32].mxu0 }
0x17ce   :  { %v2595_v10 = vadd.f32 %v2594_v54, %v2521_v6  ;;  %v3065_v56 = vpop.f32.mrb[33].mxu0 }
0x17d0   :  { %v2605_v62 = vadd.f32 %v2692_v45, %v2595_v10 }
0x17d2   :  { %2606 = vst.msk [vmem:[#allocation28] sm:$0x3] %vm216_vm0, %v2605_v62 }
0x17d3   :  { %3619 = shalt.err (!%p3616_p2)
}
0x17d4   :  { %s3620_s3 = scalar_lea.hbm %s4553_s12, 32 }
0x17d5   :  { %p3621_p3 = scmp.ne.s32.totalorder %s4553_s12, %s3620_s3  ;;  %p3624_p4 = scmp.lt.u32.totalorder %s3620_s3, %s4553_s12 }
0x17d7   :  { %p3626_p5 = pnand %p3624_p4, %p3621_p3 }
0x17d9   :  { %3629 = shalt.err (!%p3626_p5)
}
0x17da   :  { %2616 = dma.vmem_to_hbm [thread:$0]  %s2614_s18, 32, %s4553_s12, [#allocation10]  }
0x17db   :  { %3644 = dma.done.wait [#allocation10], 32  }
0x17dc   :  { %3645 = vsyncadd [#allocation10], 4294967264 }
0x17dd   :  { %2620 = vsyncpa [#allocation9], 1 }
0x17de   :  { %2621 = vsyncpa [#allocation12], 1 }
0x17df   :  { %2622 = vsyncpa [#allocation15], 1 }
0x17e0   :  { %2623 = vsyncpa [#allocation18], 1 }
0x17e1   :  { %2624 = vsyncpa [#allocation21], 1 }
0x17e2   :  { %2625 = vsyncpa [#allocation24], 1 }
0x17e3   :  { %2626 = vsyncpa [#allocation27], 1 }
0x17e4   :  { %2627 = vsyncpa [#allocation10], 1 }

</bundles_post_ra>
